<compile_context>
chip_gen: v5e
topology: v5e:2x2
jax: 0.10.0
libtpu: 0.0.40
codegen_flags: <defaults>
</compile_context>

<pallas_src>
import jax
import jax.numpy as jnp
from jax import lax
from jax.experimental import pallas as pl
from jax.experimental.pallas import tpu as pltpu

EPS = 1e-5


def _fill_shifted_pad(pad_ref, img, Cp):
    """Write img (H, W, Cp) bf16 into pad_ref (H+2, W, 3*Cp).

    Lane-group dx (lanes [dx*Cp:(dx+1)*Cp)) holds columns dx..dx+W-1 of the
    reflect-1-padded image, i.e. the column-shifted view used by conv tap
    column dx.  Requires H >= 2 and W >= 2 (reflection excludes the edge).
    """
    H, W, _ = img.shape
    # dx = 1: padded columns 1..W are the image itself.
    pad_ref[pl.ds(1, H), :, pl.ds(Cp, Cp)] = img
    # dx = 0: padded columns 0..W-1 = [reflect(col 1), img cols 0..W-2].
    pad_ref[pl.ds(1, H), pl.ds(0, 1), pl.ds(0, Cp)] = img[:, 1:2, :]
    pad_ref[pl.ds(1, H), pl.ds(1, W - 1), pl.ds(0, Cp)] = img[:, :W - 1, :]
    # dx = 2: padded columns 2..W+1 = [img cols 1..W-1, reflect(col W-2)].
    pad_ref[pl.ds(1, H), pl.ds(0, W - 1), pl.ds(2 * Cp, Cp)] = img[:, 1:, :]
    pad_ref[pl.ds(1, H), pl.ds(W - 1, 1), pl.ds(2 * Cp, Cp)] = img[:, W - 2:W - 1, :]
    # Reflected top / bottom rows for all three lane groups at once, copied
    # from interior rows already written above.
    pad_ref[pl.ds(0, 1), :, :] = pad_ref[pl.ds(2, 1), :, :]
    pad_ref[pl.ds(H + 1, 1), :, :] = pad_ref[pl.ds(H - 1, 1), :, :]


def _conv3x3(pad_ref, w_ref, H, W, Cp):
    """3x3 'VALID' conv over the dx-grouped padded scratch.

    pad_ref: (H+2, W, 3*Cp) bf16 (already filled by _fill_shifted_pad)
    w_ref:   (3, 3*Cp, Cp) bf16; w_ref[dy] has its K axis ordered [dx, Cin]
    returns: (H*W, Cp) f32

    Each dy tap is a leading-axis slice of the scratch -> contiguous load,
    free reshape to (H*W, 3*Cp), one fat K=3*Cp MXU matmul (3 per conv).
    """
    acc = jnp.dot(pad_ref[pl.ds(0, H), :, :].reshape(H * W, 3 * Cp), w_ref[0],
                  preferred_element_type=jnp.float32)
    for dy in (1, 2):
        acc = acc + jnp.dot(
            pad_ref[pl.ds(dy, H), :, :].reshape(H * W, 3 * Cp), w_ref[dy],
            preferred_element_type=jnp.float32)
    return acc


def _instance_norm_1pass(y, inv_hw):
    """Affine-free InstanceNorm on (H*W, C) f32 with single-pass statistics.

    Note: E[x^2]-E[x]^2 loses a little precision vs. two-pass when |mean|>>std;
    the max(.,0) guard keeps it NaN-free and it is well within test tolerance.
    """
    s = jnp.sum(y, axis=0, keepdims=True)
    s2 = jnp.sum(y * y, axis=0, keepdims=True)
    mean = s * inv_hw
    var = jnp.maximum(s2 * inv_hw - mean * mean, 0.0)
    return (y - mean) * lax.rsqrt(var + EPS)


def _resnet_block_kernel(x_ref, w1_ref, w2_ref, o_ref, pad_ref):
    # One batch element per grid step; batch dim is squeezed out of the refs.
    H, W, Cp = x_ref.shape
    inv_hw = 1.0 / (H * W)

    # ---- conv block, first half: ReflPad -> Conv3x3 -> IN -> ReLU ----
    # x is read from x_ref and cast to bf16 immediately; no f32 copy of the
    # input is kept live across the convs (x_ref itself stays VMEM-resident).
    _fill_shifted_pad(pad_ref, x_ref[...].astype(jnp.bfloat16), Cp)
    y = _conv3x3(pad_ref, w1_ref, H, W, Cp)              # (H*W, Cp) f32
    y = _instance_norm_1pass(y, inv_hw)
    y = jnp.maximum(y, 0.0)                              # ReLU
    # TODO(synk): dropout path (use_dropout=True) not implemented; config uses False.

    # ---- second half: ReflPad -> Conv3x3 -> IN (scratch reused) ----
    _fill_shifted_pad(pad_ref, y.astype(jnp.bfloat16).reshape(H, W, Cp), Cp)
    y = _conv3x3(pad_ref, w2_ref, H, W, Cp)
    y = _instance_norm_1pass(y, inv_hw)

    # ---- residual add (re-read x_ref instead of a held f32 copy) ----
    o_ref[...] = (x_ref[...] + y.reshape(H, W, Cp)).astype(o_ref.dtype)


def _vmem_limit_bytes():
    """Generation-aware VMEM budget: 3/4 of physical capacity, capped at 96 MiB."""
    try:
        cap = pltpu.get_tpu_info().vmem_capacity_bytes
    except Exception:
        cap = 64 * 1024 * 1024  # conservative (v7x per-TC) fallback
    return int(min(96 * 1024 * 1024, (cap * 3) // 4))


def _weight_spec(shape):
    # Constant index_map -> the weight block never changes; single-buffer it
    # (saves one full weight copy of VMEM) when the installed JAX supports it.
    kwargs = {}
    if hasattr(pl, "Buffered"):
        kwargs["pipeline_mode"] = pl.Buffered(1)
    return pl.BlockSpec(shape, lambda n: (0, 0, 0), **kwargs)


def resnet_block_forward(x_nchw, w1, b1, w2, b2):
    """x_nchw: (N, C, H, W) fp32; w*: (C, C, 3, 3) OIHW; b*: (C,).

    b1/b2 are accepted for interface parity but are mathematical no-ops:
    a per-channel conv bias is cancelled exactly by the affine-free
    InstanceNorm that immediately follows each conv.
    """
    del b1, b2
    N, C, H, W = x_nchw.shape
    Cp = max(128, ((C + 127) // 128) * 128)   # lane-dense channel padding

    # NOTE: for a chained multi-block network, keep activations in padded NHWC
    # across blocks so these transposes / channel pads amortize instead of
    # repeating per block.
    x = jnp.transpose(x_nchw, (0, 2, 3, 1)).astype(jnp.float32)   # NHWC
    if Cp != C:
        x = jnp.pad(x, ((0, 0), (0, 0), (0, 0), (0, Cp - C)))

    def prep_w(w):
        wh = jnp.transpose(w, (2, 3, 1, 0)).astype(jnp.float32)   # OIHW -> HWIO
        if Cp != C:
            wh = jnp.pad(wh, ((0, 0), (0, 0), (0, Cp - C), (0, Cp - C)))
        # (kh, kw, Cin, Cout) -> (3, 3*Cp, Cp): per-dy weight, K axis ordered
        # [dx, Cin] to match the dx lane groups of the pad scratch.
        return wh.reshape(3, 3 * Cp, Cp).astype(jnp.bfloat16)

    w1p = prep_w(w1)
    w2p = prep_w(w2)

    # TODO(synk): whole-image blocks only; a row-tiled two-pass fallback (conv
    # over H tiles with a +1 halo plus partial InstanceNorm sums) is needed for
    # images whose per-image working set exceeds the VMEM budget (mainly v7x).
    # TODO(synk): for N < 2 on v7x, add an H-split parallel grid axis so both
    # TensorCores are busy (requires a cross-half InstanceNorm reduction).
    out = pl.pallas_call(
        _resnet_block_kernel,
        out_shape=jax.ShapeDtypeStruct((N, H, W, Cp), jnp.float32),
        grid_spec=pltpu.PrefetchScalarGridSpec(
            num_scalar_prefetch=0,
            grid=(N,),
            in_specs=[
                pl.BlockSpec((None, H, W, Cp), lambda n: (n, 0, 0, 0)),
                _weight_spec((3, 3 * Cp, Cp)),
                _weight_spec((3, 3 * Cp, Cp)),
            ],
            out_specs=pl.BlockSpec((None, H, W, Cp), lambda n: (n, 0, 0, 0)),
            scratch_shapes=[pltpu.VMEM((H + 2, W, 3 * Cp), jnp.bfloat16)],
        ),
        compiler_params=pltpu.CompilerParams(
            dimension_semantics=("parallel",),
            vmem_limit_bytes=_vmem_limit_bytes(),
        ),
    )(x, w1p, w2p)

    out = out[..., :C]
    return jnp.transpose(out, (0, 3, 1, 2))   # back to NCHW


def _reference_forward(x_nchw, w1, b1, w2, b2):
    """Plain-JAX reference (NHWC path, bf16 conv operands like the kernel).

    Biases are omitted because the affine-free InstanceNorm cancels them
    exactly (same as the PyTorch module's numerics up to f32 rounding).
    """
    del b1, b2
    x = jnp.transpose(x_nchw, (0, 2, 3, 1)).astype(jnp.float32)
    w1h = jnp.transpose(w1, (2, 3, 1, 0)).astype(jnp.bfloat16)
    w2h = jnp.transpose(w2, (2, 3, 1, 0)).astype(jnp.bfloat16)

    def conv(h, w):
        hp = jnp.pad(h, ((0, 0), (1, 1), (1, 1), (0, 0)),
                     mode="reflect").astype(jnp.bfloat16)
        return lax.conv_general_dilated(
            hp, w, window_strides=(1, 1), padding="VALID",
            dimension_numbers=("NHWC", "HWIO", "NHWC"),
            preferred_element_type=jnp.float32)

    def inorm(y):
        mean = jnp.mean(y, axis=(1, 2), keepdims=True)
        var = jnp.mean((y - mean) ** 2, axis=(1, 2), keepdims=True)
        return (y - mean) * lax.rsqrt(var + EPS)

    h = jnp.maximum(inorm(conv(x, w1h)), 0.0)
    h = inorm(conv(h, w2h))
    return jnp.transpose(x + h, (0, 3, 1, 2))


if __name__ == "__main__":
    N, C, H, W = 2, 4, 16, 16

    key = jax.random.PRNGKey(0)
    kx, kw1, kb1, kw2, kb2 = jax.random.split(key, 5)
    x = jax.random.normal(kx, (N, C, H, W), jnp.float32)
    w1 = jax.random.normal(kw1, (C, C, 3, 3), jnp.float32) * 0.1
    b1 = jax.random.normal(kb1, (C,), jnp.float32) * 0.1
    w2 = jax.random.normal(kw2, (C, C, 3, 3), jnp.float32) * 0.1
    b2 = jax.random.normal(kb2, (C,), jnp.float32) * 0.1

    out = jax.block_until_ready(resnet_block_forward(x, w1, b1, w2, b2))
    ref = jax.block_until_ready(_reference_forward(x, w1, b1, w2, b2))

    assert out.shape == (N, C, H, W)
    max_err = float(jnp.max(jnp.abs(out - ref)))
    assert max_err < 1e-2, f"max abs error {max_err}"

    print("KERNEL_OK")
</pallas_src>

<mosaic_0001>
module attributes {stable_mosaic.version = 11 : i64} {
  func.func @_resnet_block_kernel(%arg0: i32, %arg1: memref<1x16x16x128xf32, #tpu.memory_space<vmem>>, %arg2: memref<3x384x128xbf16, #tpu.memory_space<vmem>>, %arg3: memref<3x384x128xbf16, #tpu.memory_space<vmem>>, %arg4: memref<1x16x16x128xf32, #tpu.memory_space<vmem>>, %arg5: memref<18x16x384xbf16, #tpu.memory_space<vmem>>) attributes {dimension_semantics = [#tpu.dimension_semantics<parallel>], iteration_bounds = array<i64: 2>, scalar_prefetch = 0 : i64, scratch_operands = 1 : i64, tpu.core_type = #tpu.core_type<tc>, window_params = [{transform_indices = @transform_0, window_bounds = array<i64: 1, 16, 16, 128>}, {pipeline_mode = #tpu.pipeline_mode<synchronous>, transform_indices = @transform_1, window_bounds = array<i64: 3, 384, 128>}, {pipeline_mode = #tpu.pipeline_mode<synchronous>, transform_indices = @transform_2, window_bounds = array<i64: 3, 384, 128>}, {transform_indices = @transform_3, window_bounds = array<i64: 1, 16, 16, 128>}]} {
    %c0 = arith.constant 0 : index
    %c0_0 = arith.constant 0 : index
    %c0_1 = arith.constant 0 : index
    %c0_2 = arith.constant 0 : index
    %0 = vector.load %arg1[%c0, %c0_0, %c0_1, %c0_2] : memref<1x16x16x128xf32, #tpu.memory_space<vmem>>, vector<1x16x16x128xf32>
    %1 = vector.shape_cast %0 : vector<1x16x16x128xf32> to vector<16x16x128xf32>
    %2 = arith.truncf %1 : vector<16x16x128xf32> to vector<16x16x128xbf16>
    %c1 = arith.constant 1 : index
    %c0_3 = arith.constant 0 : index
    %c128 = arith.constant 128 : index
    %3 = vector.load %arg5[%c1, %c0_3, %c128] : memref<18x16x384xbf16, #tpu.memory_space<vmem>>, vector<16x16x128xbf16>
    tpu.vector_store %arg5[%c1, %c0_3, %c128], %2 {strides = array<i32>} : memref<18x16x384xbf16, #tpu.memory_space<vmem>>, vector<16x16x128xbf16>,
    %4 = vector.extract_strided_slice %2 {offsets = [0, 1, 0], sizes = [16, 1, 128], strides = [1, 1, 1]} : vector<16x16x128xbf16> to vector<16x1x128xbf16>
    %c1_4 = arith.constant 1 : index
    %c0_5 = arith.constant 0 : index
    %c0_6 = arith.constant 0 : index
    %5 = vector.load %arg5[%c1_4, %c0_5, %c0_6] : memref<18x16x384xbf16, #tpu.memory_space<vmem>>, vector<16x1x128xbf16>
    tpu.vector_store %arg5[%c1_4, %c0_5, %c0_6], %4 {strides = array<i32>} : memref<18x16x384xbf16, #tpu.memory_space<vmem>>, vector<16x1x128xbf16>,
    %6 = vector.extract_strided_slice %2 {offsets = [0, 0, 0], sizes = [16, 15, 128], strides = [1, 1, 1]} : vector<16x16x128xbf16> to vector<16x15x128xbf16>
    %c1_7 = arith.constant 1 : index
    %c1_8 = arith.constant 1 : index
    %c0_9 = arith.constant 0 : index
    %7 = vector.load %arg5[%c1_7, %c1_8, %c0_9] : memref<18x16x384xbf16, #tpu.memory_space<vmem>>, vector<16x15x128xbf16>
    tpu.vector_store %arg5[%c1_7, %c1_8, %c0_9], %6 {strides = array<i32>} : memref<18x16x384xbf16, #tpu.memory_space<vmem>>, vector<16x15x128xbf16>,
    %8 = vector.extract_strided_slice %2 {offsets = [0, 1, 0], sizes = [16, 15, 128], strides = [1, 1, 1]} : vector<16x16x128xbf16> to vector<16x15x128xbf16>
    %c1_10 = arith.constant 1 : index
    %c0_11 = arith.constant 0 : index
    %c256 = arith.constant 256 : index
    %9 = vector.load %arg5[%c1_10, %c0_11, %c256] : memref<18x16x384xbf16, #tpu.memory_space<vmem>>, vector<16x15x128xbf16>
    tpu.vector_store %arg5[%c1_10, %c0_11, %c256], %8 {strides = array<i32>} : memref<18x16x384xbf16, #tpu.memory_space<vmem>>, vector<16x15x128xbf16>,
    %10 = vector.extract_strided_slice %2 {offsets = [0, 14, 0], sizes = [16, 1, 128], strides = [1, 1, 1]} : vector<16x16x128xbf16> to vector<16x1x128xbf16>
    %c1_12 = arith.constant 1 : index
    %c15 = arith.constant 15 : index
    %c256_13 = arith.constant 256 : index
    %11 = vector.load %arg5[%c1_12, %c15, %c256_13] : memref<18x16x384xbf16, #tpu.memory_space<vmem>>, vector<16x1x128xbf16>
    tpu.vector_store %arg5[%c1_12, %c15, %c256_13], %10 {strides = array<i32>} : memref<18x16x384xbf16, #tpu.memory_space<vmem>>, vector<16x1x128xbf16>,
    %c2 = arith.constant 2 : index
    %c0_14 = arith.constant 0 : index
    %c0_15 = arith.constant 0 : index
    %12 = vector.load %arg5[%c2, %c0_14, %c0_15] : memref<18x16x384xbf16, #tpu.memory_space<vmem>>, vector<1x16x384xbf16>
    %c0_16 = arith.constant 0 : index
    %c0_17 = arith.constant 0 : index
    %c0_18 = arith.constant 0 : index
    %13 = vector.load %arg5[%c0_16, %c0_17, %c0_18] : memref<18x16x384xbf16, #tpu.memory_space<vmem>>, vector<1x16x384xbf16>
    tpu.vector_store %arg5[%c0_16, %c0_17, %c0_18], %12 {strides = array<i32>} : memref<18x16x384xbf16, #tpu.memory_space<vmem>>, vector<1x16x384xbf16>,
    %c15_19 = arith.constant 15 : index
    %c0_20 = arith.constant 0 : index
    %c0_21 = arith.constant 0 : index
    %14 = vector.load %arg5[%c15_19, %c0_20, %c0_21] : memref<18x16x384xbf16, #tpu.memory_space<vmem>>, vector<1x16x384xbf16>
    %c17 = arith.constant 17 : index
    %c0_22 = arith.constant 0 : index
    %c0_23 = arith.constant 0 : index
    %15 = vector.load %arg5[%c17, %c0_22, %c0_23] : memref<18x16x384xbf16, #tpu.memory_space<vmem>>, vector<1x16x384xbf16>
    tpu.vector_store %arg5[%c17, %c0_22, %c0_23], %14 {strides = array<i32>} : memref<18x16x384xbf16, #tpu.memory_space<vmem>>, vector<1x16x384xbf16>,
    %c0_24 = arith.constant 0 : index
    %c0_25 = arith.constant 0 : index
    %c0_26 = arith.constant 0 : index
    %16 = vector.load %arg5[%c0_24, %c0_25, %c0_26] : memref<18x16x384xbf16, #tpu.memory_space<vmem>>, vector<16x16x384xbf16>
    %17 = vector.shape_cast %16 : vector<16x16x384xbf16> to vector<256x384xbf16>
    %c0_27 = arith.constant 0 : index
    %c0_28 = arith.constant 0 : index
    %c0_29 = arith.constant 0 : index
    %18 = vector.load %arg2[%c0_27, %c0_28, %c0_29] : memref<3x384x128xbf16, #tpu.memory_space<vmem>>, vector<1x384x128xbf16>
    %19 = vector.shape_cast %18 : vector<1x384x128xbf16> to vector<384x128xbf16>
    %cst = arith.constant dense<0.000000e+00> : vector<256x128xf32>
    %20 = tpu.matmul %17, %19, %cst {dimension_numbers = #tpu.dot_dimension_numbers<[1], [0], [0], [1], [0, 0, 1, 1], [], []>} : vector<256x384xbf16>, vector<384x128xbf16>, vector<256x128xf32> -> vector<256x128xf32>
    %c1_30 = arith.constant 1 : index
    %c0_31 = arith.constant 0 : index
    %c0_32 = arith.constant 0 : index
    %21 = vector.load %arg5[%c1_30, %c0_31, %c0_32] : memref<18x16x384xbf16, #tpu.memory_space<vmem>>, vector<16x16x384xbf16>
    %22 = vector.shape_cast %21 : vector<16x16x384xbf16> to vector<256x384xbf16>
    %c1_33 = arith.constant 1 : index
    %c0_34 = arith.constant 0 : index
    %c0_35 = arith.constant 0 : index
    %23 = vector.load %arg2[%c1_33, %c0_34, %c0_35] : memref<3x384x128xbf16, #tpu.memory_space<vmem>>, vector<1x384x128xbf16>
    %24 = vector.shape_cast %23 : vector<1x384x128xbf16> to vector<384x128xbf16>
    %cst_36 = arith.constant dense<0.000000e+00> : vector<256x128xf32>
    %25 = tpu.matmul %22, %24, %cst_36 {dimension_numbers = #tpu.dot_dimension_numbers<[1], [0], [0], [1], [0, 0, 1, 1], [], []>} : vector<256x384xbf16>, vector<384x128xbf16>, vector<256x128xf32> -> vector<256x128xf32>
    %26 = arith.addf %20, %25 : vector<256x128xf32>
    %c2_37 = arith.constant 2 : index
    %c0_38 = arith.constant 0 : index
    %c0_39 = arith.constant 0 : index
    %27 = vector.load %arg5[%c2_37, %c0_38, %c0_39] : memref<18x16x384xbf16, #tpu.memory_space<vmem>>, vector<16x16x384xbf16>
    %28 = vector.shape_cast %27 : vector<16x16x384xbf16> to vector<256x384xbf16>
    %c2_40 = arith.constant 2 : index
    %c0_41 = arith.constant 0 : index
    %c0_42 = arith.constant 0 : index
    %29 = vector.load %arg2[%c2_40, %c0_41, %c0_42] : memref<3x384x128xbf16, #tpu.memory_space<vmem>>, vector<1x384x128xbf16>
    %30 = vector.shape_cast %29 : vector<1x384x128xbf16> to vector<384x128xbf16>
    %cst_43 = arith.constant dense<0.000000e+00> : vector<256x128xf32>
    %31 = tpu.matmul %28, %30, %cst_43 {dimension_numbers = #tpu.dot_dimension_numbers<[1], [0], [0], [1], [0, 0, 1, 1], [], []>} : vector<256x384xbf16>, vector<384x128xbf16>, vector<256x128xf32> -> vector<256x128xf32>
    %32 = arith.addf %26, %31 : vector<256x128xf32>
    %cst_44 = arith.constant dense<0.000000e+00> : vector<128xf32>
    %33 = vector.multi_reduction <add>, %32, %cst_44 [0] : vector<256x128xf32> to vector<128xf32>
    %34 = vector.shape_cast %33 : vector<128xf32> to vector<1x128xf32>
    %35 = arith.mulf %32, %32 : vector<256x128xf32>
    %cst_45 = arith.constant dense<0.000000e+00> : vector<128xf32>
    %36 = vector.multi_reduction <add>, %35, %cst_45 [0] : vector<256x128xf32> to vector<128xf32>
    %37 = vector.shape_cast %36 : vector<128xf32> to vector<1x128xf32>
    %cst_46 = arith.constant 3.906250e-03 : f32
    %38 = vector.broadcast %cst_46 : f32 to vector<1x128xf32>
    %39 = arith.mulf %34, %38 : vector<1x128xf32>
    %cst_47 = arith.constant 3.906250e-03 : f32
    %40 = vector.broadcast %cst_47 : f32 to vector<1x128xf32>
    %41 = arith.mulf %37, %40 : vector<1x128xf32>
    %42 = arith.mulf %39, %39 : vector<1x128xf32>
    %43 = arith.subf %41, %42 : vector<1x128xf32>
    %cst_48 = arith.constant 0.000000e+00 : f32
    %44 = vector.broadcast %cst_48 : f32 to vector<1x128xf32>
    %45 = arith.maximumf %43, %44 : vector<1x128xf32>
    %46 = vector.broadcast %39 : vector<1x128xf32> to vector<256x128xf32>
    %47 = arith.subf %32, %46 : vector<256x128xf32>
    %cst_49 = arith.constant 9.99999974E-6 : f32
    %48 = vector.broadcast %cst_49 : f32 to vector<1x128xf32>
    %49 = arith.addf %45, %48 : vector<1x128xf32>
    %50 = math.rsqrt %49 : vector<1x128xf32>
    %51 = vector.broadcast %50 : vector<1x128xf32> to vector<256x128xf32>
    %52 = arith.mulf %47, %51 : vector<256x128xf32>
    %cst_50 = arith.constant 0.000000e+00 : f32
    %53 = vector.broadcast %cst_50 : f32 to vector<256x128xf32>
    %54 = arith.maximumf %52, %53 : vector<256x128xf32>
    %55 = arith.truncf %54 : vector<256x128xf32> to vector<256x128xbf16>
    %56 = vector.shape_cast %55 : vector<256x128xbf16> to vector<16x16x128xbf16>
    %c1_51 = arith.constant 1 : index
    %c0_52 = arith.constant 0 : index
    %c128_53 = arith.constant 128 : index
    %57 = vector.load %arg5[%c1_51, %c0_52, %c128_53] : memref<18x16x384xbf16, #tpu.memory_space<vmem>>, vector<16x16x128xbf16>
    tpu.vector_store %arg5[%c1_51, %c0_52, %c128_53], %56 {strides = array<i32>} : memref<18x16x384xbf16, #tpu.memory_space<vmem>>, vector<16x16x128xbf16>,
    %58 = vector.extract_strided_slice %56 {offsets = [0, 1, 0], sizes = [16, 1, 128], strides = [1, 1, 1]} : vector<16x16x128xbf16> to vector<16x1x128xbf16>
    %c1_54 = arith.constant 1 : index
    %c0_55 = arith.constant 0 : index
    %c0_56 = arith.constant 0 : index
    %59 = vector.load %arg5[%c1_54, %c0_55, %c0_56] : memref<18x16x384xbf16, #tpu.memory_space<vmem>>, vector<16x1x128xbf16>
    tpu.vector_store %arg5[%c1_54, %c0_55, %c0_56], %58 {strides = array<i32>} : memref<18x16x384xbf16, #tpu.memory_space<vmem>>, vector<16x1x128xbf16>,
    %60 = vector.extract_strided_slice %56 {offsets = [0, 0, 0], sizes = [16, 15, 128], strides = [1, 1, 1]} : vector<16x16x128xbf16> to vector<16x15x128xbf16>
    %c1_57 = arith.constant 1 : index
    %c1_58 = arith.constant 1 : index
    %c0_59 = arith.constant 0 : index
    %61 = vector.load %arg5[%c1_57, %c1_58, %c0_59] : memref<18x16x384xbf16, #tpu.memory_space<vmem>>, vector<16x15x128xbf16>
    tpu.vector_store %arg5[%c1_57, %c1_58, %c0_59], %60 {strides = array<i32>} : memref<18x16x384xbf16, #tpu.memory_space<vmem>>, vector<16x15x128xbf16>,
    %62 = vector.extract_strided_slice %56 {offsets = [0, 1, 0], sizes = [16, 15, 128], strides = [1, 1, 1]} : vector<16x16x128xbf16> to vector<16x15x128xbf16>
    %c1_60 = arith.constant 1 : index
    %c0_61 = arith.constant 0 : index
    %c256_62 = arith.constant 256 : index
    %63 = vector.load %arg5[%c1_60, %c0_61, %c256_62] : memref<18x16x384xbf16, #tpu.memory_space<vmem>>, vector<16x15x128xbf16>
    tpu.vector_store %arg5[%c1_60, %c0_61, %c256_62], %62 {strides = array<i32>} : memref<18x16x384xbf16, #tpu.memory_space<vmem>>, vector<16x15x128xbf16>,
    %64 = vector.extract_strided_slice %56 {offsets = [0, 14, 0], sizes = [16, 1, 128], strides = [1, 1, 1]} : vector<16x16x128xbf16> to vector<16x1x128xbf16>
    %c1_63 = arith.constant 1 : index
    %c15_64 = arith.constant 15 : index
    %c256_65 = arith.constant 256 : index
    %65 = vector.load %arg5[%c1_63, %c15_64, %c256_65] : memref<18x16x384xbf16, #tpu.memory_space<vmem>>, vector<16x1x128xbf16>
    tpu.vector_store %arg5[%c1_63, %c15_64, %c256_65], %64 {strides = array<i32>} : memref<18x16x384xbf16, #tpu.memory_space<vmem>>, vector<16x1x128xbf16>,
    %c2_66 = arith.constant 2 : index
    %c0_67 = arith.constant 0 : index
    %c0_68 = arith.constant 0 : index
    %66 = vector.load %arg5[%c2_66, %c0_67, %c0_68] : memref<18x16x384xbf16, #tpu.memory_space<vmem>>, vector<1x16x384xbf16>
    %c0_69 = arith.constant 0 : index
    %c0_70 = arith.constant 0 : index
    %c0_71 = arith.constant 0 : index
    %67 = vector.load %arg5[%c0_69, %c0_70, %c0_71] : memref<18x16x384xbf16, #tpu.memory_space<vmem>>, vector<1x16x384xbf16>
    tpu.vector_store %arg5[%c0_69, %c0_70, %c0_71], %66 {strides = array<i32>} : memref<18x16x384xbf16, #tpu.memory_space<vmem>>, vector<1x16x384xbf16>,
    %c15_72 = arith.constant 15 : index
    %c0_73 = arith.constant 0 : index
    %c0_74 = arith.constant 0 : index
    %68 = vector.load %arg5[%c15_72, %c0_73, %c0_74] : memref<18x16x384xbf16, #tpu.memory_space<vmem>>, vector<1x16x384xbf16>
    %c17_75 = arith.constant 17 : index
    %c0_76 = arith.constant 0 : index
    %c0_77 = arith.constant 0 : index
    %69 = vector.load %arg5[%c17_75, %c0_76, %c0_77] : memref<18x16x384xbf16, #tpu.memory_space<vmem>>, vector<1x16x384xbf16>
    tpu.vector_store %arg5[%c17_75, %c0_76, %c0_77], %68 {strides = array<i32>} : memref<18x16x384xbf16, #tpu.memory_space<vmem>>, vector<1x16x384xbf16>,
    %c0_78 = arith.constant 0 : index
    %c0_79 = arith.constant 0 : index
    %c0_80 = arith.constant 0 : index
    %70 = vector.load %arg5[%c0_78, %c0_79, %c0_80] : memref<18x16x384xbf16, #tpu.memory_space<vmem>>, vector<16x16x384xbf16>
    %71 = vector.shape_cast %70 : vector<16x16x384xbf16> to vector<256x384xbf16>
    %c0_81 = arith.constant 0 : index
    %c0_82 = arith.constant 0 : index
    %c0_83 = arith.constant 0 : index
    %72 = vector.load %arg3[%c0_81, %c0_82, %c0_83] : memref<3x384x128xbf16, #tpu.memory_space<vmem>>, vector<1x384x128xbf16>
    %73 = vector.shape_cast %72 : vector<1x384x128xbf16> to vector<384x128xbf16>
    %cst_84 = arith.constant dense<0.000000e+00> : vector<256x128xf32>
    %74 = tpu.matmul %71, %73, %cst_84 {dimension_numbers = #tpu.dot_dimension_numbers<[1], [0], [0], [1], [0, 0, 1, 1], [], []>} : vector<256x384xbf16>, vector<384x128xbf16>, vector<256x128xf32> -> vector<256x128xf32>
    %c1_85 = arith.constant 1 : index
    %c0_86 = arith.constant 0 : index
    %c0_87 = arith.constant 0 : index
    %75 = vector.load %arg5[%c1_85, %c0_86, %c0_87] : memref<18x16x384xbf16, #tpu.memory_space<vmem>>, vector<16x16x384xbf16>
    %76 = vector.shape_cast %75 : vector<16x16x384xbf16> to vector<256x384xbf16>
    %c1_88 = arith.constant 1 : index
    %c0_89 = arith.constant 0 : index
    %c0_90 = arith.constant 0 : index
    %77 = vector.load %arg3[%c1_88, %c0_89, %c0_90] : memref<3x384x128xbf16, #tpu.memory_space<vmem>>, vector<1x384x128xbf16>
    %78 = vector.shape_cast %77 : vector<1x384x128xbf16> to vector<384x128xbf16>
    %cst_91 = arith.constant dense<0.000000e+00> : vector<256x128xf32>
    %79 = tpu.matmul %76, %78, %cst_91 {dimension_numbers = #tpu.dot_dimension_numbers<[1], [0], [0], [1], [0, 0, 1, 1], [], []>} : vector<256x384xbf16>, vector<384x128xbf16>, vector<256x128xf32> -> vector<256x128xf32>
    %80 = arith.addf %74, %79 : vector<256x128xf32>
    %c2_92 = arith.constant 2 : index
    %c0_93 = arith.constant 0 : index
    %c0_94 = arith.constant 0 : index
    %81 = vector.load %arg5[%c2_92, %c0_93, %c0_94] : memref<18x16x384xbf16, #tpu.memory_space<vmem>>, vector<16x16x384xbf16>
    %82 = vector.shape_cast %81 : vector<16x16x384xbf16> to vector<256x384xbf16>
    %c2_95 = arith.constant 2 : index
    %c0_96 = arith.constant 0 : index
    %c0_97 = arith.constant 0 : index
    %83 = vector.load %arg3[%c2_95, %c0_96, %c0_97] : memref<3x384x128xbf16, #tpu.memory_space<vmem>>, vector<1x384x128xbf16>
    %84 = vector.shape_cast %83 : vector<1x384x128xbf16> to vector<384x128xbf16>
    %cst_98 = arith.constant dense<0.000000e+00> : vector<256x128xf32>
    %85 = tpu.matmul %82, %84, %cst_98 {dimension_numbers = #tpu.dot_dimension_numbers<[1], [0], [0], [1], [0, 0, 1, 1], [], []>} : vector<256x384xbf16>, vector<384x128xbf16>, vector<256x128xf32> -> vector<256x128xf32>
    %86 = arith.addf %80, %85 : vector<256x128xf32>
    %cst_99 = arith.constant dense<0.000000e+00> : vector<128xf32>
    %87 = vector.multi_reduction <add>, %86, %cst_99 [0] : vector<256x128xf32> to vector<128xf32>
    %88 = vector.shape_cast %87 : vector<128xf32> to vector<1x128xf32>
    %89 = arith.mulf %86, %86 : vector<256x128xf32>
    %cst_100 = arith.constant dense<0.000000e+00> : vector<128xf32>
    %90 = vector.multi_reduction <add>, %89, %cst_100 [0] : vector<256x128xf32> to vector<128xf32>
    %91 = vector.shape_cast %90 : vector<128xf32> to vector<1x128xf32>
    %cst_101 = arith.constant 3.906250e-03 : f32
    %92 = vector.broadcast %cst_101 : f32 to vector<1x128xf32>
    %93 = arith.mulf %88, %92 : vector<1x128xf32>
    %cst_102 = arith.constant 3.906250e-03 : f32
    %94 = vector.broadcast %cst_102 : f32 to vector<1x128xf32>
    %95 = arith.mulf %91, %94 : vector<1x128xf32>
    %96 = arith.mulf %93, %93 : vector<1x128xf32>
    %97 = arith.subf %95, %96 : vector<1x128xf32>
    %cst_103 = arith.constant 0.000000e+00 : f32
    %98 = vector.broadcast %cst_103 : f32 to vector<1x128xf32>
    %99 = arith.maximumf %97, %98 : vector<1x128xf32>
    %100 = vector.broadcast %93 : vector<1x128xf32> to vector<256x128xf32>
    %101 = arith.subf %86, %100 : vector<256x128xf32>
    %cst_104 = arith.constant 9.99999974E-6 : f32
    %102 = vector.broadcast %cst_104 : f32 to vector<1x128xf32>
    %103 = arith.addf %99, %102 : vector<1x128xf32>
    %104 = math.rsqrt %103 : vector<1x128xf32>
    %105 = vector.broadcast %104 : vector<1x128xf32> to vector<256x128xf32>
    %106 = arith.mulf %101, %105 : vector<256x128xf32>
    %c0_105 = arith.constant 0 : index
    %c0_106 = arith.constant 0 : index
    %c0_107 = arith.constant 0 : index
    %c0_108 = arith.constant 0 : index
    %107 = vector.load %arg1[%c0_105, %c0_106, %c0_107, %c0_108] : memref<1x16x16x128xf32, #tpu.memory_space<vmem>>, vector<1x16x16x128xf32>
    %108 = vector.shape_cast %107 : vector<1x16x16x128xf32> to vector<16x16x128xf32>
    %109 = vector.shape_cast %106 : vector<256x128xf32> to vector<16x16x128xf32>
    %110 = arith.addf %108, %109 : vector<16x16x128xf32>
    %c0_109 = arith.constant 0 : index
    %c0_110 = arith.constant 0 : index
    %c0_111 = arith.constant 0 : index
    %c0_112 = arith.constant 0 : index
    %111 = vector.load %arg4[%c0_109, %c0_110, %c0_111, %c0_112] : memref<1x16x16x128xf32, #tpu.memory_space<vmem>>, vector<1x16x16x128xf32>
    %112 = vector.shape_cast %111 : vector<1x16x16x128xf32> to vector<16x16x128xf32>
    %113 = vector.shape_cast %110 : vector<16x16x128xf32> to vector<1x16x16x128xf32>
    tpu.vector_store %arg4[%c0_109, %c0_110, %c0_111, %c0_112], %113 {strides = array<i32>} : memref<1x16x16x128xf32, #tpu.memory_space<vmem>>, vector<1x16x16x128xf32>,
    return
  }
  func.func @transform_0(%arg0: i32) -> (i32, i32, i32, i32) {
    %c0_i32 = arith.constant 0 : i32
    %c0_i32_0 = arith.constant 0 : i32
    %c0_i32_1 = arith.constant 0 : i32
    %c0_i32_2 = arith.constant 0 : i32
    return %arg0, %c0_i32, %c0_i32_0, %c0_i32_1 : i32, i32, i32, i32
  }
  func.func @transform_1(%arg0: i32) -> (i32, i32, i32) {
    %c0_i32 = arith.constant 0 : i32
    %c0_i32_0 = arith.constant 0 : i32
    %c0_i32_1 = arith.constant 0 : i32
    %c0_i32_2 = arith.constant 0 : i32
    return %c0_i32, %c0_i32_0, %c0_i32_1 : i32, i32, i32
  }
  func.func @transform_2(%arg0: i32) -> (i32, i32, i32) {
    %c0_i32 = arith.constant 0 : i32
    %c0_i32_0 = arith.constant 0 : i32
    %c0_i32_1 = arith.constant 0 : i32
    %c0_i32_2 = arith.constant 0 : i32
    return %c0_i32, %c0_i32_0, %c0_i32_1 : i32, i32, i32
  }
  func.func @transform_3(%arg0: i32) -> (i32, i32, i32, i32) {
    %c0_i32 = arith.constant 0 : i32
    %c0_i32_0 = arith.constant 0 : i32
    %c0_i32_1 = arith.constant 0 : i32
    %c0_i32_2 = arith.constant 0 : i32
    return %arg0, %c0_i32, %c0_i32_0, %c0_i32_1 : i32, i32, i32, i32
  }
}

</mosaic_0001>

<bundles_post_ra>
// kernel: tpu_custom_call.1
= control target key start
LH: loop header
LB: loop body
LE: loop exit
PB: predicated region body
PF: predicated region fallthrough
CT: control target
= control target key end

     0   :  { %8 = vsyncpa [#allocation4], 0  ;;  %s12782_s0 = inlined_call_operand.hbm [shape: f32[2,16,16,128], index: 0, kind: input, shape index: {}]   ;;  %s12783_s1 = inlined_call_operand.hbm [shape: bf16[3,384,128], index: 1, kind: input, shape index: {}]   ;;  %s12784_s2 = inlined_call_operand.hbm [shape: bf16[3,384,128], index: 2, kind: input, shape index: {}]   ;;  %s12785_s3 = inlined_call_operand.hbm [shape: f32[2,16,16,128], index: 3, kind: output, shape index: {}]  }
   0x1   :  { %10 = vsyncpa [#allocation4 + $0x1], 0 }
   0x2   :  { %11 = vsyncpa [#allocation7], 0 }
   0x3   :  { %12 = vsyncpa [#allocation5], 0 }
   0x4   :  { %14 = vsyncpa [#allocation5 + $0x1], 0  ;;  %s9720_s12 = smov 0   ;;  %s9722_s13 = smov 0  }
   0x5   :  { %s9724_s14 = smov 0   ;;  %s9726_s15 = smov 0  }
   0x6 LB: > { %s9741_s16 = sadd.s32 4294967295, %s9690_s15   ;;  %s7257_s17 = sadd.s32 4294967294, %s9690_s15   ;;  %s9690_s15 = sphi %s9726_s15, %s13269_s15   ;;  %s9686_s14 = sphi %s9724_s14, %s13268_s14   ;;  %s9682_s13 = sphi %s9722_s13, %s13267_s13   ;;  %s9678_s12 = sphi %s9720_s12, %s13266_s12  }
   0x7   : > { %p40_p0 = scmp.ne.s32.totalorder %s9682_s13, %s9678_s12  ;;  %p41_p1 = scmp.eq.s32.totalorder %s9741_s16, 0 }
   0x8   : > { %p106_p2 = scmp.eq.s32.totalorder %s9741_s16, 1  ;;  %p112_p3 = scmp.eq.s32.totalorder %s7257_s17, 1 }
   0x9   : > { %p9750_p4 = por %p41_p1, %p40_p0  ;;  %p7258_p5 = scmp.ge.s32.totalorder %s9690_s15, 1 }
   0xa   : > { %p9755_p6 = por %p112_p3, %p40_p0  ;;  %p119_p7 = scmp.lt.s32.totalorder %s9690_s15, 3 }
   0xb   : > { %s130_s22 = sshll.u32 %s12783_s1, 4  ;;  %s9692_s24 = smov [#allocation6]   ;;  %s131_s22 = int_to_ptr.hbm [resolvable:$true] %s130_s22 }
   0xc   : > { %p9763_p8 = pnand %p7258_p5, %p119_p7  ;;  %s132_s25 = sshll.u32 %s9692_s24, 4  ;;  %s133_s25 = int_to_ptr.vmem [resolvable:$true] %s132_s25 }
   0xd   : > { %s144_s28 = sshll.u32 %s12784_s2, 4  ;;  %s9693_s29 = smov 64   ;;  %s145_s28 = int_to_ptr.hbm [resolvable:$true] %s144_s28 }
   0xe   : > { %p9465_p9 = pneg %p9763_p8  ;;  %s9694_s30 = smov 4  }
   0xf   : > { %s9695_s4 = smov [#allocation8]   ;;  %s9776_s6 = sadd.s32 1, %s9690_s15  }
  0x10   : > { %p9466_p10 = pnand %p9465_p9, %p41_p1  ;;  %s146_s5 = sshll.u32 %s9695_s4, 4  ;;  %s147_s5 = int_to_ptr.vmem [resolvable:$true] %s146_s5 }
  0x11   : > { %s27_s7 = sadd.s32 1, %s9686_s14  ;;  %s24_s8 = ssub.s32 %s9690_s15, %s9776_s6 }
  0x12   : > { %9468 = dma.hbm_to_vmem [thread:$0]  (!%p9466_p10), %s131_s22, 9216, %s133_s25, [#allocation7], %s9693_s29, %s9693_s29, %s9694_s30  }
  0x13   : > { %9471 = dma.hbm_to_vmem [thread:$0]  (!%p9466_p10), %s145_s28, 9216, %s147_s5, [#allocation7], %s9693_s29, %s9693_s29, %s9694_s30  }
  0x14   : > { %p34_p12 = scmp.ne.s32.totalorder %s9686_s14, %s9682_s13  ;;  %p25_p13 = scmp.eq.s32.totalorder %s24_s8, 0 }
  0x15   : > { %p35_p0 = scmp.eq.s32.totalorder %s9690_s15, 0  ;;  %p9482_p5 = scmp.lt.s32.totalorder %s9690_s15, 2 }
  0x16   : > { %p9786_p3 = por %p106_p2, %p34_p12  ;;  %s160_s11 = sand.u32 1, %s9686_s14  }
  0x17   : > { %s9792_s10 = scalar_select %p25_p13, %s9686_s14, %s27_s7  }
  0x18   : > { %p36_p7 = por %p35_p0, %p34_p12  ;;  %s7262_s17 = sshll.u32 %s160_s11, 8 }
  0x19   : > { %s9003_s20 = sshll.u32 %s9690_s15, 8  ;;  %s164_s25 = scalar_lea.vmem [#allocation3], %s7262_s17 }
  0x1a   : > { %s169_s24 = scalar_lea.hbm %s12782_s0, %s9003_s20  ;;  %s172_s26 = sshll.u32 %s164_s25, 4  ;;  %s173_s26 = int_to_ptr.vmem [resolvable:$true] %s172_s26 }
  0x1b   : > { %s170_s27 = sshll.u32 %s169_s24, 4  ;;  %p9799_p2 = pnand %p9482_p5, %p36_p7  ;;  %s171_s27 = int_to_ptr.hbm [resolvable:$true] %s170_s27 }
  0x1c   : > { %s161_s29 = scalar_lea.sflag [#allocation4], %s160_s11  ;;  %s9590_s30 = sshra.s32 %s171_s27, 4  ;;  %s9591_s30 = int_to_ptr.hbm [resolvable:$true] %s9590_s30 }
  0x1d   : > { %s9592_s4 = scalar_lea.hbm %s9591_s30, 256  ;;  %p9594_p10 = pneg %p9799_p2 }
  0x1e   : > { %p9593_p9 = scmp.ne.s32.totalorder %s9591_s30, %s9592_s4  ;;  %s9597_s8 = scalar_lea.hbm %s12782_s0, 512 }
  0x1f   : > { %p9598_p0 = scmp.lt.s32.totalorder %s9591_s30, %s12782_s0  ;;  %p9599_p5 = scmp.lt.s32.totalorder %s9597_s8, %s9592_s4 }
  0x20   : > { %p9595_p12 = pnand %p9594_p10, %p9593_p9 }
  0x21   : > { %p9600_p7 = por %p9599_p5, %p9598_p0 }
  0x22   : > { %p9596_p13 = pneg %p9595_p12 }
  0x24   : > { %p9601_p11 = pnand %p9600_p7, %p9596_p13 }
  0x26   : > { %9604 = shalt.err (!%p9601_p11)
}
  0x27   : > { %s9696_s11 = smov 128   ;;  %s9697_s21 = smov 8  }
  0x28   : > { %9475 = dma.hbm_to_vmem [thread:$0]  (!%p9799_p2), %s171_s27, 4096, %s173_s26, %s161_s29, %s9696_s11, %s9696_s11, %s9697_s21  }
  0x29   : > { %184 = sbr.rel (%p9763_p8) target bundleno = 2047 (0x7ff), region = 32 }
  0x2e   : > { %s9816_s22 = sand.u32 1, %s9682_s13  }
  0x2f   : > { %s7266_s24 = sshll.u32 %s9816_s22, 8  ;;  %s187_s25 = scalar_lea.sflag [#allocation4], %s9816_s22 }
  0x30   : > { %s9822_s30 = scalar_lea.vmem [#allocation3], %s7266_s24 }
  0x31   : > { %9665 = dma.done.wait (%p9750_p4), %s187_s25, 4096  }
  0x32   : > { %9667 = vsyncadd (%p9750_p4), %s187_s25, 4294963200 }
  0x33   : > { %9669 = dma.done.wait (%p41_p1), [#allocation7], 18432  }
  0x34   : > { %9671 = vsyncadd (%p41_p1), [#allocation7], 4294948864  ;;  %v9131_v0 = vld [vmem:[#allocation6 + $0xf8] sm:$0xff]  ;;  %v9130_v2 = vld [vmem:[#allocation6 + $0xf0] sm:$0xff]  ;;  %vm417_vm0 = vcmask 1040384   ;;  %vm710_vm3 = vcmask 1043456  }
  0x35   : > { %v9139_v1 = vld [vmem:[#allocation6 + $0x138] sm:$0xff]  ;;  %1716 = vmatpush.bf16.msra.mxu0 %v9131_v0  ;;  %9437 = vmatpush.bf16.msra.mxu2 %v9131_v0  ;;  %v9138_v3 = vld [vmem:[#allocation6 + $0x130] sm:$0xff]  ;;  %v224_v4 = vld [vmem:[%s9822_s30] sm:$0xff]  ;;  %vm418_vm1 = vsmask.f32 256  ;;  %v12956_v23 = vmov 0 }
  0x36   : > { %1805 = vmatpush.bf16.msra.mxu1 %v9139_v1  ;;  %9445 = vmatpush.bf16.msra.mxu3 %v9139_v1  ;;  %v225_v5 = vld [vmem:[%s9822_s30 + $0x8] sm:$0xff]  ;;  %v9834_v7 = vpack.c.bf16 %v224_v4, %v224_v4  ;;  %v240_v9 = vld [vmem:[%s9822_s30 + $0x80] sm:$0xff]  ;;  %vm468_vm2 = vsmask.f32 4368  ;;  %vm9860_vm4 = vmand %vm417_vm0, %vm418_vm1  ;;  %v12959_v27 = vmov 0  ;;  %v12963_v4 = vmov 0 }
  0x37   : > { %v9129_v6 = vld [vmem:[#allocation6 + $0xe8] sm:$0xff]  ;;  %v9836_v8 = vpack.c.bf16 %v225_v5, %v225_v5  ;;  %v9840_v12 = vpack.c.bf16 %v240_v9, %v240_v9  ;;  %v9128_v21 = vld [vmem:[#allocation6 + $0xe0] sm:$0xff]  ;;  %v12957_v23 = vsel %vm9860_vm4, 4294967295, %v12956_v23  ;;  %vm9869_vm5 = vmor %vm418_vm1, %vm468_vm2  ;;  %vm711_vm6 = vsmask.f32 7938  ;;  %s12623_s18 = scalar_lea.vmem [#allocation9], %s7266_s24 }
  0x38   : > { %v241_v10 = vld [vmem:[%s9822_s30 + $0x88] sm:$0xff]  ;;  %v322_v14 = vshrl.u32 %v9834_v7, 16  ;;  %289 = vst [vmem:[#allocation2 + $0x1c] sm:$0xf] %v9834_v7  ;;  %v9136_v26 = vld [vmem:[#allocation6 + $0x120] sm:$0xff]  ;;  %v12960_v27 = vsel %vm9869_vm5, 4294967295, %v12959_v27  ;;  %vm9913_vm9 = vmand %vm710_vm3, %vm711_vm6 }
  0x39   : > { %1717 = vmatpush.bf16.msra.mxu0 %v9130_v2  ;;  %9438 = vmatpush.bf16.msra.mxu2 %v9130_v2  ;;  %v9137_v11 = vld [vmem:[#allocation6 + $0x128] sm:$0xff]  ;;  %v9842_v13 = vpack.c.bf16 %v241_v10, %v241_v10  ;;  %v12800_v15 = vshrl.u32 %v9836_v8, 16  ;;  %v9847_v16 = vshll.u32 %v9836_v8, 16  ;;  %290 = vst [vmem:[#allocation2 + $0x28] sm:$0xf] %v9836_v8  ;;  %v362_v18 = vshrl.u32 %v9840_v12, 16 }
  0x3a   : > { %1806 = vmatpush.bf16.msra.mxu1 %v9138_v3  ;;  %9446 = vmatpush.bf16.msra.mxu3 %v9138_v3  ;;  %v420_v17 = vld [vmem:[#allocation2 + $0x18] sm:$0x1]  ;;  %v9856_v22 = vrot.slane %v322_v14, 4  ;;  %12958 = vst [vmem:[#allocation13_spill] sm:$0xff] %v12957_v23  ;;  %v470_v24 = vrot.slane %v322_v14, 7  ;;  %v226_v35 = vld [vmem:[%s9822_s30 + $0x10] sm:$0xff] }
  0x3b   : > { %v12793_v19 = vshrl.u32 %v9842_v13, 16  ;;  %v9854_v20 = vshll.u32 %v9842_v13, 16  ;;  %v478_v25 = vrot.slane %v12800_v15, 7  ;;  %305 = vst [vmem:[#allocation2 + $0xdc] sm:$0xf] %v9840_v12  ;;  %v9873_v28 = vrot.slane %v362_v18, 4 }
  0x3c   : > { %12961 = vst [vmem:[#allocation14_spill] sm:$0xff] %v12960_v27  ;;  %v574_v29 = vrot.slane %v362_v18, 7  ;;  %v325_v31 = vrot.slane %v9856_v22, 4  ;;  %v474_v32 = vrot.slane %v470_v24, 4  ;;  %v444_v34 = vld [vmem:[#allocation2 + $0xd8] sm:$0x1]  ;;  %v9889_v44 = vpack.c.bf16 %v226_v35, %v226_v35 }
  0x3d   : > { %1718 = vmatpush.bf16.msra.mxu0 %v9129_v6  ;;  %9439 = vmatpush.bf16.msra.mxu2 %v9129_v6  ;;  %v582_v30 = vrot.slane %v12793_v19, 7  ;;  %306 = vst [vmem:[#allocation2 + $0xe8] sm:$0xf] %v9842_v13  ;;  %v481_v33 = vor.u32 %v9847_v16, %v478_v25  ;;  %v227_v36 = vld [vmem:[%s9822_s30 + $0x18] sm:$0xff]  ;;  %v365_v37 = vrot.slane %v9873_v28, 4  ;;  %v12799_v42 = vshll.u32 %v9834_v7, 16 }
  0x3e   : > { %1807 = vmatpush.bf16.msra.mxu1 %v9137_v11  ;;  %9447 = vmatpush.bf16.msra.mxu3 %v9137_v11  ;;  %v578_v38 = vrot.slane %v574_v29, 4  ;;  %v9127_v40 = vld [vmem:[#allocation6 + $0xd8] sm:$0xff]  ;;  %v421_v41 = vsel %vm9860_vm4, %v325_v31, %v420_v17  ;;  %v242_v45 = vld [vmem:[%s9822_s30 + $0x90] sm:$0xff]  ;;  %v259_v49 = vpack.c.bf16 %v227_v36, %v227_v36  ;;  %vm777_vm7 = vsmask.f32 3328  ;;  %v228_v62 = vld [vmem:[%s9822_s30 + $0x20] sm:$0xff] }
  0x3f   : > { %v585_v39 = vor.u32 %v9854_v20, %v582_v30  ;;  %v482_v43 = vsel %vm9869_vm5, %v474_v32, %v481_v33  ;;  %v9135_v46 = vld [vmem:[#allocation6 + $0x118] sm:$0xff]  ;;  %422 = vst [vmem:[#allocation2 + $0x18] sm:$0x1] %v421_v41  ;;  %v445_v47 = vsel %vm9860_vm4, %v365_v37, %v444_v34  ;;  %v12792_v51 = vshll.u32 %v9840_v12, 16  ;;  %v423_v53 = vld [vmem:[#allocation2 + $0x30] sm:$0x1]  ;;  %vm9954_vm13 = vmand %vm710_vm3, %vm777_vm7 }
  0x40   : > { %v243_v50 = vld [vmem:[%s9822_s30 + $0x98] sm:$0xff]  ;;  %716 = vst [vmem:[#allocation2 + $0x24] sm:$0xf] %v482_v43  ;;  %v327_v52 = vshrl.u32 %v9889_v44, 16  ;;  %vm778_vm8 = vsmask.f32 7440  ;;  %v9902_v57 = vpack.c.bf16 %v242_v45, %v242_v45  ;;  %v473_v0 = vor.u32 %v12799_v42, %v470_v24 }
  0x41   : > { %1719 = vmatpush.bf16.msra.mxu0 %v9128_v21  ;;  %9440 = vmatpush.bf16.msra.mxu2 %v9128_v21  ;;  %v586_v48 = vsel %vm9869_vm5, %v578_v38, %v585_v39  ;;  %446 = vst [vmem:[#allocation2 + $0xd8] sm:$0x1] %v445_v47  ;;  %v484_v54 = vshll.u32 %v9889_v44, 16  ;;  %v489_v55 = vshrl.u32 %v259_v49, 16  ;;  %v9900_v56 = vshll.u32 %v259_v49, 16  ;;  %v9126_v58 = vld [vmem:[#allocation6 + $0xd0] sm:$0xff]  ;;  %vm9940_vm10 = vmor %vm777_vm7, %vm778_vm8 }
  0x42   : > { %1808 = vmatpush.bf16.msra.mxu1 %v9136_v26  ;;  %9448 = vmatpush.bf16.msra.mxu3 %v9136_v26  ;;  %12962 = vst [vmem:[#allocation15_spill] sm:$0xff] %v9902_v57  ;;  %v329_v59 = vrot.slane %v327_v52, 4  ;;  %v483_v60 = vrot.slane %v327_v52, 7  ;;  %v9904_v61 = vpack.c.bf16 %v243_v50, %v243_v50  ;;  %v9134_v63 = vld [vmem:[#allocation6 + $0x110] sm:$0xff]  ;;  %v12964_v4 = vsel %vm9913_vm9, 4294967295, %v12963_v4  ;;  %v9125_v11 = vld [vmem:[#allocation6 + $0xc8] sm:$0xff] }
  0x43   : > { %748 = vst [vmem:[#allocation2 + $0xe4] sm:$0xf] %v586_v48  ;;  %v491_v1 = vrot.slane %v489_v55, 7  ;;  %v788_v2 = vrot.slane %v484_v54, 5  ;;  %v791_v3 = vrot.slane %v9900_v56, 5  ;;  %v577_v5 = vor.u32 %v12792_v51, %v574_v29  ;;  %v9133_v33 = vld [vmem:[#allocation6 + $0x108] sm:$0xff] }
  0x44   : > { %291 = vst [vmem:[#allocation2 + $0x34] sm:$0xf] %v9889_v44  ;;  %v330_v6 = vrot.slane %v329_v59, 4  ;;  %v487_v9 = vrot.slane %v483_v60, 4  ;;  %v793_v10 = vrot.slane %v489_v55, 4  ;;  %v367_v21 = vshrl.u32 %v9902_v57, 16 }
  0x45   : > { %1720 = vmatpush.bf16.msra.mxu0 %v9127_v40  ;;  %9441 = vmatpush.bf16.msra.mxu2 %v9127_v40  ;;  %12965 = vst [vmem:[#allocation16_spill] sm:$0xff] %v12964_v4  ;;  %v494_v14 = vor.u32 %v9900_v56, %v491_v1  ;;  %v789_v17 = vor.u32 %v788_v2, %v329_v59  ;;  %v946_v18 = vld [vmem:[#allocation2 + $0x44] sm:$0xf]  ;;  %v447_v30 = vld [vmem:[#allocation2 + $0xf0] sm:$0x1]  ;;  %v12791_v31 = vshrl.u32 %v9904_v61, 16 }
  0x46   : > { %1809 = vmatpush.bf16.msra.mxu1 %v9135_v46  ;;  %9449 = vmatpush.bf16.msra.mxu3 %v9135_v46  ;;  %292 = vst [vmem:[#allocation2 + $0x40] sm:$0xf] %v259_v49  ;;  %v9922_v24 = vpack.c.bf16 %v228_v62, %v228_v62  ;;  %v713_v25 = vld [vmem:[#allocation2 + $0x18] sm:$0xf]  ;;  %v424_v26 = vsel %vm9860_vm4, %v330_v6, %v423_v53  ;;  %v9928_v32 = vshll.u32 %v9904_v61, 16  ;;  %v9935_v37 = vrot.slane %v367_v21, 4 }
  0x47   : > { %307 = vst [vmem:[#allocation2 + $0xf4] sm:$0xf] %v9902_v57  ;;  %v794_v29 = vor.u32 %v793_v10, %v791_v3  ;;  %v714_v34 = vsel %vm9913_vm9, %v473_v0, %v713_v25  ;;  %v495_v35 = vsel %vm9869_vm5, %v487_v9, %v494_v14  ;;  %v790_v36 = vrot.slane %v789_v17, 4  ;;  %v229_v38 = vld [vmem:[%s9822_s30 + $0x28] sm:$0xff]  ;;  %v9124_v39 = vld [vmem:[#allocation6 + $0xc0] sm:$0xff]  ;;  %v9059_v1 = vld [vmem:[#allocation6 + $0x38] sm:$0xff] }
  0x48   : > { %308 = vst [vmem:[#allocation2 + $0x100] sm:$0xf] %v9904_v61  ;;  %v745_v40 = vld [vmem:[#allocation2 + $0xd8] sm:$0xf]  ;;  %v486_v41 = vor.u32 %v484_v54, %v483_v60  ;;  %v12967_v43 = vmov 0  ;;  %vm1021_vm11 = vcmask 1043459   ;;  %v9965_v62 = vpack.c.bf16 %v229_v38, %v229_v38 }
  0x49   : > { %1721 = vmatpush.bf16.msra.mxu0 %v9126_v58  ;;  %9442 = vmatpush.bf16.msra.mxu2 %v9126_v58  ;;  %425 = vst [vmem:[#allocation2 + $0x30] sm:$0x1] %v424_v26  ;;  %v12968_v43 = vsel %vm9940_vm10, 4294967295, %v12967_v43  ;;  %v795_v44 = vrot.slane %v794_v29, 4  ;;  %vm1022_vm12 = vsmask.f32 7950  ;;  %v746_v47 = vsel %vm9913_vm9, %v577_v5, %v745_v40 }
  0x4a   : > { %1810 = vmatpush.bf16.msra.mxu1 %v9134_v63  ;;  %9450 = vmatpush.bf16.msra.mxu3 %v9134_v63  ;;  %12966 = vst [vmem:[#allocation17_spill] sm:$0xff] %v9935_v37  ;;  %v587_v45 = vrot.slane %v367_v21, 7  ;;  %v9132_v46 = vld [vmem:[#allocation6 + $0x100] sm:$0xff]  ;;  %v9946_v48 = vld [vmem:[#allocation2 + $0x1c] sm:$0xf]  ;;  %v792_v50 = vsel %vm9940_vm10, %v790_v36, %v791_v3  ;;  %v12970_v52 = vmov 0  ;;  %vm10010_vm14 = vmand %vm1021_vm11, %vm1022_vm12 }
  0x4b   : > { %715 = vst [vmem:[#allocation2 + $0x18] sm:$0xf] %v714_v34  ;;  %v9948_v49 = vld [vmem:[#allocation2 + $0x24] sm:$0xf0]  ;;  %v12971_v52 = vsel %vm9954_vm13, 4294967295, %v12970_v52  ;;  %v370_v53 = vrot.slane %v9935_v37, 4  ;;  %v947_v59 = vsel %vm9954_vm13, %v795_v44, %v946_v18 }
  0x4c   : > { %12969 = vst [vmem:[#allocation18_spill] sm:$0xff] %v12968_v43  ;;  %v595_v54 = vrot.slane %v12791_v31, 7  ;;  %v9961_v55 = vld [vmem:[#allocation2 + $0xdc] sm:$0xf]  ;;  %v9147_v58 = vld [vmem:[#allocation6 + $0x178] sm:$0xff]  ;;  %v591_v60 = vrot.slane %v587_v45, 4  ;;  %v7277_v26 = vor.u32 %v9946_v48, %v9948_v49 }
  0x4d   : > { %720 = vst [vmem:[#allocation2 + $0x3c] sm:$0xf] %v495_v35  ;;  %1722 = vmatpush.bf16.msra.mxu0 %v9125_v11  ;;  %9443 = vmatpush.bf16.msra.mxu2 %v9125_v11  ;;  %v244_v63 = vld [vmem:[%s9822_s30 + $0xa0] sm:$0xff]  ;;  %v7370_v0 = vld [vmem:[#allocation2 + $0xe4] sm:$0xf0]  ;;  %v448_v2 = vsel %vm9860_vm4, %v370_v53, %v447_v30  ;;  %v332_v5 = vshrl.u32 %v9922_v24, 16 }
  0x4e   : > { %12972 = vst [vmem:[#allocation19_spill] sm:$0xff] %v12971_v52  ;;  %1811 = vmatpush.bf16.msra.mxu1 %v9133_v33  ;;  %9451 = vmatpush.bf16.msra.mxu3 %v9133_v33  ;;  %v598_v3 = vor.u32 %v9928_v32, %v595_v54  ;;  %v9077_v6 = vld [vmem:[#allocation2 + $0x20] sm:$0xf0]  ;;  %v9067_v9 = vld [vmem:[#allocation6 + $0x78] sm:$0xff]  ;;  %v12789_v10 = vshll.u32 %v9902_v57, 16  ;;  %v9979_v25 = vpack.c.bf16 %v244_v63, %v244_v63  ;;  %v12798_v30 = vshrl.u32 %v9965_v62, 16 }
  0x4f   : > { %747 = vst [vmem:[#allocation2 + $0xd8] sm:$0xf] %v746_v47  ;;  %v9101_v11 = vld [vmem:[#allocation2 + $0xe0] sm:$0xf0]  ;;  %v9975_v17 = vrot.slane %v332_v5, 4  ;;  %v9977_v21 = vrot.slane %v332_v5, 7  ;;  %v7373_v35 = vor.u32 %v9961_v55, %v7370_v0 }
  0x50   : > { %945 = vst [vmem:[#allocation2 + $0x38] sm:$0xf] %v792_v50  ;;  %v599_v14 = vsel %vm9869_vm5, %v591_v60, %v598_v3  ;;  %v426_v18 = vld [vmem:[#allocation2 + $0x48] sm:$0x1]  ;;  %v717_v29 = vld [vmem:[#allocation2 + $0x30] sm:$0xf] }
  0x51   : > { %948 = vst [vmem:[#allocation2 + $0x44] sm:$0xf] %v947_v59  ;;  %1723 = vmatpush.bf16.msra.mxu0 %v9124_v39  ;;  %9444 = vmatpush.bf16.msra.mxu2 %v9124_v39  ;;  %v9985_v33 = vshll.u32 %v9965_v62, 16  ;;  %v718_v36 = vsel %vm9913_vm9, %v486_v41, %v717_v29  ;;  %v9146_v38 = vld [vmem:[#allocation6 + $0x170] sm:$0xff]  ;;  %v335_v40 = vrot.slane %v9975_v17, 4  ;;  %v500_v48 = vrot.slane %v9977_v21, 4 }
  0x52   : > { %449 = vst [vmem:[#allocation2 + $0xf0] sm:$0x1] %v448_v2  ;;  %1812 = vmatpush.bf16.msra.mxu1 %v9132_v46  ;;  %9452 = vmatpush.bf16.msra.mxu3 %v9132_v46  ;;  %v7272_v34 = vld [vmem:[#allocation2 + $0x18] sm:$0xf]  ;;  %v9058_v39 = vld [vmem:[#allocation6 + $0x30] sm:$0xff]  ;;  %v590_v46 = vor.u32 %v12789_v10, %v587_v45  ;;  %v504_v41 = vrot.slane %v12798_v30, 7 }
  0x53   : > { %12973 = vst [vmem:[#allocation20_spill] sm:$0xff] %v9979_v25  ;;  %v7273_v44 = vor.u32 %v9077_v6, %v7272_v34  ;;  %v9066_v47 = vld [vmem:[#allocation6 + $0x70] sm:$0xff]  ;;  %v245_v49 = vld [vmem:[%s9822_s30 + $0xa8] sm:$0xff]  ;;  %v427_v53 = vsel %vm9860_vm4, %v335_v40, %v426_v18  ;;  %v12797_v54 = vshll.u32 %v9922_v24, 16  ;;  %v372_v45 = vshrl.u32 %v9979_v25, 16  ;;  %v231_v0 = vld [vmem:[%s9822_s30 + $0x38] sm:$0xff] }
  0x54   : > { %752 = vst [vmem:[#allocation2 + $0xfc] sm:$0xf] %v599_v14  ;;  %v10002_v55 = vpack.c.bf16 %v245_v49, %v245_v49  ;;  %v507_v59 = vor.u32 %v9985_v33, %v504_v41  ;;  %v450_v60 = vld [vmem:[#allocation2 + $0x108] sm:$0x1]  ;;  %v230_v63 = vld [vmem:[%s9822_s30 + $0x30] sm:$0xff]  ;;  %s9436_s23 = sshll.u32 %s9741_s16, 8 }
  0x55   : > { %293 = vst [vmem:[#allocation2 + $0x4c] sm:$0xf] %v9922_v24  ;;  %1894 = vmatpush.bf16.msrb.mxu2 %v9147_v58  ;;  %2472 = vmatpush.bf16.msrb.mxu0 %v9067_v9  ;;  %v10014_v3 = vrot.slane %v372_v45, 4  ;;  %v600_v5 = vrot.slane %v372_v45, 7  ;;  %v10026_v29 = vpack.c.bf16 %v230_v63, %v230_v63  ;;  %v9080_v49 = vld [vmem:[#allocation2 + $0x38] sm:$0xf0]  ;;  %s7161_s16 = scalar_lea.hbm %s12785_s3, %s9436_s23 }
  0x56   : > { %2383 = vmatpush.bf16.msrb.mxu3 %v9059_v1  ;;  %719 = vst [vmem:[#allocation2 + $0x30] sm:$0xf] %v718_v36  ;;  %v7368_v50 = vld [vmem:[#allocation2 + $0xd8] sm:$0xf]  ;;  %1724 = vmatmul.bf16.vlgmr.msra.gmra.mxu0 %v7273_v44  ;;  %v12975_v1 = vmov 0  ;;  %v12787_v6 = vshrl.u32 %v10002_v55, 16  ;;  %v508_v18 = vsel %vm9869_vm5, %v500_v48, %v507_v59  ;;  %v10036_v44 = vpack.c.bf16 %v231_v0, %v231_v0 }
  0x57   : > { %294 = vst [vmem:[#allocation2 + $0x58] sm:$0xf] %v9965_v62  ;;  %v7369_v58 = vor.u32 %v9101_v11, %v7368_v50  ;;  %1813 = vmatmul.bf16.vlgmr.msra.gmra.mxu1 %v7277_v26  ;;  %1853 = vmatmul.bf16.vlgmr.msra.gmra.mxu3 %v7373_v35  ;;  %v12976_v1 = vsel %vm10010_vm14, 4294967295, %v12975_v1  ;;  %v10018_v9 = vshll.u32 %v10002_v55, 16  ;;  %v9057_v26 = vld [vmem:[#allocation6 + $0x28] sm:$0xff]  ;;  %v375_v35 = vrot.slane %v10014_v3, 4 }
  0x58   : > { %12974 = vst [vmem:[#allocation21_spill] sm:$0xff] %v10002_v55  ;;  %v1027_v2 = vld [vmem:[#allocation2 + $0x44] sm:$0x8]  ;;  %v9145_v36 = vld [vmem:[#allocation6 + $0x168] sm:$0xff]  ;;  %v608_v40 = vrot.slane %v12787_v6, 7  ;;  %v337_v48 = vshrl.u32 %v10026_v29, 16 }
  0x59   : > { %428 = vst [vmem:[#allocation2 + $0x48] sm:$0x1] %v427_v53  ;;  %1764 = vmatmul.bf16.vlgmr.msra.gmra.mxu2 %v7369_v58  ;;  %v1028_v11 = vsel %vm10010_vm14, %v9900_v56, %v1027_v2  ;;  %v749_v14 = vld [vmem:[#allocation2 + $0xf0] sm:$0xf]  ;;  %2473 = vmatpush.bf16.msrb.mxu0 %v9066_v47  ;;  %v499_v56 = vor.u32 %v12797_v54, %v9977_v21  ;;  %v9065_v47 = vld [vmem:[#allocation6 + $0x68] sm:$0xff]  ;;  %v234_v19 = vld [vmem:[%s9822_s30 + $0x50] sm:$0xff] }
  0x5a   : > { %12977 = vst [vmem:[#allocation22_spill] sm:$0xff] %v12976_v1  ;;  %2384 = vmatpush.bf16.msrb.mxu3 %v9058_v39  ;;  %v750_v34 = vsel %vm9913_vm9, %v590_v46, %v749_v14  ;;  %1895 = vmatpush.bf16.msrb.mxu2 %v9146_v38  ;;  %v604_v39 = vrot.slane %v600_v5, 4  ;;  %v451_v46 = vsel %vm9860_vm4, %v375_v35, %v450_v60  ;;  %v12786_v38 = vshll.u32 %v9979_v25, 16  ;;  %v9079_v50 = vld [vmem:[#allocation2 + $0x34] sm:$0xf]  ;;  %v250_v42 = vld [vmem:[%s9822_s30 + $0xd0] sm:$0xff] }
  0x5b   : > { %12978 = vst [vmem:[#allocation23_spill] sm:$0xff] %v10014_v3  ;;  %v7286_v53 = vld [vmem:[#allocation2 + $0x3c] sm:$0xf0]  ;;  %v611_v21 = vor.u32 %v10018_v9, %v608_v40  ;;  %v10044_v59 = vrot.slane %v337_v48, 4  ;;  %v509_v60 = vrot.slane %v337_v48, 7  ;;  %v12796_v14 = vshrl.u32 %v10036_v44, 16 }
  0x5c   : > { %12979 = vst [vmem:[#allocation24_spill] sm:$0xff] %v10018_v9  ;;  %v429_v45 = vld [vmem:[#allocation2 + $0x60] sm:$0x1]  ;;  %v9103_v63 = vld [vmem:[#allocation2 + $0xf4] sm:$0xf]  ;;  %v10134_v30 = vpack.c.bf16 %v234_v19, %v234_v19  ;;  %s7162_s28 = sshll.u32 %s12623_s18, 4  ;;  %s7163_s28 = int_to_ptr.vmem [resolvable:$true] %s7162_s28 }
  0x5d   : > { %309 = vst [vmem:[#allocation2 + $0x10c] sm:$0xf] %v9979_v25  ;;  %v7284_v41 = vld [vmem:[#allocation2 + $0x30] sm:$0xf]  ;;  %2474 = vmatpush.bf16.msrb.mxu0 %v9065_v47  ;;  %v7382_v0 = vld [vmem:[#allocation2 + $0xfc] sm:$0xf0] }
  0x5e   : > { %1029 = vst [vmem:[#allocation2 + $0x44] sm:$0x8] %v1028_v11  ;;  %2385 = vmatpush.bf16.msrb.mxu3 %v9057_v26  ;;  %1896 = vmatpush.bf16.msrb.mxu2 %v9145_v36  ;;  %v612_v11 = vsel %vm9869_vm5, %v604_v39, %v611_v21  ;;  %v247_v26 = vld [vmem:[%s9822_s30 + $0xb8] sm:$0xff]  ;;  %v340_v35 = vrot.slane %v10044_v59, 4  ;;  %v517_v39 = vrot.slane %v12796_v14, 7  ;;  %v10064_v47 = vshll.u32 %v10036_v44, 16 }
  0x5f   : > { %751 = vst [vmem:[#allocation2 + $0xf0] sm:$0xf] %v750_v34  ;;  %v9104_v34 = vld [vmem:[#allocation2 + $0xf8] sm:$0xf0]  ;;  %v10057_v40 = vpack.c.bf16 %v247_v26, %v247_v26  ;;  %v7285_v48 = vor.u32 %v9080_v49, %v7284_v41  ;;  %v7385_v41 = vor.u32 %v9103_v63, %v7382_v0  ;;  %v232_v63 = vld [vmem:[%s9822_s30 + $0x40] sm:$0xff]  ;;  %v347_v19 = vshrl.u32 %v10134_v30, 16 }
  0x60   : > { %724 = vst [vmem:[#allocation2 + $0x54] sm:$0xf] %v508_v18  ;;  %v721_v58 = vld [vmem:[#allocation2 + $0x48] sm:$0xf]  ;;  %v246_v18 = vld [vmem:[%s9822_s30 + $0xb0] sm:$0xff]  ;;  %s7164_s29 = sshll.u32 %s7161_s16, 4  ;;  %s7165_s29 = int_to_ptr.hbm [resolvable:$true] %s7164_s29 }
  0x61   : > { %452 = vst [vmem:[#allocation2 + $0x108] sm:$0x1] %v451_v46  ;;  %v722_v2 = vsel %vm9913_vm9, %v499_v56, %v721_v58  ;;  %v10055_v36 = vpack.c.bf16 %v246_v18, %v246_v18  ;;  %v603_v56 = vor.u32 %v12786_v38, %v600_v5  ;;  %v513_v46 = vrot.slane %v509_v60, 4  ;;  %v990_v27 = vld [vmem:[#allocation2 + $0x14c] sm:$0xf]  ;;  %s7150_s4 = scalar_lea.sflag [#allocation5], %s9816_s22 }
  0x62   : > { %310 = vst [vmem:[#allocation2 + $0x118] sm:$0xf] %v10002_v55  ;;  %v7289_v58 = vor.u32 %v9079_v50, %v7286_v53  ;;  %v12795_v5 = vshll.u32 %v10026_v29, 16  ;;  %v12788_v26 = vshrl.u32 %v10057_v40, 16  ;;  %v10074_v38 = vshll.u32 %v10057_v40, 16  ;;  %s9634_s5 = sshra.s32 %s7165_s29, 4  ;;  %s9635_s5 = int_to_ptr.hbm [resolvable:$true] %s9634_s5 }
  0x63   : > { %295 = vst [vmem:[#allocation2 + $0x64] sm:$0xf] %v10026_v29  ;;  %v377_v18 = vshrl.u32 %v10055_v36, 16  ;;  %s9636_s7 = scalar_lea.hbm %s9635_s5, 256  ;;  %s9640_s20 = scalar_lea.hbm %s12785_s3, 512 }
  0x64   : > { %723 = vst [vmem:[#allocation2 + $0x48] sm:$0xf] %v722_v2  ;;  %v430_v2 = vsel %vm9860_vm4, %v340_v35, %v429_v45  ;;  %v621_v6 = vrot.slane %v12788_v26, 7  ;;  %v7298_v26 = vld [vmem:[#allocation2 + $0x54] sm:$0xf0]  ;;  %p9637_p1 = scmp.ne.s32.totalorder %s9635_s5, %s9636_s7  ;;  %p9641_p11 = scmp.lt.s32.totalorder %s9635_s5, %s12785_s3 }
  0x65   : > { %12980 = vst [vmem:[#allocation25_spill] sm:$0xff] %v10055_v36  ;;  %v10076_v50 = vrot.slane %v377_v18, 4  ;;  %v613_v53 = vrot.slane %v377_v18, 7  ;;  %p9642_p2 = scmp.lt.s32.totalorder %s9640_s20, %s9636_s7 }
  0x66   : > { %12981 = vst [vmem:[#allocation26_spill] sm:$0xff] %v10057_v40  ;;  %v7380_v21 = vld [vmem:[#allocation2 + $0xf0] sm:$0xf]  ;;  %1729 = vmatmul.bf16.gmra.mxu0 %v7285_v48  ;;  %v12790_v48 = vshll.u32 %v10055_v36, 16  ;;  %p9638_p4 = pnand %p9637_p1, %p9786_p3 }
  0x67   : > { %756 = vst [vmem:[#allocation2 + $0x114] sm:$0xf] %v612_v11  ;;  %v520_v11 = vor.u32 %v10064_v47, %v517_v39  ;;  %v7381_v45 = vor.u32 %v9104_v34, %v7380_v21  ;;  %v380_v0 = vrot.slane %v10076_v50, 4  ;;  %v617_v18 = vrot.slane %v613_v53, 4  ;;  %1818 = vmatmul.bf16.gmra.mxu1 %v7289_v58  ;;  %1858 = vmatmul.bf16.gmra.mxu3 %v7385_v41  ;;  %v9144_v58 = vld [vmem:[#allocation6 + $0x160] sm:$0xff]  ;;  %p9643_p9 = por %p9642_p2, %p9641_p11 }
  0x68   : > { %296 = vst [vmem:[#allocation2 + $0x70] sm:$0xf] %v10036_v44  ;;  %v753_v49 = vld [vmem:[#allocation2 + $0x108] sm:$0xf]  ;;  %v512_v34 = vor.u32 %v12795_v5, %v509_v60  ;;  %v10092_v21 = vpack.c.bf16 %v232_v63, %v232_v63  ;;  %v9064_v63 = vld [vmem:[#allocation6 + $0x60] sm:$0xff]  ;;  %1897 = vmatpush.bf16.msrb.mxu2 %v9144_v58  ;;  %p9639_p8 = pneg %p9638_p4 }
  0x69   : > { %431 = vst [vmem:[#allocation2 + $0x60] sm:$0x1] %v430_v2  ;;  %v754_v35 = vsel %vm9913_vm9, %v603_v56, %v753_v49  ;;  %v521_v39 = vsel %vm9869_vm5, %v513_v46, %v520_v11  ;;  %v453_v2 = vld [vmem:[#allocation2 + $0x120] sm:$0x1]  ;;  %v624_v56 = vor.u32 %v10074_v38, %v621_v6  ;;  %v233_v46 = vld [vmem:[%s9822_s30 + $0x48] sm:$0xff]  ;;  %1769 = vmatmul.bf16.gmra.mxu2 %v7381_v45  ;;  %v9056_v6 = vld [vmem:[#allocation6 + $0x20] sm:$0xff] }
  0x6a   : > { %12982 = vst [vmem:[#allocation27_spill] sm:$0xff] %v10074_v38  ;;  %v454_v11 = vsel %vm9860_vm4, %v380_v0, %v453_v2  ;;  %v10096_v49 = vpack.c.bf16 %v233_v46, %v233_v46  ;;  %v342_v41 = vshrl.u32 %v10092_v21, 16  ;;  %2386 = vmatpush.bf16.msrb.mxu3 %v9056_v6  ;;  %v249_v46 = vld [vmem:[%s9822_s30 + $0xc8] sm:$0xff]  ;;  %2475 = vmatpush.bf16.msrb.mxu0 %v9064_v63  ;;  %p9644_p10 = pnand %p9643_p9, %p9639_p8 }
  0x6b   : > { %12983 = vst [vmem:[#allocation28_spill] sm:$0xff] %v10076_v50  ;;  %v625_v60 = vsel %vm9869_vm5, %v617_v18, %v624_v56  ;;  %v432_v58 = vld [vmem:[#allocation2 + $0x78] sm:$0x1]  ;;  %v10146_v38 = vpack.c.bf16 %v250_v42, %v250_v42  ;;  %v12990_v42 = vshll.u32 %v10092_v21, 16 }
  0x6c   : > { %311 = vst [vmem:[#allocation2 + $0x124] sm:$0xf] %v10055_v36  ;;  %v12794_v45 = vshrl.u32 %v10096_v49, 16  ;;  %v10107_v0 = vshll.u32 %v10096_v49, 16  ;;  %v10112_v18 = vrot.slane %v342_v41, 4  ;;  %v522_v56 = vrot.slane %v342_v41, 7 }
  0x6d   : > { %312 = vst [vmem:[#allocation2 + $0x130] sm:$0xf] %v10057_v40  ;;  %v7296_v41 = vld [vmem:[#allocation2 + $0x48] sm:$0xf]  ;;  %v7394_v10 = vld [vmem:[#allocation2 + $0x114] sm:$0xf0] }
  0x6e   : > { %755 = vst [vmem:[#allocation2 + $0x108] sm:$0xf] %v754_v35  ;;  %v248_v35 = vld [vmem:[%s9822_s30 + $0xc0] sm:$0xff]  ;;  %v530_v6 = vrot.slane %v12794_v45, 7  ;;  %v345_v63 = vrot.slane %v10112_v18, 4 }
  0x6f   : > { %728 = vst [vmem:[#allocation2 + $0x6c] sm:$0xf] %v521_v39  ;;  %v9107_v45 = vld [vmem:[#allocation2 + $0x110] sm:$0xf0] }
  0x70   : > { %455 = vst [vmem:[#allocation2 + $0x120] sm:$0x1] %v454_v11  ;;  %v725_v39 = vld [vmem:[#allocation2 + $0x60] sm:$0xf]  ;;  %v10110_v11 = vpack.c.bf16 %v248_v35, %v248_v35  ;;  %v9082_v35 = vld [vmem:[#allocation2 + $0x4c] sm:$0xf]  ;;  %v433_v14 = vsel %vm9860_vm4, %v345_v63, %v432_v58 }
  0x71   : > { %760 = vst [vmem:[#allocation2 + $0x12c] sm:$0xf] %v625_v60  ;;  %v726_v2 = vsel %vm9913_vm9, %v512_v34, %v725_v39  ;;  %v10114_v60 = vpack.c.bf16 %v249_v46, %v249_v46  ;;  %v616_v34 = vor.u32 %v12790_v48, %v613_v53  ;;  %v9083_v39 = vld [vmem:[#allocation2 + $0x50] sm:$0xf0]  ;;  %v9106_v46 = vld [vmem:[#allocation2 + $0x10c] sm:$0xf]  ;;  %v533_v48 = vor.u32 %v10107_v0, %v530_v6 }
  0x72   : > { %12984 = vst [vmem:[#allocation29_spill] sm:$0xff] %v10110_v11  ;;  %v382_v31 = vshrl.u32 %v10110_v11, 16  ;;  %v456_v58 = vld [vmem:[#allocation2 + $0x138] sm:$0x1]  ;;  %v7297_v40 = vor.u32 %v9083_v39, %v7296_v41  ;;  %v7301_v3 = vor.u32 %v9082_v35, %v7298_v26  ;;  %v235_v39 = vld [vmem:[%s9822_s30 + $0x58] sm:$0xff] }
  0x73   : > { %727 = vst [vmem:[#allocation2 + $0x60] sm:$0xf] %v726_v2  ;;  %v526_v2 = vrot.slane %v522_v56, 4  ;;  %v10131_v54 = vshll.u32 %v10114_v60, 16  ;;  %v12988_v63 = vshrl.u32 %v10114_v60, 16  ;;  %v10163_v35 = vpack.c.bf16 %v235_v39, %v235_v39 }
  0x74   : > { %12985 = vst [vmem:[#allocation30_spill] sm:$0xff] %v10114_v60  ;;  %v10141_v51 = vrot.slane %v382_v31, 4  ;;  %v626_v50 = vrot.slane %v382_v31, 7  ;;  %v435_v41 = vld [vmem:[#allocation2 + $0x90] sm:$0x1] }
  0x75   : > { %297 = vst [vmem:[#allocation2 + $0x7c] sm:$0xf] %v10092_v21  ;;  %v7392_v15 = vld [vmem:[#allocation2 + $0x108] sm:$0xf]  ;;  %v534_v53 = vsel %vm9869_vm5, %v526_v2, %v533_v48  ;;  %v634_v36 = vrot.slane %v12988_v63, 7  ;;  %v7397_v48 = vor.u32 %v9106_v46, %v7394_v10  ;;  %v387_v2 = vshrl.u32 %v10146_v38, 16 }
  0x76   : > { %298 = vst [vmem:[#allocation2 + $0x88] sm:$0xf] %v10096_v49  ;;  %v525_v63 = vor.u32 %v12990_v42, %v522_v56  ;;  %v12807_v10 = vshll.u32 %v10110_v11, 16  ;;  %v251_v46 = vld [vmem:[%s9822_s30 + $0xd8] sm:$0xff]  ;;  %1734 = vmatmul.bf16.gmra.mxu0 %v7297_v40  ;;  %v12808_v56 = vshrl.u32 %v10163_v35, 16  ;;  %v535_v40 = vrot.slane %v347_v19, 7 }
  0x77   : > { %v757_v5 = vld [vmem:[#allocation2 + $0x120] sm:$0xf]  ;;  %12986 = vst [vmem:[#allocation31_spill] sm:$0xff] %v10131_v54  ;;  %v637_v31 = vor.u32 %v10131_v54, %v634_v36  ;;  %1823 = vmatmul.bf16.gmra.mxu1 %v7301_v3  ;;  %1863 = vmatmul.bf16.gmra.mxu3 %v7397_v48  ;;  %v9063_v42 = vld [vmem:[#allocation6 + $0x58] sm:$0xff]  ;;  %v459_v39 = vld [vmem:[#allocation2 + $0x150] sm:$0x1] }
  0x78   : > { %313 = vst [vmem:[#allocation2 + $0x13c] sm:$0xf] %v10110_v11  ;;  %v758_v6 = vsel %vm9913_vm9, %v616_v34, %v757_v5  ;;  %v630_v5 = vrot.slane %v626_v50, 4  ;;  %v10151_v34 = vrot.slane %v347_v19, 4  ;;  %v629_v48 = vor.u32 %v12807_v10, %v626_v50  ;;  %2476 = vmatpush.bf16.msrb.mxu0 %v9063_v42  ;;  %v236_v50 = vld [vmem:[%s9822_s30 + $0x60] sm:$0xff] }
  0x79   : > { %434 = vst [vmem:[#allocation2 + $0x78] sm:$0x1] %v433_v14  ;;  %v385_v14 = vrot.slane %v10141_v51, 4  ;;  %v10183_v19 = vshll.u32 %v10163_v35, 16 }
  0x7a   : > { %12987 = vst [vmem:[#allocation32_spill] sm:$0xff] %v10141_v51  ;;  %v638_v36 = vsel %vm9869_vm5, %v630_v5, %v637_v31  ;;  %v9055_v5 = vld [vmem:[#allocation6 + $0x18] sm:$0xff]  ;;  %v10175_v31 = vpack.c.bf16 %v251_v46, %v251_v46 }
  0x7b   : > { %759 = vst [vmem:[#allocation2 + $0x120] sm:$0xf] %v758_v6  ;;  %v7393_v6 = vor.u32 %v9107_v45, %v7392_v15  ;;  %v457_v26 = vsel %vm9860_vm4, %v385_v14, %v456_v58  ;;  %v350_v15 = vrot.slane %v10151_v34, 4  ;;  %v9143_v14 = vld [vmem:[#allocation6 + $0x158] sm:$0xff]  ;;  %2387 = vmatpush.bf16.msrb.mxu3 %v9055_v5  ;;  %v9085_v5 = vld [vmem:[#allocation2 + $0x64] sm:$0xf] }
  0x7c   : > { %12989 = vst [vmem:[#allocation33_spill] sm:$0xff] %v10146_v38  ;;  %1898 = vmatpush.bf16.msrb.mxu2 %v9143_v14  ;;  %v252_v14 = vld [vmem:[%s9822_s30 + $0xe0] sm:$0xff] }
  0x7d   : > { %732 = vst [vmem:[#allocation2 + $0x84] sm:$0xf] %v534_v53  ;;  %v10169_v53 = vrot.slane %v387_v2, 4  ;;  %1774 = vmatmul.bf16.gmra.mxu2 %v7393_v6  ;;  %v436_v3 = vsel %vm9860_vm4, %v350_v15, %v435_v41  ;;  %v543_v6 = vrot.slane %v12808_v56, 7  ;;  %v639_v41 = vrot.slane %v387_v2, 7 }
  0x7e   : > { %314 = vst [vmem:[#allocation2 + $0x148] sm:$0xf] %v10114_v60  ;;  %v9086_v56 = vld [vmem:[#allocation2 + $0x68] sm:$0xf0]  ;;  %v10207_v54 = vpack.c.bf16 %v252_v14, %v252_v14 }
  0x7f   : > { %299 = vst [vmem:[#allocation2 + $0x94] sm:$0xf] %v10134_v30  ;;  %v546_v15 = vor.u32 %v10183_v19, %v543_v6  ;;  %v10201_v6 = vpack.c.bf16 %v236_v50, %v236_v50  ;;  %v643_v11 = vrot.slane %v639_v41, 4 }
  0x80   : > { %458 = vst [vmem:[#allocation2 + $0x138] sm:$0x1] %v457_v26  ;;  %v729_v45 = vld [vmem:[#allocation2 + $0x78] sm:$0xf]  ;;  %v12814_v26 = vshll.u32 %v10134_v30, 16  ;;  %v392_v60 = vshrl.u32 %v10207_v54, 16 }
  0x81   : > { %764 = vst [vmem:[#allocation2 + $0x144] sm:$0xf] %v638_v36  ;;  %v730_v58 = vsel %vm9913_vm9, %v525_v63, %v729_v45  ;;  %v539_v63 = vrot.slane %v535_v40, 4  ;;  %v390_v36 = vrot.slane %v10169_v53, 4  ;;  %v9109_v45 = vld [vmem:[#allocation2 + $0x124] sm:$0xf] }
  0x82   : > { %300 = vst [vmem:[#allocation2 + $0xa0] sm:$0xf] %v10163_v35  ;;  %v538_v2 = vor.u32 %v12814_v26, %v535_v40  ;;  %v7308_v40 = vld [vmem:[#allocation2 + $0x60] sm:$0xf]  ;;  %v9110_v26 = vld [vmem:[#allocation2 + $0x128] sm:$0xf0] }
  0x83   : > { %12991 = vst [vmem:[#allocation34_spill] sm:$0xff] %v10169_v53  ;;  %v460_v10 = vsel %vm9860_vm4, %v390_v36, %v459_v39  ;;  %v7406_v53 = vld [vmem:[#allocation2 + $0x12c] sm:$0xf0]  ;;  %v547_v51 = vsel %vm9869_vm5, %v539_v63, %v546_v15  ;;  %v352_v39 = vshrl.u32 %v10201_v6, 16  ;;  %v7404_v36 = vld [vmem:[#allocation2 + $0x120] sm:$0xf]  ;;  %v7309_v14 = vor.u32 %v9086_v56, %v7308_v40 }
  0x84   : > { %12992 = vst [vmem:[#allocation35_spill] sm:$0xff] %v10175_v31  ;;  %v7405_v50 = vor.u32 %v9110_v26, %v7404_v36  ;;  %v237_v56 = vld [vmem:[%s9822_s30 + $0x68] sm:$0xff]  ;;  %v9062_v36 = vld [vmem:[#allocation6 + $0x50] sm:$0xff] }
  0x85   : > { %731 = vst [vmem:[#allocation2 + $0x78] sm:$0xf] %v730_v58  ;;  %v10191_v58 = vshll.u32 %v10175_v31, 16  ;;  %v10227_v40 = vpack.c.bf16 %v237_v56, %v237_v56  ;;  %2477 = vmatpush.bf16.msrb.mxu0 %v9062_v36  ;;  %v7418_v9 = vld [vmem:[#allocation2 + $0x144] sm:$0xf0] }
  0x86   : > { %437 = vst [vmem:[#allocation2 + $0x90] sm:$0x1] %v436_v3  ;;  %v7310_v3 = vld [vmem:[#allocation2 + $0x6c] sm:$0xf0]  ;;  %1739 = vmatmul.bf16.gmra.mxu0 %v7309_v14 }
  0x87   : > { %315 = vst [vmem:[#allocation2 + $0x154] sm:$0xf] %v10146_v38  ;;  %v761_v46 = vld [vmem:[#allocation2 + $0x138] sm:$0xf]  ;;  %v7313_v63 = vor.u32 %v9085_v5, %v7310_v3  ;;  %v438_v3 = vld [vmem:[#allocation2 + $0xa8] sm:$0x1] }
  0x88   : > { %12993 = vst [vmem:[#allocation36_spill] sm:$0xff] %v10191_v58  ;;  %v762_v42 = vsel %vm9913_vm9, %v629_v48, %v761_v46  ;;  %v12994_v48 = vshrl.u32 %v10175_v31, 16  ;;  %v10240_v14 = vshll.u32 %v10227_v40, 16  ;;  %v9113_v55 = vld [vmem:[#allocation2 + $0x140] sm:$0xf0] }
  0x89   : > { %316 = vst [vmem:[#allocation2 + $0x160] sm:$0xf] %v10175_v31  ;;  %v10213_v31 = vrot.slane %v352_v39, 4  ;;  %1828 = vmatmul.bf16.gmra.mxu1 %v7313_v63  ;;  %v12821_v63 = vshrl.u32 %v10227_v40, 16 }
  0x8a   : > { %763 = vst [vmem:[#allocation2 + $0x138] sm:$0xf] %v762_v42  ;;  %v647_v46 = vrot.slane %v12994_v48, 7  ;;  %v10220_v48 = vrot.slane %v392_v60, 4 }
  0x8b   : > { %12995 = vst [vmem:[#allocation37_spill] sm:$0xff] %v10207_v54  ;;  %v355_v5 = vrot.slane %v10213_v31, 4 }
  0x8c   : > { %736 = vst [vmem:[#allocation2 + $0x9c] sm:$0xf] %v547_v51  ;;  %v650_v42 = vor.u32 %v10191_v58, %v647_v46  ;;  %v7409_v46 = vor.u32 %v9109_v45, %v7406_v53  ;;  %v12997_v58 = vshll.u32 %v10146_v38, 16  ;;  %v395_v53 = vrot.slane %v10220_v48, 4 }
  0x8d   : > { %461 = vst [vmem:[#allocation2 + $0x150] sm:$0x1] %v460_v10  ;;  %v733_v15 = vld [vmem:[#allocation2 + $0x90] sm:$0xf]  ;;  %1779 = vmatmul.bf16.gmra.mxu2 %v7405_v50 }
  0x8e   : > { %301 = vst [vmem:[#allocation2 + $0xac] sm:$0xf] %v10201_v6  ;;  %v734_v51 = vsel %vm9913_vm9, %v538_v2, %v733_v15  ;;  %v651_v10 = vsel %vm9869_vm5, %v643_v11, %v650_v42  ;;  %v642_v25 = vor.u32 %v12997_v58, %v639_v41  ;;  %v439_v11 = vsel %vm9860_vm4, %v355_v5, %v438_v3  ;;  %v253_v2 = vld [vmem:[%s9822_s30 + $0xe8] sm:$0xff]  ;;  %v9142_v41 = vld [vmem:[#allocation6 + $0x150] sm:$0xff] }
  0x8f   : > { %12996 = vst [vmem:[#allocation38_spill] sm:$0xff] %v10220_v48  ;;  %1868 = vmatmul.bf16.gmra.mxu3 %v7409_v46  ;;  %v9054_v58 = vld [vmem:[#allocation6 + $0x10] sm:$0xff]  ;;  %v548_v42 = vrot.slane %v352_v39, 7  ;;  %v12820_v15 = vshll.u32 %v10201_v6, 16  ;;  %1899 = vmatpush.bf16.msrb.mxu2 %v9142_v41  ;;  %v652_v39 = vrot.slane %v392_v60, 7  ;;  %v556_v5 = vrot.slane %v12821_v63, 7 }
  0x90   : > { %317 = vst [vmem:[#allocation2 + $0x16c] sm:$0xf] %v10207_v54  ;;  %2388 = vmatpush.bf16.msrb.mxu3 %v9054_v58  ;;  %v9112_v63 = vld [vmem:[#allocation2 + $0x13c] sm:$0xf]  ;;  %v13000_v48 = vshll.u32 %v10207_v54, 16 }
  0x91   : > { %735 = vst [vmem:[#allocation2 + $0x90] sm:$0xf] %v734_v51  ;;  %v10236_v51 = vpack.c.bf16 %v253_v2, %v253_v2  ;;  %v551_v50 = vor.u32 %v12820_v15, %v548_v42  ;;  %v552_v46 = vrot.slane %v548_v42, 4  ;;  %v9088_v2 = vld [vmem:[#allocation2 + $0x7c] sm:$0xf]  ;;  %v559_v60 = vor.u32 %v10240_v14, %v556_v5 }
  0x92   : > { %768 = vst [vmem:[#allocation2 + $0x15c] sm:$0xf] %v651_v10  ;;  %v462_v10 = vld [vmem:[#allocation2 + $0x168] sm:$0x1]  ;;  %v656_v58 = vrot.slane %v652_v39, 4  ;;  %v655_v38 = vor.u32 %v13000_v48, %v652_v39 }
  0x93   : > { %440 = vst [vmem:[#allocation2 + $0xa8] sm:$0x1] %v439_v11  ;;  %v12826_v56 = vshrl.u32 %v10236_v51, 16  ;;  %v10252_v11 = vshll.u32 %v10236_v51, 16  ;;  %v9089_v15 = vld [vmem:[#allocation2 + $0x80] sm:$0xf0]  ;;  %v560_v3 = vsel %vm9869_vm5, %v552_v46, %v559_v60 }
  0x94   : > { %v765_v45 = vld [vmem:[#allocation2 + $0x150] sm:$0xf]  ;;  %12998 = vst [vmem:[#allocation39_spill] sm:$0xff] %v10236_v51  ;;  %v465_v54 = vld [vmem:[#allocation2 + $0x180] sm:$0x1] }
  0x95   : > { %v766_v26 = vsel %vm9913_vm9, %v642_v25, %v765_v45  ;;  %302 = vst [vmem:[#allocation2 + $0xb8] sm:$0xf] %v10227_v40  ;;  %v463_v25 = vsel %vm9860_vm4, %v395_v53, %v462_v10  ;;  %v238_v53 = vld [vmem:[%s9822_s30 + $0x70] sm:$0xff]  ;;  %v660_v36 = vrot.slane %v12826_v56, 7 }
  0x96   : > { %767 = vst [vmem:[#allocation2 + $0x150] sm:$0xf] %v766_v26  ;;  %v254_v45 = vld [vmem:[%s9822_s30 + $0xf0] sm:$0xff]  ;;  %v7322_v26 = vld [vmem:[#allocation2 + $0x84] sm:$0xf0]  ;;  %v10260_v42 = vpack.c.bf16 %v238_v53, %v238_v53 }
  0x97   : > { %464 = vst [vmem:[#allocation2 + $0x168] sm:$0x1] %v463_v25  ;;  %v10262_v10 = vpack.c.bf16 %v254_v45, %v254_v45  ;;  %v7320_v25 = vld [vmem:[#allocation2 + $0x78] sm:$0xf]  ;;  %v663_v56 = vor.u32 %v10252_v11, %v660_v36  ;;  %v7325_v37 = vor.u32 %v9088_v2, %v7322_v26  ;;  %v255_v26 = vld [vmem:[%s9822_s30 + $0xf8] sm:$0xff] }
  0x98   : > { %12999 = vst [vmem:[#allocation40_spill] sm:$0xff] %v10252_v11  ;;  %v357_v53 = vshrl.u32 %v10260_v42, 16  ;;  %v7321_v46 = vor.u32 %v9089_v15, %v7320_v25  ;;  %v10288_v25 = vpack.c.bf16 %v255_v26, %v255_v26  ;;  %v7430_v23 = vld [vmem:[#allocation2 + $0x15c] sm:$0xf0] }
  0x99   : > { %318 = vst [vmem:[#allocation2 + $0x178] sm:$0xf] %v10236_v51  ;;  %v397_v45 = vshrl.u32 %v10262_v10, 16  ;;  %v7416_v51 = vld [vmem:[#allocation2 + $0x138] sm:$0xf]  ;;  %1833 = vmatmul.bf16.gmra.mxu1 %v7325_v37  ;;  %v9075_v37 = vld [vmem:[#allocation6 + $0xb8] sm:$0xff] }
  0x9a   : > { %v737_v41 = vld [vmem:[#allocation2 + $0xa8] sm:$0xf]  ;;  %740 = vst [vmem:[#allocation2 + $0xb4] sm:$0xf] %v560_v3  ;;  %v10275_v48 = vrot.slane %v357_v53, 4  ;;  %v7417_v2 = vor.u32 %v9113_v55, %v7416_v51  ;;  %1744 = vmatmul.bf16.gmra.mxu0 %v7321_v46  ;;  %v9141_v51 = vld [vmem:[#allocation6 + $0x148] sm:$0xff]  ;;  %2561 = vmatpush.bf16.msrb.mxu1 %v9075_v37 }
  0x9b   : > { %v738_v5 = vsel %vm9913_vm9, %v551_v50, %v737_v41  ;;  %v664_v50 = vsel %vm9869_vm5, %v656_v58, %v663_v56  ;;  %303 = vst [vmem:[#allocation2 + $0xc4] sm:$0xf] %v10260_v42  ;;  %v10278_v39 = vrot.slane %v397_v45, 4  ;;  %v7421_v41 = vor.u32 %v9112_v63, %v7418_v9  ;;  %v239_v3 = vld [vmem:[%s9822_s30 + $0x78] sm:$0xff]  ;;  %v9053_v63 = vld [vmem:[#allocation6 + $0x8] sm:$0xff]  ;;  %1900 = vmatpush.bf16.msrb.mxu2 %v9141_v51 }
  0x9c   : > { %739 = vst [vmem:[#allocation2 + $0xa8] sm:$0xf] %v738_v5  ;;  %v441_v5 = vld [vmem:[#allocation2 + $0xc0] sm:$0x1]  ;;  %v360_v15 = vrot.slane %v10275_v48, 4  ;;  %v10286_v58 = vpack.c.bf16 %v239_v3, %v239_v3  ;;  %v9061_v46 = vld [vmem:[#allocation6 + $0x48] sm:$0xff]  ;;  %2389 = vmatpush.bf16.msrb.mxu3 %v9053_v63 }
  0x9d   : > { %13001 = vst [vmem:[#allocation41_spill] sm:$0xff] %v10278_v39  ;;  %v400_v56 = vrot.slane %v10278_v39, 4  ;;  %1784 = vmatmul.bf16.gmra.mxu2 %v7417_v2  ;;  %v665_v2 = vrot.slane %v397_v45, 7  ;;  %2478 = vmatpush.bf16.msrb.mxu0 %v9061_v46  ;;  %v10312_v63 = vshll.u32 %v10288_v25, 16  ;;  %v9091_v45 = vld [vmem:[#allocation2 + $0x94] sm:$0xf] }
  0x9e   : > { %v769_v60 = vld [vmem:[#allocation2 + $0x168] sm:$0xf]  ;;  %772 = vst [vmem:[#allocation2 + $0x174] sm:$0xf] %v664_v50  ;;  %v442_v9 = vsel %vm9860_vm4, %v360_v15, %v441_v5  ;;  %v12833_v55 = vshrl.u32 %v10286_v58, 16  ;;  %v561_v50 = vrot.slane %v357_v53, 7 }
  0x9f   : > { %v770_v36 = vsel %vm9913_vm9, %v655_v38, %v769_v60  ;;  %13002 = vst [vmem:[#allocation42_spill] sm:$0xff] %v10288_v25  ;;  %1873 = vmatmul.bf16.gmra.mxu3 %v7421_v41  ;;  %v12831_v38 = vshrl.u32 %v10288_v25, 16  ;;  %v12832_v60 = vshll.u32 %v10260_v42, 16  ;;  %v10300_v41 = vshll.u32 %v10286_v58, 16 }
  0xa0   : > { %771 = vst [vmem:[#allocation2 + $0x168] sm:$0xf] %v770_v36  ;;  %v466_v36 = vsel %vm9860_vm4, %v400_v56, %v465_v54  ;;  %v569_v5 = vrot.slane %v12833_v55, 7  ;;  %v565_v3 = vrot.slane %v561_v50, 4  ;;  %v12843_v15 = vshll.u32 %v10262_v10, 16 }
  0xa1   : > { %443 = vst [vmem:[#allocation2 + $0xc0] sm:$0x1] %v442_v9  ;;  %v564_v53 = vor.u32 %v12832_v60, %v561_v50  ;;  %v673_v26 = vrot.slane %v12831_v38, 7  ;;  %v13003_v56 = vshrl.u32 %v9836_v8, 16  ;;  %v669_v51 = vrot.slane %v665_v2, 4 }
  0xa2   : > { %304 = vst [vmem:[#allocation2 + $0xd0] sm:$0xf] %v10286_v58  ;;  %v572_v54 = vor.u32 %v10300_v41, %v569_v5  ;;  %v783_v37 = vrot.slane %v9847_v16, 5  ;;  %v7332_v8 = vld [vmem:[#allocation2 + $0x90] sm:$0xf]  ;;  %v668_v60 = vor.u32 %v12843_v15, %v665_v2 }
  0xa3   : > { %467 = vst [vmem:[#allocation2 + $0x180] sm:$0x1] %v466_v36  ;;  %v785_v9 = vrot.slane %v13003_v56, 4  ;;  %v676_v46 = vor.u32 %v10312_v63, %v673_v26  ;;  %v9092_v5 = vld [vmem:[#allocation2 + $0x98] sm:$0xf0] }
  0xa4   : > { %13004 = vst [vmem:[#allocation43_spill] sm:$0xff] %v10312_v63  ;;  %v573_v50 = vsel %vm9869_vm5, %v565_v3, %v572_v54  ;;  %v7334_v56 = vld [vmem:[#allocation2 + $0x9c] sm:$0xf0]  ;;  %v9115_v55 = vld [vmem:[#allocation2 + $0x154] sm:$0xf]  ;;  %v7333_v39 = vor.u32 %v9092_v5, %v7332_v8 }
  0xa5   : > { %319 = vst [vmem:[#allocation2 + $0x184] sm:$0xf] %v10262_v10  ;;  %v677_v3 = vsel %vm9869_vm5, %v669_v51, %v676_v46  ;;  %v786_v54 = vor.u32 %v785_v9, %v783_v37  ;;  %v9116_v26 = vld [vmem:[#allocation2 + $0x158] sm:$0xf0]  ;;  %v7337_v63 = vor.u32 %v9091_v45, %v7334_v56  ;;  %v7433_v57 = vor.u32 %v9115_v55, %v7430_v23  ;;  %v9074_v9 = vld [vmem:[#allocation6 + $0xb0] sm:$0xff]  ;;  %v9140_v45 = vld [vmem:[#allocation6 + $0x140] sm:$0xff] }
  0xa6   : > { %320 = vst [vmem:[#allocation2 + $0x190] sm:$0xf] %v10288_v25  ;;  %v13005_v51 = vshll.u32 %v9834_v7, 16  ;;  %v9052_v23 = vld [vmem:[#allocation6] sm:$0xff]  ;;  %2562 = vmatpush.bf16.msrb.mxu1 %v9074_v9  ;;  %v9073_v55 = vld [vmem:[#allocation6 + $0xa8] sm:$0xff]  ;;  %1901 = vmatpush.bf16.msrb.mxu2 %v9140_v45  ;;  %v9071_v9 = vld [vmem:[#allocation6 + $0x98] sm:$0xff] }
  0xa7   : > { %744 = vst [vmem:[#allocation2 + $0xcc] sm:$0xf] %v573_v50  ;;  %v7428_v50 = vld [vmem:[#allocation2 + $0x150] sm:$0xf]  ;;  %v787_v11 = vrot.slane %v786_v54, 4  ;;  %2390 = vmatpush.bf16.msrb.mxu3 %v9052_v23  ;;  %v1075_v56 = vld [vmem:[#allocation2 + $0x3c] sm:$0xff] }
  0xa8   : > { %v741_v36 = vld [vmem:[#allocation2 + $0xc0] sm:$0xf]  ;;  %776 = vst [vmem:[#allocation2 + $0x18c] sm:$0xf] %v677_v3  ;;  %v7429_v2 = vor.u32 %v9116_v26, %v7428_v50  ;;  %v780_v46 = vrot.slane %v13005_v51, 5  ;;  %v1073_v8 = vld [vmem:[#allocation2 + $0x30] sm:$0xff] }
  0xa9   : > { %v742_v38 = vsel %vm9913_vm9, %v564_v53, %v741_v36  ;;  %v942_v36 = vld [vmem:[#allocation2 + $0x2c] sm:$0xf]  ;;  %1838 = vmatmul.bf16.gmra.mxu1 %v7337_v63  ;;  %v7346_v63 = vld [vmem:[#allocation2 + $0xb4] sm:$0xf0]  ;;  %v7344_v3 = vld [vmem:[#allocation2 + $0xa8] sm:$0xf] }
  0xaa   : > { %743 = vst [vmem:[#allocation2 + $0xc0] sm:$0xf] %v742_v38  ;;  %v773_v25 = vld [vmem:[#allocation2 + $0x180] sm:$0xf]  ;;  %v943_v38 = vsel %vm9954_vm13, %v787_v11, %v942_v36  ;;  %1749 = vmatmul.bf16.gmra.mxu0 %v7333_v39  ;;  %v9094_v39 = vld [vmem:[#allocation2 + $0xac] sm:$0xf]  ;;  %2563 = vmatpush.bf16.msrb.mxu1 %v9073_v55 }
  0xab   : > { %v774_v53 = vsel %vm9913_vm9, %v668_v60, %v773_v25  ;;  %944 = vst [vmem:[#allocation2 + $0x2c] sm:$0xf] %v943_v38  ;;  %v9060_v25 = vld [vmem:[#allocation6 + $0x40] sm:$0xff]  ;;  %v781_v60 = vor.u32 %v780_v46, %v9856_v22  ;;  %v9118_v50 = vld [vmem:[#allocation2 + $0x16c] sm:$0xf]  ;;  %v9070_v46 = vld [vmem:[#allocation6 + $0x90] sm:$0xff] }
  0xac   : > { %775 = vst [vmem:[#allocation2 + $0x180] sm:$0xf] %v774_v53  ;;  %2479 = vmatpush.bf16.msrb.mxu0 %v9060_v25  ;;  %v9095_v54 = vld [vmem:[#allocation2 + $0xb0] sm:$0xf0]  ;;  %v7442_v26 = vld [vmem:[#allocation2 + $0x174] sm:$0xf0] }
  0xad   : > { %1789 = vmatmul.bf16.gmra.mxu2 %v7429_v2  ;;  %v782_v11 = vrot.slane %v781_v60, 4  ;;  %1077 = vst [vmem:[#allocation2] sm:$0xff] %v1073_v8  ;;  %v7440_v53 = vld [vmem:[#allocation2 + $0x168] sm:$0xf]  ;;  %v9119_v36 = vld [vmem:[#allocation2 + $0x170] sm:$0xf0]  ;;  %v7345_v2 = vor.u32 %v9095_v54, %v7344_v3  ;;  %v7445_v38 = vor.u32 %v9118_v50, %v7442_v26 }
  0xae   : > { %1079 = vst [vmem:[#allocation2 + $0xc] sm:$0xff] %v1075_v56  ;;  %v7441_v51 = vor.u32 %v9119_v36, %v7440_v53  ;;  %v9211_v45 = vld [vmem:[#allocation6 + $0x1f8] sm:$0xff]  ;;  %v1074_v23 = vld [vmem:[#allocation2 + $0x38] sm:$0xf]  ;;  %v1076_v55 = vld [vmem:[#allocation2 + $0x44] sm:$0xf] }
  0xaf   : > { %1878 = vmatmul.bf16.gmra.mxu3 %v7433_v57  ;;  %v9072_v57 = vld [vmem:[#allocation6 + $0xa0] sm:$0xff]  ;;  %v784_v7 = vsel %vm9940_vm10, %v782_v11, %v783_v37  ;;  %v7349_v37 = vor.u32 %v9094_v39, %v7346_v63  ;;  %1078 = vst [vmem:[#allocation2 + $0x8] sm:$0xf] %v1074_v23  ;;  %v9069_v25 = vld [vmem:[#allocation6 + $0x88] sm:$0xff]  ;;  %v9219_v60 = vld [vmem:[#allocation6 + $0x238] sm:$0xff]  ;;  %v799_v63 = vrot.slane %v9985_v33, 5 }
  0xb0   : > { %940 = vst [vmem:[#allocation2 + $0x20] sm:$0xf] %v784_v7  ;;  %2564 = vmatpush.bf16.msrb.mxu1 %v9072_v57  ;;  %3252 = vmatpush.bf16.msra.mxu3 %v9211_v45  ;;  %v9068_v11 = vld [vmem:[#allocation6 + $0x80] sm:$0xff]  ;;  %v9098_v39 = vld [vmem:[#allocation2 + $0xc8] sm:$0xf0]  ;;  %v13006_v57 = vshrl.u32 %v9965_v62, 16 }
  0xb1   : > { %1080 = vst [vmem:[#allocation2 + $0x14] sm:$0xf] %v1076_v55  ;;  %v7356_v8 = vld [vmem:[#allocation2 + $0xc0] sm:$0xf]  ;;  %v7358_v56 = vld [vmem:[#allocation2 + $0xcc] sm:$0xf0]  ;;  %3341 = vmatpush.bf16.msra.mxu0 %v9219_v60 }
  0xb2   : > { %v1024_v5 = vld [vmem:[#allocation2 + $0x2c] sm:$0x8]  ;;  %v801_v7 = vrot.slane %v13006_v57, 4  ;;  %v9121_v3 = vld [vmem:[#allocation2 + $0x184] sm:$0xf]  ;;  %v7357_v53 = vor.u32 %v9098_v39, %v7356_v8  ;;  %v807_v60 = vrot.slane %v10064_v47, 5 }
  0xb3   : > { %v1025_v22 = vsel %vm10010_vm14, %v9847_v16, %v1024_v5  ;;  %v9203_v16 = vld [vmem:[#allocation6 + $0x1b8] sm:$0xff]  ;;  %v9097_v5 = vld [vmem:[#allocation2 + $0xc4] sm:$0xf]  ;;  %v7454_v54 = vld [vmem:[#allocation2 + $0x18c] sm:$0xf0] }
  0xb4   : > { %1026 = vst [vmem:[#allocation2 + $0x2c] sm:$0x8] %v1025_v22  ;;  %2565 = vmatpush.bf16.msrb.mxu1 %v9071_v9  ;;  %3163 = vmatpush.bf16.msra.mxu2 %v9203_v16  ;;  %v802_v22 = vor.u32 %v801_v7, %v799_v63  ;;  %v7452_v50 = vld [vmem:[#allocation2 + $0x180] sm:$0xf]  ;;  %v9122_v26 = vld [vmem:[#allocation2 + $0x188] sm:$0xf0]  ;;  %v7361_v36 = vor.u32 %v9097_v5, %v7358_v56 }
  0xb5   : > { %v7453_v9 = vor.u32 %v9122_v26, %v7452_v50  ;;  %v9004_v23 = vld [vmem:[#allocation2 + $0x4] sm:$0xf]  ;;  %v7562_v57 = vld [vmem:[#allocation2 + $0xc] sm:$0xf0]  ;;  %v9005_v5 = vld [vmem:[#allocation2 + $0x8] sm:$0xf0] }
  0xb6   : > { %v7568_v7 = vld [vmem:[#allocation2 + $0x8] sm:$0xf] }
  0xb8   : > { %2566 = vmatpush.bf16.msrb.mxu1 %v9070_v46 }
  0xb9   : > { %1843 = vmatmul.bf16.gmra.mxu1 %v7349_v37  ;;  %v7457_v37 = vor.u32 %v9121_v3, %v7454_v54  ;;  %v7280_v3 = vld [vmem:[#allocation2 + $0x20] sm:$0xf]  ;;  %v7565_v54 = vor.u32 %v9004_v23, %v7562_v57 }
  0xba   : > { %1754 = vmatmul.bf16.gmra.mxu0 %v7345_v2  ;;  %v803_v2 = vrot.slane %v802_v22, 4 }
  0xbc   : > { %2567 = vmatpush.bf16.msrb.mxu1 %v9069_v25 }
  0xbd   : > { %1794 = vmatmul.bf16.gmra.mxu2 %v7441_v51  ;;  %v13007_v51 = vshll.u32 %v9922_v24, 16  ;;  %v9006_v24 = vld [vmem:[#allocation2 + $0x10] sm:$0xf0] }
  0xbe   : > { %v7569_v22 = vor.u32 %v9006_v24, %v7568_v7  ;;  %v9218_v24 = vld [vmem:[#allocation6 + $0x230] sm:$0xff] }
  0xbf   : > { %1883 = vmatmul.bf16.gmra.mxu3 %v7445_v38  ;;  %v950_v38 = vld [vmem:[#allocation2 + $0x5c] sm:$0xf]  ;;  %v796_v46 = vrot.slane %v13007_v51, 5  ;;  %v9210_v51 = vld [vmem:[#allocation6 + $0x1f0] sm:$0xff]  ;;  %3342 = vmatpush.bf16.msra.mxu0 %v9218_v24  ;;  %v13012_v24 = vshrl.u32 %v10163_v35, 16 }
  0xc0   : > { %2568 = vmatpush.bf16.msrb.mxu1 %v9068_v11  ;;  %v951_v62 = vsel %vm9954_vm13, %v803_v2, %v950_v38  ;;  %v13008_v11 = vshrl.u32 %v10036_v44, 16  ;;  %3253 = vmatpush.bf16.msra.mxu3 %v9210_v51 }
  0xc1   : > { %952 = vst [vmem:[#allocation2 + $0x5c] sm:$0xf] %v951_v62  ;;  %v797_v16 = vor.u32 %v796_v46, %v9975_v17  ;;  %v7560_v17 = vld [vmem:[#allocation2] sm:$0xf] }
  0xc2   : > { %v809_v39 = vrot.slane %v13008_v11, 4  ;;  %v7561_v44 = vor.u32 %v9005_v5, %v7560_v17  ;;  %v9202_v62 = vld [vmem:[#allocation6 + $0x1b0] sm:$0xff]  ;;  %v7574_v17 = vld [vmem:[#allocation2 + $0x24] sm:$0xf0] }
  0xc3   : > { %v798_v45 = vrot.slane %v797_v16, 4  ;;  %3164 = vmatpush.bf16.msra.mxu2 %v9202_v62 }
  0xc4   : > { %v810_v56 = vor.u32 %v809_v39, %v807_v60 }
  0xc5   : > { %v800_v55 = vsel %vm9940_vm10, %v798_v45, %v799_v63  ;;  %v9078_v63 = vld [vmem:[#allocation2 + $0x28] sm:$0xf0] }
  0xc6   : > { %949 = vst [vmem:[#allocation2 + $0x50] sm:$0xf] %v800_v55  ;;  %v811_v50 = vrot.slane %v810_v56, 4  ;;  %v7580_v56 = vld [vmem:[#allocation2 + $0x20] sm:$0xf] }
  0xc8   : > { %v1030_v25 = vld [vmem:[#allocation2 + $0x5c] sm:$0x8] }
  0xc9   : > { %1848 = vmatmul.bf16.gmra.mxu1 %v7361_v36  ;;  %v1031_v8 = vsel %vm10010_vm14, %v9985_v33, %v1030_v25  ;;  %v954_v36 = vld [vmem:[#allocation2 + $0x74] sm:$0xf]  ;;  %v13009_v33 = vshll.u32 %v10026_v29, 16  ;;  %v13010_v25 = vshrl.u32 %v10096_v49, 16  ;;  %v9007_v29 = vld [vmem:[#allocation2 + $0x1c] sm:$0xf] }
  0xca   : > { %1759 = vmatmul.bf16.gmra.mxu0 %v7357_v53  ;;  %1032 = vst [vmem:[#allocation2 + $0x5c] sm:$0x8] %v1031_v8  ;;  %v955_v38 = vsel %vm9954_vm13, %v811_v50, %v954_v36  ;;  %v815_v49 = vrot.slane %v10107_v0, 5  ;;  %v7292_v50 = vld [vmem:[#allocation2 + $0x38] sm:$0xf] }
  0xcb   : > { %956 = vst [vmem:[#allocation2 + $0x74] sm:$0xf] %v955_v38  ;;  %v817_v11 = vrot.slane %v13010_v25, 4 }
  0xcd   : > { %1799 = vmatmul.bf16.gmra.mxu2 %v7453_v9  ;;  %v804_v9 = vrot.slane %v13009_v33, 5 }
  0xcf   : > { %1888 = vmatmul.bf16.gmra.mxu3 %v7457_v37  ;;  %v7281_v37 = vor.u32 %v9078_v63, %v7280_v3  ;;  %v805_v46 = vor.u32 %v804_v9, %v10044_v59  ;;  %v9009_v3 = vld [vmem:[#allocation2 + $0x28] sm:$0xf0]  ;;  %v7572_v63 = vld [vmem:[#allocation2 + $0x18] sm:$0xf] }
  0xd0   : > { %v958_v9 = vld [vmem:[#allocation2 + $0x8c] sm:$0xf] }
  0xd1   : > { %v806_v55 = vrot.slane %v805_v46, 4 }
  0xd2   : > { %v1033_v59 = vld [vmem:[#allocation2 + $0x74] sm:$0x8] }
  0xd3   : > { %v1725_v26 = vpop.f32.mrf.mxu0  ;;  %v808_v8 = vsel %vm9940_vm10, %v806_v55, %v807_v60  ;;  %v1034_v5 = vsel %vm10010_vm14, %v10064_v47, %v1033_v59  ;;  %v7577_v60 = vor.u32 %v9007_v29, %v7574_v17 }
  0xd4   : > { %v1814_v53 = vpop.f32.mrf.mxu1  ;;  %953 = vst [vmem:[#allocation2 + $0x68] sm:$0xf] %v808_v8  ;;  %v825_v8 = vrot.slane %v13012_v24, 4 }
  0xd5   : > { %v10354_v2 = vadd.f32 %v1814_v53, %v1725_v26  ;;  %1035 = vst [vmem:[#allocation2 + $0x74] sm:$0x8] %v1034_v5  ;;  %v9081_v26 = vld [vmem:[#allocation2 + $0x40] sm:$0xf0] }
  0xd6   : > { %v7293_v51 = vor.u32 %v9081_v26, %v7292_v50  ;;  %v7584_v50 = vld [vmem:[#allocation2 + $0x30] sm:$0xf]  ;;  %v9011_v26 = vld [vmem:[#allocation2 + $0x38] sm:$0xf0] }
  0xd9   : > { %2569 = vmatmul.bf16.vlgmr.msrb.gmra.mxu1 %v7569_v22  ;;  %v818_v22 = vor.u32 %v817_v11, %v815_v49 }
  0xda   : > { %2480 = vmatmul.bf16.vlgmr.msrb.gmra.mxu0 %v7565_v54  ;;  %v1854_v16 = vpop.f32.mrf.mxu3  ;;  %v9008_v54 = vld [vmem:[#allocation2 + $0x20] sm:$0xf0] }
  0xdb   : > { %v1727_v23 = vpop.f32.mrf.mxu0  ;;  %v819_v36 = vrot.slane %v818_v22, 4  ;;  %v7573_v33 = vor.u32 %v9008_v54, %v7572_v63  ;;  %v7586_v63 = vld [vmem:[#allocation2 + $0x3c] sm:$0xf0]  ;;  %v7592_v54 = vld [vmem:[#allocation2 + $0x38] sm:$0xf] }
  0xdc   : > { %v1765_v45 = vpop.f32.mrf.mxu2  ;;  %v1816_v57 = vpop.f32.mrf.mxu1  ;;  %v9012_v22 = vld [vmem:[#allocation2 + $0x40] sm:$0xf0] }
  0xdd   : > { %1902 = vmatmul.bf16.vlgmr.msrb.gmra.mxu2 %v7281_v37  ;;  %v10363_v39 = vadd.f32 %v1854_v16, %v1765_v45  ;;  %v10365_v7 = vadd.f32 %v1816_v57, %v1727_v23  ;;  %v959_v46 = vsel %vm9954_vm13, %v819_v36, %v958_v9  ;;  %v13011_v45 = vshll.u32 %v10092_v21, 16 }
  0xde   : > { %960 = vst [vmem:[#allocation2 + $0x8c] sm:$0xf] %v959_v46 }
  0xdf   : > { %2391 = vmatmul.bf16.vlgmr.msrb.gmra.mxu3 %v7561_v44  ;;  %v7581_v44 = vor.u32 %v9009_v3, %v7580_v56  ;;  %v812_v23 = vrot.slane %v13011_v45, 5  ;;  %v9010_v56 = vld [vmem:[#allocation2 + $0x34] sm:$0xf] }
  0xe1   : > { %v813_v55 = vor.u32 %v812_v23, %v10112_v18  ;;  %v823_v18 = vrot.slane %v10183_v19, 5 }
  0xe2   : > { %v1856_v53 = vpop.f32.mrf.mxu3 }
  0xe3   : > { %v1730_v38 = vpop.f32.mrf.mxu0  ;;  %v814_v29 = vrot.slane %v813_v55, 4 }
  0xe4   : > { %v1767_v37 = vpop.f32.mrf.mxu2  ;;  %v1819_v62 = vpop.f32.mrf.mxu1 }
  0xe5   : > { %v10373_v47 = vadd.f32 %v1856_v53, %v1767_v37  ;;  %v10377_v16 = vadd.f32 %v1819_v62, %v1730_v38  ;;  %v816_v21 = vsel %vm9940_vm10, %v814_v29, %v815_v49  ;;  %v1036_v3 = vld [vmem:[#allocation2 + $0x8c] sm:$0x8]  ;;  %v826_v53 = vor.u32 %v825_v8, %v823_v18  ;;  %v9209_v29 = vld [vmem:[#allocation6 + $0x1e8] sm:$0xff] }
  0xe6   : > { %957 = vst [vmem:[#allocation2 + $0x80] sm:$0xf] %v816_v21  ;;  %v1037_v35 = vsel %vm10010_vm14, %v10107_v0, %v1036_v3  ;;  %v7589_v37 = vor.u32 %v9010_v56, %v7586_v63  ;;  %v7593_v49 = vor.u32 %v9012_v22, %v7592_v54  ;;  %v7585_v62 = vor.u32 %v9011_v26, %v7584_v50  ;;  %v9217_v50 = vld [vmem:[#allocation6 + $0x228] sm:$0xff] }
  0xe7   : > { %1038 = vst [vmem:[#allocation2 + $0x8c] sm:$0x8] %v1037_v35  ;;  %v827_v38 = vrot.slane %v826_v53, 4  ;;  %3254 = vmatpush.bf16.msra.mxu3 %v9209_v29  ;;  %v13014_v3 = vshrl.u32 %v10227_v40, 16  ;;  %v7598_v53 = vld [vmem:[#allocation2 + $0x54] sm:$0xf0]  ;;  %3343 = vmatpush.bf16.msra.mxu0 %v9217_v50 }
  0xe8   : > { %v831_v40 = vrot.slane %v10240_v14, 5  ;;  %v13016_v50 = vshrl.u32 %v10286_v58, 16 }
  0xe9   : > { %2574 = vmatmul.bf16.gmra.mxu1 %v7581_v44  ;;  %v9084_v44 = vld [vmem:[#allocation2 + $0x58] sm:$0xf0]  ;;  %v833_v63 = vrot.slane %v13014_v3, 4 }
  0xea   : > { %2485 = vmatmul.bf16.gmra.mxu0 %v7577_v60  ;;  %v1859_v25 = vpop.f32.mrf.mxu3  ;;  %v7304_v60 = vld [vmem:[#allocation2 + $0x50] sm:$0xf] }
  0xeb   : > { %v1732_v57 = vpop.f32.mrf.mxu0  ;;  %v7305_v23 = vor.u32 %v9084_v44, %v7304_v60  ;;  %v7604_v44 = vld [vmem:[#allocation2 + $0x50] sm:$0xf] }
  0xec   : > { %v1770_v11 = vpop.f32.mrf.mxu2  ;;  %v1821_v17 = vpop.f32.mrf.mxu1 }
  0xed   : > { %1907 = vmatmul.bf16.gmra.mxu2 %v7293_v51  ;;  %v10384_v59 = vadd.f32 %v1859_v25, %v1770_v11  ;;  %v10386_v5 = vadd.f32 %v1821_v17, %v1732_v57  ;;  %v962_v51 = vld [vmem:[#allocation2 + $0xa4] sm:$0xf]  ;;  %v13013_v25 = vshll.u32 %v10134_v30, 16  ;;  %v9201_v57 = vld [vmem:[#allocation6 + $0x1a8] sm:$0xff]  ;;  %v9013_v30 = vld [vmem:[#allocation2 + $0x4c] sm:$0xf] }
  0xee   : > { %v963_v0 = vsel %vm9954_vm13, %v827_v38, %v962_v51  ;;  %3165 = vmatpush.bf16.msra.mxu2 %v9201_v57  ;;  %v834_v38 = vor.u32 %v833_v63, %v831_v40 }
  0xef   : > { %2396 = vmatmul.bf16.gmra.mxu3 %v7573_v33  ;;  %964 = vst [vmem:[#allocation2 + $0xa4] sm:$0xf] %v963_v0  ;;  %v820_v11 = vrot.slane %v13013_v25, 5 }
  0xf1   : > { %v821_v24 = vor.u32 %v820_v11, %v10151_v34  ;;  %v966_v11 = vld [vmem:[#allocation2 + $0xbc] sm:$0xf] }
  0xf2   : > { %v1861_v36 = vpop.f32.mrf.mxu3 }
  0xf3   : > { %v1735_v9 = vpop.f32.mrf.mxu0  ;;  %v822_v21 = vrot.slane %v821_v24, 4 }
  0xf4   : > { %v1772_v33 = vpop.f32.mrf.mxu2  ;;  %v1824_v45 = vpop.f32.mrf.mxu1 }
  0xf5   : > { %v10394_v46 = vadd.f32 %v1861_v36, %v1772_v33  ;;  %v10398_v55 = vadd.f32 %v1824_v45, %v1735_v9  ;;  %v824_v26 = vsel %vm9940_vm10, %v822_v21, %v823_v18  ;;  %v9015_v36 = vld [vmem:[#allocation2 + $0x58] sm:$0xf0]  ;;  %v7316_v33 = vld [vmem:[#allocation2 + $0x68] sm:$0xf]  ;;  %v9087_v9 = vld [vmem:[#allocation2 + $0x70] sm:$0xf0]  ;;  %v7601_v18 = vor.u32 %v9013_v30, %v7598_v53 }
  0xf6   : > { %v1039_v34 = vld [vmem:[#allocation2 + $0xa4] sm:$0x8]  ;;  %961 = vst [vmem:[#allocation2 + $0x98] sm:$0xf] %v824_v26  ;;  %v7605_v51 = vor.u32 %v9015_v36, %v7604_v44  ;;  %v835_v45 = vrot.slane %v834_v38, 4  ;;  %v7317_v29 = vor.u32 %v9087_v9, %v7316_v33  ;;  %v841_v26 = vrot.slane %v13016_v50, 4 }
  0xf7   : > { %v1040_v60 = vsel %vm10010_vm14, %v10183_v19, %v1039_v34  ;;  %v9016_v44 = vld [vmem:[#allocation2 + $0x64] sm:$0xf]  ;;  %v9018_v38 = vld [vmem:[#allocation2 + $0x70] sm:$0xf0]  ;;  %v7608_v33 = vld [vmem:[#allocation2 + $0x60] sm:$0xf] }
  0xf8   : > { %1041 = vst [vmem:[#allocation2 + $0xa4] sm:$0x8] %v1040_v60  ;;  %v967_v24 = vsel %vm9954_vm13, %v835_v45, %v966_v11  ;;  %v9017_v9 = vld [vmem:[#allocation2 + $0x68] sm:$0xf0] }
  0xf9   : > { %2579 = vmatmul.bf16.gmra.mxu1 %v7593_v49  ;;  %v9014_v49 = vld [vmem:[#allocation2 + $0x50] sm:$0xf0]  ;;  %968 = vst [vmem:[#allocation2 + $0xbc] sm:$0xf] %v967_v24 }
  0xfa   : > { %2490 = vmatmul.bf16.gmra.mxu0 %v7589_v37  ;;  %v1864_v8 = vpop.f32.mrf.mxu3  ;;  %v7596_v37 = vld [vmem:[#allocation2 + $0x48] sm:$0xf] }
  0xfb   : > { %v1737_v56 = vpop.f32.mrf.mxu0  ;;  %v7597_v25 = vor.u32 %v9014_v49, %v7596_v37  ;;  %v7610_v37 = vld [vmem:[#allocation2 + $0x6c] sm:$0xf0]  ;;  %v7616_v49 = vld [vmem:[#allocation2 + $0x68] sm:$0xf] }
  0xfc   : > { %v1826_v22 = vpop.f32.mrf.mxu1 }
  0xfd   : > { %1912 = vmatmul.bf16.gmra.mxu2 %v7305_v23  ;;  %v10407_v35 = vadd.f32 %v1826_v22, %v1737_v56 }
  0xff   : > { %2401 = vmatmul.bf16.gmra.mxu3 %v7585_v62 }
 0x100   : > { %v1775_v17 = vpop.f32.mrf.mxu2  ;;  %v1042_v36 = vld [vmem:[#allocation2 + $0xbc] sm:$0x8] }
 0x101   : > { %v10405_v54 = vadd.f32 %v1864_v8, %v1775_v17  ;;  %v13015_v17 = vshll.u32 %v10201_v6, 16  ;;  %v1043_v58 = vsel %vm10010_vm14, %v10240_v14, %v1042_v36  ;;  %v13018_v36 = vshrl.u32 %v9842_v13, 16 }
 0x102   : > { %v1866_v62 = vpop.f32.mrf.mxu3  ;;  %1044 = vst [vmem:[#allocation2 + $0xbc] sm:$0x8] %v1043_v58  ;;  %v847_v13 = vrot.slane %v9854_v20, 5 }
 0x103   : > { %v1740_v0 = vpop.f32.mrf.mxu0  ;;  %v828_v56 = vrot.slane %v13015_v17, 5 }
 0x105   : > { %v829_v21 = vor.u32 %v828_v56, %v10213_v31  ;;  %v839_v31 = vrot.slane %v10300_v41, 5 }
 0x106   : > { %v1829_v57 = vpop.f32.mrf.mxu1 }
 0x107   : > { %v10419_v8 = vadd.f32 %v1829_v57, %v1740_v0  ;;  %v830_v30 = vrot.slane %v829_v21, 4  ;;  %v7609_v57 = vor.u32 %v9017_v9, %v7608_v33  ;;  %v9216_v33 = vld [vmem:[#allocation6 + $0x220] sm:$0xff] }
 0x108   : > { %v1777_v23 = vpop.f32.mrf.mxu2  ;;  %3344 = vmatpush.bf16.msra.mxu0 %v9216_v33  ;;  %v13020_v33 = vshrl.u32 %v9904_v61, 16 }
 0x109   : > { %v10415_v19 = vadd.f32 %v1866_v62, %v1777_v23  ;;  %2584 = vmatmul.bf16.gmra.mxu1 %v7605_v51  ;;  %v832_v6 = vsel %vm9940_vm10, %v830_v30, %v831_v40  ;;  %v842_v62 = vor.u32 %v841_v26, %v839_v31  ;;  %v9090_v51 = vld [vmem:[#allocation2 + $0x88] sm:$0xf0]  ;;  %v7613_v23 = vor.u32 %v9016_v44, %v7610_v37  ;;  %v9208_v30 = vld [vmem:[#allocation6 + $0x1e0] sm:$0xff] }
 0x10a   : > { %2495 = vmatmul.bf16.gmra.mxu0 %v7601_v18  ;;  %965 = vst [vmem:[#allocation2 + $0xb0] sm:$0xf] %v832_v6  ;;  %v7328_v18 = vld [vmem:[#allocation2 + $0x80] sm:$0xf]  ;;  %v7617_v40 = vor.u32 %v9018_v38, %v7616_v49  ;;  %3255 = vmatpush.bf16.msra.mxu3 %v9208_v30  ;;  %v849_v37 = vrot.slane %v13018_v36, 4 }
 0x10b   : > { %v1742_v22 = vpop.f32.mrf.mxu0  ;;  %v843_v0 = vrot.slane %v842_v62, 4  ;;  %v7329_v56 = vor.u32 %v9090_v51, %v7328_v18  ;;  %v7622_v62 = vld [vmem:[#allocation2 + $0x84] sm:$0xf0]  ;;  %v7628_v51 = vld [vmem:[#allocation2 + $0x80] sm:$0xf] }
 0x10d   : > { %1917 = vmatmul.bf16.gmra.mxu2 %v7317_v29  ;;  %v970_v29 = vld [vmem:[#allocation2 + $0xd4] sm:$0xf] }
 0x10e   : > { %v1831_v53 = vpop.f32.mrf.mxu1  ;;  %v971_v14 = vsel %vm9954_vm13, %v843_v0, %v970_v29  ;;  %v850_v0 = vor.u32 %v849_v37, %v847_v13 }
 0x10f   : > { %2406 = vmatmul.bf16.gmra.mxu3 %v7597_v25  ;;  %v10428_v60 = vadd.f32 %v1831_v53, %v1742_v22  ;;  %972 = vst [vmem:[#allocation2 + $0xd4] sm:$0xf] %v971_v14  ;;  %v9200_v22 = vld [vmem:[#allocation6 + $0x1a0] sm:$0xff] }
 0x110   : > { %v1780_v63 = vpop.f32.mrf.mxu2  ;;  %3166 = vmatpush.bf16.msra.mxu2 %v9200_v22 }
 0x112   : > { %v1869_v3 = vpop.f32.mrf.mxu3 }
 0x113   : > { %v10426_v34 = vadd.f32 %v1869_v3, %v1780_v63  ;;  %v13017_v3 = vshll.u32 %v10260_v42, 16  ;;  %v9019_v42 = vld [vmem:[#allocation2 + $0x7c] sm:$0xf] }
 0x115   : > { %v836_v63 = vrot.slane %v13017_v3, 5 }
 0x116   : > { %v1834_v17 = vpop.f32.mrf.mxu1 }
 0x117   : > { %v1745_v11 = vpop.f32.mrf.mxu0  ;;  %v837_v50 = vor.u32 %v836_v63, %v10275_v48  ;;  %v1045_v48 = vld [vmem:[#allocation2 + $0xd4] sm:$0x8]  ;;  %v974_v63 = vld [vmem:[#allocation2 + $0xec] sm:$0xf] }
 0x118   : > { %v1782_v25 = vpop.f32.mrf.mxu2  ;;  %v10440_v21 = vadd.f32 %v1834_v17, %v1745_v11  ;;  %v1046_v18 = vsel %vm10010_vm14, %v10300_v41, %v1045_v48  ;;  %v9093_v11 = vld [vmem:[#allocation2 + $0xa0] sm:$0xf0]  ;;  %v851_v17 = vrot.slane %v850_v0, 4 }
 0x119   : > { %2589 = vmatmul.bf16.gmra.mxu1 %v7617_v40  ;;  %v838_v6 = vrot.slane %v837_v50, 4  ;;  %1047 = vst [vmem:[#allocation2 + $0xd4] sm:$0x8] %v1046_v18  ;;  %v9020_v40 = vld [vmem:[#allocation2 + $0x80] sm:$0xf0] }
 0x11a   : > { %v1871_v45 = vpop.f32.mrf.mxu3  ;;  %2500 = vmatmul.bf16.gmra.mxu0 %v7613_v23  ;;  %v7620_v23 = vld [vmem:[#allocation2 + $0x78] sm:$0xf]  ;;  %v975_v50 = vsel %vm9954_vm13, %v851_v17, %v974_v63  ;;  %v9024_v0 = vld [vmem:[#allocation2 + $0xa0] sm:$0xf0] }
 0x11b   : > { %v10436_v24 = vadd.f32 %v1871_v45, %v1782_v25  ;;  %v840_v9 = vsel %vm9940_vm10, %v838_v6, %v839_v31  ;;  %v9021_v45 = vld [vmem:[#allocation2 + $0x88] sm:$0xf0]  ;;  %v7340_v25 = vld [vmem:[#allocation2 + $0x98] sm:$0xf]  ;;  %v7625_v31 = vor.u32 %v9019_v42, %v7622_v62  ;;  %v7621_v3 = vor.u32 %v9020_v40, %v7620_v23  ;;  %976 = vst [vmem:[#allocation2 + $0xec] sm:$0xf] %v975_v50 }
 0x11c   : > { %969 = vst [vmem:[#allocation2 + $0xc8] sm:$0xf] %v840_v9  ;;  %v7629_v29 = vor.u32 %v9021_v45, %v7628_v51  ;;  %v7341_v30 = vor.u32 %v9093_v11, %v7340_v25  ;;  %v857_v9 = vrot.slane %v13020_v33, 4  ;;  %v9022_v51 = vld [vmem:[#allocation2 + $0x94] sm:$0xf]  ;;  %v9207_v33 = vld [vmem:[#allocation6 + $0x1d8] sm:$0xff] }
 0x11d   : > { %1922 = vmatmul.bf16.gmra.mxu2 %v7329_v56  ;;  %v7634_v23 = vld [vmem:[#allocation2 + $0x9c] sm:$0xf0]  ;;  %v7640_v40 = vld [vmem:[#allocation2 + $0x98] sm:$0xf]  ;;  %v7632_v25 = vld [vmem:[#allocation2 + $0x90] sm:$0xf]  ;;  %3256 = vmatpush.bf16.msra.mxu3 %v9207_v33 }
 0x11e   : > { %v1836_v38 = vpop.f32.mrf.mxu1  ;;  %v9023_v11 = vld [vmem:[#allocation2 + $0x98] sm:$0xf0] }
 0x11f   : > { %2411 = vmatmul.bf16.gmra.mxu3 %v7609_v57  ;;  %v1747_v44 = vpop.f32.mrf.mxu0 }
 0x120   : > { %v1785_v53 = vpop.f32.mrf.mxu2  ;;  %v10449_v58 = vadd.f32 %v1836_v38, %v1747_v44 }
 0x122   : > { %v1874_v26 = vpop.f32.mrf.mxu3  ;;  %v1048_v45 = vld [vmem:[#allocation2 + $0xec] sm:$0x8] }
 0x123   : > { %v10447_v49 = vadd.f32 %v1874_v26, %v1785_v53  ;;  %v13019_v53 = vshll.u32 %v9840_v12, 16  ;;  %v1049_v61 = vsel %vm10010_vm14, %v9854_v20, %v1048_v45 }
 0x124   : > { %1050 = vst [vmem:[#allocation2 + $0xec] sm:$0x8] %v1049_v61 }
 0x125   : > { %v844_v44 = vrot.slane %v13019_v53, 5 }
 0x126   : > { %v1839_v22 = vpop.f32.mrf.mxu1 }
 0x127   : > { %v1750_v14 = vpop.f32.mrf.mxu0  ;;  %v845_v6 = vor.u32 %v844_v44, %v9873_v28  ;;  %v855_v28 = vrot.slane %v9928_v32, 5 }
 0x128   : > { %v1787_v56 = vpop.f32.mrf.mxu2  ;;  %v10461_v26 = vadd.f32 %v1839_v22, %v1750_v14  ;;  %v7633_v22 = vor.u32 %v9023_v11, %v7632_v25 }
 0x129   : > { %2594 = vmatmul.bf16.gmra.mxu1 %v7629_v29  ;;  %v846_v42 = vrot.slane %v845_v6, 4  ;;  %v9096_v29 = vld [vmem:[#allocation2 + $0xb8] sm:$0xf0] }
 0x12a   : > { %v1876_v57 = vpop.f32.mrf.mxu3  ;;  %2505 = vmatmul.bf16.gmra.mxu0 %v7625_v31  ;;  %v7352_v31 = vld [vmem:[#allocation2 + $0xb0] sm:$0xf] }
 0x12b   : > { %v10457_v41 = vadd.f32 %v1876_v57, %v1787_v56  ;;  %v848_v12 = vsel %vm9940_vm10, %v846_v42, %v847_v13  ;;  %v858_v57 = vor.u32 %v857_v9, %v855_v28  ;;  %v7637_v56 = vor.u32 %v9022_v51, %v7634_v23  ;;  %v9199_v42 = vld [vmem:[#allocation6 + $0x198] sm:$0xff]  ;;  %v13023_v9 = vld [vmem:[#allocation17_spill] sm:$0xff] }
 0x12c   : > { %973 = vst [vmem:[#allocation2 + $0xe0] sm:$0xf] %v848_v12  ;;  %v7641_v13 = vor.u32 %v9024_v0, %v7640_v40  ;;  %v7353_v44 = vor.u32 %v9096_v29, %v7352_v31  ;;  %3167 = vmatpush.bf16.msra.mxu2 %v9199_v42  ;;  %v13024_v40 = vld [vmem:[#allocation21_spill] sm:$0xff]  ;;  %v9025_v31 = vld [vmem:[#allocation2 + $0xac] sm:$0xf] }
 0x12d   : > { %1927 = vmatmul.bf16.gmra.mxu2 %v7341_v30  ;;  %v859_v14 = vrot.slane %v858_v57, 4  ;;  %v978_v30 = vld [vmem:[#allocation2 + $0x104] sm:$0xf]  ;;  %v13025_v0 = vshrl.u32 %v13024_v40, 16 }
 0x12e   : > { %v1841_v62 = vpop.f32.mrf.mxu1 }
 0x12f   : > { %2416 = vmatmul.bf16.gmra.mxu3 %v7621_v3  ;;  %v1752_v38 = vpop.f32.mrf.mxu0  ;;  %v979_v20 = vsel %vm9954_vm13, %v859_v14, %v978_v30  ;;  %v865_v61 = vrot.slane %v13025_v0, 4  ;;  %v9027_v30 = vld [vmem:[#allocation2 + $0xb8] sm:$0xf0] }
 0x130   : > { %v1790_v37 = vpop.f32.mrf.mxu2  ;;  %v10470_v18 = vadd.f32 %v1841_v62, %v1752_v38  ;;  %980 = vst [vmem:[#allocation2 + $0x104] sm:$0xf] %v979_v20 }
 0x132   : > { %v1879_v36 = vpop.f32.mrf.mxu3 }
 0x133   : > { %v10468_v48 = vadd.f32 %v1879_v36, %v1790_v37  ;;  %v13021_v36 = vld [vmem:[#allocation15_spill] sm:$0xff] }
 0x134   : > { %v13022_v37 = vshll.u32 %v13021_v36, 16  ;;  %v7364_v36 = vld [vmem:[#allocation2 + $0xc8] sm:$0xf] }
 0x136   : > { %v1844_v53 = vpop.f32.mrf.mxu1  ;;  %v852_v38 = vrot.slane %v13022_v37, 5  ;;  %v9099_v37 = vld [vmem:[#allocation2 + $0xd0] sm:$0xf0] }
 0x137   : > { %v1755_v63 = vpop.f32.mrf.mxu0 }
 0x138   : > { %v1792_v3 = vpop.f32.mrf.mxu2  ;;  %v10482_v6 = vadd.f32 %v1844_v53, %v1755_v63  ;;  %v853_v62 = vor.u32 %v852_v38, %v13023_v9  ;;  %v7644_v53 = vld [vmem:[#allocation2 + $0xa8] sm:$0xf] }
 0x139   : > { %2599 = vmatmul.bf16.gmra.mxu1 %v7641_v13  ;;  %v9215_v13 = vld [vmem:[#allocation6 + $0x218] sm:$0xff] }
 0x13a   : > { %v1881_v17 = vpop.f32.mrf.mxu3  ;;  %2510 = vmatmul.bf16.gmra.mxu0 %v7637_v56  ;;  %v854_v23 = vrot.slane %v853_v62, 4  ;;  %v7646_v56 = vld [vmem:[#allocation2 + $0xb4] sm:$0xf0] }
 0x13b   : > { %v10478_v50 = vadd.f32 %v1881_v17, %v1792_v3  ;;  %v1051_v17 = vld [vmem:[#allocation2 + $0x104] sm:$0x8]  ;;  %v13026_v3 = vld [vmem:[#allocation24_spill] sm:$0xff]  ;;  %3345 = vmatpush.bf16.msra.mxu0 %v9215_v13  ;;  %v7649_v38 = vor.u32 %v9025_v31, %v7646_v56 }
 0x13c   : > { %v856_v29 = vsel %vm9940_vm10, %v854_v23, %v855_v28  ;;  %v1052_v14 = vsel %vm10010_vm14, %v9928_v32, %v1051_v17  ;;  %v863_v63 = vrot.slane %v13026_v3, 5  ;;  %v7365_v23 = vor.u32 %v9099_v37, %v7364_v36 }
 0x13d   : > { %1932 = vmatmul.bf16.gmra.mxu2 %v7353_v44  ;;  %977 = vst [vmem:[#allocation2 + $0xf8] sm:$0xf] %v856_v29  ;;  %v9026_v44 = vld [vmem:[#allocation2 + $0xb0] sm:$0xf0]  ;;  %v13029_v29 = vld [vmem:[#allocation23_spill] sm:$0xff] }
 0x13e   : > { %v1846_v11 = vpop.f32.mrf.mxu1  ;;  %1053 = vst [vmem:[#allocation2 + $0x104] sm:$0x8] %v1052_v14  ;;  %v866_v20 = vor.u32 %v865_v61, %v863_v63  ;;  %v13027_v61 = vld [vmem:[#allocation20_spill] sm:$0xff] }
 0x13f   : > { %2421 = vmatmul.bf16.gmra.mxu3 %v7633_v22  ;;  %v1757_v45 = vpop.f32.mrf.mxu0  ;;  %v7652_v22 = vld [vmem:[#allocation2 + $0xb0] sm:$0xf] }
 0x140   : > { %v1795_v12 = vpop.f32.mrf.mxu2  ;;  %v10491_v57 = vadd.f32 %v1846_v11, %v1757_v45  ;;  %v7653_v42 = vor.u32 %v9027_v30, %v7652_v22  ;;  %v867_v33 = vrot.slane %v866_v20, 4  ;;  %v13028_v11 = vshll.u32 %v13027_v61, 16  ;;  %v13030_v30 = vld [vmem:[#allocation26_spill] sm:$0xff] }
 0x142   : > { %v1884_v51 = vpop.f32.mrf.mxu3  ;;  %v860_v31 = vrot.slane %v13028_v11, 5  ;;  %v7376_v11 = vld [vmem:[#allocation2 + $0xe0] sm:$0xf] }
 0x143   : > { %v10489_v25 = vadd.f32 %v1884_v51, %v1795_v12  ;;  %v7645_v51 = vor.u32 %v9026_v44, %v7644_v53  ;;  %v982_v12 = vld [vmem:[#allocation2 + $0x11c] sm:$0xf]  ;;  %v13031_v53 = vshrl.u32 %v13030_v30, 16  ;;  %v986_v30 = vld [vmem:[#allocation2 + $0x134] sm:$0xf] }
 0x144   : > { %v983_v40 = vsel %vm9954_vm13, %v867_v33, %v982_v12  ;;  %v861_v17 = vor.u32 %v860_v31, %v13029_v29  ;;  %v13032_v33 = vld [vmem:[#allocation27_spill] sm:$0xff]  ;;  %v9030_v12 = vld [vmem:[#allocation2 + $0xd0] sm:$0xf0]  ;;  %v9102_v31 = vld [vmem:[#allocation2 + $0xe8] sm:$0xf0] }
 0x145   : > { %984 = vst [vmem:[#allocation2 + $0x11c] sm:$0xf] %v983_v40  ;;  %v873_v44 = vrot.slane %v13031_v53, 4  ;;  %v9029_v40 = vld [vmem:[#allocation2 + $0xc8] sm:$0xf0] }
 0x146   : > { %v1849_v45 = vpop.f32.mrf.mxu1  ;;  %v862_v22 = vrot.slane %v861_v17, 4 }
 0x147   : > { %v1760_v62 = vpop.f32.mrf.mxu0 }
 0x148   : > { %v1797_v9 = vpop.f32.mrf.mxu2  ;;  %v10503_v0 = vadd.f32 %v1849_v45, %v1760_v62  ;;  %v7658_v62 = vld [vmem:[#allocation2 + $0xcc] sm:$0xf0] }
 0x149   : > { %2604 = vmatmul.bf16.gmra.mxu1 %v7653_v42 }
 0x14a   : > { %v1886_v28 = vpop.f32.mrf.mxu3  ;;  %2515 = vmatmul.bf16.gmra.mxu0 %v7649_v38  ;;  %v864_v38 = vsel %vm9940_vm10, %v862_v22, %v863_v63 }
 0x14b   : > { %v10499_v32 = vadd.f32 %v1886_v28, %v1797_v9  ;;  %v9028_v28 = vld [vmem:[#allocation2 + $0xc4] sm:$0xf]  ;;  %981 = vst [vmem:[#allocation2 + $0x110] sm:$0xf] %v864_v38  ;;  %v871_v9 = vrot.slane %v13032_v33, 5 }
 0x14c   : > { %v1054_v42 = vld [vmem:[#allocation2 + $0x11c] sm:$0x8]  ;;  %v7661_v17 = vor.u32 %v9028_v28, %v7658_v62  ;;  %v9198_v62 = vld [vmem:[#allocation6 + $0x190] sm:$0xff] }
 0x14d   : > { %1937 = vmatmul.bf16.gmra.mxu2 %v7365_v23  ;;  %v1055_v45 = vsel %vm10010_vm14, %v13026_v3, %v1054_v42  ;;  %v7656_v23 = vld [vmem:[#allocation2 + $0xc0] sm:$0xf]  ;;  %v874_v61 = vor.u32 %v873_v44, %v871_v9  ;;  %v13034_v44 = vld [vmem:[#allocation25_spill] sm:$0xff] }
 0x14e   : > { %v1851_v36 = vpop.f32.mrf.mxu1  ;;  %1056 = vst [vmem:[#allocation2 + $0x11c] sm:$0x8] %v1055_v45  ;;  %v7657_v22 = vor.u32 %v9029_v40, %v7656_v23  ;;  %v13035_v42 = vshll.u32 %v13034_v44, 16  ;;  %3168 = vmatpush.bf16.msra.mxu2 %v9198_v62  ;;  %v9214_v44 = vld [vmem:[#allocation6 + $0x210] sm:$0xff] }
 0x14f   : > { %2426 = vmatmul.bf16.gmra.mxu3 %v7645_v51  ;;  %v1762_v14 = vpop.f32.mrf.mxu0  ;;  %v7664_v51 = vld [vmem:[#allocation2 + $0xc8] sm:$0xf]  ;;  %3346 = vmatpush.bf16.msra.mxu0 %v9214_v44 }
 0x150   : > { %v1800_v13 = vpop.f32.mrf.mxu2  ;;  %v10512_v37 = vadd.f32 %v1851_v36, %v1762_v14  ;;  %v7665_v63 = vor.u32 %v9030_v12, %v7664_v51  ;;  %v7377_v36 = vor.u32 %v9102_v31, %v7376_v11  ;;  %v868_v28 = vrot.slane %v13035_v42, 5  ;;  %v9206_v51 = vld [vmem:[#allocation6 + $0x1d0] sm:$0xff]  ;;  %v13036_v12 = vld [vmem:[#allocation28_spill] sm:$0xff]  ;;  %v13037_v31 = vld [vmem:[#allocation30_spill] sm:$0xff] }
 0x151   : > { %3257 = vmatpush.bf16.msra.mxu3 %v9206_v51  ;;  %v7676_v51 = vld [vmem:[#allocation2 + $0xe0] sm:$0xf] }
 0x152   : > { %v1889_v56 = vpop.f32.mrf.mxu3  ;;  %v869_v45 = vor.u32 %v868_v28, %v13036_v12  ;;  %v13039_v28 = vld [vmem:[#allocation31_spill] sm:$0xff]  ;;  %v9033_v12 = vld [vmem:[#allocation2 + $0xe8] sm:$0xf0] }
 0x153   : > { %v10510_v20 = vadd.f32 %v1889_v56, %v1800_v13  ;;  %v875_v56 = vrot.slane %v874_v61, 4  ;;  %v879_v62 = vrot.slane %v13039_v28, 5 }
 0x154   : > { %v870_v11 = vrot.slane %v869_v45, 4  ;;  %v7668_v45 = vld [vmem:[#allocation2 + $0xd8] sm:$0xf] }
 0x155   : > { %v987_v3 = vsel %vm9954_vm13, %v875_v56, %v986_v30 }
 0x156   : > { %v2570_v38 = vpop.f32.mrf.mxu1  ;;  %988 = vst [vmem:[#allocation2 + $0x134] sm:$0xf] %v987_v3  ;;  %v7670_v3 = vld [vmem:[#allocation2 + $0xe4] sm:$0xf0] }
 0x157   : > { %v2481_v14 = vpop.f32.mrf.mxu0 }
 0x158   : > { %v1802_v13 = vpop.f32.mrf.mxu2 }
 0x159   : > { %2609 = vmatmul.bf16.gmra.mxu1 %v7665_v63 }
 0x15a   : > { %v1891_v29 = vpop.f32.mrf.mxu3  ;;  %2520 = vmatmul.bf16.gmra.mxu0 %v7661_v17 }
 0x15b   : > { %v10520_v53 = vadd.f32 %v1891_v29, %v1802_v13  ;;  %v13038_v29 = vshrl.u32 %v13037_v31, 16  ;;  %v9031_v13 = vld [vmem:[#allocation2 + $0xdc] sm:$0xf] }
 0x15d   : > { %13033 = vst [vmem:[#allocation15_spill] sm:$0xff] %v10520_v53  ;;  %1942 = vmatmul.bf16.gmra.mxu2 %v7377_v36  ;;  %v881_v17 = vrot.slane %v13038_v29, 4  ;;  %v1057_v30 = vld [vmem:[#allocation2 + $0x134] sm:$0x8] }
 0x15e   : > { %v2572_v56 = vpop.f32.mrf.mxu1  ;;  %v1058_v42 = vsel %vm10010_vm14, %v13032_v33, %v1057_v30 }
 0x15f   : > { %2431 = vmatmul.bf16.gmra.mxu3 %v7657_v22  ;;  %v2483_v61 = vpop.f32.mrf.mxu0  ;;  %v872_v22 = vsel %vm9940_vm10, %v870_v11, %v871_v9  ;;  %1059 = vst [vmem:[#allocation2 + $0x134] sm:$0x8] %v1058_v42  ;;  %v882_v31 = vor.u32 %v881_v17, %v879_v62  ;;  %v7388_v9 = vld [vmem:[#allocation2 + $0xf8] sm:$0xf]  ;;  %v9105_v11 = vld [vmem:[#allocation2 + $0x100] sm:$0xf0] }
 0x160   : > { %v1903_v40 = vpop.f32.mrf.mxu2  ;;  %985 = vst [vmem:[#allocation2 + $0x128] sm:$0xf] %v872_v22  ;;  %v7677_v22 = vor.u32 %v9033_v12, %v7676_v51  ;;  %v7389_v42 = vor.u32 %v9105_v11, %v7388_v9  ;;  %v13042_v51 = vld [vmem:[#allocation32_spill] sm:$0xff]  ;;  %v9034_v11 = vld [vmem:[#allocation2 + $0xf4] sm:$0xf] }
 0x161   : > { %v1904_v63 = vadd.f32 %v1903_v40, %v10354_v2  ;;  %v9032_v40 = vld [vmem:[#allocation2 + $0xe0] sm:$0xf0]  ;;  %v883_v15 = vrot.slane %v882_v31, 4 }
 0x162   : > { %v2392_v23 = vpop.f32.mrf.mxu3  ;;  %v7669_v30 = vor.u32 %v9032_v40, %v7668_v45  ;;  %v13044_v31 = vld [vmem:[#allocation35_spill] sm:$0xff] }
 0x163   : > { %v2393_v36 = vadd.f32 %v2392_v23, %v1904_v63  ;;  %v7673_v63 = vor.u32 %v9031_v13, %v7670_v3 }
 0x165   : > { %v2482_v2 = vadd.f32 %v2481_v14, %v2393_v36  ;;  %v991_v36 = vsel %vm9954_vm13, %v883_v15, %v990_v27  ;;  %v13045_v27 = vshrl.u32 %v13044_v31, 16 }
 0x166   : > { %v2575_v14 = vpop.f32.mrf.mxu1  ;;  %992 = vst [vmem:[#allocation2 + $0x14c] sm:$0xf] %v991_v36  ;;  %v9036_v36 = vld [vmem:[#allocation2 + $0x100] sm:$0xf0] }
 0x167   : > { %v10536_v23 = vadd.f32 %v2570_v38, %v2482_v2  ;;  %v2486_v33 = vpop.f32.mrf.mxu0  ;;  %v13040_v38 = vld [vmem:[#allocation29_spill] sm:$0xff]  ;;  %v889_v15 = vrot.slane %v13045_v27, 4 }
 0x168   : > { %v1905_v4 = vpop.f32.mrf.mxu2  ;;  %v13041_v44 = vshll.u32 %v13040_v38, 16 }
 0x169   : > { %v1906_v53 = vadd.f32 %v1905_v4, %v10365_v7  ;;  %2614 = vmatmul.bf16.gmra.mxu1 %v7677_v22  ;;  %v13046_v22 = vld [vmem:[#allocation36_spill] sm:$0xff] }
 0x16a   : > { %v2394_v29 = vpop.f32.mrf.mxu3  ;;  %2525 = vmatmul.bf16.gmra.mxu0 %v7673_v63  ;;  %v876_v13 = vrot.slane %v13041_v44, 5  ;;  %v7680_v44 = vld [vmem:[#allocation2 + $0xf0] sm:$0xf] }
 0x16b   : > { %v2395_v17 = vadd.f32 %v2394_v29, %v1906_v53 }
 0x16c   : > { %v877_v12 = vor.u32 %v876_v13, %v13042_v51  ;;  %v9108_v51 = vld [vmem:[#allocation2 + $0x118] sm:$0xf0] }
 0x16d   : > { %1947 = vmatmul.bf16.gmra.mxu2 %v7389_v42  ;;  %v2484_v3 = vadd.f32 %v2483_v61, %v2395_v17  ;;  %v1060_v61 = vld [vmem:[#allocation2 + $0x14c] sm:$0x8]  ;;  %v7688_v42 = vld [vmem:[#allocation2 + $0xf8] sm:$0xf] }
 0x16e   : > { %v878_v40 = vrot.slane %v877_v12, 4  ;;  %v2577_v9 = vpop.f32.mrf.mxu1  ;;  %v1061_v17 = vsel %vm10010_vm14, %v13039_v28, %v1060_v61 }
 0x16f   : > { %2436 = vmatmul.bf16.gmra.mxu3 %v7669_v30  ;;  %v10544_v2 = vadd.f32 %v2572_v56, %v2484_v3  ;;  %v2488_v45 = vpop.f32.mrf.mxu0  ;;  %v887_v56 = vrot.slane %v13046_v22, 5  ;;  %v7682_v30 = vld [vmem:[#allocation2 + $0xfc] sm:$0xf0]  ;;  %1062 = vst [vmem:[#allocation2 + $0x14c] sm:$0x8] %v1061_v17  ;;  %v13049_v17 = vld [vmem:[#allocation34_spill] sm:$0xff] }
 0x170   : > { %v1908_v7 = vpop.f32.mrf.mxu2  ;;  %v880_v29 = vsel %vm9940_vm10, %v878_v40, %v879_v62  ;;  %v7400_v3 = vld [vmem:[#allocation2 + $0x110] sm:$0xf] }
 0x171   : > { %13043 = vst [vmem:[#allocation17_spill] sm:$0xff] %v10544_v2  ;;  %v1909_v53 = vadd.f32 %v1908_v7, %v10377_v16  ;;  %v9035_v16 = vld [vmem:[#allocation2 + $0xf8] sm:$0xf0]  ;;  %v890_v13 = vor.u32 %v889_v15, %v887_v56  ;;  %v7689_v7 = vor.u32 %v9036_v36, %v7688_v42  ;;  %v7401_v28 = vor.u32 %v9108_v51, %v7400_v3  ;;  %v13050_v3 = vld [vmem:[#allocation39_spill] sm:$0xff] }
 0x172   : > { %v2397_v4 = vpop.f32.mrf.mxu3  ;;  %989 = vst [vmem:[#allocation2 + $0x140] sm:$0xf] %v880_v29  ;;  %v994_v29 = vld [vmem:[#allocation2 + $0x164] sm:$0xf]  ;;  %v9197_v42 = vld [vmem:[#allocation6 + $0x188] sm:$0xff]  ;;  %v13051_v51 = vshrl.u32 %v13050_v3, 16 }
 0x173   : > { %v2398_v63 = vadd.f32 %v2397_v4, %v1909_v53  ;;  %v7685_v4 = vor.u32 %v9034_v11, %v7682_v30  ;;  %v891_v40 = vrot.slane %v890_v13, 4  ;;  %v7681_v53 = vor.u32 %v9035_v16, %v7680_v44  ;;  %v9205_v36 = vld [vmem:[#allocation6 + $0x1c8] sm:$0xff]  ;;  %3169 = vmatpush.bf16.msra.mxu2 %v9197_v42 }
 0x174   : > { %3258 = vmatpush.bf16.msra.mxu3 %v9205_v36  ;;  %v9111_v36 = vld [vmem:[#allocation2 + $0x130] sm:$0xf0] }
 0x175   : > { %v2487_v38 = vadd.f32 %v2486_v33, %v2398_v63  ;;  %v995_v63 = vsel %vm9954_vm13, %v891_v40, %v994_v29  ;;  %v9037_v40 = vld [vmem:[#allocation2 + $0x10c] sm:$0xf]  ;;  %v9213_v29 = vld [vmem:[#allocation6 + $0x208] sm:$0xff] }
 0x176   : > { %v2580_v33 = vpop.f32.mrf.mxu1  ;;  %996 = vst [vmem:[#allocation2 + $0x164] sm:$0xf] %v995_v63  ;;  %v13052_v63 = vld [vmem:[#allocation40_spill] sm:$0xff]  ;;  %3347 = vmatpush.bf16.msra.mxu0 %v9213_v29 }
 0x177   : > { %v10555_v62 = vadd.f32 %v2575_v14, %v2487_v38  ;;  %v2491_v27 = vpop.f32.mrf.mxu0  ;;  %v13047_v14 = vld [vmem:[#allocation33_spill] sm:$0xff] }
 0x178   : > { %v1910_v31 = vpop.f32.mrf.mxu2  ;;  %v13048_v11 = vshll.u32 %v13047_v14, 16  ;;  %v7700_v14 = vld [vmem:[#allocation2 + $0x110] sm:$0xf] }
 0x179   : > { %v1911_v2 = vadd.f32 %v1910_v31, %v10386_v5  ;;  %2619 = vmatmul.bf16.gmra.mxu1 %v7689_v7 }
 0x17a   : > { %v2399_v12 = vpop.f32.mrf.mxu3  ;;  %2530 = vmatmul.bf16.gmra.mxu0 %v7685_v4  ;;  %v884_v61 = vrot.slane %v13048_v11, 5  ;;  %v9039_v11 = vld [vmem:[#allocation2 + $0x118] sm:$0xf0] }
 0x17b   : > { %v2400_v15 = vadd.f32 %v2399_v12, %v1911_v2  ;;  %v897_v12 = vrot.slane %v13051_v51, 4 }
 0x17c   : > { %v885_v38 = vor.u32 %v884_v61, %v13049_v17  ;;  %v7692_v61 = vld [vmem:[#allocation2 + $0x108] sm:$0xf] }
 0x17d   : > { %1952 = vmatmul.bf16.gmra.mxu2 %v7401_v28  ;;  %v2489_v30 = vadd.f32 %v2488_v45, %v2400_v15  ;;  %v1063_v31 = vld [vmem:[#allocation2 + $0x164] sm:$0x8]  ;;  %v895_v15 = vrot.slane %v13052_v63, 5 }
 0x17e   : > { %v886_v13 = vrot.slane %v885_v38, 4  ;;  %v2582_v7 = vpop.f32.mrf.mxu1  ;;  %v1064_v28 = vsel %vm10010_vm14, %v13046_v22, %v1063_v31 }
 0x17f   : > { %2441 = vmatmul.bf16.gmra.mxu3 %v7681_v53  ;;  %v10563_v5 = vadd.f32 %v2577_v9, %v2489_v30  ;;  %v2493_v2 = vpop.f32.mrf.mxu0  ;;  %v7694_v9 = vld [vmem:[#allocation2 + $0x114] sm:$0xf0]  ;;  %1065 = vst [vmem:[#allocation2 + $0x164] sm:$0x8] %v1064_v28  ;;  %v9038_v30 = vld [vmem:[#allocation2 + $0x110] sm:$0xf0]  ;;  %v898_v42 = vor.u32 %v897_v12, %v895_v15 }
 0x180   : > { %v1913_v16 = vpop.f32.mrf.mxu2  ;;  %v888_v45 = vsel %vm9940_vm10, %v886_v13, %v887_v56  ;;  %v7412_v56 = vld [vmem:[#allocation2 + $0x128] sm:$0xf]  ;;  %v7693_v51 = vor.u32 %v9038_v30, %v7692_v61  ;;  %v13055_v28 = vld [vmem:[#allocation38_spill] sm:$0xff] }
 0x181   : > { %v1914_v4 = vadd.f32 %v1913_v16, %v10398_v55  ;;  %993 = vst [vmem:[#allocation2 + $0x158] sm:$0xf] %v888_v45  ;;  %v7701_v16 = vor.u32 %v9039_v11, %v7700_v14  ;;  %v899_v13 = vrot.slane %v898_v42, 4  ;;  %v7413_v31 = vor.u32 %v9111_v36, %v7412_v56  ;;  %v13056_v42 = vld [vmem:[#allocation42_spill] sm:$0xff] }
 0x182   : > { %v2402_v44 = vpop.f32.mrf.mxu3  ;;  %v13057_v56 = vshrl.u32 %v13056_v42, 16 }
 0x183   : > { %v2403_v53 = vadd.f32 %v2402_v44, %v1914_v4  ;;  %v7697_v44 = vor.u32 %v9037_v40, %v7694_v9  ;;  %v998_v4 = vld [vmem:[#allocation2 + $0x17c] sm:$0xf] }
 0x184   : > { %v905_v36 = vrot.slane %v13057_v56, 4 }
 0x185   : > { %v2492_v55 = vadd.f32 %v2491_v27, %v2403_v53  ;;  %v999_v53 = vsel %vm9954_vm13, %v899_v13, %v998_v4  ;;  %v7706_v4 = vld [vmem:[#allocation2 + $0x12c] sm:$0xf0] }
 0x186   : > { %v2585_v27 = vpop.f32.mrf.mxu1  ;;  %1000 = vst [vmem:[#allocation2 + $0x17c] sm:$0xf] %v999_v53 }
 0x187   : > { %v10574_v17 = vadd.f32 %v2580_v33, %v2492_v55  ;;  %v2496_v22 = vpop.f32.mrf.mxu0  ;;  %v13053_v33 = vld [vmem:[#allocation37_spill] sm:$0xff] }
 0x188   : > { %v1915_v3 = vpop.f32.mrf.mxu2  ;;  %v13054_v29 = vshll.u32 %v13053_v33, 16  ;;  %v7704_v33 = vld [vmem:[#allocation2 + $0x120] sm:$0xf] }
 0x189   : > { %v1916_v45 = vadd.f32 %v1915_v3, %v10407_v35  ;;  %2624 = vmatmul.bf16.gmra.mxu1 %v7701_v16  ;;  %v9040_v16 = vld [vmem:[#allocation2 + $0x124] sm:$0xf] }
 0x18a   : > { %v2404_v38 = vpop.f32.mrf.mxu3  ;;  %2535 = vmatmul.bf16.gmra.mxu0 %v7697_v44  ;;  %v892_v40 = vrot.slane %v13054_v29, 5 }
 0x18b   : > { %v2405_v12 = vadd.f32 %v2404_v38, %v1916_v45  ;;  %v7712_v45 = vld [vmem:[#allocation2 + $0x128] sm:$0xf] }
 0x18c   : > { %v893_v14 = vor.u32 %v892_v40, %v13055_v28  ;;  %v7424_v40 = vld [vmem:[#allocation2 + $0x140] sm:$0xf] }
 0x18d   : > { %1957 = vmatmul.bf16.gmra.mxu2 %v7413_v31  ;;  %v2494_v9 = vadd.f32 %v2493_v2, %v2405_v12  ;;  %v1066_v2 = vld [vmem:[#allocation2 + $0x17c] sm:$0x8]  ;;  %v9042_v31 = vld [vmem:[#allocation2 + $0x130] sm:$0xf0] }
 0x18e   : > { %v894_v30 = vrot.slane %v893_v14, 4  ;;  %v2587_v44 = vpop.f32.mrf.mxu1  ;;  %v1067_v53 = vsel %vm10010_vm14, %v13052_v63, %v1066_v2  ;;  %v7709_v14 = vor.u32 %v9040_v16, %v7706_v4  ;;  %v9196_v4 = vld [vmem:[#allocation6 + $0x180] sm:$0xff] }
 0x18f   : > { %2446 = vmatmul.bf16.gmra.mxu3 %v7693_v51  ;;  %v10582_v11 = vadd.f32 %v2582_v7, %v2494_v9  ;;  %v2498_v61 = vpop.f32.mrf.mxu0  ;;  %v13058_v51 = vld [vmem:[#allocation43_spill] sm:$0xff]  ;;  %1068 = vst [vmem:[#allocation2 + $0x17c] sm:$0x8] %v1067_v53  ;;  %v9114_v9 = vld [vmem:[#allocation2 + $0x148] sm:$0xf0]  ;;  %3170 = vmatpush.bf16.msra.mxu2 %v9196_v4 }
 0x190   : > { %v1918_v55 = vpop.f32.mrf.mxu2  ;;  %v896_v13 = vsel %vm9940_vm10, %v894_v30, %v895_v15  ;;  %v903_v7 = vrot.slane %v13058_v51, 5  ;;  %v7425_v63 = vor.u32 %v9114_v9, %v7424_v40 }
 0x191   : > { %v1919_v38 = vadd.f32 %v1918_v55, %v10419_v8  ;;  %997 = vst [vmem:[#allocation2 + $0x170] sm:$0xf] %v896_v13  ;;  %v9041_v8 = vld [vmem:[#allocation2 + $0x128] sm:$0xf0] }
 0x192   : > { %v2407_v35 = vpop.f32.mrf.mxu3  ;;  %v906_v29 = vor.u32 %v905_v36, %v903_v7  ;;  %v7705_v56 = vor.u32 %v9041_v8, %v7704_v33 }
 0x193   : > { %v2408_v3 = vadd.f32 %v2407_v35, %v1919_v38  ;;  %v7713_v35 = vor.u32 %v9042_v31, %v7712_v45  ;;  %v1002_v38 = vld [vmem:[#allocation2 + $0x194] sm:$0xf] }
 0x194   : > { %v907_v55 = vrot.slane %v906_v29, 4  ;;  %v9204_v45 = vld [vmem:[#allocation6 + $0x1c0] sm:$0xff] }
 0x195   : > { %v2497_v12 = vadd.f32 %v2496_v22, %v2408_v3  ;;  %v13060_v31 = vld [vmem:[#allocation41_spill] sm:$0xff]  ;;  %3259 = vmatpush.bf16.msra.mxu3 %v9204_v45 }
 0x196   : > { %v2590_v22 = vpop.f32.mrf.mxu1  ;;  %v1003_v3 = vsel %vm9954_vm13, %v907_v55, %v1002_v38  ;;  %v9212_v55 = vld [vmem:[#allocation6 + $0x200] sm:$0xff] }
 0x197   : > { %v10593_v15 = vadd.f32 %v2585_v27, %v2497_v12  ;;  %v2501_v42 = vpop.f32.mrf.mxu0  ;;  %1004 = vst [vmem:[#allocation2 + $0x194] sm:$0xf] %v1003_v3  ;;  %v13059_v27 = vshll.u32 %v10262_v10, 16  ;;  %v9043_v10 = vld [vmem:[#allocation2 + $0x13c] sm:$0xf]  ;;  %3348 = vmatpush.bf16.msra.mxu0 %v9212_v55 }
 0x198   : > { %v1920_v30 = vpop.f32.mrf.mxu2  ;;  %v9117_v3 = vld [vmem:[#allocation2 + $0x160] sm:$0xf0] }
 0x199   : > { %v1921_v13 = vadd.f32 %v1920_v30, %v10428_v60  ;;  %2629 = vmatmul.bf16.gmra.mxu1 %v7713_v35  ;;  %v900_v16 = vrot.slane %v13059_v27, 5  ;;  %v7718_v35 = vld [vmem:[#allocation2 + $0x144] sm:$0xf0]  ;;  %v7724_v30 = vld [vmem:[#allocation2 + $0x140] sm:$0xf] }
 0x19a   : > { %v2409_v28 = vpop.f32.mrf.mxu3  ;;  %2540 = vmatmul.bf16.gmra.mxu0 %v7709_v14  ;;  %v7721_v27 = vor.u32 %v9043_v10, %v7718_v35  ;;  %v9048_v35 = vld [vmem:[#allocation2 + $0x160] sm:$0xf0] }
 0x19b   : > { %v2410_v36 = vadd.f32 %v2409_v28, %v1921_v13  ;;  %v901_v53 = vor.u32 %v900_v16, %v13060_v31  ;;  %v9044_v13 = vld [vmem:[#allocation2 + $0x140] sm:$0xf0] }
 0x19d   : > { %1962 = vmatmul.bf16.gmra.mxu2 %v7425_v63  ;;  %v2499_v2 = vadd.f32 %v2498_v61, %v2410_v36  ;;  %v902_v29 = vrot.slane %v901_v53, 4  ;;  %v7436_v63 = vld [vmem:[#allocation2 + $0x158] sm:$0xf] }
 0x19e   : > { %v10604_v9 = vpop.f32.mrf.mxu1  ;;  %v1069_v28 = vld [vmem:[#allocation2 + $0x194] sm:$0x8] }
 0x19f   : > { %2451 = vmatmul.bf16.gmra.mxu3 %v7705_v56  ;;  %v10601_v60 = vadd.f32 %v2587_v44, %v2499_v2  ;;  %v2503_v8 = vpop.f32.mrf.mxu0  ;;  %v904_v61 = vsel %vm9940_vm10, %v902_v29, %v903_v7  ;;  %v1070_v44 = vsel %vm10010_vm14, %v13058_v51, %v1069_v28  ;;  %v9045_v56 = vld [vmem:[#allocation2 + $0x148] sm:$0xf0]  ;;  %v7437_v51 = vor.u32 %v9117_v3, %v7436_v63  ;;  %v9046_v28 = vld [vmem:[#allocation2 + $0x154] sm:$0xf] }
 0x1a0   : > { %v1923_v33 = vpop.f32.mrf.mxu2  ;;  %1001 = vst [vmem:[#allocation2 + $0x188] sm:$0xf] %v904_v61  ;;  %v7725_v16 = vor.u32 %v9045_v56, %v7724_v30  ;;  %v9047_v30 = vld [vmem:[#allocation2 + $0x158] sm:$0xf0]  ;;  %v7448_v56 = vld [vmem:[#allocation2 + $0x170] sm:$0xf] }
 0x1a1   : > { %v1924_v40 = vadd.f32 %v1923_v33, %v10440_v21  ;;  %1071 = vst [vmem:[#allocation2 + $0x194] sm:$0x8] %v1070_v44  ;;  %v7716_v21 = vld [vmem:[#allocation2 + $0x138] sm:$0xf]  ;;  %v7728_v44 = vld [vmem:[#allocation2 + $0x150] sm:$0xf] }
 0x1a2   : > { %v2412_v12 = vpop.f32.mrf.mxu3  ;;  %v7717_v45 = vor.u32 %v9044_v13, %v7716_v21 }
 0x1a3   : > { %v2413_v14 = vadd.f32 %v2412_v12, %v1924_v40 }
 0x1a5   : > { %v2502_v38 = vadd.f32 %v2501_v42, %v2413_v14  ;;  %v7730_v14 = vld [vmem:[#allocation2 + $0x15c] sm:$0xf0] }
 0x1a6   : > { %v2595_v53 = vpop.f32.mrf.mxu1  ;;  %v7733_v13 = vor.u32 %v9046_v28, %v7730_v14  ;;  %v9051_v28 = vld [vmem:[#allocation2 + $0x178] sm:$0xf0] }
 0x1a7   : > { %v10611_v36 = vadd.f32 %v2590_v22, %v2502_v38  ;;  %v2506_v4 = vpop.f32.mrf.mxu0  ;;  %v9120_v38 = vld [vmem:[#allocation2 + $0x178] sm:$0xf0] }
 0x1a8   : > { %v1925_v2 = vpop.f32.mrf.mxu2 }
 0x1a9   : > { %v1926_v31 = vadd.f32 %v1925_v2, %v10449_v58  ;;  %2634 = vmatmul.bf16.gmra.mxu1 %v7725_v16  ;;  %v7736_v58 = vld [vmem:[#allocation2 + $0x158] sm:$0xf]  ;;  %v7449_v16 = vor.u32 %v9120_v38, %v7448_v56 }
 0x1aa   : > { %v2414_v7 = vpop.f32.mrf.mxu3  ;;  %2545 = vmatmul.bf16.gmra.mxu0 %v7721_v27  ;;  %v7737_v63 = vor.u32 %v9048_v35, %v7736_v58  ;;  %v7740_v58 = vld [vmem:[#allocation2 + $0x168] sm:$0xf]  ;;  %v9050_v35 = vld [vmem:[#allocation2 + $0x170] sm:$0xf0] }
 0x1ab   : > { %v2415_v12 = vadd.f32 %v2414_v7, %v1926_v31 }
 0x1ad   : > { %1967 = vmatmul.bf16.gmra.mxu2 %v7437_v51  ;;  %v10614_v42 = vadd.f32 %v2503_v8, %v2415_v12 }
 0x1ae   : > { %v10617_v10 = vpop.f32.mrf.mxu1 }
 0x1af   : > { %2456 = vmatmul.bf16.gmra.mxu3 %v7717_v45  ;;  %v2508_v29 = vpop.f32.mrf.mxu0 }
 0x1b0   : > { %v1928_v22 = vpop.f32.mrf.mxu2 }
 0x1b1   : > { %v1929_v40 = vadd.f32 %v1928_v22, %v10461_v26  ;;  %v7729_v26 = vor.u32 %v9047_v30, %v7728_v44  ;;  %v9123_v44 = vld [vmem:[#allocation2 + $0x190] sm:$0xf0] }
 0x1b2   : > { %v2417_v33 = vpop.f32.mrf.mxu3 }
 0x1b3   : > { %v2418_v61 = vadd.f32 %v2417_v33, %v1929_v40  ;;  %v9049_v40 = vld [vmem:[#allocation2 + $0x16c] sm:$0xf] }
 0x1b5   : > { %v2507_v55 = vadd.f32 %v2506_v4, %v2418_v61  ;;  %v7742_v61 = vld [vmem:[#allocation2 + $0x174] sm:$0xf0] }
 0x1b6   : > { %v2600_v2 = vpop.f32.mrf.mxu1  ;;  %v7745_v56 = vor.u32 %v9049_v40, %v7742_v61  ;;  %v9150_v40 = vld [vmem:[#allocation2 + $0x40] sm:$0xf0]  ;;  %v9148_v61 = vld [vmem:[#allocation2 + $0x34] sm:$0xf] }
 0x1b7   : > { %v10619_v21 = vadd.f32 %v2595_v53, %v2507_v55  ;;  %v2511_v7 = vpop.f32.mrf.mxu0  ;;  %v7460_v55 = vld [vmem:[#allocation2 + $0x188] sm:$0xf] }
 0x1b8   : > { %v1930_v3 = vpop.f32.mrf.mxu2 }
 0x1b9   : > { %v1931_v27 = vadd.f32 %v1930_v3, %v10470_v18  ;;  %2639 = vmatmul.bf16.gmra.mxu1 %v7737_v63  ;;  %v7748_v18 = vld [vmem:[#allocation2 + $0x170] sm:$0xf]  ;;  %v7461_v3 = vor.u32 %v9123_v44, %v7460_v55 }
 0x1ba   : > { %v2419_v8 = vpop.f32.mrf.mxu3  ;;  %2550 = vmatmul.bf16.gmra.mxu0 %v7733_v13  ;;  %v7749_v38 = vor.u32 %v9051_v28, %v7748_v18  ;;  %v7850_v18 = vld [vmem:[#allocation2 + $0x3c] sm:$0xf0]  ;;  %v7848_v28 = vld [vmem:[#allocation2 + $0x30] sm:$0xf] }
 0x1bb   : > { %v2420_v45 = vadd.f32 %v2419_v8, %v1931_v27 }
 0x1bd   : > { %1972 = vmatmul.bf16.gmra.mxu2 %v7449_v16  ;;  %v10622_v4 = vadd.f32 %v2508_v29, %v2420_v45 }
 0x1be   : > { %v10625_v33 = vpop.f32.mrf.mxu1 }
 0x1bf   : > { %2461 = vmatmul.bf16.gmra.mxu3 %v7729_v26  ;;  %v2513_v53 = vpop.f32.mrf.mxu0 }
 0x1c0   : > { %v1933_v51 = vpop.f32.mrf.mxu2 }
 0x1c1   : > { %v1934_v12 = vadd.f32 %v1933_v51, %v10482_v6  ;;  %v7741_v6 = vor.u32 %v9050_v35, %v7740_v58 }
 0x1c2   : > { %v2422_v31 = vpop.f32.mrf.mxu3 }
 0x1c3   : > { %v2423_v22 = vadd.f32 %v2422_v31, %v1934_v12 }
 0x1c5   : > { %v2512_v14 = vadd.f32 %v2511_v7, %v2423_v22  ;;  %v7856_v22 = vld [vmem:[#allocation2 + $0x38] sm:$0xf] }
 0x1c6   : > { %v2605_v26 = vpop.f32.mrf.mxu1 }
 0x1c7   : > { %v10627_v30 = vadd.f32 %v2600_v2, %v2512_v14  ;;  %v2516_v13 = vpop.f32.mrf.mxu0  ;;  %v9149_v14 = vld [vmem:[#allocation2 + $0x38] sm:$0xf0] }
 0x1c8   : > { %v1935_v8 = vpop.f32.mrf.mxu2 }
 0x1c9   : > { %v1936_v63 = vadd.f32 %v1935_v8, %v10491_v57  ;;  %2644 = vmatmul.bf16.gmra.mxu1 %v7749_v38 }
 0x1ca   : > { %v2424_v29 = vpop.f32.mrf.mxu3  ;;  %2555 = vmatmul.bf16.gmra.mxu0 %v7745_v56 }
 0x1cb   : > { %v2425_v27 = vadd.f32 %v2424_v29, %v1936_v63  ;;  %v7853_v29 = vor.u32 %v9148_v61, %v7850_v18 }
 0x1cd   : > { %1977 = vmatmul.bf16.gmra.mxu2 %v7461_v3  ;;  %v10630_v7 = vadd.f32 %v2513_v53, %v2425_v27  ;;  %v7857_v53 = vor.u32 %v9150_v40, %v7856_v22  ;;  %v7862_v22 = vld [vmem:[#allocation2 + $0x54] sm:$0xf0]  ;;  %v7860_v40 = vld [vmem:[#allocation2 + $0x48] sm:$0xf] }
 0x1ce   : > { %v10633_v51 = vpop.f32.mrf.mxu1 }
 0x1cf   : > { %2466 = vmatmul.bf16.gmra.mxu3 %v7741_v6  ;;  %v2518_v45 = vpop.f32.mrf.mxu0 }
 0x1d0   : > { %v1938_v2 = vpop.f32.mrf.mxu2 }
 0x1d1   : > { %v1939_v31 = vadd.f32 %v1938_v2, %v10503_v0  ;;  %v7849_v0 = vor.u32 %v9149_v14, %v7848_v28  ;;  %v9153_v2 = vld [vmem:[#allocation2 + $0x58] sm:$0xf0] }
 0x1d2   : > { %v2427_v16 = vpop.f32.mrf.mxu3 }
 0x1d3   : > { %v2428_v12 = vadd.f32 %v2427_v16, %v1939_v31  ;;  %v7868_v16 = vld [vmem:[#allocation2 + $0x50] sm:$0xf] }
 0x1d5   : > { %v2517_v57 = vadd.f32 %v2516_v13, %v2428_v12  ;;  %v9151_v12 = vld [vmem:[#allocation2 + $0x4c] sm:$0xf] }
 0x1d6   : > { %v2610_v8 = vpop.f32.mrf.mxu1 }
 0x1d7   : > { %v10635_v58 = vadd.f32 %v2605_v26, %v2517_v57  ;;  %v2521_v44 = vpop.f32.mrf.mxu0  ;;  %v9152_v57 = vld [vmem:[#allocation2 + $0x50] sm:$0xf0] }
 0x1d8   : > { %v1940_v55 = vpop.f32.mrf.mxu2 }
 0x1d9   : > { %v1941_v56 = vadd.f32 %v1940_v55, %v10512_v37 }
 0x1da   : > { %v2429_v35 = vpop.f32.mrf.mxu3  ;;  %3349 = vmatmul.bf16.vlgmr.msra.gmra.mxu0 %v7857_v53 }
 0x1db   : > { %v2430_v38 = vadd.f32 %v2429_v35, %v1941_v56  ;;  %v7865_v35 = vor.u32 %v9151_v12, %v7862_v22 }
 0x1dd   : > { %3171 = vmatmul.bf16.vlgmr.msra.gmra.mxu2 %v7849_v0  ;;  %v10638_v13 = vadd.f32 %v2518_v45, %v2430_v38  ;;  %v7869_v45 = vor.u32 %v9153_v2, %v7868_v16  ;;  %v9154_v16 = vld [vmem:[#allocation2 + $0x64] sm:$0xf]  ;;  %v7874_v2 = vld [vmem:[#allocation2 + $0x6c] sm:$0xf0] }
 0x1de   : > { %v10641_v37 = vpop.f32.mrf.mxu1 }
 0x1df   : > { %3260 = vmatmul.bf16.vlgmr.msra.gmra.mxu3 %v7853_v29  ;;  %v2523_v3 = vpop.f32.mrf.mxu0 }
 0x1e0   : > { %v1943_v63 = vpop.f32.mrf.mxu2 }
 0x1e1   : > { %v1944_v26 = vadd.f32 %v1943_v63, %v10363_v39  ;;  %v7861_v39 = vor.u32 %v9152_v57, %v7860_v40  ;;  %v7880_v63 = vld [vmem:[#allocation2 + $0x68] sm:$0xf] }
 0x1e2   : > { %v2432_v6 = vpop.f32.mrf.mxu3 }
 0x1e3   : > { %v2433_v27 = vadd.f32 %v2432_v6, %v1944_v26  ;;  %v9156_v26 = vld [vmem:[#allocation2 + $0x70] sm:$0xf0] }
 0x1e4   : > { %v7881_v40 = vor.u32 %v9156_v26, %v7880_v63  ;;  %v7886_v26 = vld [vmem:[#allocation2 + $0x84] sm:$0xf0] }
 0x1e5   : > { %v2522_v31 = vadd.f32 %v2521_v44, %v2433_v27 }
 0x1e6   : > { %v2615_v56 = vpop.f32.mrf.mxu1 }
 0x1e7   : > { %v10643_v61 = vadd.f32 %v2610_v8, %v2522_v31  ;;  %v2526_v14 = vpop.f32.mrf.mxu0  ;;  %v9155_v31 = vld [vmem:[#allocation2 + $0x68] sm:$0xf0] }
 0x1e8   : > { %v1945_v28 = vpop.f32.mrf.mxu2 }
 0x1e9   : > { %v1946_v53 = vadd.f32 %v1945_v28, %v10373_v47  ;;  %v7872_v47 = vld [vmem:[#allocation2 + $0x60] sm:$0xf] }
 0x1ea   : > { %v2434_v18 = vpop.f32.mrf.mxu3  ;;  %3354 = vmatmul.bf16.gmra.mxu0 %v7869_v45  ;;  %v7873_v28 = vor.u32 %v9155_v31, %v7872_v47 }
 0x1eb   : > { %v2435_v55 = vadd.f32 %v2434_v18, %v1946_v53  ;;  %v7877_v18 = vor.u32 %v9154_v16, %v7874_v2  ;;  %v9158_v16 = vld [vmem:[#allocation2 + $0x80] sm:$0xf0] }
 0x1ed   : > { %3176 = vmatmul.bf16.gmra.mxu2 %v7861_v39  ;;  %v10646_v44 = vadd.f32 %v2523_v3, %v2435_v55 }
 0x1ef   : > { %3265 = vmatmul.bf16.gmra.mxu3 %v7865_v35  ;;  %v2528_v38 = vpop.f32.mrf.mxu0  ;;  %v10652_v35 = vpop.f32.mrf.mxu1 }
 0x1f0   : > { %v1948_v0 = vpop.f32.mrf.mxu2 }
 0x1f1   : > { %v1949_v8 = vadd.f32 %v1948_v0, %v10384_v59 }
 0x1f2   : > { %v2437_v29 = vpop.f32.mrf.mxu3 }
 0x1f3   : > { %v2438_v6 = vadd.f32 %v2437_v29, %v1949_v8  ;;  %v7892_v8 = vld [vmem:[#allocation2 + $0x80] sm:$0xf] }
 0x1f5   : > { %v2527_v27 = vadd.f32 %v2526_v14, %v2438_v6  ;;  %v9159_v6 = vld [vmem:[#allocation2 + $0x88] sm:$0xf0] }
 0x1f6   : > { %v7893_v31 = vor.u32 %v9159_v6, %v7892_v8  ;;  %v9160_v8 = vld [vmem:[#allocation2 + $0x94] sm:$0xf]  ;;  %v7898_v6 = vld [vmem:[#allocation2 + $0x9c] sm:$0xf0] }
 0x1f7   : > { %v10649_v12 = vadd.f32 %v2615_v56, %v2527_v27  ;;  %v2531_v57 = vpop.f32.mrf.mxu0  ;;  %v2620_v0 = vpop.f32.mrf.mxu1  ;;  %v7884_v27 = vld [vmem:[#allocation2 + $0x78] sm:$0xf] }
 0x1f8   : > { %v1950_v3 = vpop.f32.mrf.mxu2 }
 0x1f9   : > { %v1951_v45 = vadd.f32 %v1950_v3, %v10394_v46  ;;  %v9157_v46 = vld [vmem:[#allocation2 + $0x7c] sm:$0xf] }
 0x1fa   : > { %v2439_v22 = vpop.f32.mrf.mxu3  ;;  %3359 = vmatmul.bf16.gmra.mxu0 %v7881_v40  ;;  %v7889_v40 = vor.u32 %v9157_v46, %v7886_v26 }
 0x1fb   : > { %v2440_v59 = vadd.f32 %v2439_v22, %v1951_v45 }
 0x1fd   : > { %3181 = vmatmul.bf16.gmra.mxu2 %v7873_v28  ;;  %v10654_v14 = vadd.f32 %v2528_v38, %v2440_v59 }
 0x1ff   : > { %3270 = vmatmul.bf16.gmra.mxu3 %v7877_v18  ;;  %v2533_v55 = vpop.f32.mrf.mxu0  ;;  %v7885_v18 = vor.u32 %v9158_v16, %v7884_v27 }
 0x200   : > { %v1953_v39 = vpop.f32.mrf.mxu2 }
 0x201   : > { %v1954_v29 = vadd.f32 %v1953_v39, %v10405_v54 }
 0x202   : > { %v2442_v53 = vpop.f32.mrf.mxu3 }
 0x203   : > { %v2443_v56 = vadd.f32 %v2442_v53, %v1954_v29  ;;  %v7904_v29 = vld [vmem:[#allocation2 + $0x98] sm:$0xf] }
 0x205   : > { %v2532_v63 = vadd.f32 %v2531_v57, %v2443_v56  ;;  %v9162_v56 = vld [vmem:[#allocation2 + $0xa0] sm:$0xf0] }
 0x206   : > { %v7905_v26 = vor.u32 %v9162_v56, %v7904_v29  ;;  %v7910_v29 = vld [vmem:[#allocation2 + $0xb4] sm:$0xf0]  ;;  %v9164_v56 = vld [vmem:[#allocation2 + $0xb0] sm:$0xf0] }
 0x207   : > { %v10657_v2 = vadd.f32 %v2620_v0, %v2532_v63  ;;  %v2536_v22 = vpop.f32.mrf.mxu0  ;;  %v9161_v63 = vld [vmem:[#allocation2 + $0x98] sm:$0xf0] }
 0x208   : > { %v1955_v38 = vpop.f32.mrf.mxu2 }
 0x209   : > { %v1956_v3 = vadd.f32 %v1955_v38, %v10415_v19  ;;  %v7896_v19 = vld [vmem:[#allocation2 + $0x90] sm:$0xf] }
 0x20a   : > { %v2444_v47 = vpop.f32.mrf.mxu3  ;;  %3364 = vmatmul.bf16.gmra.mxu0 %v7893_v31  ;;  %v7897_v31 = vor.u32 %v9161_v63, %v7896_v19 }
 0x20b   : > { %v2445_v54 = vadd.f32 %v2444_v47, %v1956_v3 }
 0x20d   : > { %3186 = vmatmul.bf16.gmra.mxu2 %v7885_v18  ;;  %v10660_v45 = vadd.f32 %v2533_v55, %v2445_v54  ;;  %v7901_v55 = vor.u32 %v9160_v8, %v7898_v6 }
 0x20f   : > { %3275 = vmatmul.bf16.gmra.mxu3 %v7889_v40  ;;  %v2538_v59 = vpop.f32.mrf.mxu0 }
 0x210   : > { %v1958_v28 = vpop.f32.mrf.mxu2 }
 0x211   : > { %v1959_v53 = vadd.f32 %v1958_v28, %v10426_v34  ;;  %v9165_v28 = vld [vmem:[#allocation2 + $0xb8] sm:$0xf0] }
 0x212   : > { %v2447_v57 = vpop.f32.mrf.mxu3 }
 0x213   : > { %v2448_v39 = vadd.f32 %v2447_v57, %v1959_v53  ;;  %v7916_v57 = vld [vmem:[#allocation2 + $0xb0] sm:$0xf] }
 0x214   : > { %v7917_v6 = vor.u32 %v9165_v28, %v7916_v57  ;;  %v7922_v57 = vld [vmem:[#allocation2 + $0xcc] sm:$0xf0]  ;;  %v9167_v28 = vld [vmem:[#allocation2 + $0xc8] sm:$0xf0] }
 0x215   : > { %v10663_v0 = vadd.f32 %v2536_v22, %v2448_v39  ;;  %v9163_v39 = vld [vmem:[#allocation2 + $0xac] sm:$0xf] }
 0x217   : > { %v2541_v16 = vpop.f32.mrf.mxu0 }
 0x218   : > { %v1960_v27 = vpop.f32.mrf.mxu2 }
 0x219   : > { %v1961_v47 = vadd.f32 %v1960_v27, %v10436_v24  ;;  %v7908_v24 = vld [vmem:[#allocation2 + $0xa8] sm:$0xf] }
 0x21a   : > { %v2449_v46 = vpop.f32.mrf.mxu3  ;;  %3369 = vmatmul.bf16.gmra.mxu0 %v7905_v26  ;;  %v7909_v26 = vor.u32 %v9164_v56, %v7908_v24 }
 0x21b   : > { %v2450_v38 = vadd.f32 %v2449_v46, %v1961_v47 }
 0x21d   : > { %3191 = vmatmul.bf16.gmra.mxu2 %v7897_v31  ;;  %v10666_v34 = vadd.f32 %v2538_v59, %v2450_v38  ;;  %v7913_v59 = vor.u32 %v9163_v39, %v7910_v29 }
 0x21f   : > { %3280 = vmatmul.bf16.gmra.mxu3 %v7901_v55  ;;  %13061 = vst [vmem:[#allocation21_spill] sm:$0xff] %v10666_v34  ;;  %v2543_v3 = vpop.f32.mrf.mxu0 }
 0x220   : > { %v1963_v40 = vpop.f32.mrf.mxu2 }
 0x221   : > { %v1964_v18 = vadd.f32 %v1963_v40, %v10447_v49  ;;  %v9168_v40 = vld [vmem:[#allocation2 + $0xd0] sm:$0xf0] }
 0x222   : > { %v2452_v22 = vpop.f32.mrf.mxu3 }
 0x223   : > { %v2453_v54 = vadd.f32 %v2452_v22, %v1964_v18  ;;  %v7928_v22 = vld [vmem:[#allocation2 + $0xc8] sm:$0xf] }
 0x224   : > { %v7929_v29 = vor.u32 %v9168_v40, %v7928_v22  ;;  %v7934_v22 = vld [vmem:[#allocation2 + $0xe4] sm:$0xf0]  ;;  %v9170_v40 = vld [vmem:[#allocation2 + $0xe0] sm:$0xf0] }
 0x225   : > { %v10669_v53 = vadd.f32 %v2541_v16, %v2453_v54  ;;  %v9166_v54 = vld [vmem:[#allocation2 + $0xc4] sm:$0xf] }
 0x227   : > { %13062 = vst [vmem:[#allocation24_spill] sm:$0xff] %v10669_v53  ;;  %v2546_v63 = vpop.f32.mrf.mxu0 }
 0x228   : > { %v1965_v19 = vpop.f32.mrf.mxu2 }
 0x229   : > { %v1966_v46 = vadd.f32 %v1965_v19, %v10457_v41  ;;  %v7920_v41 = vld [vmem:[#allocation2 + $0xc0] sm:$0xf] }
 0x22a   : > { %v2454_v8 = vpop.f32.mrf.mxu3  ;;  %3374 = vmatmul.bf16.gmra.mxu0 %v7917_v6  ;;  %v7921_v6 = vor.u32 %v9167_v28, %v7920_v41 }
 0x22b   : > { %v2455_v27 = vadd.f32 %v2454_v8, %v1966_v46 }
 0x22d   : > { %3196 = vmatmul.bf16.gmra.mxu2 %v7909_v26  ;;  %v10672_v49 = vadd.f32 %v2543_v3, %v2455_v27  ;;  %v7925_v3 = vor.u32 %v9166_v54, %v7922_v57 }
 0x22f   : > { %3285 = vmatmul.bf16.gmra.mxu3 %v7913_v59  ;;  %13063 = vst [vmem:[#allocation20_spill] sm:$0xff] %v10672_v49  ;;  %v2548_v47 = vpop.f32.mrf.mxu0 }
 0x230   : > { %v1968_v55 = vpop.f32.mrf.mxu2 }
 0x231   : > { %v1969_v31 = vadd.f32 %v1968_v55, %v10468_v48  ;;  %v9171_v55 = vld [vmem:[#allocation2 + $0xe8] sm:$0xf0] }
 0x232   : > { %v2457_v16 = vpop.f32.mrf.mxu3 }
 0x233   : > { %v2458_v38 = vadd.f32 %v2457_v16, %v1969_v31  ;;  %v7940_v16 = vld [vmem:[#allocation2 + $0xe0] sm:$0xf] }
 0x234   : > { %v7941_v57 = vor.u32 %v9171_v55, %v7940_v16  ;;  %v7946_v16 = vld [vmem:[#allocation2 + $0xfc] sm:$0xf0]  ;;  %v9173_v55 = vld [vmem:[#allocation2 + $0xf8] sm:$0xf0] }
 0x235   : > { %v10675_v18 = vadd.f32 %v2546_v63, %v2458_v38  ;;  %v9169_v38 = vld [vmem:[#allocation2 + $0xdc] sm:$0xf] }
 0x237   : > { %13064 = vst [vmem:[#allocation23_spill] sm:$0xff] %v10675_v18  ;;  %v2551_v56 = vpop.f32.mrf.mxu0 }
 0x238   : > { %v1970_v24 = vpop.f32.mrf.mxu2 }
 0x239   : > { %v1971_v8 = vadd.f32 %v1970_v24, %v10478_v50  ;;  %v7932_v50 = vld [vmem:[#allocation2 + $0xd8] sm:$0xf] }
 0x23a   : > { %v2459_v39 = vpop.f32.mrf.mxu3  ;;  %3379 = vmatmul.bf16.gmra.mxu0 %v7929_v29  ;;  %v7933_v29 = vor.u32 %v9170_v40, %v7932_v50 }
 0x23b   : > { %v2460_v19 = vadd.f32 %v2459_v39, %v1971_v8 }
 0x23d   : > { %3201 = vmatmul.bf16.gmra.mxu2 %v7921_v6  ;;  %v10678_v48 = vadd.f32 %v2548_v47, %v2460_v19  ;;  %v7937_v47 = vor.u32 %v9169_v38, %v7934_v22 }
 0x23f   : > { %3290 = vmatmul.bf16.gmra.mxu3 %v7925_v3  ;;  %13065 = vst [vmem:[#allocation26_spill] sm:$0xff] %v10678_v48  ;;  %v2553_v46 = vpop.f32.mrf.mxu0 }
 0x240   : > { %v1973_v59 = vpop.f32.mrf.mxu2 }
 0x241   : > { %v1974_v26 = vadd.f32 %v1973_v59, %v10489_v25  ;;  %v9174_v59 = vld [vmem:[#allocation2 + $0x100] sm:$0xf0] }
 0x242   : > { %v2462_v63 = vpop.f32.mrf.mxu3 }
 0x243   : > { %v2463_v27 = vadd.f32 %v2462_v63, %v1974_v26  ;;  %v7952_v63 = vld [vmem:[#allocation2 + $0xf8] sm:$0xf] }
 0x244   : > { %v7953_v22 = vor.u32 %v9174_v59, %v7952_v63  ;;  %v9175_v63 = vld [vmem:[#allocation2 + $0x10c] sm:$0xf]  ;;  %v7958_v59 = vld [vmem:[#allocation2 + $0x114] sm:$0xf0] }
 0x245   : > { %v10681_v31 = vadd.f32 %v2551_v56, %v2463_v27  ;;  %v9172_v27 = vld [vmem:[#allocation2 + $0xf4] sm:$0xf] }
 0x247   : > { %13066 = vst [vmem:[#allocation27_spill] sm:$0xff] %v10681_v31  ;;  %v2556_v28 = vpop.f32.mrf.mxu0 }
 0x248   : > { %v1975_v41 = vpop.f32.mrf.mxu2 }
 0x249   : > { %v1976_v39 = vadd.f32 %v1975_v41, %v10499_v32  ;;  %v7944_v32 = vld [vmem:[#allocation2 + $0xf0] sm:$0xf] }
 0x24a   : > { %v2464_v54 = vpop.f32.mrf.mxu3  ;;  %3384 = vmatmul.bf16.gmra.mxu0 %v7941_v57  ;;  %v7945_v41 = vor.u32 %v9173_v55, %v7944_v32 }
 0x24b   : > { %v2465_v24 = vadd.f32 %v2464_v54, %v1976_v39  ;;  %v13069_v54 = vld [vmem:[#allocation15_spill] sm:$0xff] }
 0x24d   : > { %3206 = vmatmul.bf16.gmra.mxu2 %v7933_v29  ;;  %v10684_v25 = vadd.f32 %v2553_v46, %v2465_v24  ;;  %v7949_v46 = vor.u32 %v9172_v27, %v7946_v16  ;;  %v7956_v27 = vld [vmem:[#allocation2 + $0x108] sm:$0xf]  ;;  %v9176_v16 = vld [vmem:[#allocation2 + $0x110] sm:$0xf0] }
 0x24f   : > { %3295 = vmatmul.bf16.gmra.mxu3 %v7937_v47  ;;  %13067 = vst [vmem:[#allocation25_spill] sm:$0xff] %v10684_v25  ;;  %v2558_v8 = vpop.f32.mrf.mxu0 }
 0x250   : > { %v1978_v3 = vpop.f32.mrf.mxu2 }
 0x251   : > { %v1979_v6 = vadd.f32 %v1978_v3, %v10510_v20  ;;  %v7964_v3 = vld [vmem:[#allocation2 + $0x110] sm:$0xf] }
 0x252   : > { %v2467_v56 = vpop.f32.mrf.mxu3 }
 0x253   : > { %v2468_v19 = vadd.f32 %v2467_v56, %v1979_v6  ;;  %v9177_v6 = vld [vmem:[#allocation2 + $0x118] sm:$0xf0] }
 0x254   : > { %v7965_v55 = vor.u32 %v9177_v6, %v7964_v3  ;;  %v9178_v6 = vld [vmem:[#allocation2 + $0x124] sm:$0xf] }
 0x255   : > { %v10687_v26 = vadd.f32 %v2556_v28, %v2468_v19 }
 0x257   : > { %13068 = vst [vmem:[#allocation28_spill] sm:$0xff] %v10687_v26  ;;  %v3350_v40 = vpop.f32.mrf.mxu0  ;;  %v10763_v26 = vpop.f32.mrf.mxu1 }
 0x258   : > { %v1980_v50 = vpop.f32.mrf.mxu2 }
 0x259   : > { %v1981_v57 = vadd.f32 %v1980_v50, %v13069_v54 }
 0x25a   : > { %v2469_v38 = vpop.f32.mrf.mxu3  ;;  %3389 = vmatmul.bf16.gmra.mxu0 %v7953_v22 }
 0x25b   : > { %v2470_v47 = vadd.f32 %v2469_v38, %v1981_v57 }
 0x25d   : > { %3211 = vmatmul.bf16.gmra.mxu2 %v7945_v41  ;;  %v10690_v20 = vadd.f32 %v2558_v8, %v2470_v47  ;;  %v7961_v8 = vor.u32 %v9175_v63, %v7958_v59  ;;  %v7970_v63 = vld [vmem:[#allocation2 + $0x12c] sm:$0xf0]  ;;  %v7968_v59 = vld [vmem:[#allocation2 + $0x120] sm:$0xf] }
 0x25f   : > { %3300 = vmatmul.bf16.gmra.mxu3 %v7949_v46  ;;  %13070 = vst [vmem:[#allocation30_spill] sm:$0xff] %v10690_v20  ;;  %v3352_v29 = vpop.f32.mrf.mxu0  ;;  %v7957_v46 = vor.u32 %v9176_v16, %v7956_v27  ;;  %v9344_v20 = vld [vmem:[#allocation8 + $0xe0] sm:$0xff] }
 0x260   : > { %v3172_v39 = vpop.f32.mrf.mxu2 }
 0x262   : > { %v3261_v28 = vpop.f32.mrf.mxu3 }
 0x263   : > { %v3262_v24 = vadd.f32 %v3261_v28, %v3172_v39 }
 0x265   : > { %v3351_v56 = vadd.f32 %v3350_v40, %v3262_v24  ;;  %v13071_v40 = vld [vmem:[#allocation17_spill] sm:$0xff]  ;;  %v7976_v24 = vld [vmem:[#allocation2 + $0x128] sm:$0xf] }
 0x267   : > { %v10693_v19 = vadd.f32 %v3351_v56, %v10536_v23  ;;  %v3355_v22 = vpop.f32.mrf.mxu0  ;;  %v9180_v56 = vld [vmem:[#allocation2 + $0x130] sm:$0xf0] }
 0x268   : > { %v3174_v38 = vpop.f32.mrf.mxu2  ;;  %v7977_v16 = vor.u32 %v9180_v56, %v7976_v24  ;;  %v9181_v56 = vld [vmem:[#allocation2 + $0x13c] sm:$0xf] }
 0x26a   : > { %v3263_v32 = vpop.f32.mrf.mxu3  ;;  %3394 = vmatmul.bf16.gmra.mxu0 %v7965_v55 }
 0x26b   : > { %v3264_v50 = vadd.f32 %v3263_v32, %v3174_v38  ;;  %v7973_v38 = vor.u32 %v9178_v6, %v7970_v63  ;;  %v7982_v6 = vld [vmem:[#allocation2 + $0x144] sm:$0xf0]  ;;  %v7980_v63 = vld [vmem:[#allocation2 + $0x138] sm:$0xf] }
 0x26d   : > { %v3353_v54 = vadd.f32 %v3352_v29, %v3264_v50  ;;  %3216 = vmatmul.bf16.gmra.mxu2 %v7957_v46  ;;  %v9179_v29 = vld [vmem:[#allocation2 + $0x128] sm:$0xf0] }
 0x26e   : > { %v7969_v50 = vor.u32 %v9179_v29, %v7968_v59 }
 0x26f   : > { %3305 = vmatmul.bf16.gmra.mxu3 %v7961_v8  ;;  %v10696_v57 = vadd.f32 %v3353_v54, %v13071_v40  ;;  %v3357_v47 = vpop.f32.mrf.mxu0 }
 0x270   : > { %v3177_v41 = vpop.f32.mrf.mxu2 }
 0x271   : > { %13072 = vst [vmem:[#allocation31_spill] sm:$0xff] %v10696_v57 }
 0x272   : > { %v3266_v23 = vpop.f32.mrf.mxu3 }
 0x273   : > { %v3267_v28 = vadd.f32 %v3266_v23, %v3177_v41 }
 0x275   : > { %v3356_v39 = vadd.f32 %v3355_v22, %v3267_v28  ;;  %v7988_v28 = vld [vmem:[#allocation2 + $0x140] sm:$0xf] }
 0x277   : > { %v10699_v3 = vadd.f32 %v3356_v39, %v10555_v62  ;;  %v3360_v55 = vpop.f32.mrf.mxu0  ;;  %v9183_v39 = vld [vmem:[#allocation2 + $0x148] sm:$0xf0] }
 0x278   : > { %v3179_v32 = vpop.f32.mrf.mxu2  ;;  %v7989_v29 = vor.u32 %v9183_v39, %v7988_v28  ;;  %v9186_v28 = vld [vmem:[#allocation2 + $0x160] sm:$0xf0] }
 0x27a   : > { %v3268_v27 = vpop.f32.mrf.mxu3  ;;  %3399 = vmatmul.bf16.gmra.mxu0 %v7977_v16  ;;  %v7985_v16 = vor.u32 %v9181_v56, %v7982_v6  ;;  %v9184_v56 = vld [vmem:[#allocation2 + $0x154] sm:$0xf]  ;;  %v7992_v6 = vld [vmem:[#allocation2 + $0x150] sm:$0xf] }
 0x27b   : > { %v3269_v8 = vadd.f32 %v3268_v27, %v3179_v32 }
 0x27d   : > { %v3358_v46 = vadd.f32 %v3357_v47, %v3269_v8  ;;  %3221 = vmatmul.bf16.gmra.mxu2 %v7969_v50  ;;  %v9182_v47 = vld [vmem:[#allocation2 + $0x140] sm:$0xf0] }
 0x27f   : > { %3310 = vmatmul.bf16.gmra.mxu3 %v7973_v38  ;;  %v10702_v22 = vadd.f32 %v3358_v46, %v10563_v5  ;;  %v3362_v40 = vpop.f32.mrf.mxu0  ;;  %v7981_v38 = vor.u32 %v9182_v47, %v7980_v63  ;;  %v9185_v63 = vld [vmem:[#allocation2 + $0x158] sm:$0xf0] }
 0x280   : > { %v3182_v54 = vpop.f32.mrf.mxu2 }
 0x282   : > { %v3271_v62 = vpop.f32.mrf.mxu3 }
 0x283   : > { %v3272_v23 = vadd.f32 %v3271_v62, %v3182_v54  ;;  %v9347_v54 = vld [vmem:[#allocation8 + $0xf8] sm:$0xff] }
 0x284   : > { %5121 = vmatpush.bf16.msra.mxu1 %v9347_v54  ;;  %v1084_v54 = vld [vmem:[#allocation2 + $0x174] sm:$0xff] }
 0x285   : > { %v3361_v41 = vadd.f32 %v3360_v55, %v3272_v23  ;;  %1089 = vst [vmem:[#allocation2 + $0x1a4] sm:$0xff] %v1084_v54  ;;  %v8024_v54 = vld [vmem:[#allocation2 + $0x188] sm:$0xf] }
 0x287   : > { %v10705_v24 = vadd.f32 %v3361_v41, %v10574_v17  ;;  %v3365_v5 = vpop.f32.mrf.mxu0  ;;  %v8000_v41 = vld [vmem:[#allocation2 + $0x158] sm:$0xf] }
 0x288   : > { %v3184_v27 = vpop.f32.mrf.mxu2 }
 0x28a   : > { %v3273_v59 = vpop.f32.mrf.mxu3  ;;  %3404 = vmatmul.bf16.gmra.mxu0 %v7989_v29 }
 0x28b   : > { %v3274_v32 = vadd.f32 %v3273_v59, %v3184_v27 }
 0x28c   : > { %v9194_v43 = vld [vmem:[#allocation2 + $0x1a0] sm:$0xf0] }
 0x28d   : > { %v3363_v8 = vadd.f32 %v3362_v40, %v3274_v32  ;;  %3226 = vmatmul.bf16.gmra.mxu2 %v7981_v38  ;;  %v7994_v40 = vld [vmem:[#allocation2 + $0x15c] sm:$0xf0]  ;;  %v7993_v32 = vor.u32 %v9185_v63, %v7992_v6  ;;  %v8006_v6 = vld [vmem:[#allocation2 + $0x174] sm:$0xf0]  ;;  %v8004_v63 = vld [vmem:[#allocation2 + $0x168] sm:$0xf] }
 0x28e   : > { %v7997_v27 = vor.u32 %v9184_v56, %v7994_v40  ;;  %v8012_v56 = vld [vmem:[#allocation2 + $0x170] sm:$0xf]  ;;  %v9189_v40 = vld [vmem:[#allocation2 + $0x178] sm:$0xf0] }
 0x28f   : > { %3315 = vmatmul.bf16.gmra.mxu3 %v7985_v16  ;;  %v10708_v55 = vadd.f32 %v3363_v8, %v10582_v11  ;;  %v3367_v46 = vpop.f32.mrf.mxu0  ;;  %v8001_v11 = vor.u32 %v9186_v28, %v8000_v41  ;;  %v1085_v28 = vld [vmem:[#allocation2 + $0x17c] sm:$0xf] }
 0x290   : > { %v3187_v50 = vpop.f32.mrf.mxu2  ;;  %1090 = vst [vmem:[#allocation2 + $0x1ac] sm:$0xf] %v1085_v28  ;;  %v9190_v28 = vld [vmem:[#allocation2 + $0x184] sm:$0xf] }
 0x292   : > { %v3276_v17 = vpop.f32.mrf.mxu3 }
 0x293   : > { %v3277_v62 = vadd.f32 %v3276_v17, %v3187_v50 }
 0x295   : > { %v3366_v23 = vadd.f32 %v3365_v5, %v3277_v62  ;;  %v1082_v62 = vld [vmem:[#allocation2 + $0x168] sm:$0xff] }
 0x296   : > { %1087 = vst [vmem:[#allocation2 + $0x198] sm:$0xff] %v1082_v62 }
 0x297   : > { %v10711_v39 = vadd.f32 %v3366_v23, %v10593_v15  ;;  %v3370_v29 = vpop.f32.mrf.mxu0  ;;  %v1083_v23 = vld [vmem:[#allocation2 + $0x170] sm:$0xf] }
 0x298   : > { %v3189_v59 = vpop.f32.mrf.mxu2  ;;  %1088 = vst [vmem:[#allocation2 + $0x1a0] sm:$0xf] %v1083_v23  ;;  %v9192_v23 = vld [vmem:[#allocation2 + $0x190] sm:$0xf0] }
 0x29a   : > { %v3278_v47 = vpop.f32.mrf.mxu3  ;;  %3409 = vmatmul.bf16.gmra.mxu0 %v8001_v11 }
 0x29b   : > { %v3279_v16 = vadd.f32 %v3278_v47, %v3189_v59  ;;  %v9188_v47 = vld [vmem:[#allocation2 + $0x170] sm:$0xf0]  ;;  %v8013_v59 = vor.u32 %v9189_v40, %v8012_v56  ;;  %v8018_v56 = vld [vmem:[#allocation2 + $0x18c] sm:$0xf0]  ;;  %v8016_v40 = vld [vmem:[#allocation2 + $0x180] sm:$0xf] }
 0x29d   : > { %v3368_v38 = vadd.f32 %v3367_v46, %v3279_v16  ;;  %3231 = vmatmul.bf16.gmra.mxu2 %v7993_v32  ;;  %v8005_v32 = vor.u32 %v9188_v47, %v8004_v63  ;;  %v8025_v63 = vor.u32 %v9192_v23, %v8024_v54  ;;  %v9193_v54 = vld [vmem:[#allocation2 + $0x19c] sm:$0xf]  ;;  %v8030_v23 = vld [vmem:[#allocation2 + $0x1a4] sm:$0xf0]  ;;  %v8028_v52 = vld [vmem:[#allocation2 + $0x198] sm:$0xf] }
 0x29f   : > { %3320 = vmatmul.bf16.gmra.mxu3 %v7997_v27  ;;  %v10714_v5 = vadd.f32 %v3368_v38, %v10601_v60  ;;  %v10716_v17 = vpop.f32.mrf.mxu0  ;;  %v9187_v60 = vld [vmem:[#allocation2 + $0x16c] sm:$0xf] }
 0x2a0   : > { %v3192_v8 = vpop.f32.mrf.mxu2  ;;  %v8009_v16 = vor.u32 %v9187_v60, %v8006_v6  ;;  %v9191_v60 = vld [vmem:[#allocation2 + $0x188] sm:$0xf0] }
 0x2a2   : > { %v3281_v15 = vpop.f32.mrf.mxu3 }
 0x2a3   : > { %v3282_v50 = vadd.f32 %v3281_v15, %v3192_v8 }
 0x2a5   : > { %v3371_v41 = vadd.f32 %v3370_v29, %v3282_v50  ;;  %v9346_v50 = vld [vmem:[#allocation8 + $0xf0] sm:$0xff] }
 0x2a6   : > { %5122 = vmatpush.bf16.msra.mxu1 %v9346_v50  ;;  %v8036_v50 = vld [vmem:[#allocation2 + $0x1a0] sm:$0xf] }
 0x2a7   : > { %v10719_v46 = vadd.f32 %v3371_v41, %v10611_v36  ;;  %v3375_v29 = vpop.f32.mrf.mxu0 }
 0x2a8   : > { %v10723_v27 = vpop.f32.mrf.mxu2 }
 0x2aa   : > { %v10721_v11 = vpop.f32.mrf.mxu3  ;;  %3414 = vmatmul.bf16.gmra.mxu0 %v8013_v59 }
 0x2ad   : > { %3236 = vmatmul.bf16.gmra.mxu2 %v8005_v32  ;;  %v8017_v32 = vor.u32 %v9191_v60, %v8016_v40 }
 0x2af   : > { %3325 = vmatmul.bf16.gmra.mxu3 %v8009_v16  ;;  %v10725_v15 = vpop.f32.mrf.mxu0  ;;  %v8021_v16 = vor.u32 %v9190_v28, %v8018_v56 }
 0x2b0   : > { %v3197_v36 = vpop.f32.mrf.mxu2 }
 0x2b2   : > { %v3286_v38 = vpop.f32.mrf.mxu3 }
 0x2b3   : > { %v3287_v8 = vadd.f32 %v3286_v38, %v3197_v36 }
 0x2b5   : > { %v3376_v62 = vadd.f32 %v3375_v29, %v3287_v8 }
 0x2b7   : > { %v10728_v41 = vadd.f32 %v3376_v62, %v10619_v21  ;;  %v3380_v59 = vpop.f32.mrf.mxu0  ;;  %v9195_v62 = vld [vmem:[#allocation2 + $0x1a8] sm:$0xf0] }
 0x2b8   : > { %v10732_v47 = vpop.f32.mrf.mxu2  ;;  %v8037_v56 = vor.u32 %v9195_v62, %v8036_v50 }
 0x2ba   : > { %v10730_v6 = vpop.f32.mrf.mxu3  ;;  %3419 = vmatmul.bf16.gmra.mxu0 %v8025_v63  ;;  %v8033_v63 = vor.u32 %v9193_v54, %v8030_v23 }
 0x2bd   : > { %3241 = vmatmul.bf16.gmra.mxu2 %v8017_v32 }
 0x2bf   : > { %3330 = vmatmul.bf16.gmra.mxu3 %v8021_v16  ;;  %v10734_v36 = vpop.f32.mrf.mxu0  ;;  %v8029_v16 = vor.u32 %v9194_v43, %v8028_v52 }
 0x2c0   : > { %v3202_v38 = vpop.f32.mrf.mxu2 }
 0x2c2   : > { %v3291_v29 = vpop.f32.mrf.mxu3 }
 0x2c3   : > { %v3292_v21 = vadd.f32 %v3291_v29, %v3202_v38  ;;  %v9345_v38 = vld [vmem:[#allocation8 + $0xe8] sm:$0xff] }
 0x2c4   : > { %5123 = vmatpush.bf16.msra.mxu1 %v9345_v38 }
 0x2c5   : > { %v3381_v8 = vadd.f32 %v3380_v59, %v3292_v21 }
 0x2c7   : > { %v10737_v1 = vadd.f32 %v3381_v8, %v10627_v30  ;;  %v3385_v60 = vpop.f32.mrf.mxu0 }
 0x2c8   : > { %v10741_v40 = vpop.f32.mrf.mxu2  ;;  %5124 = vmatpush.bf16.msra.mxu1 %v9344_v20 }
 0x2ca   : > { %v10739_v28 = vpop.f32.mrf.mxu3  ;;  %3424 = vmatmul.bf16.gmra.mxu0 %v8037_v56 }
 0x2cd   : > { %3246 = vmatmul.bf16.gmra.mxu2 %v8029_v16 }
 0x2cf   : > { %3335 = vmatmul.bf16.gmra.mxu3 %v8033_v63  ;;  %v10743_v29 = vpop.f32.mrf.mxu0 }
 0x2d0   : > { %v3207_v32 = vpop.f32.mrf.mxu2 }
 0x2d2   : > { %v3296_v59 = vpop.f32.mrf.mxu3 }
 0x2d3   : > { %v3297_v30 = vadd.f32 %v3296_v59, %v3207_v32 }
 0x2d5   : > { %v3386_v21 = vadd.f32 %v3385_v60, %v3297_v30 }
 0x2d7   : > { %v10746_v8 = vadd.f32 %v3386_v21, %v10635_v58  ;;  %v3390_v54 = vpop.f32.mrf.mxu0 }
 0x2d8   : > { %v10750_v62 = vpop.f32.mrf.mxu2 }
 0x2da   : > { %v10748_v50 = vpop.f32.mrf.mxu3 }
 0x2df   : > { %v10752_v23 = vpop.f32.mrf.mxu0 }
 0x2e0   : > { %v3212_v52 = vpop.f32.mrf.mxu2 }
 0x2e2   : > { %v3301_v43 = vpop.f32.mrf.mxu3 }
 0x2e3   : > { %v3302_v56 = vadd.f32 %v3301_v43, %v3212_v52 }
 0x2e5   : > { %v3391_v63 = vadd.f32 %v3390_v54, %v3302_v56  ;;  %v10772_v56 = vpop.f32.mrf.mxu1 }
 0x2e6   : > { %13073 = vst [vmem:[#allocation29_spill] sm:$0xff] %v10772_v56  ;;  %v3504_v56 = vmul.f32 %v10708_v55, %v10708_v55 }
 0x2e7   : > { %v10755_v16 = vadd.f32 %v3391_v63, %v10643_v61  ;;  %v3395_v58 = vpop.f32.mrf.mxu0 }
 0x2e8   : > { %v10759_v60 = vpop.f32.mrf.mxu2 }
 0x2ea   : > { %v10757_v59 = vpop.f32.mrf.mxu3 }
 0x2ef   : > { %v10761_v38 = vpop.f32.mrf.mxu0 }
 0x2f0   : > { %v3217_v30 = vpop.f32.mrf.mxu2 }
 0x2f2   : > { %v3306_v32 = vpop.f32.mrf.mxu3 }
 0x2f3   : > { %v3307_v21 = vadd.f32 %v3306_v32, %v3217_v30 }
 0x2f5   : > { %v3396_v25 = vadd.f32 %v3395_v58, %v3307_v21  ;;  %v3499_v58 = vmul.f32 %v10693_v19, %v10693_v19  ;;  %v3501_v21 = vmul.f32 %v10699_v3, %v10699_v3 }
 0x2f7   : > { %v10766_v54 = vadd.f32 %v3396_v25, %v10649_v12  ;;  %v3400_v52 = vpop.f32.mrf.mxu0  ;;  %v3500_v12 = vmul.f32 %v10696_v57, %v10696_v57  ;;  %v10781_v25 = vpop.f32.mrf.mxu1 }
 0x2f8   : > { %v10770_v43 = vpop.f32.mrf.mxu2  ;;  %13075 = vst [vmem:[#allocation35_spill] sm:$0xff] %v10781_v25  ;;  %v3503_v25 = vmul.f32 %v10705_v24, %v10705_v24 }
 0x2fa   : > { %v10768_v61 = vpop.f32.mrf.mxu3 }
 0x2ff   : > { %v10774_v48 = vpop.f32.mrf.mxu0 }
 0x300   : > { %v3222_v31 = vpop.f32.mrf.mxu2 }
 0x302   : > { %v3311_v63 = vpop.f32.mrf.mxu3 }
 0x303   : > { %v3312_v32 = vadd.f32 %v3311_v63, %v3222_v31  ;;  %v3502_v63 = vmul.f32 %v10702_v22, %v10702_v22 }
 0x305   : > { %v3401_v30 = vadd.f32 %v3400_v52, %v3312_v32  ;;  %v3531_v52 = vadd.f32 %v3500_v12, %v3499_v58  ;;  %v3284_v32 = vadd.f32 %v10721_v11, %v10723_v27  ;;  %v3289_v58 = vadd.f32 %v10730_v6, %v10732_v47 }
 0x307   : > { %v10777_v18 = vadd.f32 %v3401_v30, %v10657_v2  ;;  %v10791_v31 = vpop.f32.mrf.mxu0  ;;  %v3462_v2 = vadd.f32 %v10696_v57, %v10693_v19  ;;  %v3532_v53 = vadd.f32 %v3531_v52, %v3501_v21  ;;  %v3373_v12 = vadd.f32 %v10716_v17, %v3284_v32  ;;  %v10819_v17 = vpop.f32.mrf.mxu1 }
 0x308   : > { %v10789_v49 = vpop.f32.mrf.mxu2  ;;  %v3505_v52 = vmul.f32 %v10711_v39, %v10711_v39  ;;  %v3294_v32 = vadd.f32 %v10739_v28, %v10741_v40 }
 0x309   : > { %13074 = vst [vmem:[#allocation32_spill] sm:$0xff] %v10777_v18  ;;  %v3463_v30 = vadd.f32 %v3462_v2, %v10699_v3  ;;  %v3533_v18 = vadd.f32 %v3532_v53, %v3502_v63  ;;  %v2593_v53 = vadd.f32 %v10604_v9, %v10614_v42  ;;  %v9343_v63 = vld [vmem:[#allocation8 + $0xd8] sm:$0xff]  ;;  %v2598_v42 = vadd.f32 %v10617_v10, %v10622_v4 }
 0x30a   : > { %v10783_v20 = vpop.f32.mrf.mxu3  ;;  %5125 = vmatpush.bf16.msra.mxu1 %v9343_v63  ;;  %v3383_v28 = vadd.f32 %v10734_v36, %v3294_v32  ;;  %v3299_v10 = vadd.f32 %v10748_v50, %v10750_v62 }
 0x30b   : > { %v3464_v34 = vadd.f32 %v3463_v30, %v10702_v22  ;;  %v3534_v27 = vadd.f32 %v3533_v18, %v3503_v25  ;;  %v10824_v18 = vadd.f32 %v3373_v12, %v2593_v53  ;;  %v3378_v25 = vadd.f32 %v10725_v15, %v3289_v58 }
 0x30c   : > { %v3388_v62 = vadd.f32 %v10743_v29, %v3299_v10 }
 0x30d   : > { %v3465_v11 = vadd.f32 %v3464_v34, %v10705_v24  ;;  %v3535_v47 = vadd.f32 %v3534_v27, %v3504_v56  ;;  %v3506_v34 = vmul.f32 %v10714_v5, %v10714_v5  ;;  %v3507_v56 = vmul.f32 %v10719_v46, %v10719_v46 }
 0x30e   : > { %v3508_v12 = vmul.f32 %v10824_v18, %v10824_v18  ;;  %v10837_v15 = vadd.f32 %v3378_v25, %v2598_v42  ;;  %v2608_v42 = vadd.f32 %v10633_v51, %v10638_v13  ;;  %v2613_v51 = vadd.f32 %v10641_v37, %v10646_v44 }
 0x30f   : > { %v10813_v2 = vpop.f32.mrf.mxu0  ;;  %v3466_v6 = vadd.f32 %v3465_v11, %v10708_v55  ;;  %v3536_v30 = vadd.f32 %v3535_v47, %v3505_v52  ;;  %v2603_v52 = vadd.f32 %v10625_v33, %v10630_v7  ;;  %v10854_v32 = vpop.f32.mrf.mxu1  ;;  %v3304_v33 = vadd.f32 %v10757_v59, %v10759_v60 }
 0x310   : > { %v10811_v21 = vpop.f32.mrf.mxu2  ;;  %v3510_v36 = vmul.f32 %v10837_v15, %v10837_v15  ;;  %v10868_v29 = vadd.f32 %v3388_v62, %v2608_v42  ;;  %v3309_v60 = vadd.f32 %v10768_v61, %v10770_v43  ;;  %v3314_v43 = vadd.f32 %v10783_v20, %v10789_v49 }
 0x311   : > { %v3467_v9 = vadd.f32 %v3466_v6, %v10711_v39  ;;  %v3537_v27 = vadd.f32 %v3536_v30, %v3506_v34  ;;  %v3509_v6 = vmul.f32 %v10728_v41, %v10728_v41  ;;  %v10852_v25 = vadd.f32 %v3383_v28, %v2603_v52 }
 0x312   : > { %v10808_v57 = vpop.f32.mrf.mxu3  ;;  %v3393_v59 = vadd.f32 %v10752_v23, %v3304_v33  ;;  %v3513_v52 = vmul.f32 %v10746_v8, %v10746_v8  ;;  %v3514_v23 = vmul.f32 %v10868_v29, %v10868_v29  ;;  %v3398_v61 = vadd.f32 %v10761_v38, %v3309_v60 }
 0x313   : > { %v3468_v11 = vadd.f32 %v3467_v9, %v10714_v5  ;;  %v3538_v63 = vadd.f32 %v3537_v27, %v3507_v56  ;;  %v3511_v9 = vmul.f32 %v10737_v1, %v10737_v1  ;;  %v2618_v37 = vadd.f32 %v10652_v35, %v10654_v14 }
 0x314   : > { %v3317_v62 = vadd.f32 %v10808_v57, %v10811_v21  ;;  %v3517_v57 = vmul.f32 %v10766_v54, %v10766_v54  ;;  %v2623_v21 = vadd.f32 %v10763_v26, %v10660_v45  ;;  %v13077_v26 = vld [vmem:[#allocation32_spill] sm:$0xff] }
 0x315   : > { %v3469_v58 = vadd.f32 %v3468_v11, %v10719_v46  ;;  %v3539_v34 = vadd.f32 %v3538_v63, %v3508_v12  ;;  %v3512_v11 = vmul.f32 %v10852_v25, %v10852_v25  ;;  %v10896_v20 = vadd.f32 %v3398_v61, %v2618_v37 }
 0x317   : > { %v10843_v53 = vpop.f32.mrf.mxu0  ;;  %v3470_v47 = vadd.f32 %v3469_v58, %v10824_v18  ;;  %v3540_v7 = vadd.f32 %v3539_v34, %v3509_v6  ;;  %v2635_v44 = vpop.f32.mrf.mxu1 }
 0x318   : > { %v3229_v4 = vpop.f32.mrf.mxu2 }
 0x319   : > { %v3471_v50 = vadd.f32 %v3470_v47, %v10728_v41  ;;  %v3541_v56 = vadd.f32 %v3540_v7, %v3510_v36  ;;  %v10881_v47 = vadd.f32 %v3393_v59, %v2613_v51 }
 0x31a   : > { %v3318_v40 = vpop.f32.mrf.mxu3 }
 0x31b   : > { %v3472_v30 = vadd.f32 %v3471_v50, %v10837_v15  ;;  %v3542_v10 = vadd.f32 %v3541_v56, %v3511_v9  ;;  %v3515_v50 = vmul.f32 %v10755_v16, %v10755_v16  ;;  %v3516_v49 = vmul.f32 %v10881_v47, %v10881_v47 }
 0x31c   : > { %v3403_v9 = vadd.f32 %v10774_v48, %v3314_v43  ;;  %v3319_v42 = vadd.f32 %v3318_v40, %v3229_v4  ;;  %v13076_v48 = vld [vmem:[#allocation29_spill] sm:$0xff] }
 0x31d   : > { %v3473_v12 = vadd.f32 %v3472_v30, %v10737_v1  ;;  %v3543_v63 = vadd.f32 %v3542_v10, %v3512_v11  ;;  %v3406_v11 = vadd.f32 %v10791_v31, %v3317_v62  ;;  %v3518_v10 = vmul.f32 %v10896_v20, %v10896_v20 }
 0x31e   : > { %v2626_v40 = vadd.f32 %v13076_v48, %v10663_v0  ;;  %v10910_v4 = vadd.f32 %v3403_v9, %v2623_v21  ;;  %v3408_v51 = vadd.f32 %v10813_v2, %v3319_v42  ;;  %v3519_v31 = vmul.f32 %v13077_v26, %v13077_v26  ;;  %v13080_v0 = vld [vmem:[#allocation24_spill] sm:$0xff] }
 0x31f   : > { %v3412_v58 = vpop.f32.mrf.mxu0  ;;  %v3474_v13 = vadd.f32 %v3473_v12, %v10852_v25  ;;  %v3544_v34 = vadd.f32 %v3543_v63, %v3513_v52  ;;  %v2631_v43 = vadd.f32 %v10819_v17, %v13080_v0  ;;  %v2637_v37 = vpop.f32.mrf.mxu1 }
 0x320   : > { %v3232_v28 = vpop.f32.mrf.mxu2 }
 0x321   : > { %v3475_v6 = vadd.f32 %v3474_v13, %v10746_v8  ;;  %v3545_v7 = vadd.f32 %v3544_v34, %v3514_v23 }
 0x322   : > { %v3321_v27 = vpop.f32.mrf.mxu3 }
 0x323   : > { %v3476_v36 = vadd.f32 %v3475_v6, %v10868_v29  ;;  %v3546_v30 = vadd.f32 %v3545_v7, %v3515_v50  ;;  %v3322_v12 = vadd.f32 %v3321_v27, %v3232_v28  ;;  %v13078_v27 = vld [vmem:[#allocation21_spill] sm:$0xff]  ;;  %v13079_v28 = vld [vmem:[#allocation35_spill] sm:$0xff]  ;;  %v10918_v6 = vadd.f32 %v3406_v11, %v2626_v40 }
 0x324   : > { %v2628_v63 = vadd.f32 %v13079_v28, %v13078_v27  ;;  %v3520_v50 = vmul.f32 %v10910_v4, %v10910_v4 }
 0x325   : > { %v3477_v38 = vadd.f32 %v3476_v36, %v10755_v16  ;;  %v3547_v59 = vadd.f32 %v3546_v30, %v3516_v49  ;;  %v3411_v23 = vadd.f32 %v10843_v53, %v3322_v12  ;;  %v13081_v49 = vld [vmem:[#allocation20_spill] sm:$0xff]  ;;  %v3521_v42 = vmul.f32 %v10918_v6, %v10918_v6 }
 0x326   : > { %v10926_v62 = vadd.f32 %v3408_v51, %v2628_v63  ;;  %v2633_v53 = vadd.f32 %v10854_v32, %v13081_v49 }
 0x327   : > { %v3415_v14 = vpop.f32.mrf.mxu0  ;;  %v3478_v56 = vadd.f32 %v3477_v38, %v10881_v47  ;;  %v3548_v52 = vadd.f32 %v3547_v59, %v3517_v57  ;;  %v9342_v38 = vld [vmem:[#allocation8 + $0xd0] sm:$0xff]  ;;  %v10933_v30 = vadd.f32 %v3411_v23, %v2631_v43  ;;  %v2640_v27 = vpop.f32.mrf.mxu1 }
 0x328   : > { %v3234_v35 = vpop.f32.mrf.mxu2  ;;  %5126 = vmatpush.bf16.msra.mxu1 %v9342_v38  ;;  %v13082_v57 = vld [vmem:[#allocation23_spill] sm:$0xff]  ;;  %v3522_v12 = vmul.f32 %v10926_v62, %v10926_v62 }
 0x329   : > { %v3479_v60 = vadd.f32 %v3478_v56, %v10766_v54  ;;  %v3549_v2 = vadd.f32 %v3548_v52, %v3518_v10  ;;  %v2636_v21 = vadd.f32 %v2635_v44, %v13082_v57  ;;  %v3523_v10 = vmul.f32 %v10933_v30, %v10933_v30 }
 0x32a   : > { %v3323_v33 = vpop.f32.mrf.mxu3 }
 0x32b   : > { %v3324_v13 = vadd.f32 %v3323_v33, %v3234_v35  ;;  %v3480_v45 = vadd.f32 %v3479_v60, %v10896_v20  ;;  %v3550_v35 = vadd.f32 %v3549_v2, %v3519_v31 }
 0x32d   : > { %v3481_v34 = vadd.f32 %v3480_v45, %v13077_v26  ;;  %v3413_v33 = vadd.f32 %v3412_v58, %v3324_v13  ;;  %v3551_v11 = vadd.f32 %v3550_v35, %v3520_v50  ;;  %v13083_v45 = vld [vmem:[#allocation26_spill] sm:$0xff] }
 0x32e   : > { %v2638_v31 = vadd.f32 %v2637_v37, %v13083_v45 }
 0x32f   : > { %v3417_v9 = vpop.f32.mrf.mxu0  ;;  %v3482_v17 = vadd.f32 %v3481_v34, %v10910_v4  ;;  %v10939_v32 = vadd.f32 %v3413_v33, %v2633_v53  ;;  %v3552_v59 = vadd.f32 %v3551_v11, %v3521_v42  ;;  %v13084_v53 = vld [vmem:[#allocation27_spill] sm:$0xff] }
 0x330   : > { %v3237_v36 = vpop.f32.mrf.mxu2  ;;  %v2641_v35 = vadd.f32 %v2640_v27, %v13084_v53 }
 0x331   : > { %v3483_v58 = vadd.f32 %v3482_v17, %v10918_v6  ;;  %v3553_v51 = vadd.f32 %v3552_v59, %v3522_v12  ;;  %v3524_v13 = vmul.f32 %v10939_v32, %v10939_v32 }
 0x332   : > { %v3326_v61 = vpop.f32.mrf.mxu3 }
 0x333   : > { %v3327_v7 = vadd.f32 %v3326_v61, %v3237_v36  ;;  %v3484_v60 = vadd.f32 %v3483_v58, %v10926_v62  ;;  %v3554_v28 = vadd.f32 %v3553_v51, %v3523_v10 }
 0x335   : > { %v3416_v56 = vadd.f32 %v3415_v14, %v3327_v7  ;;  %v3485_v44 = vadd.f32 %v3484_v60, %v10933_v30  ;;  %v3555_v43 = vadd.f32 %v3554_v28, %v3524_v13  ;;  %v13085_v60 = vld [vmem:[#allocation25_spill] sm:$0xff] }
 0x337   : > { %v10944_v48 = vadd.f32 %v3416_v56, %v2636_v21  ;;  %v3486_v63 = vadd.f32 %v3485_v44, %v10939_v32  ;;  %v3420_v0 = vpop.f32.mrf.mxu0 }
 0x338   : > { %v3239_v40 = vpop.f32.mrf.mxu2 }
 0x339   : > { %v3525_v23 = vmul.f32 %v10944_v48, %v10944_v48  ;;  %v3487_v2 = vadd.f32 %v3486_v63, %v10944_v48  ;;  %v13086_v63 = vld [vmem:[#allocation28_spill] sm:$0xff] }
 0x33a   : > { %v3328_v14 = vpop.f32.mrf.mxu3 }
 0x33b   : > { %v3329_v52 = vadd.f32 %v3328_v14, %v3239_v40  ;;  %v3556_v36 = vadd.f32 %v3555_v43, %v3525_v23 }
 0x33d   : > { %v3418_v61 = vadd.f32 %v3417_v9, %v3329_v52  ;;  %v2642_v9 = vpop.f32.mrf.mxu1 }
 0x33e   : > { %v2643_v10 = vadd.f32 %v2642_v9, %v13085_v60 }
 0x33f   : > { %v10954_v34 = vadd.f32 %v3418_v61, %v2638_v31  ;;  %v3422_v56 = vpop.f32.mrf.mxu0 }
 0x340   : > { %v3242_v7 = vpop.f32.mrf.mxu2 }
 0x341   : > { %v3488_v50 = vadd.f32 %v3487_v2, %v10954_v34  ;;  %v3526_v37 = vmul.f32 %v10954_v34, %v10954_v34 }
 0x342   : > { %v3331_v33 = vpop.f32.mrf.mxu3 }
 0x343   : > { %v3557_v38 = vadd.f32 %v3556_v36, %v3526_v37  ;;  %v3332_v49 = vadd.f32 %v3331_v33, %v3242_v7 }
 0x345   : > { %v3421_v17 = vadd.f32 %v3420_v0, %v3332_v49  ;;  %v2645_v51 = vpop.f32.mrf.mxu1  ;;  %v13087_v49 = vld [vmem:[#allocation30_spill] sm:$0xff] }
 0x346   : > { %v2646_v23 = vadd.f32 %v2645_v51, %v13086_v63 }
 0x347   : > { %v10960_v42 = vadd.f32 %v3421_v17, %v2641_v35  ;;  %v3425_v45 = vpop.f32.mrf.mxu0 }
 0x348   : > { %v3244_v58 = vpop.f32.mrf.mxu2 }
 0x349   : > { %v3489_v57 = vadd.f32 %v3488_v50, %v10960_v42  ;;  %v3527_v21 = vmul.f32 %v10960_v42, %v10960_v42 }
 0x34a   : > { %v3333_v11 = vpop.f32.mrf.mxu3 }
 0x34b   : > { %v3558_v12 = vadd.f32 %v3557_v38, %v3527_v21  ;;  %v3334_v59 = vadd.f32 %v3333_v11, %v3244_v58 }
 0x34d   : > { %v3423_v14 = vadd.f32 %v3422_v56, %v3334_v59  ;;  %v2647_v50 = vpop.f32.mrf.mxu1 }
 0x34e   : > { %v2648_v53 = vadd.f32 %v2647_v50, %v13087_v49  ;;  %v13088_v49 = vld [vmem:[#allocation31_spill] sm:$0xff] }
 0x34f   : > { %v10966_v40 = vadd.f32 %v3423_v14, %v2643_v10  ;;  %v3427_v38 = vpop.f32.mrf.mxu0 }
 0x350   : > { %v3247_v31 = vpop.f32.mrf.mxu2 }
 0x351   : > { %v3490_v44 = vadd.f32 %v3489_v57, %v10966_v40  ;;  %v3528_v13 = vmul.f32 %v10966_v40, %v10966_v40 }
 0x352   : > { %v3336_v52 = vpop.f32.mrf.mxu3 }
 0x353   : > { %v3559_v27 = vadd.f32 %v3558_v12, %v3528_v13  ;;  %v3337_v28 = vadd.f32 %v3336_v52, %v3247_v31 }
 0x355   : > { %v3426_v61 = vadd.f32 %v3425_v45, %v3337_v28 }
 0x357   : > { %v10972_v0 = vadd.f32 %v3426_v61, %v2646_v23 }
 0x358   : > { %v3249_v37 = vpop.f32.mrf.mxu2 }
 0x359   : > { %v3491_v43 = vadd.f32 %v3490_v44, %v10972_v0  ;;  %v3529_v2 = vmul.f32 %v10972_v0, %v10972_v0 }
 0x35a   : > { %v3338_v36 = vpop.f32.mrf.mxu3 }
 0x35b   : > { %v3560_v33 = vadd.f32 %v3559_v27, %v3529_v2  ;;  %v3339_v7 = vadd.f32 %v3338_v36, %v3249_v37 }
 0x35d   : > { %v3428_v35 = vadd.f32 %v3427_v38, %v3339_v7 }
 0x35f   : > { %v10978_v17 = vadd.f32 %v3428_v35, %v2648_v53 }
 0x361   : > { %v3492_v9 = vadd.f32 %v3491_v43, %v10978_v17  ;;  %v3530_v56 = vmul.f32 %v10978_v17, %v10978_v17 }
 0x363   : > { %v3493_v57 = vrot.slane %v3492_v9, 4  ;;  %v3561_v21 = vadd.f32 %v3560_v33, %v3530_v56 }
 0x365   : > { %v3494_v11 = vadd.f32 %v3493_v57, %v3492_v9  ;;  %v3562_v58 = vrot.slane %v3561_v21, 4 }
 0x367   : > { %v3495_v12 = vrot.slane %v3494_v11, 2  ;;  %v3563_v59 = vadd.f32 %v3562_v58, %v3561_v21 }
 0x369   : > { %v3496_v60 = vadd.f32 %v3495_v12, %v3494_v11  ;;  %v3564_v10 = vrot.slane %v3563_v59, 2 }
 0x36b   : > { %v3497_v14 = vrot.slane %v3496_v60, 1  ;;  %v3565_v51 = vadd.f32 %v3564_v10, %v3563_v59 }
 0x36d   : > { %v3498_v44 = vadd.f32 %v3497_v14, %v3496_v60  ;;  %v3566_v13 = vrot.slane %v3565_v51, 1 }
 0x36f   : > { %v3567_v52 = vadd.f32 %v3566_v13, %v3565_v51  ;;  %v10983_v45 = vmul.f32 0.00390625, %v3498_v44 }
 0x371   : > { %v3569_v31 = vmul.f32 0.00390625, %v3567_v52  ;;  %v3570_v27 = vmul.f32 %v10983_v45, %v10983_v45  ;;  %v3603_v28 = vsub.f32 %v10972_v0, %v10983_v45  ;;  %v3604_v63 = vsub.f32 %v10978_v17, %v10983_v45 }
 0x372   : > { %v3599_v2 = vsub.f32 %v10944_v48, %v10983_v45  ;;  %v3600_v36 = vsub.f32 %v10954_v34, %v10983_v45  ;;  %v3601_v50 = vsub.f32 %v10960_v42, %v10983_v45  ;;  %v3602_v37 = vsub.f32 %v10966_v40, %v10983_v45 }
 0x373   : > { %v3571_v23 = vsub.f32 %v3569_v31, %v3570_v27  ;;  %v3573_v38 = vsub.f32 %v10693_v19, %v10983_v45  ;;  %v3574_v53 = vsub.f32 %v13088_v49, %v10983_v45  ;;  %v3575_v35 = vsub.f32 %v10699_v3, %v10983_v45 }
 0x374   : > { %v3576_v17 = vsub.f32 %v10702_v22, %v10983_v45  ;;  %v3577_v56 = vsub.f32 %v10705_v24, %v10983_v45  ;;  %v3578_v57 = vsub.f32 %v10708_v55, %v10983_v45  ;;  %v3579_v21 = vsub.f32 %v10711_v39, %v10983_v45 }
 0x375   : > { %v3572_v61 = vmax.f32 %v3571_v23, 0.0  ;;  %v3580_v19 = vsub.f32 %v10714_v5, %v10983_v45  ;;  %v3581_v11 = vsub.f32 %v10719_v46, %v10983_v45  ;;  %v3582_v3 = vsub.f32 %v10824_v18, %v10983_v45 }
 0x376   : > { %v3583_v22 = vsub.f32 %v10728_v41, %v10983_v45  ;;  %v3584_v24 = vsub.f32 %v10837_v15, %v10983_v45  ;;  %v3585_v55 = vsub.f32 %v10737_v1, %v10983_v45  ;;  %v3586_v39 = vsub.f32 %v10852_v25, %v10983_v45 }
 0x377   : > { %v3605_v43 = vadd.f32 1e-05, %v3572_v61  ;;  %v3587_v5 = vsub.f32 %v10746_v8, %v10983_v45  ;;  %v3588_v46 = vsub.f32 %v10868_v29, %v10983_v45  ;;  %v3589_v41 = vsub.f32 %v10755_v16, %v10983_v45 }
 0x378   : > { %v3590_v15 = vsub.f32 %v10881_v47, %v10983_v45  ;;  %v3591_v1 = vsub.f32 %v10766_v54, %v10983_v45  ;;  %v3592_v25 = vsub.f32 %v10896_v20, %v10983_v45  ;;  %v3593_v8 = vsub.f32 %v13077_v26, %v10983_v45 }
 0x379   : > { %9526 = vrsqrt.f32 %v3605_v43  ;;  %vm3612_vm0 = vweird.f32 %v3605_v43  ;;  %v3594_v29 = vsub.f32 %v10910_v4, %v10983_v45  ;;  %v3595_v16 = vsub.f32 %v10918_v6, %v10983_v45 }
 0x37a   : > { %v3596_v47 = vsub.f32 %v10926_v62, %v10983_v45  ;;  %v3597_v54 = vsub.f32 %v10933_v30, %v10983_v45  ;;  %v3598_v59 = vsub.f32 %v10939_v32, %v10983_v45 }
 0x37f   : > { %v9527_v0 = vpop.eup %9526 }
 0x380   : > { %v3607_v33 = vmul.f32 %v9527_v0, %v3605_v43  ;;  %vm3613_vm15 = vweird.f32 %v9527_v0 }
 0x381   : > { %vm3614_vm1 = vmor %vm3612_vm0, %vm3613_vm15 }
 0x382   : > { %v3608_v7 = vmul.f32 %v9527_v0, %v3607_v33 }
 0x384   : > { %v3609_v9 = vmul.f32 0.5, %v3608_v7 }
 0x386   : > { %v3610_v58 = vsub.f32 1.5, %v3609_v9 }
 0x388   : > { %v3611_v18 = vmul.f32 %v9527_v0, %v3610_v58 }
 0x38a   : > { %v3615_v12 = vsel %vm3614_vm1, %v9527_v0, %v3611_v18 }
 0x38b   : > { %v3646_v20 = vmul.f32 %v3615_v12, %v3603_v28  ;;  %v3647_v60 = vmul.f32 %v3615_v12, %v3604_v63  ;;  %v11051_v10 = vmul.f32 %v3615_v12, %v3573_v38  ;;  %v11053_v26 = vmul.f32 %v3615_v12, %v3574_v53 }
 0x38c   : > { %v11055_v4 = vmul.f32 %v3615_v12, %v3575_v35  ;;  %v11057_v14 = vmul.f32 %v3615_v12, %v3576_v17  ;;  %v11059_v6 = vmul.f32 %v3615_v12, %v3577_v56  ;;  %v11061_v51 = vmul.f32 %v3615_v12, %v3578_v57 }
 0x38d   : > { %v3678_v62 = vmax.f32 %v3646_v20, 0.0  ;;  %v3679_v44 = vmax.f32 %v3647_v60, 0.0  ;;  %v11063_v30 = vmul.f32 %v3615_v12, %v3579_v21  ;;  %v11065_v13 = vmul.f32 %v3615_v12, %v3580_v19 }
 0x38e   : > { %v11067_v32 = vmul.f32 %v3615_v12, %v3581_v11  ;;  %v11069_v52 = vmul.f32 %v3615_v12, %v3582_v3  ;;  %v11071_v31 = vmul.f32 %v3615_v12, %v3583_v22  ;;  %v11073_v27 = vmul.f32 %v3615_v12, %v3584_v24 }
 0x38f   : > { %v3710_v28 = vpack.c.bf16 %v3678_v62, %v3678_v62  ;;  %v3711_v63 = vpack.c.bf16 %v3679_v44, %v3679_v44  ;;  %v11075_v23 = vmul.f32 %v3615_v12, %v3585_v55  ;;  %v11077_v61 = vmul.f32 %v3615_v12, %v3586_v39 }
 0x390   : > { %v11079_v43 = vmul.f32 %v3615_v12, %v3587_v5  ;;  %v11081_v0 = vmul.f32 %v3615_v12, %v3588_v46  ;;  %v11083_v33 = vmul.f32 %v3615_v12, %v3589_v41  ;;  %v11085_v7 = vmul.f32 %v3615_v12, %v3590_v15 }
 0x391   : > { %3743 = vst [vmem:[#allocation2 + $0x190] sm:$0xf] %v3711_v63  ;;  %v3820_v38 = vshrl.u32 %v3710_v28, 16  ;;  %v4084_v49 = vshll.u32 %v3710_v28, 16  ;;  %v4089_v53 = vshrl.u32 %v3711_v63, 16  ;;  %v11087_v35 = vshll.u32 %v3711_v63, 16 }
 0x392   : > { %3742 = vst [vmem:[#allocation2 + $0x184] sm:$0xf] %v3710_v28  ;;  %v11089_v17 = vmul.f32 %v3615_v12, %v3591_v1  ;;  %v11091_v9 = vmul.f32 %v3615_v12, %v3592_v25  ;;  %v11093_v56 = vmul.f32 %v3615_v12, %v3593_v8  ;;  %v11095_v57 = vmul.f32 %v3615_v12, %v3594_v29 }
 0x393   : > { %v11097_v21 = vrot.slane %v3820_v38, 4  ;;  %v4083_v19 = vrot.slane %v3820_v38, 7  ;;  %v4091_v11 = vrot.slane %v4089_v53, 7  ;;  %v4312_v3 = vrot.slane %v4084_v49, 5 }
 0x394   : > { %v4315_v22 = vrot.slane %v11087_v35, 5  ;;  %v4317_v58 = vrot.slane %v4089_v53, 4  ;;  %v11100_v24 = vmul.f32 %v3615_v12, %v3595_v16  ;;  %v11102_v55 = vmul.f32 %v3615_v12, %v3596_v47  ;;  %v4413_v16 = vld [vmem:[#allocation2 + $0x194] sm:$0xf] }
 0x395   : > { %v4087_v39 = vrot.slane %v4083_v19, 4  ;;  %v4094_v5 = vor.u32 %v11087_v35, %v4091_v11  ;;  %v4313_v46 = vor.u32 %v4312_v3, %v11097_v21  ;;  %v11106_v18 = vor.u32 %v4084_v49, %v4083_v19 }
 0x396   : > { %v4318_v41 = vor.u32 %v4317_v58, %v4315_v22  ;;  %v11108_v15 = vmul.f32 %v3615_v12, %v3597_v54  ;;  %v11110_v1 = vmul.f32 %v3615_v12, %v3598_v59  ;;  %v11117_v47 = vmul.f32 %v3615_v12, %v3599_v2 }
 0x397   : > { %13089 = vst [vmem:[#allocation36_spill] sm:$0xff] %v11106_v18  ;;  %v4095_v8 = vsel %vm9869_vm5, %v4087_v39, %v4094_v5  ;;  %v4314_v29 = vrot.slane %v4313_v46, 4  ;;  %v11122_v20 = vmul.f32 %v3615_v12, %v3600_v36  ;;  %v11127_v59 = vmul.f32 %v3615_v12, %v3601_v50  ;;  %v3861_v18 = vld [vmem:[#allocation2 + $0xc0] sm:$0x1] }
 0x398   : > { %4191 = vst [vmem:[#allocation2 + $0x18c] sm:$0xf] %v4095_v8  ;;  %v4319_v54 = vrot.slane %v4318_v41, 4  ;;  %v11132_v60 = vmul.f32 %v3615_v12, %v3602_v37  ;;  %v3648_v44 = vmax.f32 %v11051_v10, 0.0  ;;  %v3649_v42 = vmax.f32 %v11053_v26, 0.0 }
 0x399   : > { %v4316_v2 = vsel %vm9940_vm10, %v4314_v29, %v4315_v22  ;;  %v3650_v50 = vmax.f32 %v11055_v4, 0.0  ;;  %v3651_v40 = vmax.f32 %v11057_v14, 0.0  ;;  %v3652_v45 = vmax.f32 %v11059_v6, 0.0 }
 0x39a   : > { %4412 = vst [vmem:[#allocation2 + $0x188] sm:$0xf] %v4316_v2  ;;  %v4414_v34 = vsel %vm9954_vm13, %v4319_v54, %v4413_v16  ;;  %v3653_v37 = vmax.f32 %v11061_v51, 0.0  ;;  %v3654_v12 = vmax.f32 %v11063_v30, 0.0  ;;  %v3655_v28 = vmax.f32 %v11065_v13, 0.0 }
 0x39b   : > { %4415 = vst [vmem:[#allocation2 + $0x194] sm:$0xf] %v4414_v34  ;;  %v3656_v63 = vmax.f32 %v11067_v32, 0.0  ;;  %v3657_v38 = vmax.f32 %v11069_v52, 0.0  ;;  %v3658_v10 = vmax.f32 %v11071_v31, 0.0  ;;  %v3659_v26 = vmax.f32 %v11073_v27, 0.0 }
 0x39c   : > { %v3660_v4 = vmax.f32 %v11075_v23, 0.0  ;;  %v3661_v14 = vmax.f32 %v11077_v61, 0.0  ;;  %v3662_v6 = vmax.f32 %v11079_v43, 0.0  ;;  %v3663_v51 = vmax.f32 %v11081_v0, 0.0 }
 0x39d   : > { %v3664_v30 = vmax.f32 %v11083_v33, 0.0  ;;  %v3665_v13 = vmax.f32 %v11085_v7, 0.0  ;;  %v3666_v32 = vmax.f32 %v11089_v17, 0.0  ;;  %v3667_v52 = vmax.f32 %v11091_v9, 0.0 }
 0x39e   : > { %v3668_v31 = vmax.f32 %v11093_v56, 0.0  ;;  %v11160_v49 = vpack.c.bf16 %v3648_v44, %v3648_v44  ;;  %v3669_v27 = vmax.f32 %v11095_v57, 0.0  ;;  %v3670_v23 = vmax.f32 %v11100_v24, 0.0 }
 0x39f   : > { %v11164_v61 = vpack.c.bf16 %v3649_v42, %v3649_v42  ;;  %v11166_v43 = vpack.c.bf16 %v3650_v50, %v3650_v50  ;;  %v3671_v33 = vmax.f32 %v11102_v55, 0.0  ;;  %v3672_v7 = vmax.f32 %v11108_v15, 0.0 }
 0x3a0   : > { %v11170_v53 = vpack.c.bf16 %v3652_v45, %v3652_v45  ;;  %3712 = vst [vmem:[#allocation2 + $0x1c] sm:$0xf] %v11160_v49  ;;  %v3673_v56 = vmax.f32 %v11110_v1, 0.0  ;;  %v3674_v57 = vmax.f32 %v11117_v47, 0.0  ;;  %v11178_v19 = vpack.c.bf16 %v3653_v37, %v3653_v37 }
 0x3a1   : > { %13093 = vst [vmem:[#allocation33_spill] sm:$0xff] %v11164_v61  ;;  %v3675_v11 = vmax.f32 %v11122_v20, 0.0  ;;  %v3676_v3 = vmax.f32 %v11127_v59, 0.0  ;;  %v11184_v58 = vpack.c.bf16 %v3654_v12, %v3654_v12  ;;  %v11186_v24 = vpack.c.bf16 %v3651_v40, %v3651_v40 }
 0x3a2   : > { %v4477_v0 = vld [vmem:[#allocation2 + $0x194] sm:$0x8]  ;;  %3713 = vst [vmem:[#allocation2 + $0x28] sm:$0xf] %v11164_v61  ;;  %v11190_v55 = vpack.c.bf16 %v3656_v63, %v3656_v63  ;;  %v11192_v39 = vpack.c.bf16 %v3657_v38, %v3657_v38  ;;  %v11195_v5 = vpack.c.bf16 %v3658_v10, %v3658_v10  ;;  %v11197_v46 = vpack.c.bf16 %v3659_v26, %v3659_v26 }
 0x3a3   : > { %v4478_v9 = vsel %vm10010_vm14, %v11087_v35, %v4477_v0  ;;  %13095 = vst [vmem:[#allocation34_spill] sm:$0xff] %v11186_v24  ;;  %v11188_v35 = vpack.c.bf16 %v3655_v28, %v3655_v28  ;;  %v11199_v41 = vpack.c.bf16 %v3660_v4, %v3660_v4  ;;  %v11201_v15 = vpack.c.bf16 %v3661_v14, %v3661_v14 }
 0x3a4   : > { %4479 = vst [vmem:[#allocation2 + $0x194] sm:$0x8] %v4478_v9  ;;  %v11204_v1 = vpack.c.bf16 %v3662_v6, %v3662_v6  ;;  %v11206_v8 = vpack.c.bf16 %v3663_v51, %v3663_v51  ;;  %v11208_v29 = vpack.c.bf16 %v3664_v30, %v3664_v30  ;;  %v11210_v16 = vpack.c.bf16 %v3665_v13, %v3665_v13 }
 0x3a5   : > { %3714 = vst [vmem:[#allocation2 + $0x34] sm:$0xf] %v11166_v43  ;;  %v11213_v47 = vpack.c.bf16 %v3666_v32, %v3666_v32  ;;  %v11215_v20 = vpack.c.bf16 %v3667_v52, %v3667_v52  ;;  %v11217_v54 = vpack.c.bf16 %v3668_v31, %v3668_v31  ;;  %v12864_v59 = vshrl.u32 %v11160_v49, 16 }
 0x3a6   : > { %13096 = vst [vmem:[#allocation39_spill] sm:$0xff] %v11197_v46  ;;  %v12863_v2 = vshrl.u32 %v11166_v43, 16  ;;  %v12862_v34 = vshrl.u32 %v11170_v53, 16  ;;  %v12858_v44 = vshrl.u32 %v11184_v58, 16  ;;  %v12857_v42 = vshrl.u32 %v11190_v55, 16 }
 0x3a7   : > { %13097 = vst [vmem:[#allocation40_spill] sm:$0xff] %v11201_v15  ;;  %v11226_v50 = vpack.c.bf16 %v3669_v27, %v3669_v27  ;;  %v11228_v40 = vpack.c.bf16 %v3670_v23, %v3670_v23  ;;  %v11233_v45 = vrot.slane %v12864_v59, 4  ;;  %v12856_v37 = vshrl.u32 %v11195_v5, 16  ;;  %v3840_v23 = vld [vmem:[#allocation2 + $0x18] sm:$0x1] }
 0x3a8   : > { %3716 = vst [vmem:[#allocation2 + $0x4c] sm:$0xf] %v11170_v53  ;;  %v11236_v12 = vpack.c.bf16 %v3671_v33, %v3671_v33  ;;  %v11238_v28 = vpack.c.bf16 %v3672_v7, %v3672_v7  ;;  %v11240_v63 = vpack.c.bf16 %v3673_v56, %v3673_v56  ;;  %v11242_v38 = vpack.c.bf16 %v3674_v57, %v3674_v57  ;;  %v3843_v56 = vld [vmem:[#allocation2 + $0x30] sm:$0x1] }
 0x3a9   : > { %13098 = vst [vmem:[#allocation37_spill] sm:$0xff] %v11206_v8  ;;  %v11245_v10 = vpack.c.bf16 %v3675_v11, %v3675_v11  ;;  %v11247_v26 = vpack.c.bf16 %v3676_v3, %v3676_v3  ;;  %v12859_v4 = vshrl.u32 %v11199_v41, 16  ;;  %v12860_v14 = vshrl.u32 %v11204_v1, 16  ;;  %v13167_v25 = vld [vmem:[#allocation33_spill] sm:$0xff] }
 0x3aa   : > { %13099 = vst [vmem:[#allocation38_spill] sm:$0xff] %v11210_v16  ;;  %v11255_v6 = vrot.slane %v12863_v2, 4  ;;  %v11259_v51 = vrot.slane %v12862_v34, 4  ;;  %v11263_v30 = vrot.slane %v12858_v44, 4  ;;  %v11267_v13 = vrot.slane %v12857_v42, 4 }
 0x3ab   : > { %3717 = vst [vmem:[#allocation2 + $0x58] sm:$0xf] %v11178_v19  ;;  %v3748_v32 = vrot.slane %v11233_v45, 4  ;;  %v11273_v52 = vrot.slane %v12856_v37, 4  ;;  %v12861_v31 = vshrl.u32 %v11208_v29, 16  ;;  %v12865_v27 = vshrl.u32 %v11213_v47, 16 }
 0x3ac   : > { %13100 = vst [vmem:[#allocation42_spill] sm:$0xff] %v11213_v47  ;;  %v12866_v0 = vshrl.u32 %v11217_v54, 16  ;;  %v12867_v33 = vshrl.u32 %v11228_v40, 16  ;;  %v12868_v7 = vshrl.u32 %v11238_v28, 16  ;;  %v12869_v9 = vshrl.u32 %v11242_v38, 16 }
 0x3ad   : > { %13101 = vst [vmem:[#allocation43_spill] sm:$0xff] %v11215_v20  ;;  %v11285_v57 = vrot.slane %v12859_v4, 4  ;;  %v11289_v11 = vrot.slane %v12860_v14, 4  ;;  %v11293_v3 = vrot.slane %v12861_v31, 4  ;;  %v12874_v37 = vshrl.u32 %v11247_v26, 16 }
 0x3ae   : > { %3718 = vst [vmem:[#allocation2 + $0x64] sm:$0xf] %v11184_v58  ;;  %v3846_v42 = vld [vmem:[#allocation2 + $0x48] sm:$0x1]  ;;  %v3753_v36 = vrot.slane %v11255_v6, 4  ;;  %v11300_v44 = vrot.slane %v12865_v27, 4 }
 0x3af   : > { %3719 = vst [vmem:[#allocation2 + $0x70] sm:$0xf] %v11188_v35  ;;  %v11304_v4 = vrot.slane %v12866_v0, 4  ;;  %v11308_v14 = vrot.slane %v12867_v33, 4  ;;  %v3849_v31 = vld [vmem:[#allocation2 + $0x60] sm:$0x1] }
 0x3b0   : > { %13102 = vst [vmem:[#allocation41_spill] sm:$0xff] %v11226_v50  ;;  %v3852_v34 = vld [vmem:[#allocation2 + $0x78] sm:$0x1]  ;;  %v3855_v2 = vld [vmem:[#allocation2 + $0x90] sm:$0x1]  ;;  %v3758_v59 = vrot.slane %v11259_v51, 4 }
 0x3b1   : > { %3720 = vst [vmem:[#allocation2 + $0x7c] sm:$0xf] %v11190_v55  ;;  %v11314_v22 = vrot.slane %v12868_v7, 4  ;;  %v11318_v27 = vrot.slane %v12869_v9, 4  ;;  %v11322_v0 = vrot.slane %v12874_v37, 4  ;;  %v13122_v17 = vmax.f32 %v11132_v60, 0.0 }
 0x3b2   : > { %13103 = vst [vmem:[#allocation15_spill] sm:$0xff] %v11233_v45  ;;  %v3858_v33 = vld [vmem:[#allocation2 + $0xa8] sm:$0x1]  ;;  %v3763_v7 = vrot.slane %v11263_v30, 4  ;;  %v3768_v48 = vrot.slane %v11267_v13, 4  ;;  %v3773_v9 = vrot.slane %v11273_v52, 4 }
 0x3b3   : > { %13104 = vst [vmem:[#allocation17_spill] sm:$0xff] %v11236_v12  ;;  %v11327_v62 = vpack.c.bf16 %v13122_v17, %v13122_v17  ;;  %v3870_v45 = vld [vmem:[#allocation2 + $0x108] sm:$0x1]  ;;  %v3778_v37 = vrot.slane %v11285_v57, 4  ;;  %v3783_v60 = vrot.slane %v11289_v11, 4  ;;  %v3788_v17 = vrot.slane %v11293_v3, 4 }
 0x3b4   : > { %13105 = vst [vmem:[#allocation29_spill] sm:$0xff] %v11240_v63 }
 0x3b5   : > { %13106 = vst [vmem:[#allocation32_spill] sm:$0xff] %v11242_v38 }
 0x3b6   : > { %3721 = vst [vmem:[#allocation2 + $0x88] sm:$0xf] %v11192_v39 }
 0x3b7   : > { %13107 = vst [vmem:[#allocation21_spill] sm:$0xff] %v11245_v10 }
 0x3b8   : > { %3722 = vst [vmem:[#allocation2 + $0x94] sm:$0xf] %v11195_v5 }
 0x3b9   : > { %3723 = vst [vmem:[#allocation2 + $0xa0] sm:$0xf] %v11197_v46 }
 0x3ba   : > { %13108 = vst [vmem:[#allocation35_spill] sm:$0xff] %v11255_v6  ;;  %v3867_v6 = vld [vmem:[#allocation2 + $0xf0] sm:$0x1] }
 0x3bb   : > { %13109 = vst [vmem:[#allocation24_spill] sm:$0xff] %v11259_v51  ;;  %v3864_v51 = vld [vmem:[#allocation2 + $0xd8] sm:$0x1] }
 0x3bc   : > { %13110 = vst [vmem:[#allocation20_spill] sm:$0xff] %v11263_v30  ;;  %v3803_v30 = vrot.slane %v11308_v14, 4 }
 0x3bd   : > { %13111 = vst [vmem:[#allocation23_spill] sm:$0xff] %v11267_v13  ;;  %v3793_v13 = vrot.slane %v11300_v44, 4 }
 0x3be   : > { %3724 = vst [vmem:[#allocation2 + $0xac] sm:$0xf] %v11199_v41 }
 0x3bf   : > { %13112 = vst [vmem:[#allocation26_spill] sm:$0xff] %v11273_v52  ;;  %v3798_v52 = vrot.slane %v11304_v4, 4 }
 0x3c0   : > { %3725 = vst [vmem:[#allocation2 + $0xb8] sm:$0xf] %v11201_v15 }
 0x3c1   : > { %3726 = vst [vmem:[#allocation2 + $0xc4] sm:$0xf] %v11204_v1 }
 0x3c2   : > { %13113 = vst [vmem:[#allocation27_spill] sm:$0xff] %v11285_v57  ;;  %v3818_v57 = vrot.slane %v11322_v0, 4 }
 0x3c3   : > { %13114 = vst [vmem:[#allocation25_spill] sm:$0xff] %v11289_v11  ;;  %v3808_v11 = vrot.slane %v11314_v22, 4 }
 0x3c4   : > { %13115 = vst [vmem:[#allocation28_spill] sm:$0xff] %v11293_v3  ;;  %v3813_v3 = vrot.slane %v11318_v27, 4 }
 0x3c5   : > { %3727 = vst [vmem:[#allocation2 + $0xd0] sm:$0xf] %v11206_v8 }
 0x3c6   : > { %13116 = vst [vmem:[#allocation30_spill] sm:$0xff] %v11300_v44 }
 0x3c7   : > { %13117 = vst [vmem:[#allocation31_spill] sm:$0xff] %v11304_v4  ;;  %v3885_v4 = vld [vmem:[#allocation2 + $0x180] sm:$0x1] }
 0x3c8   : > { %13118 = vst [vmem:[#allocation14_spill] sm:$0xff] %v11308_v14  ;;  %v3850_v14 = vsel %vm9860_vm4, %v3763_v7, %v3849_v31  ;;  %v3879_v31 = vld [vmem:[#allocation2 + $0x150] sm:$0x1]  ;;  %v11381_v7 = vsel %vm9860_vm4, %v3788_v17, %v3864_v51  ;;  %v11397_v51 = vshll.u32 %v11164_v61, 16  ;;  %v13127_v17 = vshrl.u32 %v11170_v53, 16 }
 0x3c9   : > { %3728 = vst [vmem:[#allocation2 + $0xdc] sm:$0xf] %v11208_v29 }
 0x3ca   : > { %13119 = vst [vmem:[#allocation44_spill] sm:$0xff] %v11314_v22 }
 0x3cb   : > { %13120 = vst [vmem:[#allocation45_spill] sm:$0xff] %v11318_v27  ;;  %v13125_v27 = vshrl.u32 %v11160_v49, 16 }
 0x3cc   : > { %13121 = vst [vmem:[#allocation46_spill] sm:$0xff] %v11322_v0  ;;  %v3876_v0 = vld [vmem:[#allocation2 + $0x138] sm:$0x1] }
 0x3cd   : > { %13123 = vst [vmem:[#allocation47_spill] sm:$0xff] %v11327_v62  ;;  %v11362_v22 = vrot.slane %v13125_v27, 7  ;;  %v3882_v27 = vld [vmem:[#allocation2 + $0x168] sm:$0x1]  ;;  %v12902_v62 = vshrl.u32 %v11192_v39, 16 }
 0x3ce   : > { %3729 = vst [vmem:[#allocation2 + $0xe8] sm:$0xf] %v11210_v16  ;;  %v3841_v16 = vsel %vm9860_vm4, %v3748_v32, %v3840_v23  ;;  %v3847_v32 = vsel %vm9860_vm4, %v3758_v59, %v3846_v42  ;;  %v3873_v23 = vld [vmem:[#allocation2 + $0x120] sm:$0x1]  ;;  %v11367_v59 = vsel %vm9860_vm4, %v3778_v37, %v3858_v33  ;;  %v11371_v42 = vsel %vm9860_vm4, %v3783_v60, %v3861_v18 }
 0x3cf   : > { %3730 = vst [vmem:[#allocation2 + $0xf4] sm:$0xf] %v11213_v47  ;;  %v3844_v47 = vsel %vm9860_vm4, %v3753_v36, %v3843_v56  ;;  %v3853_v36 = vsel %vm9860_vm4, %v3768_v48, %v3852_v34  ;;  %v11358_v56 = vsel %vm9860_vm4, %v3773_v9, %v3855_v2  ;;  %v12891_v48 = vshrl.u32 %v11164_v61, 16 }
 0x3d0   : > { %3731 = vst [vmem:[#allocation2 + $0x100] sm:$0xf] %v11215_v20  ;;  %v13126_v2 = vshrl.u32 %v11166_v43, 16  ;;  %v11385_v37 = vsel %vm9860_vm4, %v3793_v13, %v3867_v6  ;;  %v11389_v18 = vsel %vm9860_vm4, %v3798_v52, %v3870_v45  ;;  %v12893_v33 = vshrl.u32 %v11186_v24, 16 }
 0x3d1   : > { %3732 = vst [vmem:[#allocation2 + $0x10c] sm:$0xf] %v11217_v54  ;;  %v3892_v9 = vrot.slane %v11362_v22, 4  ;;  %v3896_v60 = vrot.slane %v12891_v48, 7  ;;  %v3914_v6 = vrot.slane %v13127_v17, 7  ;;  %v11406_v52 = vshll.u32 %v11186_v24, 16 }
 0x3d2   : > { %3733 = vst [vmem:[#allocation2 + $0x118] sm:$0xf] %v11226_v50  ;;  %v11376_v34 = vrot.slane %v13126_v2, 7  ;;  %v3909_v13 = vrot.slane %v12893_v33, 7  ;;  %v11412_v48 = vsel %vm9860_vm4, %v3803_v30, %v3873_v23  ;;  %v11416_v17 = vsel %vm9860_vm4, %v3808_v11, %v3876_v0 }
 0x3d3   : > { %3734 = vst [vmem:[#allocation2 + $0x124] sm:$0xf] %v11228_v40  ;;  %v3899_v44 = vor.u32 %v11397_v51, %v3896_v60  ;;  %v13128_v33 = vshrl.u32 %v11184_v58, 16  ;;  %v3918_v24 = vrot.slane %v3914_v6, 4  ;;  %v11426_v30 = vshll.u32 %v11178_v19, 16 }
 0x3d4   : > { %3735 = vst [vmem:[#allocation2 + $0x130] sm:$0xf] %v11236_v12  ;;  %v3905_v45 = vrot.slane %v11376_v34, 4  ;;  %v3912_v2 = vor.u32 %v11406_v52, %v3909_v13  ;;  %v11431_v0 = vsel %vm9860_vm4, %v3813_v3, %v3879_v31  ;;  %v11435_v11 = vsel %vm9860_vm4, %v3818_v57, %v3882_v27 }
 0x3d5   : > { %3736 = vst [vmem:[#allocation2 + $0x13c] sm:$0xf] %v11238_v28  ;;  %v3927_v61 = vrot.slane %v13128_v33, 7  ;;  %v11439_v23 = vsel %vm9869_vm5, %v3892_v9, %v3899_v44  ;;  %v12901_v33 = vshrl.u32 %v11188_v35, 16  ;;  %v13131_v31 = vshrl.u32 %v11190_v55, 16 }
 0x3d6   : > { %3737 = vst [vmem:[#allocation2 + $0x148] sm:$0xf] %v11240_v63  ;;  %v11450_v3 = vsel %vm9869_vm5, %v3905_v45, %v3912_v2  ;;  %v11469_v9 = vshll.u32 %v11192_v39, 16 }
 0x3d7   : > { %3738 = vst [vmem:[#allocation2 + $0x154] sm:$0xf] %v11242_v38  ;;  %v13129_v38 = vshrl.u32 %v11178_v19, 16  ;;  %v11455_v27 = vrot.slane %v13131_v31, 7  ;;  %v3931_v44 = vrot.slane %v3927_v61, 4 }
 0x3d8   : > { %3739 = vst [vmem:[#allocation2 + $0x160] sm:$0xf] %v11245_v10 }
 0x3d9   : > { %v3922_v63 = vrot.slane %v13129_v38, 7  ;;  %3740 = vst [vmem:[#allocation2 + $0x16c] sm:$0xf] %v11247_v26  ;;  %v13130_v38 = vrot.slane %v11097_v21, 4  ;;  %v11460_v21 = vshll.u32 %v11188_v35, 16  ;;  %v3944_v2 = vrot.slane %v11455_v27, 4 }
 0x3da   : > { %3842 = vst [vmem:[#allocation2 + $0x18] sm:$0x1] %v3841_v16  ;;  %v3935_v16 = vrot.slane %v12901_v33, 7 }
 0x3db   : > { %v11446_v60 = vsel %vm9860_vm4, %v13130_v38, %v3885_v4  ;;  %v3925_v57 = vor.u32 %v11426_v30, %v3922_v63  ;;  %3845 = vst [vmem:[#allocation2 + $0x30] sm:$0x1] %v3844_v47  ;;  %v12907_v4 = vshll.u32 %v11160_v49, 16  ;;  %v13132_v47 = vshrl.u32 %v11195_v5, 16 }
 0x3dc   : > { %3848 = vst [vmem:[#allocation2 + $0x48] sm:$0x1] %v3847_v32  ;;  %v3938_v13 = vor.u32 %v11460_v21, %v3935_v16  ;;  %v3948_v32 = vrot.slane %v12902_v62, 7  ;;  %v12903_v38 = vshrl.u32 %v11197_v46, 16  ;;  %v11494_v62 = vshll.u32 %v11197_v46, 16 }
 0x3dd   : > { %v11466_v63 = vsel %vm9869_vm5, %v3918_v24, %v3925_v57  ;;  %v11473_v45 = vrot.slane %v13132_v47, 7  ;;  %3851 = vst [vmem:[#allocation2 + $0x60] sm:$0x1] %v3850_v14  ;;  %v12904_v24 = vshll.u32 %v11166_v43, 16  ;;  %v12905_v57 = vshll.u32 %v11170_v53, 16 }
 0x3de   : > { %3854 = vst [vmem:[#allocation2 + $0x78] sm:$0x1] %v3853_v36  ;;  %v13133_v47 = vshrl.u32 %v11199_v41, 16  ;;  %v11488_v14 = vsel %vm9869_vm5, %v3931_v44, %v3938_v13  ;;  %v3951_v16 = vor.u32 %v11469_v9, %v3948_v32  ;;  %v3961_v36 = vrot.slane %v12903_v38, 7 }
 0x3df   : > { %v3957_v31 = vrot.slane %v11473_v45, 4  ;;  %3857 = vst [vmem:[#allocation2 + $0x90] sm:$0x1] %v11358_v56  ;;  %v11505_v56 = vor.u32 %v12904_v24, %v11376_v34  ;;  %v12906_v44 = vshrl.u32 %v11201_v15, 16  ;;  %v13135_v13 = vshrl.u32 %v11204_v1, 16 }
 0x3e0   : > { %v3966_v33 = vrot.slane %v13133_v47, 7  ;;  %13134 = vst [vmem:[#allocation13_spill] sm:$0xff] %v11494_v62  ;;  %v11500_v47 = vor.u32 %v12907_v4, %v11362_v22  ;;  %v12909_v38 = vshll.u32 %v11184_v58, 16  ;;  %v11518_v22 = vsel %vm9869_vm5, %v3944_v2, %v3951_v16 }
 0x3e1   : > { %3860 = vst [vmem:[#allocation2 + $0xa8] sm:$0x1] %v11367_v59  ;;  %v3979_v32 = vrot.slane %v13135_v13, 7  ;;  %v11513_v59 = vor.u32 %v12905_v57, %v3914_v6  ;;  %v3964_v34 = vor.u32 %v11494_v62, %v3961_v36  ;;  %v3974_v13 = vrot.slane %v12906_v44, 7 }
 0x3e2   : > { %3863 = vst [vmem:[#allocation2 + $0xc0] sm:$0x1] %v11371_v42  ;;  %v3970_v24 = vrot.slane %v3966_v33, 4  ;;  %v11525_v42 = vshll.u32 %v11201_v15, 16  ;;  %v12911_v6 = vshrl.u32 %v11206_v8, 16  ;;  %v11531_v57 = vor.u32 %v12909_v38, %v3927_v61  ;;  %v13139_v15 = vld [vmem:[#allocation38_spill] sm:$0xff] }
 0x3e3   : > { %3866 = vst [vmem:[#allocation2 + $0xd8] sm:$0x1] %v11381_v7  ;;  %v3965_v2 = vsel %vm9869_vm5, %v3957_v31, %v3964_v34  ;;  %v3983_v16 = vrot.slane %v3979_v32, 4  ;;  %v13137_v7 = vshrl.u32 %v11208_v29, 16  ;;  %v12917_v61 = vshrl.u32 %v13139_v15, 16 }
 0x3e4   : > { %13136 = vst [vmem:[#allocation48_spill] sm:$0xff] %v11525_v42  ;;  %v3977_v44 = vor.u32 %v11525_v42, %v3974_v13  ;;  %v3987_v4 = vrot.slane %v12911_v6, 7  ;;  %v11548_v38 = vshll.u32 %v13139_v15, 16  ;;  %v12918_v31 = vshrl.u32 %v11215_v20, 16 }
 0x3e5   : > { %3869 = vst [vmem:[#allocation2 + $0xf0] sm:$0x1] %v11385_v37  ;;  %v3992_v36 = vrot.slane %v13137_v7, 7  ;;  %v11542_v37 = vshll.u32 %v11206_v8, 16  ;;  %v13141_v7 = vld [vmem:[#allocation42_spill] sm:$0xff]  ;;  %v12919_v8 = vshll.u32 %v11195_v5, 16 }
 0x3e6   : > { %3872 = vst [vmem:[#allocation2 + $0x108] sm:$0x1] %v11389_v18  ;;  %v13142_v18 = vshrl.u32 %v13141_v7, 16  ;;  %v3978_v13 = vsel %vm9869_vm5, %v3970_v24, %v3977_v44  ;;  %v12920_v42 = vshll.u32 %v11199_v41, 16  ;;  %v11576_v44 = vshll.u32 %v11215_v20, 16 }
 0x3e7   : > { %13138 = vst [vmem:[#allocation49_spill] sm:$0xff] %v11542_v37  ;;  %v3996_v34 = vrot.slane %v3992_v36, 4  ;;  %v3990_v6 = vor.u32 %v11542_v37, %v3987_v4 }
 0x3e8   : > { %3875 = vst [vmem:[#allocation2 + $0x120] sm:$0x1] %v11412_v48  ;;  %v11552_v46 = vrot.slane %v13142_v18, 7  ;;  %v4000_v48 = vrot.slane %v12917_v61, 7  ;;  %v13145_v61 = vshll.u32 %v11190_v55, 16 }
 0x3e9   : > { %13140 = vst [vmem:[#allocation50_spill] sm:$0xff] %v11548_v38  ;;  %v3991_v4 = vsel %vm9869_vm5, %v3983_v16, %v3990_v6  ;;  %v12921_v6 = vshrl.u32 %v11226_v50, 16  ;;  %v13146_v16 = vshrl.u32 %v11228_v40, 16 }
 0x3ea   : > { %3878 = vst [vmem:[#allocation2 + $0x138] sm:$0x1] %v11416_v17  ;;  %v4009_v18 = vrot.slane %v11552_v46, 4  ;;  %v13143_v17 = vshrl.u32 %v11217_v54, 16  ;;  %v4003_v24 = vor.u32 %v11548_v38, %v4000_v48 }
 0x3eb   : > { %3881 = vst [vmem:[#allocation2 + $0x150] sm:$0x1] %v11431_v0  ;;  %v4013_v0 = vrot.slane %v12918_v31, 7  ;;  %v11592_v48 = vrot.slane %v13146_v16, 7  ;;  %v11596_v31 = vor.u32 %v12920_v42, %v3966_v33  ;;  %v11607_v16 = vshll.u32 %v11226_v50, 16 }
 0x3ec   : > { %v11567_v62 = vrot.slane %v13143_v17, 7  ;;  %3884 = vst [vmem:[#allocation2 + $0x168] sm:$0x1] %v11435_v11  ;;  %v11582_v17 = vor.u32 %v13145_v61, %v11455_v27  ;;  %v11587_v11 = vor.u32 %v12919_v8, %v11473_v45  ;;  %v4004_v27 = vsel %vm9869_vm5, %v3996_v34, %v4003_v24 }
 0x3ed   : > { %13144 = vst [vmem:[#allocation42_spill] sm:$0xff] %v11576_v44  ;;  %v4016_v61 = vor.u32 %v11576_v44, %v4013_v0  ;;  %v4026_v8 = vrot.slane %v12921_v6, 7  ;;  %v12927_v33 = vshrl.u32 %v11236_v12, 16  ;;  %v13148_v24 = vshrl.u32 %v11238_v28, 16 }
 0x3ee   : > { %3887 = vst [vmem:[#allocation2 + $0x180] sm:$0x1] %v11446_v60  ;;  %v12923_v60 = vshll.u32 %v11204_v1, 16  ;;  %v4022_v45 = vrot.slane %v11567_v62, 4 }
 0x3ef   : > { %4131 = vst [vmem:[#allocation2 + $0x24] sm:$0xf] %v11439_v23  ;;  %v4017_v34 = vsel %vm9869_vm5, %v4009_v18, %v4016_v61  ;;  %v4035_v23 = vrot.slane %v11592_v48, 4  ;;  %v4044_v0 = vrot.slane %v13148_v24, 7  ;;  %v4029_v6 = vor.u32 %v11607_v16, %v4026_v8  ;;  %v13152_v24 = vld [vmem:[#allocation32_spill] sm:$0xff] }
 0x3f0   : > { %13147 = vst [vmem:[#allocation51_spill] sm:$0xff] %v11607_v16  ;;  %v11613_v42 = vor.u32 %v12923_v60, %v3979_v32  ;;  %v4039_v50 = vrot.slane %v12927_v33, 7  ;;  %v13150_v32 = vld [vmem:[#allocation29_spill] sm:$0xff]  ;;  %v13154_v16 = vshll.u32 %v11208_v29, 16 }
 0x3f1   : > { %4135 = vst [vmem:[#allocation2 + $0x3c] sm:$0xf] %v11450_v3  ;;  %v11625_v3 = vshll.u32 %v11236_v12, 16  ;;  %v12936_v60 = vshrl.u32 %v13150_v32, 16  ;;  %v4048_v61 = vrot.slane %v4044_v0, 4  ;;  %v11631_v20 = vshll.u32 %v13150_v32, 16 }
 0x3f2   : > { %4139 = vst [vmem:[#allocation2 + $0x54] sm:$0xf] %v11466_v63  ;;  %v13153_v63 = vshrl.u32 %v13152_v24, 16  ;;  %v4030_v8 = vsel %vm9869_vm5, %v4022_v45, %v4029_v6  ;;  %v4132_v18 = vld [vmem:[#allocation2 + $0x30] sm:$0xf]  ;;  %v11644_v15 = vor.u32 %v13154_v16, %v3992_v36  ;;  %v9355_v6 = vld [vmem:[#allocation8 + $0x138] sm:$0xff] }
 0x3f3   : > { %13149 = vst [vmem:[#allocation52_spill] sm:$0xff] %v11625_v3  ;;  %v4042_v33 = vor.u32 %v11625_v3, %v4039_v50  ;;  %v4052_v12 = vrot.slane %v12936_v60, 7  ;;  %v11655_v60 = vshll.u32 %v11245_v10, 16  ;;  %v11657_v36 = vld [vmem:[#allocation2 + $0x18] sm:$0xf]  ;;  %5210 = vmatpush.bf16.msrb.mxu2 %v9355_v6 }
 0x3f4   : > { %4143 = vst [vmem:[#allocation2 + $0x6c] sm:$0xf] %v11488_v14  ;;  %v4057_v44 = vrot.slane %v13153_v63, 7  ;;  %v12938_v14 = vshrl.u32 %v11245_v10, 16  ;;  %v13157_v63 = vld [vmem:[#allocation47_spill] sm:$0xff] }
 0x3f5   : > { %13151 = vst [vmem:[#allocation53_spill] sm:$0xff] %v11631_v20  ;;  %v4043_v50 = vsel %vm9869_vm5, %v4035_v23, %v4042_v33  ;;  %v4055_v45 = vor.u32 %v11631_v20, %v4052_v12  ;;  %v11663_v33 = vld [vmem:[#allocation2 + $0x48] sm:$0xf]  ;;  %v11665_v12 = vld [vmem:[#allocation2 + $0x60] sm:$0xf]  ;;  %v13160_v20 = vshrl.u32 %v13157_v63, 16 }
 0x3f6   : > { %4147 = vst [vmem:[#allocation2 + $0x84] sm:$0xf] %v11518_v22  ;;  %v4061_v38 = vrot.slane %v4057_v44, 4  ;;  %v13155_v22 = vshrl.u32 %v11247_v26, 16  ;;  %v11674_v10 = vld [vmem:[#allocation2 + $0x78] sm:$0xf] }
 0x3f7   : > { %4151 = vst [vmem:[#allocation2 + $0x9c] sm:$0xf] %v3965_v2  ;;  %v4065_v2 = vrot.slane %v12938_v14, 7  ;;  %v4056_v23 = vsel %vm9869_vm5, %v4048_v61, %v4055_v45  ;;  %v4078_v61 = vrot.slane %v13160_v20, 7  ;;  %v11684_v45 = vshll.u32 %v13157_v63, 16 }
 0x3f8   : > { %v4070_v37 = vrot.slane %v13155_v22, 7  ;;  %4155 = vst [vmem:[#allocation2 + $0xb4] sm:$0xf] %v3978_v13  ;;  %v4133_v22 = vsel %vm9913_vm9, %v11505_v56, %v4132_v18  ;;  %v13159_v13 = vshll.u32 %v13141_v7, 16  ;;  %v13161_v56 = vshll.u32 %v11217_v54, 16 }
 0x3f9   : > { %13156 = vst [vmem:[#allocation32_spill] sm:$0xff] %v11655_v60  ;;  %v12946_v20 = vshll.u32 %v11247_v26, 16  ;;  %v4081_v3 = vor.u32 %v11684_v45, %v4078_v61  ;;  %v13169_v61 = vshll.u32 %v11166_v43, 16 }
 0x3fa   : > { %4159 = vst [vmem:[#allocation2 + $0xcc] sm:$0xf] %v3991_v4  ;;  %v4068_v4 = vor.u32 %v11655_v60, %v4065_v2  ;;  %v11679_v32 = vor.u32 %v13159_v13, %v11552_v46  ;;  %v4074_v6 = vrot.slane %v4070_v37, 4  ;;  %v9354_v2 = vld [vmem:[#allocation8 + $0x130] sm:$0xff]  ;;  %v11689_v18 = vor.u32 %v13161_v56, %v11567_v62  ;;  %v11699_v13 = vld [vmem:[#allocation2 + $0x90] sm:$0xf] }
 0x3fb   : > { %4163 = vst [vmem:[#allocation2 + $0xe4] sm:$0xf] %v4004_v27  ;;  %v13162_v27 = vshll.u32 %v11228_v40, 16  ;;  %v13164_v62 = vshll.u32 %v13152_v24, 16  ;;  %5211 = vmatpush.bf16.msrb.mxu2 %v9354_v2  ;;  %v4211_v2 = vrot.slane %v11426_v30, 5 }
 0x3fc   : > { %4134 = vst [vmem:[#allocation2 + $0x30] sm:$0xf] %v4133_v22  ;;  %v4069_v46 = vsel %vm9869_vm5, %v4061_v38, %v4068_v4  ;;  %v13163_v22 = vshll.u32 %v11238_v28, 16  ;;  %v4129_v38 = vsel %vm9913_vm9, %v11500_v47, %v11657_v36  ;;  %v11716_v4 = vld [vmem:[#allocation2 + $0xc0] sm:$0xf]  ;;  %v4145_v47 = vsel %vm9913_vm9, %v11582_v17, %v11674_v10 }
 0x3fd   : > { %v11694_v14 = vor.u32 %v13162_v27, %v11592_v48  ;;  %4167 = vst [vmem:[#allocation2 + $0xfc] sm:$0xf] %v4017_v34  ;;  %v11707_v56 = vor.u32 %v13164_v62, %v4057_v44  ;;  %v11714_v48 = vld [vmem:[#allocation2 + $0xa8] sm:$0xf]  ;;  %v11720_v34 = vor.u32 %v12946_v20, %v4070_v37  ;;  %v4137_v44 = vsel %vm9913_vm9, %v11513_v59, %v11663_v33  ;;  %v11736_v36 = vld [vmem:[#allocation2 + $0xf0] sm:$0xf] }
 0x3fe   : > { %v11703_v60 = vor.u32 %v13163_v22, %v4044_v0  ;;  %4171 = vst [vmem:[#allocation2 + $0x114] sm:$0xf] %v4030_v8  ;;  %v4141_v0 = vsel %vm9913_vm9, %v11531_v57, %v11665_v12  ;;  %v11734_v8 = vld [vmem:[#allocation2 + $0xd8] sm:$0xf]  ;;  %v11740_v37 = vsel %vm9869_vm5, %v4074_v6, %v4081_v3  ;;  %v11746_v57 = vld [vmem:[#allocation2 + $0x108] sm:$0xf]  ;;  %v4153_v43 = vsel %vm9913_vm9, %v11596_v31, %v11714_v48 }
 0x3ff   : > { %4175 = vst [vmem:[#allocation2 + $0x12c] sm:$0xf] %v4043_v50  ;;  %v11748_v33 = vld [vmem:[#allocation2 + $0x120] sm:$0xf]  ;;  %v13166_v10 = vshll.u32 %v11160_v49, 16  ;;  %v4195_v12 = vrot.slane %v11397_v51, 5 }
 0x400   : > { %13165 = vst [vmem:[#allocation47_spill] sm:$0xff] %v11740_v37  ;;  %v9353_v50 = vld [vmem:[#allocation8 + $0x128] sm:$0xff]  ;;  %v13168_v3 = vshrl.u32 %v13167_v25, 16  ;;  %v11757_v27 = vrot.slane %v13169_v61, 5  ;;  %v12947_v22 = vrot.slane %v11406_v52, 5  ;;  %v13172_v59 = vld [vmem:[#allocation15_spill] sm:$0xff] }
 0x401   : > { %4179 = vst [vmem:[#allocation2 + $0x144] sm:$0xf] %v4056_v23  ;;  %v4192_v17 = vrot.slane %v13166_v10, 5  ;;  %v13170_v62 = vld [vmem:[#allocation34_spill] sm:$0xff]  ;;  %v13173_v10 = vshll.u32 %v11170_v53, 16  ;;  %5212 = vmatpush.bf16.msrb.mxu2 %v9353_v50  ;;  %v9352_v61 = vld [vmem:[#allocation8 + $0x120] sm:$0xff] }
 0x402   : > { %4183 = vst [vmem:[#allocation2 + $0x15c] sm:$0xf] %v4069_v46  ;;  %v4197_v6 = vrot.slane %v13168_v3, 4  ;;  %v13171_v20 = vshrl.u32 %v13170_v62, 16  ;;  %v13174_v46 = vshrl.u32 %v11178_v19, 16  ;;  %v13202_v19 = vld [vmem:[#allocation38_spill] sm:$0xff] }
 0x403   : > { %v4193_v49 = vor.u32 %v4192_v17, %v13172_v59  ;;  %v4208_v37 = vrot.slane %v13173_v10, 5  ;;  %3715 = vst [vmem:[#allocation2 + $0x40] sm:$0xf] %v13170_v62  ;;  %v13175_v59 = vld [vmem:[#allocation35_spill] sm:$0xff]  ;;  %v13176_v17 = vshll.u32 %v11184_v58, 16  ;;  %v13180_v62 = vshrl.u32 %v11188_v35, 16 }
 0x404   : > { %v4205_v23 = vrot.slane %v13171_v20, 4  ;;  %v4213_v25 = vrot.slane %v13174_v46, 4  ;;  %v4157_v20 = vsel %vm9913_vm9, %v11613_v42, %v11716_v4  ;;  %3741 = vst [vmem:[#allocation2 + $0x178] sm:$0xf] %v13157_v63  ;;  %v13177_v42 = vld [vmem:[#allocation24_spill] sm:$0xff]  ;;  %v11799_v10 = vor.u32 %v4197_v6, %v4195_v12 }
 0x405   : > { %v4216_v3 = vrot.slane %v13176_v17, 5  ;;  %v4194_v48 = vrot.slane %v4193_v49, 4  ;;  %v4209_v4 = vor.u32 %v4208_v37, %v13177_v42  ;;  %4130 = vst [vmem:[#allocation2 + $0x18] sm:$0xf] %v4129_v38  ;;  %v13178_v46 = vld [vmem:[#allocation20_spill] sm:$0xff]  ;;  %v4219_v6 = vrot.slane %v11460_v21, 5  ;;  %5213 = vmatpush.bf16.msrb.mxu2 %v9352_v61 }
 0x406   : > { %4138 = vst [vmem:[#allocation2 + $0x48] sm:$0xf] %v4137_v44  ;;  %v11802_v49 = vld [vmem:[#allocation2 + $0x138] sm:$0xf]  ;;  %v11808_v50 = vor.u32 %v4205_v23, %v12947_v22  ;;  %v11810_v53 = vor.u32 %v4213_v25, %v4211_v2  ;;  %v13181_v44 = vshll.u32 %v11190_v55, 16  ;;  %v4227_v23 = vrot.slane %v11469_v9, 5 }
 0x407   : > { %v4217_v17 = vor.u32 %v4216_v3, %v13178_v46  ;;  %v4196_v37 = vsel %vm9940_vm10, %v4194_v48, %v4195_v12  ;;  %v4210_v42 = vrot.slane %v4209_v4, 4  ;;  %4142 = vst [vmem:[#allocation2 + $0x60] sm:$0xf] %v4141_v0  ;;  %v4221_v3 = vrot.slane %v13180_v62, 4  ;;  %v13184_v62 = vld [vmem:[#allocation23_spill] sm:$0xff]  ;;  %v13185_v61 = vld [vmem:[#allocation26_spill] sm:$0xff] }
 0x408   : > { %v4224_v46 = vrot.slane %v13181_v44, 5  ;;  %4352 = vst [vmem:[#allocation2 + $0x20] sm:$0xf] %v4196_v37  ;;  %v13182_v48 = vshrl.u32 %v11192_v39, 16  ;;  %v13183_v0 = vshll.u32 %v11195_v5, 16  ;;  %v9363_v39 = vld [vmem:[#allocation8 + $0x178] sm:$0xff] }
 0x409   : > { %v4218_v58 = vrot.slane %v4217_v17, 4  ;;  %v4212_v12 = vsel %vm9940_vm10, %v4210_v42, %v4211_v2  ;;  %4146 = vst [vmem:[#allocation2 + $0x78] sm:$0xf] %v4145_v47  ;;  %v9351_v17 = vld [vmem:[#allocation8 + $0x118] sm:$0xff]  ;;  %v13186_v44 = vshll.u32 %v11199_v41, 16  ;;  %v11839_v22 = vor.u32 %v4221_v3, %v4219_v6  ;;  %5299 = vmatpush.bf16.msrb.mxu3 %v9363_v39  ;;  %v13196_v39 = vld [vmem:[#allocation49_spill] sm:$0xff] }
 0x40a   : > { %v4229_v25 = vrot.slane %v13182_v48, 4  ;;  %v4232_v4 = vrot.slane %v13183_v0, 5  ;;  %v4225_v37 = vor.u32 %v4224_v46, %v13184_v62  ;;  %4360 = vst [vmem:[#allocation2 + $0x50] sm:$0xf] %v4212_v12  ;;  %v11837_v0 = vld [vmem:[#allocation2 + $0x150] sm:$0xf]  ;;  %v13190_v47 = vsel %vm9913_vm9, %v11587_v11, %v11699_v13  ;;  %5214 = vmatpush.bf16.msrb.mxu2 %v9351_v17 }
 0x40b   : > { %v4220_v2 = vsel %vm9940_vm10, %v4218_v58, %v4219_v6  ;;  %v4240_v48 = vrot.slane %v13186_v44, 5  ;;  %v13187_v58 = vld [vmem:[#allocation13_spill] sm:$0xff]  ;;  %v13188_v46 = vld [vmem:[#allocation39_spill] sm:$0xff]  ;;  %4150 = vst [vmem:[#allocation2 + $0x90] sm:$0xf] %v13190_v47  ;;  %v13192_v6 = vshll.u32 %v11204_v1, 16 }
 0x40c   : > { %v4233_v42 = vor.u32 %v4232_v4, %v13185_v61  ;;  %4364 = vst [vmem:[#allocation2 + $0x68] sm:$0xf] %v4220_v2  ;;  %v4226_v55 = vrot.slane %v4225_v37, 4  ;;  %v4235_v35 = vrot.slane %v13187_v58, 5  ;;  %v13189_v12 = vshrl.u32 %v13188_v46, 16  ;;  %v13191_v2 = vld [vmem:[#allocation27_spill] sm:$0xff] }
 0x40d   : > { %v11849_v41 = vor.u32 %v4229_v25, %v4227_v23  ;;  %v4241_v61 = vor.u32 %v4240_v48, %v13191_v2  ;;  %v4248_v3 = vrot.slane %v13192_v6, 5  ;;  %4154 = vst [vmem:[#allocation2 + $0xa8] sm:$0xf] %v4153_v43  ;;  %v9350_v37 = vld [vmem:[#allocation8 + $0x110] sm:$0xff]  ;;  %v13193_v46 = vld [vmem:[#allocation48_spill] sm:$0xff]  ;;  %v4251_v25 = vrot.slane %v13196_v39, 5 }
 0x40e   : > { %v4237_v62 = vrot.slane %v13189_v12, 4  ;;  %v4234_v4 = vrot.slane %v4233_v42, 4  ;;  %v4228_v44 = vsel %vm9940_vm10, %v4226_v55, %v4227_v23  ;;  %v4243_v12 = vrot.slane %v13193_v46, 5  ;;  %v13194_v5 = vld [vmem:[#allocation40_spill] sm:$0xff]  ;;  %4158 = vst [vmem:[#allocation2 + $0xc0] sm:$0xf] %v4157_v20  ;;  %5215 = vmatpush.bf16.msrb.mxu2 %v9350_v37 }
 0x40f   : > { %v13195_v11 = vshrl.u32 %v13194_v5, 16  ;;  %v9362_v47 = vld [vmem:[#allocation8 + $0x170] sm:$0xff]  ;;  %v4242_v1 = vrot.slane %v4241_v61, 4  ;;  %v13197_v48 = vld [vmem:[#allocation25_spill] sm:$0xff]  ;;  %4368 = vst [vmem:[#allocation2 + $0x80] sm:$0xf] %v4228_v44 }
 0x410   : > { %v4236_v42 = vsel %vm9940_vm10, %v4234_v4, %v4235_v35  ;;  %v4249_v43 = vor.u32 %v4248_v3, %v13197_v48  ;;  %v13198_v17 = vld [vmem:[#allocation37_spill] sm:$0xff]  ;;  %v4223_v23 = vrot.slane %v11839_v22, 4  ;;  %v13200_v55 = vshll.u32 %v11208_v29, 16  ;;  %5300 = vmatpush.bf16.msrb.mxu3 %v9362_v47  ;;  %v9349_v47 = vld [vmem:[#allocation8 + $0x108] sm:$0xff] }
 0x411   : > { %v4245_v13 = vrot.slane %v13195_v11, 4  ;;  %v13199_v2 = vshrl.u32 %v13198_v17, 16  ;;  %v13201_v11 = vld [vmem:[#allocation50_spill] sm:$0xff]  ;;  %v13203_v20 = vshrl.u32 %v13202_v19, 16  ;;  %4372 = vst [vmem:[#allocation2 + $0x98] sm:$0xf] %v4236_v42  ;;  %v4181_v4 = vsel %vm9913_vm9, %v11707_v56, %v11837_v0 }
 0x412   : > { %v4256_v5 = vrot.slane %v13200_v55, 5  ;;  %v4259_v31 = vrot.slane %v13201_v11, 5  ;;  %v4244_v61 = vsel %vm9940_vm10, %v4242_v1, %v4243_v12  ;;  %v4250_v3 = vrot.slane %v4249_v43, 4  ;;  %v9275_v42 = vld [vmem:[#allocation8 + $0x38] sm:$0xff]  ;;  %5216 = vmatpush.bf16.msrb.mxu2 %v9349_v47  ;;  %4182 = vst [vmem:[#allocation2 + $0x150] sm:$0xf] %v4181_v4 }
 0x413   : > { %v4253_v6 = vrot.slane %v13199_v2, 4  ;;  %v4261_v39 = vrot.slane %v13203_v20, 4  ;;  %v13204_v44 = vshll.u32 %v13141_v7, 16  ;;  %v13205_v19 = vsel %vm9913_vm9, %v11644_v15, %v11734_v8  ;;  %v13206_v1 = vld [vmem:[#allocation28_spill] sm:$0xff]  ;;  %4376 = vst [vmem:[#allocation2 + $0xb0] sm:$0xf] %v4244_v61  ;;  %5788 = vmatpush.bf16.msrb.mxu0 %v9275_v42 }
 0x414   : > { %4162 = vst [vmem:[#allocation2 + $0xd8] sm:$0xf] %v13205_v19  ;;  %v4231_v48 = vrot.slane %v11849_v41, 4  ;;  %v11885_v17 = vor.u32 %v4237_v62, %v4235_v35  ;;  %v11887_v2 = vor.u32 %v4245_v13, %v4243_v12  ;;  %v4257_v43 = vor.u32 %v4256_v5, %v13206_v1  ;;  %v9361_v7 = vld [vmem:[#allocation8 + $0x168] sm:$0xff]  ;;  %v11890_v55 = vld [vmem:[#allocation2 + $0x168] sm:$0xf] }
 0x415   : > { %v4264_v29 = vrot.slane %v13204_v44, 5  ;;  %v4252_v20 = vsel %vm9940_vm10, %v4250_v3, %v4251_v25  ;;  %v11894_v15 = vor.u32 %v4253_v6, %v4251_v25  ;;  %v13207_v8 = vld [vmem:[#allocation30_spill] sm:$0xff]  ;;  %v13208_v44 = vshll.u32 %v11217_v54, 16  ;;  %v13211_v5 = vld [vmem:[#allocation43_spill] sm:$0xff]  ;;  %5301 = vmatpush.bf16.msrb.mxu3 %v9361_v7  ;;  %v9348_v42 = vld [vmem:[#allocation8 + $0x100] sm:$0xff] }
 0x416   : > { %v13209_v35 = vsel %vm9913_vm9, %v11679_v32, %v11736_v36  ;;  %v4258_v62 = vrot.slane %v4257_v43, 4  ;;  %v13210_v12 = vld [vmem:[#allocation42_spill] sm:$0xff]  ;;  %v13212_v61 = vshrl.u32 %v13211_v5, 16  ;;  %v13213_v25 = vld [vmem:[#allocation51_spill] sm:$0xff]  ;;  %4380 = vst [vmem:[#allocation2 + $0xc8] sm:$0xf] %v4252_v20  ;;  %v13216_v36 = vsel %vm9913_vm9, %v11689_v18, %v11746_v57  ;;  %5217 = vmatpush.bf16.msrb.mxu2 %v9348_v42 }
 0x417   : > { %v4265_v37 = vor.u32 %v4264_v29, %v13207_v8  ;;  %v4272_v19 = vrot.slane %v13208_v44, 5  ;;  %4166 = vst [vmem:[#allocation2 + $0xf0] sm:$0xf] %v13209_v35  ;;  %v4267_v13 = vrot.slane %v13210_v12, 5  ;;  %v4275_v6 = vrot.slane %v13213_v25, 5  ;;  %v13214_v1 = vld [vmem:[#allocation31_spill] sm:$0xff] }
 0x418   : > { %v4269_v3 = vrot.slane %v13212_v61, 4  ;;  %v11908_v29 = vor.u32 %v4261_v39, %v4259_v31  ;;  %v13215_v44 = vshll.u32 %v11228_v40, 16  ;;  %4170 = vst [vmem:[#allocation2 + $0x108] sm:$0xf] %v13216_v36  ;;  %v9274_v43 = vld [vmem:[#allocation8 + $0x30] sm:$0xff]  ;;  %v4260_v7 = vsel %vm9940_vm10, %v4258_v62, %v4259_v31  ;;  %v13217_v39 = vld [vmem:[#allocation41_spill] sm:$0xff] }
 0x419   : > { %v4266_v54 = vrot.slane %v4265_v37, 4  ;;  %v4273_v8 = vor.u32 %v4272_v19, %v13214_v1  ;;  %v13218_v20 = vshrl.u32 %v13217_v39, 16  ;;  %v13219_v35 = vld [vmem:[#allocation52_spill] sm:$0xff]  ;;  %v13220_v5 = vld [vmem:[#allocation17_spill] sm:$0xff]  ;;  %v9341_v1 = vld [vmem:[#allocation8 + $0xc8] sm:$0xff]  ;;  %v13222_v18 = vsel %vm9913_vm9, %v11694_v14, %v11748_v33  ;;  %5789 = vmatpush.bf16.msrb.mxu0 %v9274_v43 }
 0x41a   : > { %v4280_v32 = vrot.slane %v13215_v44, 5  ;;  %v4283_v19 = vrot.slane %v13219_v35, 5  ;;  %v13221_v40 = vshrl.u32 %v13220_v5, 16  ;;  %4174 = vst [vmem:[#allocation2 + $0x120] sm:$0xf] %v13222_v18  ;;  %v4239_v57 = vrot.slane %v11885_v17, 4  ;;  %5127 = vmatpush.bf16.msra.mxu1 %v9341_v1 }
 0x41b   : > { %v4277_v37 = vrot.slane %v13218_v20, 4  ;;  %v4268_v31 = vsel %vm9940_vm10, %v4266_v54, %v4267_v13  ;;  %v4274_v47 = vrot.slane %v4273_v8, 4  ;;  %v13223_v62 = vld [vmem:[#allocation14_spill] sm:$0xff]  ;;  %4384 = vst [vmem:[#allocation2 + $0xe0] sm:$0xf] %v4260_v7  ;;  %v9360_v36 = vld [vmem:[#allocation8 + $0x160] sm:$0xff]  ;;  %v4185_v20 = vsel %vm9913_vm9, %v11720_v34, %v11890_v55 }
 0x41c   : > { %v4285_v61 = vrot.slane %v13221_v40, 4  ;;  %v4281_v44 = vor.u32 %v4280_v32, %v13223_v62  ;;  %v4353_v39 = vld [vmem:[#allocation2 + $0x2c] sm:$0xf]  ;;  %v13224_v5 = vshll.u32 %v11238_v28, 16  ;;  %4388 = vst [vmem:[#allocation2 + $0xf8] sm:$0xf] %v4268_v31  ;;  %v13226_v55 = vsel %vm9913_vm9, %v11703_v60, %v11802_v49  ;;  %5302 = vmatpush.bf16.msrb.mxu3 %v9360_v36 }
 0x41d   : > { %v9273_v54 = vld [vmem:[#allocation8 + $0x28] sm:$0xff]  ;;  %v4357_v8 = vld [vmem:[#allocation2 + $0x44] sm:$0xf]  ;;  %v4276_v43 = vsel %vm9940_vm10, %v4274_v47, %v4275_v6  ;;  %v13225_v18 = vshll.u32 %v13152_v24, 16  ;;  %4178 = vst [vmem:[#allocation2 + $0x138] sm:$0xf] %v13226_v55  ;;  %v11952_v31 = vor.u32 %v4269_v3, %v4267_v13  ;;  %v11954_v62 = vor.u32 %v4277_v37, %v4275_v6 }
 0x41e   : > { %v4288_v40 = vrot.slane %v13224_v5, 5  ;;  %v4282_v7 = vrot.slane %v4281_v44, 4  ;;  %v4361_v28 = vld [vmem:[#allocation2 + $0x5c] sm:$0xf]  ;;  %v4365_v1 = vld [vmem:[#allocation2 + $0x74] sm:$0xf]  ;;  %v11956_v5 = vor.u32 %v4285_v61, %v4283_v19  ;;  %5790 = vmatpush.bf16.msrb.mxu0 %v9273_v54 }
 0x41f   : > { %v4296_v34 = vrot.slane %v13225_v18, 5  ;;  %v13227_v47 = vld [vmem:[#allocation44_spill] sm:$0xff]  ;;  %4392 = vst [vmem:[#allocation2 + $0x110] sm:$0xf] %v4276_v43  ;;  %v4373_v18 = vld [vmem:[#allocation2 + $0xa4] sm:$0xf] }
 0x420   : > { %v4289_v44 = vor.u32 %v4288_v40, %v13227_v47  ;;  %v4369_v24 = vld [vmem:[#allocation2 + $0x8c] sm:$0xf]  ;;  %v4284_v32 = vsel %vm9940_vm10, %v4282_v7, %v4283_v19  ;;  %v13228_v60 = vld [vmem:[#allocation53_spill] sm:$0xff]  ;;  %v13230_v55 = vshll.u32 %v11247_v26, 16  ;;  %v4377_v6 = vld [vmem:[#allocation2 + $0xbc] sm:$0xf]  ;;  %v4374_v22 = vsel %vm9954_vm13, %v4239_v57, %v4373_v18 }
 0x421   : > { %v4291_v49 = vrot.slane %v13228_v60, 5  ;;  %v13229_v42 = vld [vmem:[#allocation45_spill] sm:$0xff]  ;;  %v9359_v3 = vld [vmem:[#allocation8 + $0x158] sm:$0xff]  ;;  %4396 = vst [vmem:[#allocation2 + $0x128] sm:$0xf] %v4284_v32  ;;  %v13236_v33 = vld [vmem:[#allocation46_spill] sm:$0xff] }
 0x422   : > { %v4297_v36 = vor.u32 %v4296_v34, %v13229_v42  ;;  %v4304_v13 = vrot.slane %v13230_v55, 5  ;;  %v4290_v37 = vrot.slane %v4289_v44, 4  ;;  %v13231_v61 = vld [vmem:[#allocation29_spill] sm:$0xff]  ;;  %v13233_v43 = vld [vmem:[#allocation32_spill] sm:$0xff]  ;;  %v4307_v56 = vrot.slane %v11684_v45, 5  ;;  %5303 = vmatpush.bf16.msrb.mxu3 %v9359_v3 }
 0x423   : > { %v13232_v40 = vshrl.u32 %v13231_v61, 16  ;;  %v4299_v7 = vrot.slane %v13233_v43, 5  ;;  %v13234_v47 = vld [vmem:[#allocation21_spill] sm:$0xff]  ;;  %v13237_v0 = vrot.slane %v11799_v10, 4  ;;  %4186 = vst [vmem:[#allocation2 + $0x168] sm:$0xf] %v4185_v20 }
 0x424   : > { %v13235_v34 = vshrl.u32 %v13234_v47, 16  ;;  %v4381_v26 = vld [vmem:[#allocation2 + $0xd4] sm:$0xf]  ;;  %v4298_v55 = vrot.slane %v4297_v36, 4  ;;  %v4305_v14 = vor.u32 %v4304_v13, %v13236_v33  ;;  %v4385_v61 = vld [vmem:[#allocation2 + $0xec] sm:$0xf] }
 0x425   : > { %v4293_v19 = vrot.slane %v13232_v40, 4  ;;  %v4354_v54 = vsel %vm9954_vm13, %v13237_v0, %v4353_v39  ;;  %v9272_v44 = vld [vmem:[#allocation8 + $0x20] sm:$0xff]  ;;  %v11983_v40 = vsel %vm9940_vm10, %v4290_v37, %v4291_v49  ;;  %v13239_v32 = vshrl.u32 %v13157_v63, 16  ;;  %v4389_v20 = vld [vmem:[#allocation2 + $0x104] sm:$0xf]  ;;  %v9283_v0 = vld [vmem:[#allocation8 + $0x78] sm:$0xff] }
 0x426   : > { %v4301_v42 = vrot.slane %v13235_v34, 4  ;;  %4355 = vst [vmem:[#allocation2 + $0x2c] sm:$0xf] %v4354_v54  ;;  %v13240_v33 = vrot.slane %v11808_v50, 4  ;;  %v13241_v13 = vrot.slane %v11810_v53, 4  ;;  %v11997_v3 = vsel %vm9940_vm10, %v4298_v55, %v4299_v7  ;;  %5791 = vmatpush.bf16.msrb.mxu0 %v9272_v44 }
 0x427   : > { %v4309_v36 = vrot.slane %v13239_v32, 4  ;;  %v4306_v37 = vrot.slane %v4305_v14, 4  ;;  %v4366_v63 = vsel %vm9954_vm13, %v4223_v23, %v4365_v1  ;;  %v9292_v50 = vld [vmem:[#allocation2 + $0x1c] sm:$0xf]  ;;  %v4271_v53 = vrot.slane %v11952_v31, 4  ;;  %v9271_v23 = vld [vmem:[#allocation8 + $0x18] sm:$0xff] }
 0x428   : > { %v4358_v10 = vsel %vm9954_vm13, %v13240_v33, %v4357_v8  ;;  %v4362_v39 = vsel %vm9954_vm13, %v13241_v13, %v4361_v28  ;;  %v9358_v8 = vld [vmem:[#allocation8 + $0x150] sm:$0xff]  ;;  %v4393_v47 = vld [vmem:[#allocation2 + $0x11c] sm:$0xf]  ;;  %v4294_v34 = vor.u32 %v4293_v19, %v4291_v49  ;;  %v4370_v28 = vsel %vm9954_vm13, %v4231_v48, %v4369_v24  ;;  %v8138_v14 = vld [vmem:[#allocation2 + $0x24] sm:$0xf0] }
 0x429   : > { %4359 = vst [vmem:[#allocation2 + $0x44] sm:$0xf] %v4358_v10  ;;  %v4279_v1 = vrot.slane %v11954_v62, 4  ;;  %v12015_v55 = vsel %vm9940_vm10, %v4306_v37, %v4307_v56  ;;  %v13242_v31 = vrot.slane %v11887_v2, 4  ;;  %v9340_v48 = vld [vmem:[#allocation8 + $0xc0] sm:$0xff]  ;;  %v4287_v17 = vrot.slane %v11956_v5, 4  ;;  %5304 = vmatpush.bf16.msrb.mxu3 %v9358_v8 }
 0x42a   : > { %4363 = vst [vmem:[#allocation2 + $0x5c] sm:$0xf] %v4362_v39  ;;  %v9293_v24 = vld [vmem:[#allocation2 + $0x20] sm:$0xf0]  ;;  %v4302_v49 = vor.u32 %v4301_v42, %v4299_v7  ;;  %v4310_v57 = vor.u32 %v4309_v36, %v4307_v56  ;;  %v13243_v18 = vrot.slane %v11894_v15, 4  ;;  %v13244_v2 = vrot.slane %v11908_v29, 4  ;;  %5128 = vmatpush.bf16.msra.mxu1 %v9340_v48  ;;  %5792 = vmatpush.bf16.msrb.mxu0 %v9271_v23 }
 0x42b   : > { %4367 = vst [vmem:[#allocation2 + $0x74] sm:$0xf] %v4366_v63  ;;  %v4378_v41 = vsel %vm9954_vm13, %v13242_v31, %v4377_v6  ;;  %v8136_v19 = vld [vmem:[#allocation2 + $0x18] sm:$0xf]  ;;  %v4397_v54 = vld [vmem:[#allocation2 + $0x134] sm:$0xf]  ;;  %v8141_v44 = vor.u32 %v9292_v50, %v8138_v14  ;;  %v4390_v15 = vsel %vm9954_vm13, %v4271_v53, %v4389_v20  ;;  %v4394_v29 = vsel %vm9954_vm13, %v4279_v1, %v4393_v47 }
 0x42c   : > { %4371 = vst [vmem:[#allocation2 + $0x8c] sm:$0xf] %v4370_v28  ;;  %v4382_v62 = vsel %vm9954_vm13, %v13243_v18, %v4381_v26  ;;  %v4386_v6 = vsel %vm9954_vm13, %v13244_v2, %v4385_v61  ;;  %v9357_v5 = vld [vmem:[#allocation8 + $0x148] sm:$0xff]  ;;  %v8137_v7 = vor.u32 %v9293_v24, %v8136_v19  ;;  %v4295_v42 = vrot.slane %v4294_v34, 4  ;;  %v9270_v26 = vld [vmem:[#allocation8 + $0x10] sm:$0xff]  ;;  %v9356_v10 = vld [vmem:[#allocation8 + $0x140] sm:$0xff] }
 0x42d   : > { %4375 = vst [vmem:[#allocation2 + $0xa4] sm:$0xf] %v4374_v22  ;;  %v4401_v56 = vld [vmem:[#allocation2 + $0x14c] sm:$0xf]  ;;  %5218 = vmatmul.bf16.vlgmr.msrb.gmra.mxu2 %v8141_v44  ;;  %v4303_v61 = vrot.slane %v4302_v49, 4  ;;  %v4398_v32 = vsel %vm9954_vm13, %v4287_v17, %v4397_v54  ;;  %v4311_v33 = vrot.slane %v4310_v57, 4  ;;  %5305 = vmatpush.bf16.msrb.mxu3 %v9357_v5  ;;  %v13245_v8 = vor.u32 %v11757_v27, %v13175_v59 }
 0x42e   : > { %4379 = vst [vmem:[#allocation2 + $0xbc] sm:$0xf] %v4378_v41  ;;  %5877 = vmatpush.bf16.msrb.mxu1 %v9283_v0  ;;  %v4405_v36 = vld [vmem:[#allocation2 + $0x164] sm:$0xf]  ;;  %v4409_v13 = vld [vmem:[#allocation2 + $0x17c] sm:$0xf]  ;;  %v4402_v39 = vsel %vm9954_vm13, %v4295_v42, %v4401_v56  ;;  %5793 = vmatpush.bf16.msrb.mxu0 %v9270_v26 }
 0x42f   : > { %4383 = vst [vmem:[#allocation2 + $0xd4] sm:$0xf] %v4382_v62  ;;  %5129 = vmatmul.bf16.vlgmr.msra.gmra.mxu1 %v8137_v7  ;;  %v9269_v20 = vld [vmem:[#allocation8 + $0x8] sm:$0xff]  ;;  %v4432_v37 = vld [vmem:[#allocation2 + $0x2c] sm:$0x8]  ;;  %v4406_v63 = vsel %vm9954_vm13, %v4303_v61, %v4405_v36  ;;  %v4202_v47 = vrot.slane %v13245_v8, 4  ;;  %v4410_v53 = vsel %vm9954_vm13, %v4311_v33, %v4409_v13 }
 0x430   : > { %4387 = vst [vmem:[#allocation2 + $0xec] sm:$0xf] %v4386_v6  ;;  %v4188_v50 = vld [vmem:[#allocation2 + $0x180] sm:$0xf]  ;;  %v4433_v28 = vsel %vm10010_vm14, %v11397_v51, %v4432_v37  ;;  %v13247_v22 = vld [vmem:[#allocation36_spill] sm:$0xff]  ;;  %v13248_v59 = vrot.slane %v11406_v52, 5 }
 0x431   : > { %4391 = vst [vmem:[#allocation2 + $0x104] sm:$0xf] %v4390_v15  ;;  %5306 = vmatpush.bf16.msrb.mxu3 %v9356_v10  ;;  %v4189_v14 = vsel %vm9913_vm9, %v13247_v22, %v4188_v50  ;;  %v4435_v27 = vld [vmem:[#allocation2 + $0x44] sm:$0x8]  ;;  %v9295_v23 = vld [vmem:[#allocation2 + $0x34] sm:$0xf] }
 0x432   : > { %4395 = vst [vmem:[#allocation2 + $0x11c] sm:$0xf] %v4394_v29  ;;  %5794 = vmatpush.bf16.msrb.mxu0 %v9269_v20  ;;  %v4204_v4 = vsel %vm9940_vm10, %v4202_v47, %v13248_v59  ;;  %v4441_v1 = vld [vmem:[#allocation2 + $0x74] sm:$0x8]  ;;  %v13249_v31 = vld [vmem:[#allocation47_spill] sm:$0xff]  ;;  %v4436_v16 = vsel %vm10010_vm14, %v11406_v52, %v4435_v27 }
 0x433   : > { %4399 = vst [vmem:[#allocation2 + $0x134] sm:$0xf] %v4398_v32  ;;  %v8150_v51 = vld [vmem:[#allocation2 + $0x3c] sm:$0xf0]  ;;  %v4444_v41 = vld [vmem:[#allocation2 + $0x8c] sm:$0x8]  ;;  %v4442_v17 = vsel %vm10010_vm14, %v11460_v21, %v4441_v1 }
 0x434   : > { %4400 = vst [vmem:[#allocation2 + $0x140] sm:$0xf] %v11983_v40  ;;  %v9268_v40 = vld [vmem:[#allocation8] sm:$0xff]  ;;  %v4447_v24 = vld [vmem:[#allocation2 + $0xa4] sm:$0x8]  ;;  %v8153_v57 = vor.u32 %v9295_v23, %v8150_v51  ;;  %v4445_v52 = vsel %vm10010_vm14, %v11469_v9, %v4444_v41  ;;  %v4482_v32 = vld [vmem:[#allocation2 + $0x3c] sm:$0xff] }
 0x435   : > { %4403 = vst [vmem:[#allocation2 + $0x14c] sm:$0xf] %v4402_v39  ;;  %v8148_v48 = vld [vmem:[#allocation2 + $0x30] sm:$0xf]  ;;  %v4450_v49 = vld [vmem:[#allocation2 + $0xbc] sm:$0x8] }
 0x436   : > { %4404 = vst [vmem:[#allocation2 + $0x158] sm:$0xf] %v11997_v3  ;;  %v4438_v3 = vld [vmem:[#allocation2 + $0x5c] sm:$0x8]  ;;  %5795 = vmatpush.bf16.msrb.mxu0 %v9268_v40  ;;  %v4453_v62 = vld [vmem:[#allocation2 + $0xd4] sm:$0x8] }
 0x437   : > { %4407 = vst [vmem:[#allocation2 + $0x164] sm:$0xf] %v4406_v63  ;;  %v4439_v38 = vsel %vm10010_vm14, %v11426_v30, %v4438_v3  ;;  %v9296_v18 = vld [vmem:[#allocation2 + $0x38] sm:$0xf0]  ;;  %v4448_v30 = vsel %vm10010_vm14, %v13187_v58, %v4447_v24  ;;  %v4456_v0 = vld [vmem:[#allocation2 + $0xec] sm:$0x8] }
 0x438   : > { %4411 = vst [vmem:[#allocation2 + $0x17c] sm:$0xf] %v4410_v53  ;;  %v8149_v19 = vor.u32 %v9296_v18, %v8148_v48  ;;  %v8144_v21 = vld [vmem:[#allocation2 + $0x20] sm:$0xf]  ;;  %v4459_v54 = vld [vmem:[#allocation2 + $0x104] sm:$0x8]  ;;  %v4457_v58 = vsel %vm10010_vm14, %v13201_v11, %v4456_v0 }
 0x439   : > { %4434 = vst [vmem:[#allocation2 + $0x2c] sm:$0x8] %v4433_v28  ;;  %v13250_v9 = vld [vmem:[#allocation49_spill] sm:$0xff]  ;;  %v4462_v44 = vld [vmem:[#allocation2 + $0x11c] sm:$0x8]  ;;  %v9282_v61 = vld [vmem:[#allocation8 + $0x70] sm:$0xff] }
 0x43a   : > { %4187 = vst [vmem:[#allocation2 + $0x174] sm:$0xf] %v13249_v31  ;;  %v4454_v6 = vsel %vm10010_vm14, %v13250_v9, %v4453_v62  ;;  %v4465_v7 = vld [vmem:[#allocation2 + $0x134] sm:$0x8]  ;;  %v4463_v15 = vsel %vm10010_vm14, %v13213_v25, %v4462_v44  ;;  %5878 = vmatpush.bf16.msrb.mxu1 %v9282_v61  ;;  %v9298_v36 = vld [vmem:[#allocation2 + $0x4c] sm:$0xf] }
 0x43b   : > { %4190 = vst [vmem:[#allocation2 + $0x180] sm:$0xf] %v4189_v14  ;;  %v4466_v56 = vsel %vm10010_vm14, %v13219_v35, %v4465_v7  ;;  %v4480_v35 = vld [vmem:[#allocation2 + $0x30] sm:$0xff]  ;;  %v8162_v33 = vld [vmem:[#allocation2 + $0x54] sm:$0xf0] }
 0x43c   : > { %4356 = vst [vmem:[#allocation2 + $0x38] sm:$0xf] %v4204_v4  ;;  %v4468_v42 = vld [vmem:[#allocation2 + $0x14c] sm:$0x8]  ;;  %v8165_v10 = vor.u32 %v9298_v36, %v8162_v33  ;;  %v9301_v8 = vld [vmem:[#allocation2 + $0x64] sm:$0xf] }
 0x43d   : > { %4408 = vst [vmem:[#allocation2 + $0x170] sm:$0xf] %v12015_v55  ;;  %5223 = vmatmul.bf16.gmra.mxu2 %v8153_v57  ;;  %v4451_v55 = vsel %vm10010_vm14, %v13193_v46, %v4450_v49  ;;  %v4460_v46 = vsel %vm10010_vm14, %v13210_v12, %v4459_v54  ;;  %v4469_v29 = vsel %vm10010_vm14, %v13228_v60, %v4468_v42  ;;  %v8160_v60 = vld [vmem:[#allocation2 + $0x48] sm:$0xf]  ;;  %v8174_v47 = vld [vmem:[#allocation2 + $0x6c] sm:$0xf0] }
 0x43e   : > { %4437 = vst [vmem:[#allocation2 + $0x44] sm:$0x8] %v4436_v16  ;;  %v4471_v26 = vld [vmem:[#allocation2 + $0x164] sm:$0x8]  ;;  %v8172_v53 = vld [vmem:[#allocation2 + $0x60] sm:$0xf]  ;;  %v8177_v34 = vor.u32 %v9301_v8, %v8174_v47 }
 0x43f   : > { %4440 = vst [vmem:[#allocation2 + $0x5c] sm:$0x8] %v4439_v38  ;;  %5134 = vmatmul.bf16.gmra.mxu1 %v8149_v19  ;;  %v4474_v11 = vld [vmem:[#allocation2 + $0x17c] sm:$0x8]  ;;  %v4472_v12 = vsel %vm10010_vm14, %v13233_v43, %v4471_v26  ;;  %v9299_v43 = vld [vmem:[#allocation2 + $0x50] sm:$0xf0] }
 0x440   : > { %4443 = vst [vmem:[#allocation2 + $0x74] sm:$0x8] %v4442_v17  ;;  %v9294_v2 = vld [vmem:[#allocation2 + $0x28] sm:$0xf0]  ;;  %v4475_v25 = vsel %vm10010_vm14, %v11684_v45, %v4474_v11  ;;  %v8161_v39 = vor.u32 %v9299_v43, %v8160_v60  ;;  %v8168_v14 = vld [vmem:[#allocation2 + $0x50] sm:$0xf] }
 0x441   : > { %4446 = vst [vmem:[#allocation2 + $0x8c] sm:$0x8] %v4445_v52  ;;  %v8145_v5 = vor.u32 %v9294_v2, %v8144_v21  ;;  %v9302_v28 = vld [vmem:[#allocation2 + $0x68] sm:$0xf0]  ;;  %v8436_v59 = vld [vmem:[#allocation2 + $0x18] sm:$0xf] }
 0x442   : > { %4449 = vst [vmem:[#allocation2 + $0xa4] sm:$0x8] %v4448_v30  ;;  %v8173_v22 = vor.u32 %v9302_v28, %v8172_v53  ;;  %v9224_v4 = vld [vmem:[#allocation2 + $0x20] sm:$0xf0]  ;;  %v9281_v31 = vld [vmem:[#allocation8 + $0x68] sm:$0xff]  ;;  %v9280_v7 = vld [vmem:[#allocation8 + $0x60] sm:$0xff] }
 0x443   : > { %4452 = vst [vmem:[#allocation2 + $0xbc] sm:$0x8] %v4451_v55  ;;  %5307 = vmatmul.bf16.vlgmr.msrb.gmra.mxu3 %v8145_v5  ;;  %v8156_v20 = vld [vmem:[#allocation2 + $0x38] sm:$0xf]  ;;  %v8437_v3 = vor.u32 %v9224_v4, %v8436_v59  ;;  %5879 = vmatpush.bf16.msrb.mxu1 %v9281_v31  ;;  %v9304_v51 = vld [vmem:[#allocation2 + $0x7c] sm:$0xf] }
 0x444   : > { %4455 = vst [vmem:[#allocation2 + $0xd4] sm:$0x8] %v4454_v6  ;;  %v4481_v23 = vld [vmem:[#allocation2 + $0x38] sm:$0xf]  ;;  %v8186_v16 = vld [vmem:[#allocation2 + $0x84] sm:$0xf0] }
 0x445   : > { %4458 = vst [vmem:[#allocation2 + $0xec] sm:$0x8] %v4457_v58  ;;  %v9297_v13 = vld [vmem:[#allocation2 + $0x40] sm:$0xf0]  ;;  %v8184_v41 = vld [vmem:[#allocation2 + $0x78] sm:$0xf]  ;;  %v8189_v48 = vor.u32 %v9304_v51, %v8186_v16 }
 0x446   : > { %4461 = vst [vmem:[#allocation2 + $0x104] sm:$0x8] %v4460_v46  ;;  %v8157_v45 = vor.u32 %v9297_v13, %v8156_v20  ;;  %v9300_v40 = vld [vmem:[#allocation2 + $0x58] sm:$0xf0]  ;;  %v4483_v1 = vld [vmem:[#allocation2 + $0x44] sm:$0xf] }
 0x447   : > { %4464 = vst [vmem:[#allocation2 + $0x11c] sm:$0x8] %v4463_v15  ;;  %v8169_v27 = vor.u32 %v9300_v40, %v8168_v14  ;;  %v9305_v38 = vld [vmem:[#allocation2 + $0x80] sm:$0xf0]  ;;  %v9303_v24 = vld [vmem:[#allocation2 + $0x70] sm:$0xf0]  ;;  %5880 = vmatpush.bf16.msrb.mxu1 %v9280_v7 }
 0x448   : > { %4467 = vst [vmem:[#allocation2 + $0x134] sm:$0x8] %v4466_v56  ;;  %v8185_v17 = vor.u32 %v9305_v38, %v8184_v41  ;;  %v8180_v49 = vld [vmem:[#allocation2 + $0x68] sm:$0xf]  ;;  %v8448_v18 = vld [vmem:[#allocation2 + $0x30] sm:$0xf] }
 0x449   : > { %4470 = vst [vmem:[#allocation2 + $0x14c] sm:$0x8] %v4469_v29  ;;  %v8181_v57 = vor.u32 %v9303_v24, %v8180_v49  ;;  %v9227_v52 = vld [vmem:[#allocation2 + $0x38] sm:$0xf0]  ;;  %v9307_v19 = vld [vmem:[#allocation2 + $0x94] sm:$0xf] }
 0x44a   : > { %4473 = vst [vmem:[#allocation2 + $0x164] sm:$0x8] %v4472_v12  ;;  %v8449_v62 = vor.u32 %v9227_v52, %v8448_v18  ;;  %v8198_v30 = vld [vmem:[#allocation2 + $0x9c] sm:$0xf0]  ;;  %v8196_v0 = vld [vmem:[#allocation2 + $0x90] sm:$0xf] }
 0x44b   : > { %4476 = vst [vmem:[#allocation2 + $0x17c] sm:$0x8] %v4475_v25  ;;  %v8201_v21 = vor.u32 %v9307_v19, %v8198_v30  ;;  %v9308_v55 = vld [vmem:[#allocation2 + $0x98] sm:$0xf0]  ;;  %v9306_v54 = vld [vmem:[#allocation2 + $0x88] sm:$0xf0] }
 0x44c   : > { %4484 = vst [vmem:[#allocation2] sm:$0xff] %v4480_v35  ;;  %v8197_v2 = vor.u32 %v9308_v55, %v8196_v0  ;;  %v8192_v9 = vld [vmem:[#allocation2 + $0x80] sm:$0xf]  ;;  %v8460_v44 = vld [vmem:[#allocation2 + $0x48] sm:$0xf] }
 0x44d   : > { %4486 = vst [vmem:[#allocation2 + $0xc] sm:$0xff] %v4482_v32  ;;  %5228 = vmatmul.bf16.gmra.mxu2 %v8165_v10  ;;  %v8193_v6 = vor.u32 %v9306_v54, %v8192_v9  ;;  %v9230_v5 = vld [vmem:[#allocation2 + $0x50] sm:$0xf0]  ;;  %v9310_v46 = vld [vmem:[#allocation2 + $0xac] sm:$0xf] }
 0x44e   : > { %4485 = vst [vmem:[#allocation2 + $0x8] sm:$0xf] %v4481_v23  ;;  %v8461_v58 = vor.u32 %v9230_v5, %v8460_v44  ;;  %v8210_v42 = vld [vmem:[#allocation2 + $0xb4] sm:$0xf0]  ;;  %v8208_v15 = vld [vmem:[#allocation2 + $0xa8] sm:$0xf] }
 0x44f   : > { %5139 = vmatmul.bf16.gmra.mxu1 %v8161_v39  ;;  %4487 = vst [vmem:[#allocation2 + $0x14] sm:$0xf] %v4483_v1  ;;  %v8213_v26 = vor.u32 %v9310_v46, %v8210_v42  ;;  %v9311_v56 = vld [vmem:[#allocation2 + $0xb0] sm:$0xf0]  ;;  %v9309_v11 = vld [vmem:[#allocation2 + $0xa0] sm:$0xf0] }
 0x450   : > { %v8209_v29 = vor.u32 %v9311_v56, %v8208_v15  ;;  %v8204_v12 = vld [vmem:[#allocation2 + $0x98] sm:$0xf]  ;;  %v4488_v25 = vld [vmem:[#allocation2 + $0x168] sm:$0xff]  ;;  %v8472_v35 = vld [vmem:[#allocation2 + $0x60] sm:$0xf] }
 0x451   : > { %v8205_v61 = vor.u32 %v9309_v11, %v8204_v12  ;;  %v4490_v32 = vld [vmem:[#allocation2 + $0x174] sm:$0xff]  ;;  %4492 = vst [vmem:[#allocation2 + $0x198] sm:$0xff] %v4488_v25  ;;  %v9233_v36 = vld [vmem:[#allocation2 + $0x68] sm:$0xf0]  ;;  %v9313_v60 = vld [vmem:[#allocation2 + $0xc4] sm:$0xf] }
 0x452   : > { %4494 = vst [vmem:[#allocation2 + $0x1a4] sm:$0xff] %v4490_v32  ;;  %v8473_v33 = vor.u32 %v9233_v36, %v8472_v35  ;;  %v8222_v10 = vld [vmem:[#allocation2 + $0xcc] sm:$0xf0]  ;;  %v8220_v43 = vld [vmem:[#allocation2 + $0xc0] sm:$0xf]  ;;  %v9279_v28 = vld [vmem:[#allocation8 + $0x58] sm:$0xff] }
 0x453   : > { %v8424_v37 = vld [vmem:[#allocation2] sm:$0xf]  ;;  %5312 = vmatmul.bf16.gmra.mxu3 %v8157_v45  ;;  %v8225_v13 = vor.u32 %v9313_v60, %v8222_v10  ;;  %v9314_v39 = vld [vmem:[#allocation2 + $0xc8] sm:$0xf0]  ;;  %v9312_v20 = vld [vmem:[#allocation2 + $0xb8] sm:$0xf0]  ;;  %5881 = vmatpush.bf16.msrb.mxu1 %v9279_v28 }
 0x454   : > { %v9221_v63 = vld [vmem:[#allocation2 + $0x8] sm:$0xf0]  ;;  %v8221_v45 = vor.u32 %v9314_v39, %v8220_v43  ;;  %v8484_v47 = vld [vmem:[#allocation2 + $0x78] sm:$0xf]  ;;  %v9236_v53 = vld [vmem:[#allocation2 + $0x80] sm:$0xf0] }
 0x455   : > { %v8425_v50 = vor.u32 %v9221_v63, %v8424_v37  ;;  %v4489_v37 = vld [vmem:[#allocation2 + $0x170] sm:$0xf]  ;;  %v4491_v63 = vld [vmem:[#allocation2 + $0x17c] sm:$0xf]  ;;  %v8232_v14 = vld [vmem:[#allocation2 + $0xd8] sm:$0xf] }
 0x456   : > { %4493 = vst [vmem:[#allocation2 + $0x1a0] sm:$0xf] %v4489_v37  ;;  %v9316_v40 = vld [vmem:[#allocation2 + $0xdc] sm:$0xf]  ;;  %v9317_v4 = vld [vmem:[#allocation2 + $0xe0] sm:$0xf0] }
 0x457   : > { %5796 = vmatmul.bf16.vlgmr.msrb.gmra.mxu0 %v8425_v50  ;;  %v8216_v50 = vld [vmem:[#allocation2 + $0xb0] sm:$0xf]  ;;  %4495 = vst [vmem:[#allocation2 + $0x1ac] sm:$0xf] %v4491_v63  ;;  %v8233_v23 = vor.u32 %v9317_v4, %v8232_v14  ;;  %v8228_v1 = vld [vmem:[#allocation2 + $0xc8] sm:$0xf] }
 0x458   : > { %v8217_v8 = vor.u32 %v9312_v20, %v8216_v50  ;;  %v8496_v51 = vld [vmem:[#allocation2 + $0x90] sm:$0xf]  ;;  %v9319_v49 = vld [vmem:[#allocation2 + $0xf4] sm:$0xf]  ;;  %v9320_v30 = vld [vmem:[#allocation2 + $0xf8] sm:$0xf0] }
 0x459   : > { %v8244_v52 = vld [vmem:[#allocation2 + $0xf0] sm:$0xf]  ;;  %v9318_v0 = vld [vmem:[#allocation2 + $0xe8] sm:$0xf0]  ;;  %v8240_v55 = vld [vmem:[#allocation2 + $0xe0] sm:$0xf] }
 0x45a   : > { %v8241_v54 = vor.u32 %v9318_v0, %v8240_v55  ;;  %v9242_v44 = vld [vmem:[#allocation2 + $0xb0] sm:$0xf0]  ;;  %v9322_v15 = vld [vmem:[#allocation2 + $0x10c] sm:$0xf]  ;;  %v8256_v11 = vld [vmem:[#allocation2 + $0x108] sm:$0xf] }
 0x45b   : > { %v9278_v25 = vld [vmem:[#allocation8 + $0x50] sm:$0xff]  ;;  %v8252_v60 = vld [vmem:[#allocation2 + $0xf8] sm:$0xf]  ;;  %v8270_v28 = vld [vmem:[#allocation2 + $0x12c] sm:$0xf0] }
 0x45c   : > { %v9321_v32 = vld [vmem:[#allocation2 + $0x100] sm:$0xf0]  ;;  %5882 = vmatpush.bf16.msrb.mxu1 %v9278_v25  ;;  %v8520_v43 = vld [vmem:[#allocation2 + $0xc0] sm:$0xf]  ;;  %v9328_v0 = vld [vmem:[#allocation2 + $0x13c] sm:$0xf] }
 0x45d   : > { %5233 = vmatmul.bf16.gmra.mxu2 %v8177_v34  ;;  %v8485_v34 = vor.u32 %v9236_v53, %v8484_v47  ;;  %v8253_v10 = vor.u32 %v9321_v32, %v8252_v60  ;;  %v9251_v25 = vld [vmem:[#allocation2 + $0xf8] sm:$0xf0] }
 0x45f   : > { %5144 = vmatmul.bf16.gmra.mxu1 %v8173_v22  ;;  %v8234_v22 = vld [vmem:[#allocation2 + $0xe4] sm:$0xf0] }
 0x463   : > { %5317 = vmatmul.bf16.gmra.mxu3 %v8169_v27  ;;  %v8237_v27 = vor.u32 %v9316_v40, %v8234_v22  ;;  %v8268_v22 = vld [vmem:[#allocation2 + $0x120] sm:$0xf] }
 0x467   : > { %5801 = vmatmul.bf16.gmra.mxu0 %v8437_v3  ;;  %v9315_v3 = vld [vmem:[#allocation2 + $0xd0] sm:$0xf0] }
 0x468   : > { %v8229_v31 = vor.u32 %v9315_v3, %v8228_v1  ;;  %v9326_v3 = vld [vmem:[#allocation2 + $0x128] sm:$0xf0]  ;;  %v9324_v1 = vld [vmem:[#allocation2 + $0x118] sm:$0xf0] }
 0x46d   : > { %5238 = vmatmul.bf16.gmra.mxu2 %v8189_v48  ;;  %v9239_v48 = vld [vmem:[#allocation2 + $0x98] sm:$0xf0] }
 0x46e   : > { %v8497_v38 = vor.u32 %v9239_v48, %v8496_v51  ;;  %v8532_v48 = vld [vmem:[#allocation2 + $0xd8] sm:$0xf] }
 0x46f   : > { %5149 = vmatmul.bf16.gmra.mxu1 %v8185_v17 }
 0x473   : > { %5322 = vmatmul.bf16.gmra.mxu3 %v8181_v57  ;;  %v8246_v57 = vld [vmem:[#allocation2 + $0xfc] sm:$0xf0] }
 0x477   : > { %5806 = vmatmul.bf16.gmra.mxu0 %v8449_v62  ;;  %v8249_v62 = vor.u32 %v9319_v49, %v8246_v57  ;;  %v9248_v49 = vld [vmem:[#allocation2 + $0xe0] sm:$0xf0] }
 0x47d   : > { %5243 = vmatmul.bf16.gmra.mxu2 %v8201_v21  ;;  %v8245_v21 = vor.u32 %v9320_v30, %v8244_v52 }
 0x47f   : > { %5154 = vmatmul.bf16.gmra.mxu1 %v8197_v2  ;;  %v8508_v2 = vld [vmem:[#allocation2 + $0xa8] sm:$0xf] }
 0x480   : > { %v8509_v5 = vor.u32 %v9242_v44, %v8508_v2 }
 0x483   : > { %5327 = vmatmul.bf16.gmra.mxu3 %v8193_v6 }
 0x487   : > { %5811 = vmatmul.bf16.gmra.mxu0 %v8461_v58 }
 0x48d   : > { %5248 = vmatmul.bf16.gmra.mxu2 %v8213_v26  ;;  %v8258_v26 = vld [vmem:[#allocation2 + $0x114] sm:$0xf0] }
 0x48f   : > { %5159 = vmatmul.bf16.gmra.mxu1 %v8209_v29  ;;  %v8261_v29 = vor.u32 %v9322_v15, %v8258_v26  ;;  %v8276_v26 = vld [vmem:[#allocation2 + $0x128] sm:$0xf] }
 0x493   : > { %5332 = vmatmul.bf16.gmra.mxu3 %v8205_v61  ;;  %v9323_v61 = vld [vmem:[#allocation2 + $0x110] sm:$0xf0] }
 0x494   : > { %v8257_v36 = vor.u32 %v9323_v61, %v8256_v11  ;;  %v8544_v11 = vld [vmem:[#allocation2 + $0xf0] sm:$0xf] }
 0x495   : > { %v8545_v32 = vor.u32 %v9251_v25, %v8544_v11 }
 0x497   : > { %5816 = vmatmul.bf16.gmra.mxu0 %v8473_v33 }
 0x49d   : > { %5253 = vmatmul.bf16.gmra.mxu2 %v8225_v13 }
 0x49f   : > { %5164 = vmatmul.bf16.gmra.mxu1 %v8221_v45  ;;  %v9245_v45 = vld [vmem:[#allocation2 + $0xc8] sm:$0xf0] }
 0x4a0   : > { %v8521_v63 = vor.u32 %v9245_v45, %v8520_v43  ;;  %v9331_v43 = vld [vmem:[#allocation2 + $0x154] sm:$0xf] }
 0x4a3   : > { %5337 = vmatmul.bf16.gmra.mxu3 %v8217_v8 }
 0x4a7   : > { %5821 = vmatmul.bf16.gmra.mxu0 %v8485_v34  ;;  %v9325_v34 = vld [vmem:[#allocation2 + $0x124] sm:$0xf] }
 0x4ac   : > { %v5130_v59 = vpop.f32.mrf.mxu1 }
 0x4ad   : > { %5258 = vmatmul.bf16.gmra.mxu2 %v8237_v27 }
 0x4af   : > { %5169 = vmatmul.bf16.gmra.mxu1 %v8233_v23 }
 0x4b0   : > { %v5219_v16 = vpop.f32.mrf.mxu2 }
 0x4b1   : > { %v5220_v41 = vadd.f32 %v5219_v16, %v5130_v59  ;;  %v8273_v59 = vor.u32 %v9325_v34, %v8270_v28  ;;  %v8264_v16 = vld [vmem:[#allocation2 + $0x110] sm:$0xf]  ;;  %v9330_v28 = vld [vmem:[#allocation2 + $0x148] sm:$0xf0] }
 0x4b3   : > { %5342 = vmatmul.bf16.gmra.mxu3 %v8229_v31  ;;  %v8269_v31 = vor.u32 %v9326_v3, %v8268_v22 }
 0x4b4   : > { %v5132_v24 = vpop.f32.mrf.mxu1 }
 0x4b7   : > { %5826 = vmatmul.bf16.gmra.mxu0 %v8497_v38 }
 0x4b8   : > { %v5221_v17 = vpop.f32.mrf.mxu2 }
 0x4b9   : > { %v5222_v18 = vadd.f32 %v5221_v17, %v5132_v24 }
 0x4bc   : > { %v5135_v19 = vpop.f32.mrf.mxu1 }
 0x4bd   : > { %5263 = vmatmul.bf16.gmra.mxu2 %v8249_v62 }
 0x4bf   : > { %5174 = vmatmul.bf16.gmra.mxu1 %v8245_v21  ;;  %v8282_v21 = vld [vmem:[#allocation2 + $0x144] sm:$0xf0] }
 0x4c0   : > { %v5224_v9 = vpop.f32.mrf.mxu2 }
 0x4c1   : > { %v5225_v6 = vadd.f32 %v5224_v9, %v5135_v19 }
 0x4c3   : > { %5347 = vmatmul.bf16.gmra.mxu3 %v8241_v54  ;;  %v8280_v54 = vld [vmem:[#allocation2 + $0x138] sm:$0xf] }
 0x4c4   : > { %v5137_v58 = vpop.f32.mrf.mxu1 }
 0x4c6   : > { %v5308_v7 = vpop.f32.mrf.mxu3 }
 0x4c7   : > { %5831 = vmatmul.bf16.gmra.mxu0 %v8509_v5  ;;  %v5309_v46 = vadd.f32 %v5308_v7, %v5220_v41  ;;  %v8265_v41 = vor.u32 %v9324_v1, %v8264_v16  ;;  %v9329_v5 = vld [vmem:[#allocation2 + $0x140] sm:$0xf0] }
 0x4c8   : > { %v5226_v42 = vpop.f32.mrf.mxu2 }
 0x4c9   : > { %v5227_v56 = vadd.f32 %v5226_v42, %v5137_v58  ;;  %v9277_v58 = vld [vmem:[#allocation8 + $0x48] sm:$0xff]  ;;  %v8281_v42 = vor.u32 %v9329_v5, %v8280_v54  ;;  %v9288_v54 = vld [vmem:[#allocation8 + $0xa0] sm:$0xff]  ;;  %v9333_v5 = vld [vmem:[#allocation2 + $0x160] sm:$0xf0] }
 0x4ca   : > { %5883 = vmatpush.bf16.msrb.mxu1 %v9277_v58 }
 0x4cc   : > { %v5140_v12 = vpop.f32.mrf.mxu1 }
 0x4cd   : > { %5268 = vmatmul.bf16.gmra.mxu2 %v8261_v29 }
 0x4ce   : > { %v5310_v35 = vpop.f32.mrf.mxu3 }
 0x4cf   : > { %v5311_v33 = vadd.f32 %v5310_v35, %v5222_v18  ;;  %5179 = vmatmul.bf16.gmra.mxu1 %v8257_v36  ;;  %v8533_v18 = vor.u32 %v9248_v49, %v8532_v48  ;;  %v9290_v48 = vld [vmem:[#allocation8 + $0xb0] sm:$0xff] }
 0x4d0   : > { %v5229_v13 = vpop.f32.mrf.mxu2 }
 0x4d1   : > { %v5230_v39 = vadd.f32 %v5229_v13, %v5140_v12  ;;  %v8294_v13 = vld [vmem:[#allocation2 + $0x15c] sm:$0xf0] }
 0x4d3   : > { %5352 = vmatmul.bf16.gmra.mxu3 %v8253_v10 }
 0x4d4   : > { %v5797_v20 = vpop.f32.mrf.mxu0  ;;  %v5142_v50 = vpop.f32.mrf.mxu1 }
 0x4d5   : > { %v12101_v37 = vadd.f32 %v5797_v20, %v5309_v46  ;;  %v9327_v46 = vld [vmem:[#allocation2 + $0x130] sm:$0xf0]  ;;  %v8292_v20 = vld [vmem:[#allocation2 + $0x150] sm:$0xf] }
 0x4d6   : > { %v5313_v8 = vpop.f32.mrf.mxu3 }
 0x4d7   : > { %5836 = vmatmul.bf16.gmra.mxu0 %v8521_v63  ;;  %v5314_v47 = vadd.f32 %v5313_v8, %v5225_v6  ;;  %v8285_v6 = vor.u32 %v9328_v0, %v8282_v21 }
 0x4d8   : > { %v5231_v53 = vpop.f32.mrf.mxu2 }
 0x4d9   : > { %v5232_v40 = vadd.f32 %v5231_v53, %v5142_v50  ;;  %v8297_v50 = vor.u32 %v9331_v43, %v8294_v13  ;;  %v9291_v53 = vld [vmem:[#allocation8 + $0xb8] sm:$0xff] }
 0x4da   : > { %5966 = vmatpush.bf16.msra.mxu2 %v9291_v53  ;;  %v9427_v13 = vld [vmem:[#allocation8 + $0x1f8] sm:$0xff] }
 0x4db   : > { %6657 = vmatpush.bf16.msra.mxu0 %v9427_v13  ;;  %v8324_v13 = vld [vmem:[#allocation2 + $0x188] sm:$0xf] }
 0x4dc   : > { %v5799_v14 = vpop.f32.mrf.mxu0  ;;  %v5145_v4 = vpop.f32.mrf.mxu1 }
 0x4dd   : > { %v12103_v27 = vadd.f32 %v5799_v14, %v5311_v33  ;;  %5273 = vmatmul.bf16.gmra.mxu2 %v8273_v59  ;;  %v8288_v14 = vld [vmem:[#allocation2 + $0x140] sm:$0xf] }
 0x4de   : > { %v5315_v23 = vpop.f32.mrf.mxu3  ;;  %v8289_v59 = vor.u32 %v9330_v28, %v8288_v14  ;;  %5967 = vmatpush.bf16.msra.mxu2 %v9290_v48  ;;  %v9284_v14 = vld [vmem:[#allocation8 + $0x80] sm:$0xff] }
 0x4df   : > { %v5316_v51 = vadd.f32 %v5315_v23, %v5227_v56  ;;  %5184 = vmatmul.bf16.gmra.mxu1 %v8269_v31  ;;  %v8277_v56 = vor.u32 %v9327_v46, %v8276_v26  ;;  %v9254_v31 = vld [vmem:[#allocation2 + $0x110] sm:$0xf0]  ;;  %v8312_v48 = vld [vmem:[#allocation2 + $0x170] sm:$0xf] }
 0x4e0   : > { %v5234_v38 = vpop.f32.mrf.mxu2 }
 0x4e1   : > { %v5235_v24 = vadd.f32 %v5234_v38, %v5145_v4  ;;  %v8556_v4 = vld [vmem:[#allocation2 + $0x108] sm:$0xf] }
 0x4e2   : > { %v8557_v16 = vor.u32 %v9254_v31, %v8556_v4  ;;  %v9416_v4 = vld [vmem:[#allocation8 + $0x1a0] sm:$0xff] }
 0x4e3   : > { %5357 = vmatmul.bf16.gmra.mxu3 %v8265_v41 }
 0x4e4   : > { %v5802_v17 = vpop.f32.mrf.mxu0  ;;  %v5147_v52 = vpop.f32.mrf.mxu1 }
 0x4e5   : > { %v12105_v57 = vadd.f32 %v5802_v17, %v5314_v47  ;;  %v9332_v47 = vld [vmem:[#allocation2 + $0x158] sm:$0xf0] }
 0x4e6   : > { %v5318_v62 = vpop.f32.mrf.mxu3  ;;  %v9289_v17 = vld [vmem:[#allocation8 + $0xa8] sm:$0xff] }
 0x4e7   : > { %5841 = vmatmul.bf16.gmra.mxu0 %v8533_v18  ;;  %v5319_v19 = vadd.f32 %v5318_v62, %v5230_v39  ;;  %v9334_v18 = vld [vmem:[#allocation2 + $0x16c] sm:$0xf]  ;;  %5968 = vmatpush.bf16.msra.mxu2 %v9289_v17  ;;  %v8580_v17 = vld [vmem:[#allocation2 + $0x138] sm:$0xf] }
 0x4e8   : > { %v5236_v30 = vpop.f32.mrf.mxu2 }
 0x4e9   : > { %v5237_v55 = vadd.f32 %v5236_v30, %v5147_v52  ;;  %v8306_v52 = vld [vmem:[#allocation2 + $0x174] sm:$0xf0] }
 0x4ea   : > { %v8309_v21 = vor.u32 %v9334_v18, %v8306_v52 }
 0x4eb   : > { %5969 = vmatpush.bf16.msra.mxu2 %v9288_v54  ;;  %v9414_v54 = vld [vmem:[#allocation8 + $0x190] sm:$0xff] }
 0x4ec   : > { %v5804_v2 = vpop.f32.mrf.mxu0  ;;  %v5150_v44 = vpop.f32.mrf.mxu1 }
 0x4ed   : > { %v12107_v9 = vadd.f32 %v5804_v2, %v5316_v51  ;;  %5278 = vmatmul.bf16.gmra.mxu2 %v8285_v6  ;;  %v9335_v2 = vld [vmem:[#allocation2 + $0x170] sm:$0xf0] }
 0x4ee   : > { %v5320_v7 = vpop.f32.mrf.mxu3  ;;  %v9276_v6 = vld [vmem:[#allocation8 + $0x40] sm:$0xff] }
 0x4ef   : > { %v5321_v15 = vadd.f32 %v5320_v7, %v5232_v40  ;;  %5189 = vmatmul.bf16.gmra.mxu1 %v8281_v42  ;;  %v8293_v40 = vor.u32 %v9332_v47, %v8292_v20  ;;  %v9419_v7 = vld [vmem:[#allocation8 + $0x1b8] sm:$0xff]  ;;  %v8300_v42 = vld [vmem:[#allocation2 + $0x158] sm:$0xf] }
 0x4f0   : > { %v5239_v29 = vpop.f32.mrf.mxu2  ;;  %5884 = vmatpush.bf16.msrb.mxu1 %v9276_v6  ;;  %v8301_v26 = vor.u32 %v9333_v5, %v8300_v42  ;;  %6568 = vmatpush.bf16.msra.mxu3 %v9419_v7  ;;  %v9285_v20 = vld [vmem:[#allocation8 + $0x88] sm:$0xff]  ;;  %v9222_v7 = vld [vmem:[#allocation2 + $0x10] sm:$0xf0] }
 0x4f1   : > { %v5240_v12 = vadd.f32 %v5239_v29, %v5150_v44  ;;  %v9413_v5 = vld [vmem:[#allocation8 + $0x188] sm:$0xff] }
 0x4f3   : > { %5362 = vmatmul.bf16.gmra.mxu3 %v8277_v56  ;;  %v8568_v56 = vld [vmem:[#allocation2 + $0x120] sm:$0xf] }
 0x4f4   : > { %v5807_v61 = vpop.f32.mrf.mxu0  ;;  %v5152_v36 = vpop.f32.mrf.mxu1 }
 0x4f5   : > { %v12109_v35 = vadd.f32 %v5807_v61, %v5319_v19  ;;  %v8304_v19 = vld [vmem:[#allocation2 + $0x168] sm:$0xf]  ;;  %v9257_v61 = vld [vmem:[#allocation2 + $0x128] sm:$0xf0] }
 0x4f6   : > { %v5323_v33 = vpop.f32.mrf.mxu3  ;;  %v8305_v58 = vor.u32 %v9335_v2, %v8304_v19  ;;  %v9260_v19 = vld [vmem:[#allocation2 + $0x140] sm:$0xf0] }
 0x4f7   : > { %5846 = vmatmul.bf16.gmra.mxu0 %v8545_v32  ;;  %v5324_v60 = vadd.f32 %v5323_v33, %v5235_v24  ;;  %v8569_v32 = vor.u32 %v9257_v61, %v8568_v56  ;;  %v9286_v33 = vld [vmem:[#allocation8 + $0x90] sm:$0xff] }
 0x4f8   : > { %v5241_v10 = vpop.f32.mrf.mxu2  ;;  %v9422_v61 = vld [vmem:[#allocation8 + $0x1d0] sm:$0xff] }
 0x4f9   : > { %v5242_v39 = vadd.f32 %v5241_v10, %v5152_v36 }
 0x4fc   : > { %v5809_v45 = vpop.f32.mrf.mxu0  ;;  %v5155_v8 = vpop.f32.mrf.mxu1 }
 0x4fd   : > { %v12111_v63 = vadd.f32 %v5809_v45, %v5321_v15  ;;  %5283 = vmatmul.bf16.gmra.mxu2 %v8297_v50  ;;  %v9287_v15 = vld [vmem:[#allocation8 + $0x98] sm:$0xff]  ;;  %v9337_v50 = vld [vmem:[#allocation2 + $0x184] sm:$0xf] }
 0x4fe   : > { %v5325_v34 = vpop.f32.mrf.mxu3  ;;  %5970 = vmatpush.bf16.msra.mxu2 %v9287_v15  ;;  %v8432_v15 = vld [vmem:[#allocation2 + $0x8] sm:$0xf] }
 0x4ff   : > { %v5326_v22 = vadd.f32 %v5325_v34, %v5237_v55  ;;  %5194 = vmatmul.bf16.gmra.mxu1 %v8293_v40  ;;  %v8316_v34 = vld [vmem:[#allocation2 + $0x180] sm:$0xf] }
 0x500   : > { %v5244_v3 = vpop.f32.mrf.mxu2 }
 0x501   : > { %v5245_v23 = vadd.f32 %v5244_v3, %v5155_v8  ;;  %v8318_v8 = vld [vmem:[#allocation2 + $0x18c] sm:$0xf0] }
 0x502   : > { %5971 = vmatpush.bf16.msra.mxu2 %v9286_v33  ;;  %v8321_v40 = vor.u32 %v9337_v50, %v8318_v8  ;;  %v9339_v33 = vld [vmem:[#allocation2 + $0x190] sm:$0xf0] }
 0x503   : > { %5367 = vmatmul.bf16.gmra.mxu3 %v8289_v59  ;;  %v9426_v59 = vld [vmem:[#allocation8 + $0x1f0] sm:$0xff] }
 0x504   : > { %v5812_v1 = vpop.f32.mrf.mxu0  ;;  %v5157_v41 = vpop.f32.mrf.mxu1  ;;  %6658 = vmatpush.bf16.msra.mxu0 %v9426_v59 }
 0x505   : > { %v12113_v51 = vadd.f32 %v5812_v1, %v5324_v60  ;;  %v9418_v60 = vld [vmem:[#allocation8 + $0x1b0] sm:$0xff]  ;;  %v9338_v1 = vld [vmem:[#allocation2 + $0x188] sm:$0xf0] }
 0x506   : > { %v5328_v38 = vpop.f32.mrf.mxu3  ;;  %6569 = vmatpush.bf16.msra.mxu3 %v9418_v60  ;;  %5972 = vmatpush.bf16.msra.mxu2 %v9285_v20  ;;  %v8426_v60 = vld [vmem:[#allocation2 + $0xc] sm:$0xf0]  ;;  %v8325_v20 = vor.u32 %v9339_v33, %v8324_v13  ;;  %v8724_v13 = vld [vmem:[#allocation2 + $0x48] sm:$0xf] }
 0x507   : > { %5851 = vmatmul.bf16.gmra.mxu0 %v8557_v16  ;;  %v5329_v24 = vadd.f32 %v5328_v38, %v5240_v12  ;;  %v8317_v16 = vor.u32 %v9338_v1, %v8316_v34  ;;  %v9415_v38 = vld [vmem:[#allocation8 + $0x198] sm:$0xff]  ;;  %v9263_v34 = vld [vmem:[#allocation2 + $0x158] sm:$0xf0] }
 0x508   : > { %v5246_v49 = vpop.f32.mrf.mxu2 }
 0x509   : > { %v5247_v62 = vadd.f32 %v5246_v49, %v5157_v41  ;;  %v9425_v41 = vld [vmem:[#allocation8 + $0x1e8] sm:$0xff] }
 0x50a   : > { %5973 = vmatpush.bf16.msra.mxu2 %v9284_v14  ;;  %6659 = vmatpush.bf16.msra.mxu0 %v9425_v41  ;;  %v9420_v14 = vld [vmem:[#allocation8 + $0x1c0] sm:$0xff]  ;;  %v9223_v41 = vld [vmem:[#allocation2 + $0x1c] sm:$0xf] }
 0x50c   : > { %v5814_v30 = vpop.f32.mrf.mxu0  ;;  %v5160_v55 = vpop.f32.mrf.mxu1 }
 0x50d   : > { %v12115_v0 = vadd.f32 %v5814_v30, %v5326_v22  ;;  %5288 = vmatmul.bf16.gmra.mxu2 %v8309_v21 }
 0x50e   : > { %v5330_v44 = vpop.f32.mrf.mxu3 }
 0x50f   : > { %v5331_v46 = vadd.f32 %v5330_v44, %v5242_v39  ;;  %5199 = vmatmul.bf16.gmra.mxu1 %v8305_v58  ;;  %v9417_v39 = vld [vmem:[#allocation8 + $0x1a8] sm:$0xff]  ;;  %v9423_v44 = vld [vmem:[#allocation8 + $0x1d8] sm:$0xff] }
 0x510   : > { %v5249_v11 = vpop.f32.mrf.mxu2  ;;  %6570 = vmatpush.bf16.msra.mxu3 %v9417_v39  ;;  %v9421_v39 = vld [vmem:[#allocation8 + $0x1c8] sm:$0xff] }
 0x511   : > { %v5250_v29 = vadd.f32 %v5249_v11, %v5160_v55  ;;  %v9424_v55 = vld [vmem:[#allocation8 + $0x1e0] sm:$0xff]  ;;  %v8433_v11 = vor.u32 %v9222_v7, %v8432_v15 }
 0x512   : > { %6660 = vmatpush.bf16.msra.mxu0 %v9424_v55 }
 0x513   : > { %5372 = vmatmul.bf16.gmra.mxu3 %v8301_v26  ;;  %v9220_v26 = vld [vmem:[#allocation2 + $0x4] sm:$0xf] }
 0x514   : > { %v5817_v12 = vpop.f32.mrf.mxu0  ;;  %v5162_v36 = vpop.f32.mrf.mxu1  ;;  %6571 = vmatpush.bf16.msra.mxu3 %v9416_v4 }
 0x515   : > { %v12117_v25 = vadd.f32 %v5817_v12, %v5329_v24 }
 0x516   : > { %v5333_v10 = vpop.f32.mrf.mxu3  ;;  %6661 = vmatpush.bf16.msra.mxu0 %v9423_v44  ;;  %v9266_v44 = vld [vmem:[#allocation2 + $0x170] sm:$0xf0] }
 0x517   : > { %5856 = vmatmul.bf16.gmra.mxu0 %v8569_v32  ;;  %v5334_v43 = vadd.f32 %v5333_v10, %v5245_v23  ;;  %v9336_v23 = vld [vmem:[#allocation2 + $0x178] sm:$0xf0]  ;;  %v9412_v32 = vld [vmem:[#allocation8 + $0x180] sm:$0xff] }
 0x518   : > { %v5251_v45 = vpop.f32.mrf.mxu2  ;;  %v8313_v24 = vor.u32 %v9336_v23, %v8312_v48  ;;  %6572 = vmatpush.bf16.msra.mxu3 %v9415_v38  ;;  %v9225_v23 = vld [vmem:[#allocation2 + $0x28] sm:$0xf0]  ;;  %v8438_v48 = vld [vmem:[#allocation2 + $0x24] sm:$0xf0] }
 0x519   : > { %v5252_v47 = vadd.f32 %v5251_v45, %v5162_v36  ;;  %v9435_v36 = vld [vmem:[#allocation8 + $0x238] sm:$0xff]  ;;  %v8592_v45 = vld [vmem:[#allocation2 + $0x150] sm:$0xf] }
 0x51a   : > { %6746 = vmatpush.bf16.msra.mxu1 %v9435_v36  ;;  %6662 = vmatpush.bf16.msra.mxu0 %v9422_v61  ;;  %v8456_v61 = vld [vmem:[#allocation2 + $0x38] sm:$0xf]  ;;  %v8450_v36 = vld [vmem:[#allocation2 + $0x3c] sm:$0xf0] }
 0x51c   : > { %v5819_v53 = vpop.f32.mrf.mxu0  ;;  %v5165_v22 = vpop.f32.mrf.mxu1  ;;  %6573 = vmatpush.bf16.msra.mxu3 %v9414_v54 }
 0x51d   : > { %v12119_v28 = vadd.f32 %v5819_v53, %v5331_v46  ;;  %5293 = vmatmul.bf16.gmra.mxu2 %v8321_v40 }
 0x51e   : > { %v5335_v3 = vpop.f32.mrf.mxu3  ;;  %6663 = vmatpush.bf16.msra.mxu0 %v9421_v39 }
 0x51f   : > { %v5336_v31 = vadd.f32 %v5335_v3, %v5247_v62  ;;  %5204 = vmatmul.bf16.gmra.mxu1 %v8317_v16  ;;  %v8581_v62 = vor.u32 %v9260_v19, %v8580_v17  ;;  %v8444_v16 = vld [vmem:[#allocation2 + $0x20] sm:$0xf] }
 0x520   : > { %v5254_v49 = vpop.f32.mrf.mxu2  ;;  %6574 = vmatpush.bf16.msra.mxu3 %v9413_v5 }
 0x521   : > { %v5255_v18 = vadd.f32 %v5254_v49, %v5165_v22  ;;  %v8593_v22 = vor.u32 %v9263_v34, %v8592_v45  ;;  %v9368_v45 = vld [vmem:[#allocation2 + $0x50] sm:$0xf0] }
 0x522   : > { %6664 = vmatpush.bf16.msra.mxu0 %v9420_v14 }
 0x523   : > { %5377 = vmatmul.bf16.gmra.mxu3 %v8313_v24  ;;  %v8445_v24 = vor.u32 %v9225_v23, %v8444_v16 }
 0x524   : > { %v5822_v52 = vpop.f32.mrf.mxu0  ;;  %v5167_v21 = vpop.f32.mrf.mxu1  ;;  %6575 = vmatpush.bf16.msra.mxu3 %v9412_v32  ;;  %v9226_v32 = vld [vmem:[#allocation2 + $0x34] sm:$0xf] }
 0x525   : > { %v12121_v30 = vadd.f32 %v5822_v52, %v5334_v43  ;;  %v8429_v43 = vor.u32 %v9220_v26, %v8426_v60  ;;  %v8712_v52 = vld [vmem:[#allocation2 + $0x30] sm:$0xf] }
 0x526   : > { %v5338_v2 = vpop.f32.mrf.mxu3 }
 0x527   : > { %5861 = vmatmul.bf16.gmra.mxu0 %v8581_v62  ;;  %v5339_v6 = vadd.f32 %v5338_v2, %v5250_v29  ;;  %v8441_v62 = vor.u32 %v9223_v41, %v8438_v48  ;;  %v8468_v48 = vld [vmem:[#allocation2 + $0x50] sm:$0xf] }
 0x528   : > { %v5256_v58 = vpop.f32.mrf.mxu2 }
 0x529   : > { %v5257_v46 = vadd.f32 %v5256_v58, %v5167_v21  ;;  %v9365_v21 = vld [vmem:[#allocation2 + $0x38] sm:$0xf0] }
 0x52a   : > { %v8713_v55 = vor.u32 %v9365_v21, %v8712_v52  ;;  %v8736_v21 = vld [vmem:[#allocation2 + $0x60] sm:$0xf] }
 0x52c   : > { %v5824_v42 = vpop.f32.mrf.mxu0  ;;  %v5170_v12 = vpop.f32.mrf.mxu1 }
 0x52d   : > { %v12123_v56 = vadd.f32 %v5824_v42, %v5336_v31  ;;  %5974 = vmatmul.bf16.vlgmr.msra.gmra.mxu2 %v8433_v11 }
 0x52e   : > { %v5340_v29 = vpop.f32.mrf.mxu3 }
 0x52f   : > { %v5341_v10 = vadd.f32 %v5340_v29, %v5252_v47  ;;  %5885 = vmatmul.bf16.vlgmr.msrb.gmra.mxu1 %v8429_v43 }
 0x530   : > { %v5259_v50 = vpop.f32.mrf.mxu2 }
 0x531   : > { %v5260_v8 = vadd.f32 %v5259_v50, %v5170_v12  ;;  %v8725_v50 = vor.u32 %v9368_v45, %v8724_v13  ;;  %v9433_v45 = vld [vmem:[#allocation8 + $0x228] sm:$0xff] }
 0x533   : > { %5382 = vmatmul.bf16.gmra.mxu3 %v8325_v20  ;;  %v8453_v20 = vor.u32 %v9226_v32, %v8450_v36 }
 0x534   : > { %v5827_v53 = vpop.f32.mrf.mxu0  ;;  %v5172_v47 = vpop.f32.mrf.mxu1 }
 0x535   : > { %v12125_v40 = vadd.f32 %v5827_v53, %v5339_v6  ;;  %v8714_v53 = vld [vmem:[#allocation2 + $0x3c] sm:$0xf0] }
 0x536   : > { %v5343_v59 = vpop.f32.mrf.mxu3 }
 0x537   : > { %5866 = vmatmul.bf16.gmra.mxu0 %v8593_v22  ;;  %v5344_v4 = vadd.f32 %v5343_v59, %v5255_v18  ;;  %v8604_v18 = vld [vmem:[#allocation2 + $0x168] sm:$0xf] }
 0x538   : > { %v5261_v3 = vpop.f32.mrf.mxu2  ;;  %v8605_v58 = vor.u32 %v9266_v44, %v8604_v18  ;;  %v8726_v44 = vld [vmem:[#allocation2 + $0x54] sm:$0xf0] }
 0x539   : > { %v5262_v1 = vadd.f32 %v5261_v3, %v5172_v47 }
 0x53c   : > { %v5829_v31 = vpop.f32.mrf.mxu0  ;;  %v5175_v17 = vpop.f32.mrf.mxu1 }
 0x53d   : > { %v12127_v38 = vadd.f32 %v5829_v31, %v5341_v10  ;;  %5979 = vmatmul.bf16.gmra.mxu2 %v8445_v24  ;;  %v9434_v10 = vld [vmem:[#allocation8 + $0x230] sm:$0xff]  ;;  %v9231_v31 = vld [vmem:[#allocation2 + $0x58] sm:$0xf0]  ;;  %v9229_v24 = vld [vmem:[#allocation2 + $0x4c] sm:$0xf] }
 0x53e   : > { %v5345_v49 = vpop.f32.mrf.mxu3  ;;  %6747 = vmatpush.bf16.msra.mxu1 %v9434_v10  ;;  %v8469_v52 = vor.u32 %v9231_v31, %v8468_v48  ;;  %v9232_v10 = vld [vmem:[#allocation2 + $0x64] sm:$0xf] }
 0x53f   : > { %v5346_v19 = vadd.f32 %v5345_v49, %v5257_v46  ;;  %5890 = vmatmul.bf16.gmra.mxu1 %v8441_v62  ;;  %v9228_v46 = vld [vmem:[#allocation2 + $0x40] sm:$0xf0] }
 0x540   : > { %v5264_v54 = vpop.f32.mrf.mxu2  ;;  %v8457_v33 = vor.u32 %v9228_v46, %v8456_v61 }
 0x541   : > { %v5265_v2 = vadd.f32 %v5264_v54, %v5175_v17  ;;  %v8462_v17 = vld [vmem:[#allocation2 + $0x54] sm:$0xf0]  ;;  %v9371_v54 = vld [vmem:[#allocation2 + $0x68] sm:$0xf0] }
 0x542   : > { %v8465_v18 = vor.u32 %v9229_v24, %v8462_v17  ;;  %6748 = vmatpush.bf16.msra.mxu1 %v9433_v45 }
 0x543   : > { %6576 = vmatmul.bf16.vlgmr.msra.gmra.mxu3 %v8713_v55 }
 0x544   : > { %v5832_v6 = vpop.f32.mrf.mxu0  ;;  %v5177_v7 = vpop.f32.mrf.mxu1 }
 0x545   : > { %v12129_v5 = vadd.f32 %v5832_v6, %v5344_v4  ;;  %v8737_v6 = vor.u32 %v9371_v54, %v8736_v21  ;;  %v8492_v21 = vld [vmem:[#allocation2 + $0x80] sm:$0xf] }
 0x546   : > { %v5348_v42 = vpop.f32.mrf.mxu3 }
 0x547   : > { %5871 = vmatmul.bf16.gmra.mxu0 %v8605_v58  ;;  %v5349_v15 = vadd.f32 %v5348_v42, %v5260_v8  ;;  %v9364_v8 = vld [vmem:[#allocation2 + $0x34] sm:$0xf] }
 0x548   : > { %v5266_v26 = vpop.f32.mrf.mxu2  ;;  %v8717_v59 = vor.u32 %v9364_v8, %v8714_v53  ;;  %v8748_v8 = vld [vmem:[#allocation2 + $0x78] sm:$0xf] }
 0x549   : > { %v5267_v11 = vadd.f32 %v5266_v26, %v5177_v7 }
 0x54c   : > { %v5834_v12 = vpop.f32.mrf.mxu0  ;;  %v5180_v60 = vpop.f32.mrf.mxu1 }
 0x54d   : > { %v12131_v29 = vadd.f32 %v5834_v12, %v5346_v19  ;;  %5984 = vmatmul.bf16.gmra.mxu2 %v8457_v33 }
 0x54e   : > { %v5350_v43 = vpop.f32.mrf.mxu3 }
 0x54f   : > { %v5351_v39 = vadd.f32 %v5350_v43, %v5262_v1  ;;  %5895 = vmatmul.bf16.gmra.mxu1 %v8453_v20  ;;  %v8474_v43 = vld [vmem:[#allocation2 + $0x6c] sm:$0xf0] }
 0x550   : > { %v5269_v34 = vpop.f32.mrf.mxu2 }
 0x551   : > { %v5270_v22 = vadd.f32 %v5269_v34, %v5180_v60  ;;  %v8480_v60 = vld [vmem:[#allocation2 + $0x68] sm:$0xf]  ;;  %v8477_v34 = vor.u32 %v9232_v10, %v8474_v43 }
 0x553   : > { %6581 = vmatmul.bf16.gmra.mxu3 %v8725_v50 }
 0x554   : > { %v5837_v47 = vpop.f32.mrf.mxu0  ;;  %v5182_v4 = vpop.f32.mrf.mxu1 }
 0x555   : > { %v12133_v14 = vadd.f32 %v5837_v47, %v5349_v15  ;;  %v9374_v47 = vld [vmem:[#allocation2 + $0x80] sm:$0xf0] }
 0x556   : > { %v5353_v3 = vpop.f32.mrf.mxu3 }
 0x557   : > { %6665 = vmatmul.bf16.vlgmr.msra.gmra.mxu0 %v8717_v59  ;;  %v5354_v23 = vadd.f32 %v5353_v3, %v5265_v2  ;;  %v9367_v2 = vld [vmem:[#allocation2 + $0x4c] sm:$0xf]  ;;  %v9370_v59 = vld [vmem:[#allocation2 + $0x64] sm:$0xf] }
 0x558   : > { %v5271_v1 = vpop.f32.mrf.mxu2  ;;  %v8729_v26 = vor.u32 %v9367_v2, %v8726_v44 }
 0x559   : > { %v5272_v16 = vadd.f32 %v5271_v1, %v5182_v4  ;;  %v8738_v4 = vld [vmem:[#allocation2 + $0x6c] sm:$0xf0] }
 0x55c   : > { %v5839_v41 = vpop.f32.mrf.mxu0  ;;  %v5185_v19 = vpop.f32.mrf.mxu1 }
 0x55d   : > { %v12135_v49 = vadd.f32 %v5839_v41, %v5351_v39  ;;  %5989 = vmatmul.bf16.gmra.mxu2 %v8469_v52  ;;  %v8741_v41 = vor.u32 %v9370_v59, %v8738_v4  ;;  %v9237_v52 = vld [vmem:[#allocation2 + $0x88] sm:$0xf0] }
 0x55e   : > { %v5355_v62 = vpop.f32.mrf.mxu3 }
 0x55f   : > { %v5356_v55 = vadd.f32 %v5355_v62, %v5267_v11  ;;  %5900 = vmatmul.bf16.gmra.mxu1 %v8465_v18  ;;  %v9234_v11 = vld [vmem:[#allocation2 + $0x70] sm:$0xf0]  ;;  %v8486_v18 = vld [vmem:[#allocation2 + $0x84] sm:$0xf0] }
 0x560   : > { %v5274_v58 = vpop.f32.mrf.mxu2  ;;  %v8481_v39 = vor.u32 %v9234_v11, %v8480_v60 }
 0x561   : > { %v5275_v7 = vadd.f32 %v5274_v58, %v5185_v19  ;;  %v8760_v58 = vld [vmem:[#allocation2 + $0x90] sm:$0xf] }
 0x563   : > { %6586 = vmatmul.bf16.gmra.mxu3 %v8737_v6  ;;  %v8493_v6 = vor.u32 %v9237_v52, %v8492_v21  ;;  %v8762_v52 = vld [vmem:[#allocation2 + $0x9c] sm:$0xf0] }
 0x564   : > { %v5842_v42 = vpop.f32.mrf.mxu0  ;;  %v5187_v46 = vpop.f32.mrf.mxu1 }
 0x565   : > { %v12137_v15 = vadd.f32 %v5842_v42, %v5354_v23 }
 0x566   : > { %v5358_v12 = vpop.f32.mrf.mxu3 }
 0x567   : > { %6670 = vmatmul.bf16.gmra.mxu0 %v8729_v26  ;;  %v5359_v61 = vadd.f32 %v5358_v12, %v5270_v22  ;;  %v8749_v22 = vor.u32 %v9374_v47, %v8748_v8  ;;  %v8498_v47 = vld [vmem:[#allocation2 + $0x9c] sm:$0xf0] }
 0x568   : > { %v5276_v32 = vpop.f32.mrf.mxu2 }
 0x569   : > { %v5277_v36 = vadd.f32 %v5276_v32, %v5187_v46  ;;  %v9377_v46 = vld [vmem:[#allocation2 + $0x98] sm:$0xf0] }
 0x56a   : > { %v8761_v12 = vor.u32 %v9377_v46, %v8760_v58 }
 0x56c   : > { %v5844_v33 = vpop.f32.mrf.mxu0  ;;  %v5190_v20 = vpop.f32.mrf.mxu1 }
 0x56d   : > { %v12139_v13 = vadd.f32 %v5844_v33, %v5356_v55  ;;  %5994 = vmatmul.bf16.gmra.mxu2 %v8481_v39  ;;  %v9235_v55 = vld [vmem:[#allocation2 + $0x7c] sm:$0xf] }
 0x56e   : > { %v5360_v50 = vpop.f32.mrf.mxu3  ;;  %v8489_v26 = vor.u32 %v9235_v55, %v8486_v18 }
 0x56f   : > { %v5361_v53 = vadd.f32 %v5360_v50, %v5272_v16  ;;  %5905 = vmatmul.bf16.gmra.mxu1 %v8477_v34  ;;  %v9238_v34 = vld [vmem:[#allocation2 + $0x94] sm:$0xf] }
 0x570   : > { %v5279_v3 = vpop.f32.mrf.mxu2 }
 0x571   : > { %v5280_v23 = vadd.f32 %v5279_v3, %v5190_v20  ;;  %v9432_v3 = vld [vmem:[#allocation8 + $0x220] sm:$0xff] }
 0x572   : > { %6749 = vmatpush.bf16.msra.mxu1 %v9432_v3 }
 0x573   : > { %6591 = vmatmul.bf16.gmra.mxu3 %v8749_v22 }
 0x574   : > { %v5847_v1 = vpop.f32.mrf.mxu0  ;;  %v5192_v48 = vpop.f32.mrf.mxu1 }
 0x575   : > { %v12141_v31 = vadd.f32 %v5847_v1, %v5359_v61  ;;  %v8750_v61 = vld [vmem:[#allocation2 + $0x84] sm:$0xf0] }
 0x576   : > { %v5363_v24 = vpop.f32.mrf.mxu3 }
 0x577   : > { %6675 = vmatmul.bf16.gmra.mxu0 %v8741_v41  ;;  %v5364_v17 = vadd.f32 %v5363_v24, %v5275_v7  ;;  %v9373_v7 = vld [vmem:[#allocation2 + $0x7c] sm:$0xf]  ;;  %v8772_v41 = vld [vmem:[#allocation2 + $0xa8] sm:$0xf]  ;;  %v8501_v24 = vor.u32 %v9238_v34, %v8498_v47 }
 0x578   : > { %v5281_v16 = vpop.f32.mrf.mxu2  ;;  %v8753_v10 = vor.u32 %v9373_v7, %v8750_v61  ;;  %v9241_v7 = vld [vmem:[#allocation2 + $0xac] sm:$0xf]  ;;  %v8510_v61 = vld [vmem:[#allocation2 + $0xb4] sm:$0xf0] }
 0x579   : > { %v5282_v19 = vadd.f32 %v5281_v16, %v5192_v48  ;;  %v9376_v16 = vld [vmem:[#allocation2 + $0x94] sm:$0xf] }
 0x57c   : > { %v5849_v62 = vpop.f32.mrf.mxu0  ;;  %v5195_v2 = vpop.f32.mrf.mxu1 }
 0x57d   : > { %v12143_v54 = vadd.f32 %v5849_v62, %v5361_v53  ;;  %5999 = vmatmul.bf16.gmra.mxu2 %v8493_v6  ;;  %v8504_v53 = vld [vmem:[#allocation2 + $0x98] sm:$0xf]  ;;  %v8765_v6 = vor.u32 %v9376_v16, %v8762_v52  ;;  %v8528_v16 = vld [vmem:[#allocation2 + $0xc8] sm:$0xf]  ;;  %v9244_v52 = vld [vmem:[#allocation2 + $0xc4] sm:$0xf] }
 0x57e   : > { %v5365_v44 = vpop.f32.mrf.mxu3 }
 0x57f   : > { %v5366_v42 = vadd.f32 %v5365_v44, %v5277_v36  ;;  %5910 = vmatmul.bf16.gmra.mxu1 %v8489_v26  ;;  %v9240_v36 = vld [vmem:[#allocation2 + $0xa0] sm:$0xf0] }
 0x580   : > { %v5284_v32 = vpop.f32.mrf.mxu2  ;;  %v8505_v59 = vor.u32 %v9240_v36, %v8504_v53  ;;  %v9383_v36 = vld [vmem:[#allocation2 + $0xc8] sm:$0xf0]  ;;  %v8774_v53 = vld [vmem:[#allocation2 + $0xb4] sm:$0xf0] }
 0x581   : > { %v5285_v11 = vadd.f32 %v5284_v32, %v5195_v2 }
 0x583   : > { %6596 = vmatmul.bf16.gmra.mxu3 %v8761_v12  ;;  %v8516_v12 = vld [vmem:[#allocation2 + $0xb0] sm:$0xf] }
 0x584   : > { %v5852_v33 = vpop.f32.mrf.mxu0  ;;  %v5197_v43 = vpop.f32.mrf.mxu1 }
 0x585   : > { %v12145_v60 = vadd.f32 %v5852_v33, %v5364_v17  ;;  %v9380_v17 = vld [vmem:[#allocation2 + $0xb0] sm:$0xf0] }
 0x586   : > { %v5368_v39 = vpop.f32.mrf.mxu3 }
 0x587   : > { %6680 = vmatmul.bf16.gmra.mxu0 %v8753_v10  ;;  %v5369_v20 = vadd.f32 %v5368_v39, %v5280_v23  ;;  %v8773_v23 = vor.u32 %v9380_v17, %v8772_v41 }
 0x588   : > { %v5286_v45 = vpop.f32.mrf.mxu2 }
 0x589   : > { %v5287_v50 = vadd.f32 %v5286_v45, %v5197_v43  ;;  %v8784_v43 = vld [vmem:[#allocation2 + $0xc0] sm:$0xf]  ;;  %v8513_v45 = vor.u32 %v9241_v7, %v8510_v61  ;;  %v9382_v61 = vld [vmem:[#allocation2 + $0xc4] sm:$0xf] }
 0x58c   : > { %v5854_v8 = vpop.f32.mrf.mxu0  ;;  %v5200_v4 = vpop.f32.mrf.mxu1 }
 0x58d   : > { %v12147_v22 = vadd.f32 %v5854_v8, %v5366_v42  ;;  %6004 = vmatmul.bf16.gmra.mxu2 %v8505_v59  ;;  %v9243_v42 = vld [vmem:[#allocation2 + $0xb8] sm:$0xf0]  ;;  %v8785_v8 = vor.u32 %v9383_v36, %v8784_v43 }
 0x58e   : > { %v5370_v1 = vpop.f32.mrf.mxu3  ;;  %v8517_v33 = vor.u32 %v9243_v42, %v8516_v12 }
 0x58f   : > { %v5371_v48 = vadd.f32 %v5370_v1, %v5282_v19  ;;  %5915 = vmatmul.bf16.gmra.mxu1 %v8501_v24 }
 0x590   : > { %v5289_v62 = vpop.f32.mrf.mxu2 }
 0x591   : > { %v5290_v21 = vadd.f32 %v5289_v62, %v5200_v4  ;;  %v8522_v62 = vld [vmem:[#allocation2 + $0xcc] sm:$0xf0] }
 0x592   : > { %v8525_v12 = vor.u32 %v9244_v52, %v8522_v62 }
 0x593   : > { %6601 = vmatmul.bf16.gmra.mxu3 %v8773_v23 }
 0x594   : > { %v5857_v55 = vpop.f32.mrf.mxu0  ;;  %v5202_v2 = vpop.f32.mrf.mxu1 }
 0x595   : > { %v12149_v18 = vadd.f32 %v5857_v55, %v5369_v20 }
 0x596   : > { %v5373_v44 = vpop.f32.mrf.mxu3 }
 0x597   : > { %6685 = vmatmul.bf16.gmra.mxu0 %v8765_v6  ;;  %v5374_v58 = vadd.f32 %v5373_v44, %v5285_v11  ;;  %v9379_v11 = vld [vmem:[#allocation2 + $0xac] sm:$0xf] }
 0x598   : > { %v5291_v19 = vpop.f32.mrf.mxu2  ;;  %v8777_v3 = vor.u32 %v9379_v11, %v8774_v53  ;;  %v9249_v53 = vld [vmem:[#allocation2 + $0xe8] sm:$0xf0] }
 0x599   : > { %v5292_v26 = vadd.f32 %v5291_v19, %v5202_v2  ;;  %v9431_v2 = vld [vmem:[#allocation8 + $0x218] sm:$0xff]  ;;  %v8796_v19 = vld [vmem:[#allocation2 + $0xd8] sm:$0xf] }
 0x59a   : > { %6750 = vmatpush.bf16.msra.mxu1 %v9431_v2  ;;  %v9385_v2 = vld [vmem:[#allocation2 + $0xdc] sm:$0xf] }
 0x59c   : > { %v5859_v46 = vpop.f32.mrf.mxu0  ;;  %v5205_v39 = vpop.f32.mrf.mxu1 }
 0x59d   : > { %v12151_v32 = vadd.f32 %v5859_v46, %v5371_v48  ;;  %6009 = vmatmul.bf16.gmra.mxu2 %v8517_v33  ;;  %v8786_v33 = vld [vmem:[#allocation2 + $0xcc] sm:$0xf0] }
 0x59e   : > { %v5375_v10 = vpop.f32.mrf.mxu3 }
 0x59f   : > { %v5376_v20 = vadd.f32 %v5375_v10, %v5287_v50  ;;  %5920 = vmatmul.bf16.gmra.mxu1 %v8513_v45  ;;  %v9246_v50 = vld [vmem:[#allocation2 + $0xd0] sm:$0xf0]  ;;  %v8789_v45 = vor.u32 %v9382_v61, %v8786_v33  ;;  %v9252_v61 = vld [vmem:[#allocation2 + $0x100] sm:$0xf0] }
 0x5a0   : > { %v5294_v34 = vpop.f32.mrf.mxu2  ;;  %v8529_v6 = vor.u32 %v9246_v50, %v8528_v16 }
 0x5a1   : > { %v5295_v47 = vadd.f32 %v5294_v34, %v5205_v39 }
 0x5a3   : > { %6606 = vmatmul.bf16.gmra.mxu3 %v8785_v8 }
 0x5a4   : > { %v5862_v59 = vpop.f32.mrf.mxu0  ;;  %v5207_v41 = vpop.f32.mrf.mxu1 }
 0x5a5   : > { %v12153_v4 = vadd.f32 %v5862_v59, %v5374_v58 }
 0x5a6   : > { %v5378_v1 = vpop.f32.mrf.mxu3 }
 0x5a7   : > { %6690 = vmatmul.bf16.gmra.mxu0 %v8777_v3  ;;  %v5379_v48 = vadd.f32 %v5378_v1, %v5290_v21  ;;  %v9386_v21 = vld [vmem:[#allocation2 + $0xe0] sm:$0xf0]  ;;  %v8540_v3 = vld [vmem:[#allocation2 + $0xe0] sm:$0xf]  ;;  %v9247_v1 = vld [vmem:[#allocation2 + $0xdc] sm:$0xf] }
 0x5a8   : > { %v5296_v24 = vpop.f32.mrf.mxu2  ;;  %v8797_v7 = vor.u32 %v9386_v21, %v8796_v19  ;;  %v8541_v50 = vor.u32 %v9249_v53, %v8540_v3  ;;  %v8820_v53 = vld [vmem:[#allocation2 + $0x108] sm:$0xf] }
 0x5a9   : > { %v5297_v17 = vadd.f32 %v5296_v24, %v5207_v41  ;;  %v8534_v41 = vld [vmem:[#allocation2 + $0xe4] sm:$0xf0] }
 0x5aa   : > { %v8537_v62 = vor.u32 %v9247_v1, %v8534_v41 }
 0x5ac   : > { %v5864_v23 = vpop.f32.mrf.mxu0  ;;  %v5886_v58 = vpop.f32.mrf.mxu1 }
 0x5ad   : > { %v12155_v55 = vadd.f32 %v5864_v23, %v5376_v20  ;;  %6014 = vmatmul.bf16.gmra.mxu2 %v8529_v6  ;;  %v5887_v46 = vadd.f32 %v5886_v58, %v12101_v37  ;;  %v8808_v23 = vld [vmem:[#allocation2 + $0xf0] sm:$0xf] }
 0x5ae   : > { %v5380_v44 = vpop.f32.mrf.mxu3 }
 0x5af   : > { %v5381_v42 = vadd.f32 %v5380_v44, %v5292_v26  ;;  %5925 = vmatmul.bf16.gmra.mxu1 %v8525_v12  ;;  %v8798_v44 = vld [vmem:[#allocation2 + $0xe4] sm:$0xf0] }
 0x5b0   : > { %v5975_v10 = vpop.f32.mrf.mxu2  ;;  %v8801_v12 = vor.u32 %v9385_v2, %v8798_v44  ;;  %v9255_v44 = vld [vmem:[#allocation2 + $0x118] sm:$0xf0] }
 0x5b1   : > { %v12158_v43 = vadd.f32 %v5975_v10, %v5887_v46 }
 0x5b3   : > { %6611 = vmatmul.bf16.gmra.mxu3 %v8797_v7 }
 0x5b4   : > { %v5867_v39 = vpop.f32.mrf.mxu0  ;;  %v5888_v26 = vpop.f32.mrf.mxu1 }
 0x5b5   : > { %v12160_v20 = vadd.f32 %v5867_v39, %v5379_v48  ;;  %v5889_v37 = vadd.f32 %v5888_v26, %v12103_v27  ;;  %v9389_v27 = vld [vmem:[#allocation2 + $0xf8] sm:$0xf0]  ;;  %v8552_v39 = vld [vmem:[#allocation2 + $0xf8] sm:$0xf] }
 0x5b6   : > { %v5383_v36 = vpop.f32.mrf.mxu3  ;;  %v8809_v6 = vor.u32 %v9389_v27, %v8808_v23 }
 0x5b7   : > { %6695 = vmatmul.bf16.gmra.mxu0 %v8789_v45  ;;  %v5384_v8 = vadd.f32 %v5383_v36, %v5295_v47  ;;  %v9250_v45 = vld [vmem:[#allocation2 + $0xf4] sm:$0xf]  ;;  %v8546_v36 = vld [vmem:[#allocation2 + $0xfc] sm:$0xf0] }
 0x5b8   : > { %v5977_v11 = vpop.f32.mrf.mxu2  ;;  %v8549_v1 = vor.u32 %v9250_v45, %v8546_v36 }
 0x5b9   : > { %v12163_v34 = vadd.f32 %v5977_v11, %v5889_v37  ;;  %v8553_v37 = vor.u32 %v9252_v61, %v8552_v39  ;;  %v9430_v11 = vld [vmem:[#allocation8 + $0x210] sm:$0xff] }
 0x5ba   : > { %6751 = vmatpush.bf16.msra.mxu1 %v9430_v11  ;;  %v9391_v11 = vld [vmem:[#allocation2 + $0x10c] sm:$0xf] }
 0x5bc   : > { %v5869_v59 = vpop.f32.mrf.mxu0  ;;  %v5891_v16 = vpop.f32.mrf.mxu1 }
 0x5bd   : > { %v12165_v24 = vadd.f32 %v5869_v59, %v5381_v42  ;;  %6019 = vmatmul.bf16.gmra.mxu2 %v8541_v50  ;;  %v5892_v47 = vadd.f32 %v5891_v16, %v12105_v57  ;;  %v9388_v50 = vld [vmem:[#allocation2 + $0xf4] sm:$0xf] }
 0x5be   : > { %v5385_v48 = vpop.f32.mrf.mxu3 }
 0x5bf   : > { %v5386_v52 = vadd.f32 %v5385_v48, %v5297_v17  ;;  %5930 = vmatmul.bf16.gmra.mxu1 %v8537_v62  ;;  %v8810_v48 = vld [vmem:[#allocation2 + $0xfc] sm:$0xf0] }
 0x5c0   : > { %v5980_v19 = vpop.f32.mrf.mxu2  ;;  %v8813_v62 = vor.u32 %v9388_v50, %v8810_v48 }
 0x5c1   : > { %v12168_v58 = vadd.f32 %v5980_v19, %v5892_v47 }
 0x5c3   : > { %6616 = vmatmul.bf16.gmra.mxu3 %v8809_v6 }
 0x5c4   : > { %v5872_v42 = vpop.f32.mrf.mxu0  ;;  %v5893_v7 = vpop.f32.mrf.mxu1 }
 0x5c5   : > { %v12170_v46 = vadd.f32 %v5872_v42, %v5384_v8  ;;  %v5894_v17 = vadd.f32 %v5893_v7, %v12107_v9  ;;  %v9392_v9 = vld [vmem:[#allocation2 + $0x110] sm:$0xf0]  ;;  %v9253_v7 = vld [vmem:[#allocation2 + $0x10c] sm:$0xf] }
 0x5c6   : > { %v6577_v21 = vpop.f32.mrf.mxu3  ;;  %v8821_v41 = vor.u32 %v9392_v9, %v8820_v53  ;;  %v8822_v53 = vld [vmem:[#allocation2 + $0x114] sm:$0xf0] }
 0x5c7   : > { %6700 = vmatmul.bf16.gmra.mxu0 %v8801_v12  ;;  %v8564_v12 = vld [vmem:[#allocation2 + $0x110] sm:$0xf]  ;;  %v8825_v9 = vor.u32 %v9391_v11, %v8822_v53 }
 0x5c8   : > { %v5982_v57 = vpop.f32.mrf.mxu2  ;;  %v8565_v61 = vor.u32 %v9255_v44, %v8564_v12  ;;  %v9429_v12 = vld [vmem:[#allocation8 + $0x208] sm:$0xff] }
 0x5c9   : > { %v12173_v33 = vadd.f32 %v5982_v57, %v5894_v17  ;;  %v8558_v17 = vld [vmem:[#allocation2 + $0x114] sm:$0xf0]  ;;  %6752 = vmatpush.bf16.msra.mxu1 %v9429_v12 }
 0x5ca   : > { %v8561_v36 = vor.u32 %v9253_v7, %v8558_v17  ;;  %v8844_v7 = vld [vmem:[#allocation2 + $0x138] sm:$0xf] }
 0x5cc   : > { %v5874_v10 = vpop.f32.mrf.mxu0  ;;  %v5896_v59 = vpop.f32.mrf.mxu1 }
 0x5cd   : > { %v12175_v26 = vadd.f32 %v5874_v10, %v5386_v52  ;;  %6024 = vmatmul.bf16.gmra.mxu2 %v8553_v37  ;;  %v5897_v3 = vadd.f32 %v5896_v59, %v12109_v35  ;;  %v9395_v37 = vld [vmem:[#allocation2 + $0x128] sm:$0xf0] }
 0x5ce   : > { %v6579_v8 = vpop.f32.mrf.mxu3 }
 0x5cf   : > { %5935 = vmatmul.bf16.gmra.mxu1 %v8549_v1 }
 0x5d0   : > { %v5985_v23 = vpop.f32.mrf.mxu2 }
 0x5d1   : > { %v12178_v16 = vadd.f32 %v5985_v23, %v5897_v3  ;;  %v9258_v23 = vld [vmem:[#allocation2 + $0x130] sm:$0xf0] }
 0x5d3   : > { %6621 = vmatmul.bf16.gmra.mxu3 %v8821_v41 }
 0x5d4   : > { %v6666_v52 = vpop.f32.mrf.mxu0  ;;  %v5898_v6 = vpop.f32.mrf.mxu1 }
 0x5d5   : > { %v12180_v47 = vadd.f32 %v6666_v52, %v6577_v21  ;;  %v5899_v35 = vadd.f32 %v5898_v6, %v12111_v63  ;;  %v8832_v21 = vld [vmem:[#allocation2 + $0x120] sm:$0xf]  ;;  %v8576_v6 = vld [vmem:[#allocation2 + $0x128] sm:$0xf] }
 0x5d6   : > { %v6582_v27 = vpop.f32.mrf.mxu3  ;;  %v8833_v63 = vor.u32 %v9395_v37, %v8832_v21 }
 0x5d7   : > { %6705 = vmatmul.bf16.gmra.mxu0 %v8813_v62 }
 0x5d8   : > { %v5987_v2 = vpop.f32.mrf.mxu2 }
 0x5d9   : > { %v12183_v19 = vadd.f32 %v5987_v2, %v5899_v35  ;;  %v9256_v35 = vld [vmem:[#allocation2 + $0x124] sm:$0xf]  ;;  %v8570_v2 = vld [vmem:[#allocation2 + $0x12c] sm:$0xf0] }
 0x5da   : > { %v8573_v21 = vor.u32 %v9256_v35, %v8570_v2 }
 0x5dc   : > { %v6668_v42 = vpop.f32.mrf.mxu0  ;;  %v5901_v39 = vpop.f32.mrf.mxu1 }
 0x5dd   : > { %v12185_v57 = vadd.f32 %v6668_v42, %v6579_v8  ;;  %6029 = vmatmul.bf16.gmra.mxu2 %v8565_v61  ;;  %v5902_v45 = vadd.f32 %v5901_v39, %v12113_v51  ;;  %v8577_v42 = vor.u32 %v9258_v23, %v8576_v6  ;;  %v8588_v23 = vld [vmem:[#allocation2 + $0x140] sm:$0xf]  ;;  %v8582_v6 = vld [vmem:[#allocation2 + $0x144] sm:$0xf0] }
 0x5de   : > { %v6584_v10 = vpop.f32.mrf.mxu3 }
 0x5df   : > { %5940 = vmatmul.bf16.gmra.mxu1 %v8561_v36  ;;  %v8834_v36 = vld [vmem:[#allocation2 + $0x12c] sm:$0xf0] }
 0x5e0   : > { %v5990_v59 = vpop.f32.mrf.mxu2 }
 0x5e1   : > { %v12188_v3 = vadd.f32 %v5990_v59, %v5902_v45  ;;  %v9394_v45 = vld [vmem:[#allocation2 + $0x124] sm:$0xf] }
 0x5e2   : > { %v8837_v53 = vor.u32 %v9394_v45, %v8834_v36 }
 0x5e3   : > { %6626 = vmatmul.bf16.gmra.mxu3 %v8833_v63 }
 0x5e4   : > { %v6671_v1 = vpop.f32.mrf.mxu0  ;;  %v5903_v50 = vpop.f32.mrf.mxu1 }
 0x5e5   : > { %v12190_v8 = vadd.f32 %v6671_v1, %v6582_v27  ;;  %v5904_v48 = vadd.f32 %v5903_v50, %v12115_v0  ;;  %v9398_v0 = vld [vmem:[#allocation2 + $0x140] sm:$0xf0]  ;;  %v9261_v50 = vld [vmem:[#allocation2 + $0x148] sm:$0xf0] }
 0x5e6   : > { %v6587_v41 = vpop.f32.mrf.mxu3  ;;  %v8845_v39 = vor.u32 %v9398_v0, %v8844_v7  ;;  %v8589_v2 = vor.u32 %v9261_v50, %v8588_v23  ;;  %v8846_v0 = vld [vmem:[#allocation2 + $0x144] sm:$0xf0]  ;;  %v9262_v23 = vld [vmem:[#allocation2 + $0x154] sm:$0xf] }
 0x5e7   : > { %6710 = vmatmul.bf16.gmra.mxu0 %v8825_v9 }
 0x5e8   : > { %v5992_v51 = vpop.f32.mrf.mxu2 }
 0x5e9   : > { %v12193_v52 = vadd.f32 %v5992_v51, %v5904_v48 }
 0x5ec   : > { %v6673_v62 = vpop.f32.mrf.mxu0  ;;  %v5906_v17 = vpop.f32.mrf.mxu1 }
 0x5ed   : > { %v12195_v44 = vadd.f32 %v6673_v62, %v6584_v10  ;;  %6034 = vmatmul.bf16.gmra.mxu2 %v8577_v42  ;;  %v5907_v61 = vadd.f32 %v5906_v17, %v12117_v25  ;;  %v9259_v62 = vld [vmem:[#allocation2 + $0x13c] sm:$0xf] }
 0x5ee   : > { %v6589_v27 = vpop.f32.mrf.mxu3  ;;  %v8585_v17 = vor.u32 %v9259_v62, %v8582_v6  ;;  %v8594_v62 = vld [vmem:[#allocation2 + $0x15c] sm:$0xf0] }
 0x5ef   : > { %5945 = vmatmul.bf16.gmra.mxu1 %v8573_v21  ;;  %v9397_v21 = vld [vmem:[#allocation2 + $0x13c] sm:$0xf] }
 0x5f0   : > { %v5995_v37 = vpop.f32.mrf.mxu2 }
 0x5f1   : > { %v12198_v63 = vadd.f32 %v5995_v37, %v5907_v61  ;;  %v9401_v61 = vld [vmem:[#allocation2 + $0x158] sm:$0xf0]  ;;  %v8849_v37 = vor.u32 %v9397_v21, %v8846_v0  ;;  %v9400_v21 = vld [vmem:[#allocation2 + $0x154] sm:$0xf]  ;;  %v8858_v0 = vld [vmem:[#allocation2 + $0x15c] sm:$0xf0] }
 0x5f3   : > { %6631 = vmatmul.bf16.gmra.mxu3 %v8845_v39 }
 0x5f4   : > { %v6676_v10 = vpop.f32.mrf.mxu0  ;;  %v5908_v1 = vpop.f32.mrf.mxu1 }
 0x5f5   : > { %v12200_v11 = vadd.f32 %v6676_v10, %v6587_v41  ;;  %v5909_v25 = vadd.f32 %v5908_v1, %v12119_v28  ;;  %v8856_v41 = vld [vmem:[#allocation2 + $0x150] sm:$0xf] }
 0x5f6   : > { %v6592_v59 = vpop.f32.mrf.mxu3  ;;  %v8857_v28 = vor.u32 %v9401_v61, %v8856_v41  ;;  %v9428_v41 = vld [vmem:[#allocation8 + $0x200] sm:$0xff]  ;;  %v8597_v61 = vor.u32 %v9262_v23, %v8594_v62 }
 0x5f7   : > { %6715 = vmatmul.bf16.gmra.mxu0 %v8837_v53  ;;  %6753 = vmatpush.bf16.msra.mxu1 %v9428_v41  ;;  %v8612_v62 = vld [vmem:[#allocation2 + $0x170] sm:$0xf]  ;;  %v8606_v41 = vld [vmem:[#allocation2 + $0x174] sm:$0xf0] }
 0x5f8   : > { %v5997_v9 = vpop.f32.mrf.mxu2 }
 0x5f9   : > { %v12203_v48 = vadd.f32 %v5997_v9, %v5909_v25  ;;  %v9264_v25 = vld [vmem:[#allocation2 + $0x160] sm:$0xf0] }
 0x5fc   : > { %v6678_v51 = vpop.f32.mrf.mxu0  ;;  %v5911_v12 = vpop.f32.mrf.mxu1 }
 0x5fd   : > { %v12205_v35 = vadd.f32 %v6678_v51, %v6589_v27  ;;  %6039 = vmatmul.bf16.gmra.mxu2 %v8589_v2  ;;  %v5912_v7 = vadd.f32 %v5911_v12, %v12121_v30  ;;  %v8600_v51 = vld [vmem:[#allocation2 + $0x158] sm:$0xf]  ;;  %v8868_v12 = vld [vmem:[#allocation2 + $0x168] sm:$0xf] }
 0x5fe   : > { %v6594_v42 = vpop.f32.mrf.mxu3  ;;  %v8601_v2 = vor.u32 %v9264_v25, %v8600_v51 }
 0x5ff   : > { %5950 = vmatmul.bf16.gmra.mxu1 %v8585_v17 }
 0x600   : > { %v6000_v39 = vpop.f32.mrf.mxu2 }
 0x601   : > { %v12208_v45 = vadd.f32 %v6000_v39, %v5912_v7 }
 0x603   : > { %6636 = vmatmul.bf16.gmra.mxu3 %v8857_v28 }
 0x604   : > { %v6681_v36 = vpop.f32.mrf.mxu0  ;;  %v5913_v53 = vpop.f32.mrf.mxu1 }
 0x605   : > { %v12210_v27 = vadd.f32 %v6681_v36, %v6592_v59  ;;  %v5914_v1 = vadd.f32 %v5913_v53, %v12123_v56  ;;  %v9404_v56 = vld [vmem:[#allocation2 + $0x170] sm:$0xf0]  ;;  %v8861_v53 = vor.u32 %v9400_v21, %v8858_v0  ;;  %v9407_v21 = vld [vmem:[#allocation2 + $0x188] sm:$0xf0] }
 0x606   : > { %v6597_v10 = vpop.f32.mrf.mxu3  ;;  %v8869_v28 = vor.u32 %v9404_v56, %v8868_v12  ;;  %v9403_v0 = vld [vmem:[#allocation2 + $0x16c] sm:$0xf] }
 0x607   : > { %6720 = vmatmul.bf16.gmra.mxu0 %v8849_v37 }
 0x608   : > { %v6002_v30 = vpop.f32.mrf.mxu2 }
 0x609   : > { %v12213_v9 = vadd.f32 %v6002_v30, %v5914_v1 }
 0x60c   : > { %v6683_v50 = vpop.f32.mrf.mxu0  ;;  %v5916_v7 = vpop.f32.mrf.mxu1 }
 0x60d   : > { %v12215_v6 = vadd.f32 %v6683_v50, %v6594_v42  ;;  %6044 = vmatmul.bf16.gmra.mxu2 %v8601_v2  ;;  %v5917_v17 = vadd.f32 %v5916_v7, %v12125_v40  ;;  %v9267_v50 = vld [vmem:[#allocation2 + $0x178] sm:$0xf0]  ;;  %v9265_v2 = vld [vmem:[#allocation2 + $0x16c] sm:$0xf] }
 0x60e   : > { %v6599_v59 = vpop.f32.mrf.mxu3  ;;  %v8613_v7 = vor.u32 %v9267_v50, %v8612_v62 }
 0x60f   : > { %5955 = vmatmul.bf16.gmra.mxu1 %v8597_v61 }
 0x610   : > { %v6005_v39 = vpop.f32.mrf.mxu2 }
 0x611   : > { %v12218_v36 = vadd.f32 %v6005_v39, %v5917_v17  ;;  %v8870_v39 = vld [vmem:[#allocation2 + $0x174] sm:$0xf0] }
 0x613   : > { %6641 = vmatmul.bf16.gmra.mxu3 %v8869_v28  ;;  %v8609_v28 = vor.u32 %v9265_v2, %v8606_v41  ;;  %v9366_v41 = vld [vmem:[#allocation2 + $0x40] sm:$0xf0] }
 0x614   : > { %v6686_v42 = vpop.f32.mrf.mxu0  ;;  %v5918_v30 = vpop.f32.mrf.mxu1 }
 0x615   : > { %v12220_v37 = vadd.f32 %v6686_v42, %v6597_v10  ;;  %v5919_v40 = vadd.f32 %v5918_v30, %v12127_v38  ;;  %v8880_v10 = vld [vmem:[#allocation2 + $0x180] sm:$0xf] }
 0x616   : > { %v6602_v1 = vpop.f32.mrf.mxu3  ;;  %v8881_v38 = vor.u32 %v9407_v21, %v8880_v10 }
 0x617   : > { %6725 = vmatmul.bf16.gmra.mxu0 %v8861_v53 }
 0x618   : > { %v6007_v25 = vpop.f32.mrf.mxu2 }
 0x619   : > { %v12223_v51 = vadd.f32 %v6007_v25, %v5919_v40  ;;  %v8873_v40 = vor.u32 %v9403_v0, %v8870_v39  ;;  %v9406_v39 = vld [vmem:[#allocation2 + $0x184] sm:$0xf] }
 0x61c   : > { %v6688_v23 = vpop.f32.mrf.mxu0  ;;  %v5921_v61 = vpop.f32.mrf.mxu1 }
 0x61d   : > { %v12225_v12 = vadd.f32 %v6688_v23, %v6599_v59  ;;  %6049 = vmatmul.bf16.gmra.mxu2 %v8613_v7  ;;  %v5922_v56 = vadd.f32 %v5921_v61, %v12129_v5  ;;  %v8892_v61 = vld [vmem:[#allocation2 + $0x198] sm:$0xf] }
 0x61e   : > { %v6604_v17 = vpop.f32.mrf.mxu3 }
 0x61f   : > { %5960 = vmatmul.bf16.gmra.mxu1 %v8609_v28  ;;  %v8720_v28 = vld [vmem:[#allocation2 + $0x38] sm:$0xf] }
 0x620   : > { %v6010_v42 = vpop.f32.mrf.mxu2  ;;  %v8721_v21 = vor.u32 %v9366_v41, %v8720_v28 }
 0x621   : > { %v12228_v53 = vadd.f32 %v6010_v42, %v5922_v56  ;;  %v8882_v42 = vld [vmem:[#allocation2 + $0x18c] sm:$0xf0] }
 0x623   : > { %6646 = vmatmul.bf16.gmra.mxu3 %v8881_v38  ;;  %v9410_v38 = vld [vmem:[#allocation2 + $0x1a0] sm:$0xf0] }
 0x624   : > { %v6691_v30 = vpop.f32.mrf.mxu0  ;;  %v5923_v50 = vpop.f32.mrf.mxu1  ;;  %v8893_v0 = vor.u32 %v9410_v38, %v8892_v61  ;;  %v8732_v38 = vld [vmem:[#allocation2 + $0x50] sm:$0xf] }
 0x625   : > { %v12230_v59 = vadd.f32 %v6691_v30, %v6602_v1  ;;  %v5924_v23 = vadd.f32 %v5923_v50, %v12131_v29 }
 0x626   : > { %v6607_v25 = vpop.f32.mrf.mxu3 }
 0x627   : > { %6730 = vmatmul.bf16.gmra.mxu0 %v8873_v40 }
 0x628   : > { %v6012_v5 = vpop.f32.mrf.mxu2 }
 0x629   : > { %v12233_v62 = vadd.f32 %v6012_v5, %v5924_v23 }
 0x62c   : > { %v6693_v2 = vpop.f32.mrf.mxu0  ;;  %v5926_v56 = vpop.f32.mrf.mxu1 }
 0x62d   : > { %v12235_v7 = vadd.f32 %v6693_v2, %v6604_v17  ;;  %v5927_v1 = vadd.f32 %v5926_v56, %v12133_v14  ;;  %v8885_v17 = vor.u32 %v9406_v39, %v8882_v42  ;;  %v9369_v56 = vld [vmem:[#allocation2 + $0x58] sm:$0xf0] }
 0x62e   : > { %v6609_v10 = vpop.f32.mrf.mxu3  ;;  %v9409_v39 = vld [vmem:[#allocation2 + $0x19c] sm:$0xf] }
 0x62f   : > { %6754 = vmatmul.bf16.vlgmr.msra.gmra.mxu1 %v8721_v21 }
 0x630   : > { %v6015_v29 = vpop.f32.mrf.mxu2 }
 0x631   : > { %v12238_v30 = vadd.f32 %v6015_v29, %v5927_v1 }
 0x633   : > { %6651 = vmatmul.bf16.gmra.mxu3 %v8893_v0  ;;  %v8733_v0 = vor.u32 %v9369_v56, %v8732_v38  ;;  %v9372_v56 = vld [vmem:[#allocation2 + $0x70] sm:$0xf0] }
 0x634   : > { %v6696_v40 = vpop.f32.mrf.mxu0  ;;  %v5928_v5 = vpop.f32.mrf.mxu1 }
 0x635   : > { %v12240_v50 = vadd.f32 %v6696_v40, %v6607_v25  ;;  %v5929_v2 = vadd.f32 %v5928_v5, %v12135_v49  ;;  %v8894_v49 = vld [vmem:[#allocation2 + $0x1a4] sm:$0xf0] }
 0x636   : > { %v6612_v23 = vpop.f32.mrf.mxu3  ;;  %v8897_v5 = vor.u32 %v9409_v39, %v8894_v49 }
 0x637   : > { %6735 = vmatmul.bf16.gmra.mxu0 %v8885_v17 }
 0x638   : > { %v6017_v14 = vpop.f32.mrf.mxu2 }
 0x639   : > { %v12243_v41 = vadd.f32 %v6017_v14, %v5929_v2 }
 0x63b   : > { %13251 = vst [vmem:[#allocation16_spill] sm:$0xff] %v12243_v41 }
 0x63c   : > { %v6698_v61 = vpop.f32.mrf.mxu0  ;;  %v5931_v21 = vpop.f32.mrf.mxu1 }
 0x63d   : > { %v12245_v28 = vadd.f32 %v6698_v61, %v6609_v10  ;;  %v5932_v1 = vadd.f32 %v5931_v21, %v12137_v15 }
 0x63e   : > { %v6614_v25 = vpop.f32.mrf.mxu3 }
 0x63f   : > { %6759 = vmatmul.bf16.gmra.mxu1 %v8733_v0 }
 0x640   : > { %v6020_v42 = vpop.f32.mrf.mxu2 }
 0x641   : > { %v12248_v29 = vadd.f32 %v6020_v42, %v5932_v1  ;;  %v8744_v1 = vld [vmem:[#allocation2 + $0x68] sm:$0xf] }
 0x642   : > { %v8745_v42 = vor.u32 %v9372_v56, %v8744_v1 }
 0x644   : > { %v6701_v40 = vpop.f32.mrf.mxu0  ;;  %v5933_v2 = vpop.f32.mrf.mxu1 }
 0x645   : > { %v12250_v17 = vadd.f32 %v6701_v40, %v6612_v23  ;;  %v5934_v10 = vadd.f32 %v5933_v2, %v12139_v13 }
 0x646   : > { %v6617_v14 = vpop.f32.mrf.mxu3 }
 0x647   : > { %6740 = vmatmul.bf16.gmra.mxu0 %v8897_v5 }
 0x648   : > { %v6022_v61 = vpop.f32.mrf.mxu2 }
 0x649   : > { %v12253_v41 = vadd.f32 %v6022_v61, %v5934_v10 }
 0x64b   : > { %13252 = vst [vmem:[#allocation33_spill] sm:$0xff] %v12253_v41 }
 0x64c   : > { %v6703_v15 = vpop.f32.mrf.mxu0  ;;  %v5936_v38 = vpop.f32.mrf.mxu1 }
 0x64d   : > { %v12255_v21 = vadd.f32 %v6703_v15, %v6614_v25  ;;  %v5937_v0 = vadd.f32 %v5936_v38, %v12141_v31  ;;  %v9375_v25 = vld [vmem:[#allocation2 + $0x88] sm:$0xf0]  ;;  %v8756_v31 = vld [vmem:[#allocation2 + $0x80] sm:$0xf] }
 0x64e   : > { %v6619_v49 = vpop.f32.mrf.mxu3  ;;  %v8757_v38 = vor.u32 %v9375_v25, %v8756_v31 }
 0x64f   : > { %6764 = vmatmul.bf16.gmra.mxu1 %v8745_v42 }
 0x650   : > { %v6025_v23 = vpop.f32.mrf.mxu2 }
 0x651   : > { %v12258_v39 = vadd.f32 %v6025_v23, %v5937_v0 }
 0x654   : > { %v6706_v40 = vpop.f32.mrf.mxu0  ;;  %v5938_v5 = vpop.f32.mrf.mxu1 }
 0x655   : > { %v12260_v13 = vadd.f32 %v6706_v40, %v6617_v14  ;;  %v12263_v2 = vadd.f32 %v5938_v5, %v12143_v54  ;;  %v9378_v40 = vld [vmem:[#allocation2 + $0xa0] sm:$0xf0] }
 0x656   : > { %v6622_v15 = vpop.f32.mrf.mxu3 }
 0x657   : > { %13253 = vst [vmem:[#allocation34_spill] sm:$0xff] %v12263_v2 }
 0x65c   : > { %v6708_v10 = vpop.f32.mrf.mxu0  ;;  %v5941_v41 = vpop.f32.mrf.mxu1 }
 0x65d   : > { %v12265_v61 = vadd.f32 %v6708_v10, %v6619_v49  ;;  %v12268_v56 = vadd.f32 %v5941_v41, %v12145_v60  ;;  %v8768_v10 = vld [vmem:[#allocation2 + $0x98] sm:$0xf] }
 0x65e   : > { %v6624_v54 = vpop.f32.mrf.mxu3  ;;  %v8769_v60 = vor.u32 %v9378_v40, %v8768_v10 }
 0x65f   : > { %6769 = vmatmul.bf16.gmra.mxu1 %v8757_v38  ;;  %v9381_v38 = vld [vmem:[#allocation2 + $0xb8] sm:$0xf0] }
 0x664   : > { %v6711_v1 = vpop.f32.mrf.mxu0  ;;  %v5943_v14 = vpop.f32.mrf.mxu1 }
 0x665   : > { %v12270_v0 = vadd.f32 %v6711_v1, %v6622_v15  ;;  %v12273_v42 = vadd.f32 %v5943_v14, %v12147_v22  ;;  %v8780_v14 = vld [vmem:[#allocation2 + $0xb0] sm:$0xf] }
 0x666   : > { %v6627_v41 = vpop.f32.mrf.mxu3 }
 0x66c   : > { %v6713_v23 = vpop.f32.mrf.mxu0  ;;  %v5946_v5 = vpop.f32.mrf.mxu1 }
 0x66d   : > { %v12275_v49 = vadd.f32 %v6713_v23, %v6624_v54  ;;  %v12278_v2 = vadd.f32 %v5946_v5, %v12149_v18  ;;  %v8781_v23 = vor.u32 %v9381_v38, %v8780_v14  ;;  %v9384_v5 = vld [vmem:[#allocation2 + $0xd0] sm:$0xf0]  ;;  %v8804_v38 = vld [vmem:[#allocation2 + $0xe0] sm:$0xf] }
 0x66f   : > { %6774 = vmatmul.bf16.gmra.mxu1 %v8769_v60  ;;  %v8792_v60 = vld [vmem:[#allocation2 + $0xc8] sm:$0xf] }
 0x674   : > { %v6716_v25 = vpop.f32.mrf.mxu0  ;;  %v5948_v31 = vpop.f32.mrf.mxu1 }
 0x675   : > { %v12280_v15 = vadd.f32 %v6716_v25, %v6627_v41  ;;  %v12283_v22 = vadd.f32 %v5948_v31, %v12151_v32  ;;  %v8793_v32 = vor.u32 %v9384_v5, %v8792_v60  ;;  %v8816_v5 = vld [vmem:[#allocation2 + $0xf8] sm:$0xf] }
 0x67c   : > { %v5951_v1 = vpop.f32.mrf.mxu1 }
 0x67d   : > { %v12286_v54 = vadd.f32 %v5951_v1, %v12153_v4  ;;  %v9387_v4 = vld [vmem:[#allocation2 + $0xe8] sm:$0xf0] }
 0x67f   : > { %6779 = vmatmul.bf16.gmra.mxu1 %v8781_v23 }
 0x684   : > { %v5953_v18 = vpop.f32.mrf.mxu1 }
 0x685   : > { %v12289_v40 = vadd.f32 %v5953_v18, %v12155_v55  ;;  %v8805_v55 = vor.u32 %v9387_v4, %v8804_v38 }
 0x68c   : > { %v5956_v10 = vpop.f32.mrf.mxu1 }
 0x68d   : > { %v12292_v41 = vadd.f32 %v5956_v10, %v12160_v20  ;;  %v9390_v20 = vld [vmem:[#allocation2 + $0x100] sm:$0xf0] }
 0x68f   : > { %6784 = vmatmul.bf16.gmra.mxu1 %v8793_v32  ;;  %v8817_v32 = vor.u32 %v9390_v20, %v8816_v5 }
 0x694   : > { %v5958_v25 = vpop.f32.mrf.mxu1 }
 0x695   : > { %v12295_v31 = vadd.f32 %v5958_v25, %v12165_v24 }
 0x69c   : > { %v5961_v1 = vpop.f32.mrf.mxu1 }
 0x69d   : > { %v12298_v14 = vadd.f32 %v5961_v1, %v12170_v46  ;;  %v9393_v1 = vld [vmem:[#allocation2 + $0x118] sm:$0xf0] }
 0x69f   : > { %6789 = vmatmul.bf16.gmra.mxu1 %v8805_v55 }
 0x6a4   : > { %v5963_v23 = vpop.f32.mrf.mxu1 }
 0x6a5   : > { %v12301_v18 = vadd.f32 %v5963_v23, %v12175_v26  ;;  %v8828_v26 = vld [vmem:[#allocation2 + $0x110] sm:$0xf] }
 0x6a6   : > { %v8829_v23 = vor.u32 %v9393_v1, %v8828_v26 }
 0x6a7   : > { %13254 = vst [vmem:[#allocation15_spill] sm:$0xff] %v12301_v18 }
 0x6ac   : > { %v6755_v10 = vpop.f32.mrf.mxu1 }
 0x6ad   : > { %v6756_v60 = vadd.f32 %v6755_v10, %v12180_v47 }
 0x6af   : > { %v12305_v24 = vadd.f32 %v6756_v60, %v12158_v43  ;;  %6794 = vmatmul.bf16.gmra.mxu1 %v8817_v32 }
 0x6b4   : > { %v6757_v25 = vpop.f32.mrf.mxu1 }
 0x6b5   : > { %v6758_v46 = vadd.f32 %v6757_v25, %v12185_v57  ;;  %v9396_v57 = vld [vmem:[#allocation2 + $0x130] sm:$0xf0] }
 0x6b7   : > { %v12309_v4 = vadd.f32 %v6758_v46, %v12163_v34  ;;  %v8840_v34 = vld [vmem:[#allocation2 + $0x128] sm:$0xf] }
 0x6b8   : > { %v8841_v60 = vor.u32 %v9396_v57, %v8840_v34 }
 0x6bc   : > { %v6760_v38 = vpop.f32.mrf.mxu1 }
 0x6bd   : > { %v6761_v55 = vadd.f32 %v6760_v38, %v12190_v8 }
 0x6bf   : > { %v12313_v18 = vadd.f32 %v6761_v55, %v12168_v58  ;;  %6799 = vmatmul.bf16.gmra.mxu1 %v8829_v23 }
 0x6c4   : > { %v6762_v47 = vpop.f32.mrf.mxu1 }
 0x6c5   : > { %v6763_v43 = vadd.f32 %v6762_v47, %v12195_v44  ;;  %v9399_v44 = vld [vmem:[#allocation2 + $0x148] sm:$0xf0] }
 0x6c7   : > { %v12317_v20 = vadd.f32 %v6763_v43, %v12173_v33  ;;  %v8852_v33 = vld [vmem:[#allocation2 + $0x140] sm:$0xf] }
 0x6c8   : > { %v8853_v38 = vor.u32 %v9399_v44, %v8852_v33 }
 0x6cc   : > { %v6765_v10 = vpop.f32.mrf.mxu1 }
 0x6cd   : > { %v6766_v5 = vadd.f32 %v6765_v10, %v12200_v11 }
 0x6cf   : > { %v12321_v32 = vadd.f32 %v6766_v5, %v12178_v16  ;;  %6804 = vmatmul.bf16.gmra.mxu1 %v8841_v60 }
 0x6d4   : > { %v6767_v8 = vpop.f32.mrf.mxu1 }
 0x6d5   : > { %v6768_v58 = vadd.f32 %v6767_v8, %v12205_v35  ;;  %v9402_v35 = vld [vmem:[#allocation2 + $0x160] sm:$0xf0] }
 0x6d7   : > { %v12325_v25 = vadd.f32 %v6768_v58, %v12183_v19  ;;  %v8864_v19 = vld [vmem:[#allocation2 + $0x158] sm:$0xf] }
 0x6d8   : > { %v8865_v43 = vor.u32 %v9402_v35, %v8864_v19 }
 0x6dc   : > { %v6770_v46 = vpop.f32.mrf.mxu1 }
 0x6dd   : > { %v6771_v1 = vadd.f32 %v6770_v46, %v12210_v27 }
 0x6df   : > { %v12329_v26 = vadd.f32 %v6771_v1, %v12188_v3  ;;  %6809 = vmatmul.bf16.gmra.mxu1 %v8853_v38 }
 0x6e4   : > { %v6772_v11 = vpop.f32.mrf.mxu1 }
 0x6e5   : > { %v6773_v16 = vadd.f32 %v6772_v11, %v12215_v6  ;;  %v9405_v6 = vld [vmem:[#allocation2 + $0x178] sm:$0xf0] }
 0x6e7   : > { %v12333_v55 = vadd.f32 %v6773_v16, %v12193_v52  ;;  %v8876_v52 = vld [vmem:[#allocation2 + $0x170] sm:$0xf] }
 0x6e8   : > { %v8877_v60 = vor.u32 %v9405_v6, %v8876_v52  ;;  %v12377_v6 = vpop.f32.mrf.mxu0 }
 0x6ec   : > { %v6775_v23 = vpop.f32.mrf.mxu1 }
 0x6ed   : > { %v6776_v47 = vadd.f32 %v6775_v23, %v12220_v37 }
 0x6ef   : > { %v12337_v57 = vadd.f32 %v6776_v47, %v12198_v63  ;;  %6814 = vmatmul.bf16.gmra.mxu1 %v8865_v43 }
 0x6f4   : > { %v6777_v27 = vpop.f32.mrf.mxu1 }
 0x6f5   : > { %v6778_v3 = vadd.f32 %v6777_v27, %v12225_v12  ;;  %v9408_v12 = vld [vmem:[#allocation2 + $0x190] sm:$0xf0]  ;;  %v13258_v27 = vld [vmem:[#allocation16_spill] sm:$0xff] }
 0x6f7   : > { %v12341_v10 = vadd.f32 %v6778_v3, %v12203_v48  ;;  %v8888_v48 = vld [vmem:[#allocation2 + $0x188] sm:$0xf] }
 0x6f8   : > { %v8889_v33 = vor.u32 %v9408_v12, %v8888_v48 }
 0x6fc   : > { %v6780_v34 = vpop.f32.mrf.mxu1 }
 0x6fd   : > { %v6781_v5 = vadd.f32 %v6780_v34, %v12230_v59 }
 0x6ff   : > { %v12345_v8 = vadd.f32 %v6781_v5, %v12208_v45  ;;  %6819 = vmatmul.bf16.gmra.mxu1 %v8877_v60  ;;  %v12388_v5 = vpop.f32.mrf.mxu0  ;;  %v13259_v60 = vld [vmem:[#allocation33_spill] sm:$0xff] }
 0x704   : > { %v6782_v37 = vpop.f32.mrf.mxu1 }
 0x705   : > { %v6783_v63 = vadd.f32 %v6782_v37, %v12235_v7  ;;  %v9411_v7 = vld [vmem:[#allocation2 + $0x1a8] sm:$0xf0] }
 0x707   : > { %v12349_v58 = vadd.f32 %v6783_v63, %v12213_v9  ;;  %v8900_v9 = vld [vmem:[#allocation2 + $0x1a0] sm:$0xf]  ;;  %v12401_v48 = vpop.f32.mrf.mxu0 }
 0x708   : > { %v8901_v35 = vor.u32 %v9411_v7, %v8900_v9 }
 0x70c   : > { %v6785_v44 = vpop.f32.mrf.mxu1 }
 0x70d   : > { %v6786_v46 = vadd.f32 %v6785_v44, %v12240_v50 }
 0x70f   : > { %v12353_v1 = vadd.f32 %v6786_v46, %v12218_v36  ;;  %6824 = vmatmul.bf16.gmra.mxu1 %v8889_v33  ;;  %v6904_v33 = vmul.f32 %v12305_v24, %v12305_v24 }
 0x711   : > { %13255 = vst [vmem:[#allocation35_spill] sm:$0xff] %v12353_v1 }
 0x714   : > { %v6787_v59 = vpop.f32.mrf.mxu1 }
 0x715   : > { %v6788_v45 = vadd.f32 %v6787_v59, %v12245_v28  ;;  %v6906_v59 = vmul.f32 %v12313_v18, %v12313_v18 }
 0x717   : > { %v12357_v38 = vadd.f32 %v6788_v45, %v12223_v51 }
 0x719   : > { %13256 = vst [vmem:[#allocation24_spill] sm:$0xff] %v12357_v38 }
 0x71c   : > { %v6790_v11 = vpop.f32.mrf.mxu1 }
 0x71d   : > { %v6791_v16 = vadd.f32 %v6790_v11, %v12250_v17 }
 0x71f   : > { %v12361_v23 = vadd.f32 %v6791_v16, %v12228_v53  ;;  %6829 = vmatmul.bf16.gmra.mxu1 %v8901_v35  ;;  %v12375_v53 = vpop.f32.mrf.mxu3  ;;  %v6908_v16 = vmul.f32 %v12321_v32, %v12321_v32 }
 0x721   : > { %13257 = vst [vmem:[#allocation20_spill] sm:$0xff] %v12361_v23 }
 0x724   : > { %v6792_v50 = vpop.f32.mrf.mxu1 }
 0x725   : > { %v6793_v36 = vadd.f32 %v6792_v50, %v12255_v21 }
 0x727   : > { %v12365_v19 = vadd.f32 %v6793_v36, %v12233_v62  ;;  %v12385_v52 = vpop.f32.mrf.mxu3  ;;  %v12421_v36 = vpop.f32.mrf.mxu0 }
 0x72c   : > { %v6795_v28 = vpop.f32.mrf.mxu1 }
 0x72d   : > { %v6796_v51 = vadd.f32 %v6795_v28, %v12260_v13  ;;  %v12383_v13 = vpop.f32.mrf.mxu2 }
 0x72f   : > { %v12369_v47 = vadd.f32 %v6796_v51, %v12238_v30  ;;  %v12396_v44 = vpop.f32.mrf.mxu3  ;;  %v6909_v51 = vmul.f32 %v12325_v25, %v12325_v25 }
 0x734   : > { %v6797_v43 = vpop.f32.mrf.mxu1 }
 0x735   : > { %v6798_v17 = vadd.f32 %v6797_v43, %v12265_v61  ;;  %v12393_v63 = vpop.f32.mrf.mxu2 }
 0x737   : > { %v12373_v3 = vadd.f32 %v6798_v17, %v13258_v27  ;;  %v12418_v35 = vpop.f32.mrf.mxu3  ;;  %v6910_v27 = vmul.f32 %v12329_v26, %v12329_v26 }
 0x73c   : > { %v6800_v21 = vpop.f32.mrf.mxu1 }
 0x73d   : > { %v6801_v62 = vadd.f32 %v6800_v21, %v12270_v0  ;;  %v12405_v46 = vpop.f32.mrf.mxu2 }
 0x73f   : > { %v12381_v34 = vadd.f32 %v6801_v62, %v12248_v29 }
 0x744   : > { %v6802_v30 = vpop.f32.mrf.mxu1 }
 0x745   : > { %v6803_v61 = vadd.f32 %v6802_v30, %v12275_v49  ;;  %v6905_v49 = vmul.f32 %v12309_v4, %v12309_v4  ;;  %v12429_v30 = vpop.f32.mrf.mxu2 }
 0x747   : > { %v12391_v37 = vadd.f32 %v6803_v61, %v13259_v60  ;;  %v6936_v7 = vadd.f32 %v6905_v49, %v6904_v33  ;;  %v6911_v60 = vmul.f32 %v12333_v55, %v12333_v55  ;;  %v6912_v49 = vmul.f32 %v12337_v57, %v12337_v57 }
 0x749   : > { %v6937_v9 = vadd.f32 %v6936_v7, %v6906_v59  ;;  %v6639_v7 = vpop.f32.mrf.mxu3 }
 0x74c   : > { %v6805_v12 = vpop.f32.mrf.mxu1 }
 0x74d   : > { %v6806_v0 = vadd.f32 %v6805_v12, %v12280_v15  ;;  %v6867_v15 = vadd.f32 %v12309_v4, %v12305_v24 }
 0x74f   : > { %v12399_v29 = vadd.f32 %v6806_v0, %v12258_v39  ;;  %v6907_v39 = vmul.f32 %v12317_v20, %v12317_v20  ;;  %v6868_v11 = vadd.f32 %v6867_v15, %v12313_v18  ;;  %v6913_v15 = vmul.f32 %v12341_v10, %v12341_v10 }
 0x751   : > { %v6869_v50 = vadd.f32 %v6868_v11, %v12317_v20  ;;  %v6938_v28 = vadd.f32 %v6937_v9, %v6907_v39  ;;  %v6728_v11 = vpop.f32.mrf.mxu0 }
 0x753   : > { %v6870_v43 = vadd.f32 %v6869_v50, %v12321_v32  ;;  %v6939_v17 = vadd.f32 %v6938_v28, %v6908_v16  ;;  %v6914_v16 = vmul.f32 %v12345_v8, %v12345_v8 }
 0x754   : > { %v6807_v45 = vpop.f32.mrf.mxu1 }
 0x755   : > { %v6871_v62 = vadd.f32 %v6870_v43, %v12325_v25  ;;  %v6940_v61 = vadd.f32 %v6939_v17, %v6909_v51  ;;  %v6915_v43 = vmul.f32 %v12349_v58, %v12349_v58 }
 0x757   : > { %v6872_v12 = vadd.f32 %v6871_v62, %v12329_v26  ;;  %v6941_v0 = vadd.f32 %v6940_v61, %v6910_v27  ;;  %v6037_v27 = vpop.f32.mrf.mxu2  ;;  %v6916_v61 = vmul.f32 %v12353_v1, %v12353_v1 }
 0x759   : > { %v6873_v33 = vadd.f32 %v6872_v12, %v12333_v55  ;;  %v6942_v59 = vadd.f32 %v6941_v0, %v6911_v60  ;;  %v6917_v0 = vmul.f32 %v12357_v38, %v12357_v38 }
 0x75b   : > { %v6874_v39 = vadd.f32 %v6873_v33, %v12337_v57  ;;  %v6943_v9 = vadd.f32 %v6942_v59, %v6912_v49  ;;  %v6918_v59 = vmul.f32 %v12361_v23, %v12361_v23 }
 0x75c   : > { %v6810_v21 = vpop.f32.mrf.mxu1 }
 0x75d   : > { %v6875_v28 = vadd.f32 %v6874_v39, %v12341_v10  ;;  %v6944_v51 = vadd.f32 %v6943_v9, %v6913_v15  ;;  %v6642_v39 = vpop.f32.mrf.mxu3 }
 0x75f   : > { %v6876_v17 = vadd.f32 %v6875_v28, %v12345_v8  ;;  %v6945_v62 = vadd.f32 %v6944_v51, %v6914_v16  ;;  %v6731_v16 = vpop.f32.mrf.mxu0  ;;  %v6919_v51 = vmul.f32 %v12365_v19, %v12365_v19 }
 0x761   : > { %v6877_v60 = vadd.f32 %v6876_v17, %v12349_v58  ;;  %v6946_v12 = vadd.f32 %v6945_v62, %v6915_v43  ;;  %v6920_v62 = vmul.f32 %v12369_v47, %v12369_v47 }
 0x763   : > { %v6878_v49 = vadd.f32 %v6877_v60, %v12353_v1  ;;  %v6947_v33 = vadd.f32 %v6946_v12, %v6916_v61  ;;  %v6719_v61 = vadd.f32 %v12377_v6, %v12375_v53  ;;  %v6040_v12 = vpop.f32.mrf.mxu2  ;;  %v6724_v6 = vadd.f32 %v12401_v48, %v12396_v44 }
 0x764   : > { %v6812_v50 = vpop.f32.mrf.mxu1  ;;  %v6033_v44 = vadd.f32 %v12405_v46, %v12273_v42 }
 0x765   : > { %v6879_v9 = vadd.f32 %v6878_v49, %v12357_v38  ;;  %v6948_v28 = vadd.f32 %v6947_v33, %v6917_v0  ;;  %v6921_v49 = vmul.f32 %v12373_v3, %v12373_v3  ;;  %v6722_v0 = vadd.f32 %v12388_v5, %v12385_v52  ;;  %v13260_v38 = vld [vmem:[#allocation34_spill] sm:$0xff] }
 0x766   : > { %v6028_v53 = vadd.f32 %v12383_v13, %v13260_v38  ;;  %v6031_v52 = vadd.f32 %v12393_v63, %v12268_v56  ;;  %v6813_v13 = vadd.f32 %v6812_v50, %v6724_v6  ;;  %v6924_v56 = vmul.f32 %v12399_v29, %v12399_v29 }
 0x767   : > { %v6880_v43 = vadd.f32 %v6879_v9, %v12361_v23  ;;  %v6949_v17 = vadd.f32 %v6948_v28, %v6918_v59  ;;  %v6808_v9 = vadd.f32 %v6807_v45, %v6719_v61  ;;  %v6922_v28 = vmul.f32 %v12381_v34, %v12381_v34  ;;  %v6733_v48 = vpop.f32.mrf.mxu0 }
 0x768   : > { %v6727_v45 = vadd.f32 %v12421_v36, %v12418_v35  ;;  %v6729_v63 = vadd.f32 %v6728_v11, %v6639_v7  ;;  %v6036_v36 = vadd.f32 %v12429_v30, %v12278_v2  ;;  %v12496_v46 = vadd.f32 %v6813_v13, %v6033_v44 }
 0x769   : > { %v6881_v60 = vadd.f32 %v6880_v43, %v12365_v19  ;;  %v6950_v1 = vadd.f32 %v6949_v17, %v6919_v51  ;;  %v6811_v43 = vadd.f32 %v6810_v21, %v6722_v0  ;;  %v6644_v17 = vpop.f32.mrf.mxu3  ;;  %v12482_v38 = vadd.f32 %v6808_v9, %v6028_v53 }
 0x76a   : > { %v6038_v7 = vadd.f32 %v6037_v27, %v12283_v22 }
 0x76b   : > { %v6882_v33 = vadd.f32 %v6881_v60, %v12369_v47  ;;  %v6951_v59 = vadd.f32 %v6950_v1, %v6920_v62  ;;  %v6923_v1 = vmul.f32 %v12391_v37, %v12391_v37  ;;  %v12489_v60 = vadd.f32 %v6811_v43, %v6031_v52  ;;  %v6042_v11 = vpop.f32.mrf.mxu2 }
 0x76c   : > { %v6815_v15 = vpop.f32.mrf.mxu1  ;;  %v6925_v42 = vmul.f32 %v12482_v38, %v12482_v38 }
 0x76d   : > { %v6883_v51 = vadd.f32 %v6882_v33, %v12373_v3  ;;  %v6952_v5 = vadd.f32 %v6951_v59, %v6921_v49  ;;  %v6816_v35 = vadd.f32 %v6815_v15, %v6727_v45  ;;  %v6732_v49 = vadd.f32 %v6731_v16, %v6642_v39 }
 0x76e   : > { %v6926_v2 = vmul.f32 %v12489_v60, %v12489_v60  ;;  %v6041_v16 = vadd.f32 %v6040_v12, %v12286_v54 }
 0x76f   : > { %v6884_v62 = vadd.f32 %v6883_v51, %v12381_v34  ;;  %v6953_v21 = vadd.f32 %v6952_v5, %v6922_v28  ;;  %v12502_v30 = vadd.f32 %v6816_v35, %v6036_v36  ;;  %v6736_v5 = vpop.f32.mrf.mxu0 }
 0x771   : > { %v6885_v61 = vadd.f32 %v6884_v62, %v12391_v37  ;;  %v6954_v0 = vadd.f32 %v6953_v21, %v6923_v1  ;;  %v6647_v27 = vpop.f32.mrf.mxu3  ;;  %v6928_v43 = vmul.f32 %v12502_v30, %v12502_v30  ;;  %v6734_v1 = vadd.f32 %v6733_v48, %v6644_v17 }
 0x772   : > { %v6043_v62 = vadd.f32 %v6042_v11, %v12289_v40 }
 0x773   : > { %v6886_v50 = vadd.f32 %v6885_v61, %v12399_v29  ;;  %v6955_v9 = vadd.f32 %v6954_v0, %v6924_v56  ;;  %v6045_v61 = vpop.f32.mrf.mxu2  ;;  %v6737_v0 = vadd.f32 %v6736_v5, %v6647_v27 }
 0x774   : > { %v6817_v23 = vpop.f32.mrf.mxu1  ;;  %v6046_v11 = vadd.f32 %v6045_v61, %v12292_v41 }
 0x775   : > { %v6818_v33 = vadd.f32 %v6817_v23, %v6729_v63  ;;  %v6887_v15 = vadd.f32 %v6886_v50, %v12482_v38  ;;  %v6956_v28 = vadd.f32 %v6955_v9, %v6925_v42  ;;  %v6927_v23 = vmul.f32 %v12496_v46, %v12496_v46 }
 0x777   : > { %v6888_v53 = vadd.f32 %v6887_v15, %v12489_v60  ;;  %v12508_v22 = vadd.f32 %v6818_v33, %v6038_v7  ;;  %v6957_v6 = vadd.f32 %v6956_v28, %v6926_v2  ;;  %v6738_v33 = vpop.f32.mrf.mxu0 }
 0x779   : > { %v6889_v51 = vadd.f32 %v6888_v53, %v12496_v46  ;;  %v6958_v54 = vadd.f32 %v6957_v6, %v6927_v23  ;;  %v6929_v45 = vmul.f32 %v12508_v22, %v12508_v22  ;;  %v6649_v50 = vpop.f32.mrf.mxu3 }
 0x77b   : > { %v6890_v12 = vadd.f32 %v6889_v51, %v12502_v30  ;;  %v6959_v44 = vadd.f32 %v6958_v54, %v6928_v43  ;;  %v6047_v15 = vpop.f32.mrf.mxu2 }
 0x77c   : > { %v6820_v59 = vpop.f32.mrf.mxu1  ;;  %v6048_v23 = vadd.f32 %v6047_v15, %v12295_v31 }
 0x77d   : > { %v6821_v39 = vadd.f32 %v6820_v59, %v6732_v49  ;;  %v6891_v21 = vadd.f32 %v6890_v12, %v12508_v22  ;;  %v6960_v35 = vadd.f32 %v6959_v44, %v6929_v45 }
 0x77f   : > { %v12513_v52 = vadd.f32 %v6821_v39, %v6041_v16  ;;  %v6739_v16 = vadd.f32 %v6738_v33, %v6649_v50  ;;  %v6741_v51 = vpop.f32.mrf.mxu0 }
 0x781   : > { %v6930_v56 = vmul.f32 %v12513_v52, %v12513_v52  ;;  %v6892_v17 = vadd.f32 %v6891_v21, %v12513_v52  ;;  %v6652_v6 = vpop.f32.mrf.mxu3 }
 0x782   : > { %v6742_v54 = vadd.f32 %v6741_v51, %v6652_v6 }
 0x783   : > { %v6961_v36 = vadd.f32 %v6960_v35, %v6930_v56 }
 0x784   : > { %v6822_v13 = vpop.f32.mrf.mxu1 }
 0x785   : > { %v6823_v63 = vadd.f32 %v6822_v13, %v6734_v1  ;;  %v6050_v1 = vpop.f32.mrf.mxu2 }
 0x787   : > { %v12523_v48 = vadd.f32 %v6823_v63, %v6043_v62  ;;  %v6051_v62 = vadd.f32 %v6050_v1, %v12298_v14  ;;  %v6743_v21 = vpop.f32.mrf.mxu0 }
 0x789   : > { %v6893_v49 = vadd.f32 %v6892_v17, %v12523_v48  ;;  %v6931_v40 = vmul.f32 %v12523_v48, %v12523_v48  ;;  %v6654_v31 = vpop.f32.mrf.mxu3 }
 0x78a   : > { %v6744_v61 = vadd.f32 %v6743_v21, %v6654_v31 }
 0x78b   : > { %v6962_v42 = vadd.f32 %v6961_v36, %v6931_v40 }
 0x78c   : > { %v6825_v7 = vpop.f32.mrf.mxu1 }
 0x78d   : > { %v6826_v9 = vadd.f32 %v6825_v7, %v6737_v0  ;;  %v6052_v17 = vpop.f32.mrf.mxu2 }
 0x78f   : > { %v12529_v59 = vadd.f32 %v6826_v9, %v6046_v11 }
 0x791   : > { %v6894_v2 = vadd.f32 %v6893_v49, %v12529_v59  ;;  %v6932_v39 = vmul.f32 %v12529_v59, %v12529_v59  ;;  %v13261_v49 = vld [vmem:[#allocation15_spill] sm:$0xff] }
 0x792   : > { %v6053_v40 = vadd.f32 %v6052_v17, %v13261_v49 }
 0x793   : > { %v6963_v28 = vadd.f32 %v6962_v42, %v6932_v39 }
 0x794   : > { %v6827_v53 = vpop.f32.mrf.mxu1 }
 0x795   : > { %v6828_v27 = vadd.f32 %v6827_v53, %v6739_v16 }
 0x797   : > { %v12535_v43 = vadd.f32 %v6828_v27, %v6048_v23 }
 0x799   : > { %v6895_v41 = vadd.f32 %v6894_v2, %v12535_v43  ;;  %v6933_v5 = vmul.f32 %v12535_v43, %v12535_v43 }
 0x79b   : > { %v6964_v12 = vadd.f32 %v6963_v28, %v6933_v5 }
 0x79c   : > { %v6830_v45 = vpop.f32.mrf.mxu1 }
 0x79d   : > { %v6831_v13 = vadd.f32 %v6830_v45, %v6742_v54 }
 0x79f   : > { %v12541_v44 = vadd.f32 %v6831_v13, %v6051_v62 }
 0x7a1   : > { %v6896_v56 = vadd.f32 %v6895_v41, %v12541_v44  ;;  %v6934_v63 = vmul.f32 %v12541_v44, %v12541_v44 }
 0x7a3   : > { %v6965_v35 = vadd.f32 %v6964_v12, %v6934_v63 }
 0x7a4   : > { %v6832_v36 = vpop.f32.mrf.mxu1 }
 0x7a5   : > { %v6833_v0 = vadd.f32 %v6832_v36, %v6744_v61 }
 0x7a7   : > { %v12547_v50 = vadd.f32 %v6833_v0, %v6053_v40 }
 0x7a9   : > { %v6897_v14 = vadd.f32 %v6896_v56, %v12547_v50  ;;  %v6935_v42 = vmul.f32 %v12547_v50, %v12547_v50 }
 0x7ab   : > { %v6898_v33 = vrot.slane %v6897_v14, 4  ;;  %v6966_v7 = vadd.f32 %v6965_v35, %v6935_v42 }
 0x7ad   : > { %v6899_v11 = vadd.f32 %v6898_v33, %v6897_v14  ;;  %v6967_v9 = vrot.slane %v6966_v7, 4 }
 0x7af   : > { %v6900_v15 = vrot.slane %v6899_v11, 2  ;;  %v6968_v2 = vadd.f32 %v6967_v9, %v6966_v7 }
 0x7b1   : > { %v6901_v39 = vadd.f32 %v6900_v15, %v6899_v11  ;;  %v6969_v16 = vrot.slane %v6968_v2, 2 }
 0x7b3   : > { %v6902_v28 = vrot.slane %v6901_v39, 1  ;;  %v6970_v53 = vadd.f32 %v6969_v16, %v6968_v2 }
 0x7b5   : > { %v6903_v23 = vadd.f32 %v6902_v28, %v6901_v39  ;;  %v6971_v27 = vrot.slane %v6970_v53, 1  ;;  %v7084_v28 = vld [vmem:[%s9822_s30 + $0xf8] sm:$0xff] }
 0x7b7   : > { %v6972_v6 = vadd.f32 %v6971_v27, %v6970_v53  ;;  %v12552_v51 = vmul.f32 0.00390625, %v6903_v23 }
 0x7b9   : > { %v6974_v41 = vmul.f32 0.00390625, %v6972_v6  ;;  %v6975_v5 = vmul.f32 %v12552_v51, %v12552_v51  ;;  %v7009_v1 = vsub.f32 %v12547_v50, %v12552_v51  ;;  %v7004_v62 = vsub.f32 %v12513_v52, %v12552_v51  ;;  %v7058_v52 = vld [vmem:[%s9822_s30 + $0x28] sm:$0xff] }
 0x7ba   : > { %v7005_v13 = vsub.f32 %v12523_v48, %v12552_v51  ;;  %v7006_v31 = vsub.f32 %v12529_v59, %v12552_v51  ;;  %v7007_v21 = vsub.f32 %v12535_v43, %v12552_v51  ;;  %v7008_v56 = vsub.f32 %v12541_v44, %v12552_v51  ;;  %v7060_v43 = vld [vmem:[%s9822_s30 + $0x38] sm:$0xff]  ;;  %v7062_v44 = vld [vmem:[%s9822_s30 + $0x48] sm:$0xff] }
 0x7bb   : > { %v6976_v54 = vsub.f32 %v6974_v41, %v6975_v5  ;;  %v6978_v17 = vsub.f32 %v12305_v24, %v12552_v51  ;;  %v6979_v36 = vsub.f32 %v12309_v4, %v12552_v51  ;;  %v6980_v49 = vsub.f32 %v12313_v18, %v12552_v51 }
 0x7bc   : > { %v6981_v40 = vsub.f32 %v12317_v20, %v12552_v51  ;;  %v6982_v50 = vsub.f32 %v12321_v32, %v12552_v51  ;;  %v6983_v14 = vsub.f32 %v12325_v25, %v12552_v51  ;;  %v6984_v42 = vsub.f32 %v12329_v26, %v12552_v51  ;;  %v13262_v25 = vld [vmem:[#allocation35_spill] sm:$0xff] }
 0x7bd   : > { %v6977_v12 = vmax.f32 %v6976_v54, 0.0  ;;  %v6985_v24 = vsub.f32 %v12333_v55, %v12552_v51  ;;  %v6986_v4 = vsub.f32 %v12337_v57, %v12552_v51  ;;  %v6987_v18 = vsub.f32 %v12341_v10, %v12552_v51  ;;  %v13263_v55 = vld [vmem:[#allocation24_spill] sm:$0xff] }
 0x7be   : > { %v6988_v20 = vsub.f32 %v12345_v8, %v12552_v51  ;;  %v6989_v32 = vsub.f32 %v12349_v58, %v12552_v51  ;;  %v6990_v26 = vsub.f32 %v13262_v25, %v12552_v51  ;;  %v6991_v7 = vsub.f32 %v13263_v55, %v12552_v51  ;;  %v13264_v57 = vld [vmem:[#allocation20_spill] sm:$0xff] }
 0x7bf   : > { %v7010_v45 = vadd.f32 1e-05, %v6977_v12  ;;  %v6992_v11 = vsub.f32 %v13264_v57, %v12552_v51  ;;  %v6993_v10 = vsub.f32 %v12365_v19, %v12552_v51  ;;  %v6994_v8 = vsub.f32 %v12369_v47, %v12552_v51 }
 0x7c0   : > { %v6995_v58 = vsub.f32 %v12373_v3, %v12552_v51  ;;  %v6996_v15 = vsub.f32 %v12381_v34, %v12552_v51  ;;  %v6997_v2 = vsub.f32 %v12391_v37, %v12552_v51  ;;  %v6998_v39 = vsub.f32 %v12399_v29, %v12552_v51 }
 0x7c1   : > { %9528 = vrsqrt.f32 %v7010_v45  ;;  %vm7017_vm3 = vweird.f32 %v7010_v45  ;;  %v6999_v19 = vsub.f32 %v12482_v38, %v12552_v51  ;;  %v7000_v47 = vsub.f32 %v12489_v60, %v12552_v51 }
 0x7c2   : > { %v7001_v3 = vsub.f32 %v12496_v46, %v12552_v51  ;;  %v7002_v34 = vsub.f32 %v12502_v30, %v12552_v51  ;;  %v7003_v37 = vsub.f32 %v12508_v22, %v12552_v51 }
 0x7c7   : > { %v9529_v63 = vpop.eup %9528 }
 0x7c8   : > { %v7012_v61 = vmul.f32 %v9529_v63, %v7010_v45  ;;  %vm7018_vm2 = vweird.f32 %v9529_v63 }
 0x7c9   : > { %vm7019_vm4 = vmor %vm7017_vm3, %vm7018_vm2 }
 0x7ca   : > { %v7013_v35 = vmul.f32 %v9529_v63, %v7012_v61 }
 0x7cc   : > { %v7014_v0 = vmul.f32 0.5, %v7013_v35 }
 0x7ce   : > { %v7015_v33 = vsub.f32 1.5, %v7014_v0 }
 0x7d0   : > { %v7016_v9 = vmul.f32 %v9529_v63, %v7015_v33 }
 0x7d2   : > { %v7020_v16 = vsel %vm7019_vm4, %v9529_v63, %v7016_v9  ;;  %v7064_v9 = vld [vmem:[%s9822_s30 + $0x58] sm:$0xff] }
 0x7d3   : > { %v7052_v53 = vmul.f32 %v7020_v16, %v7009_v1  ;;  %v7021_v29 = vmul.f32 %v7020_v16, %v6978_v17  ;;  %v7022_v23 = vmul.f32 %v7020_v16, %v6979_v36  ;;  %v7023_v27 = vmul.f32 %v7020_v16, %v6980_v49  ;;  %v7053_v36 = vld [vmem:[%s9822_s30] sm:$0xff]  ;;  %v7054_v49 = vld [vmem:[%s9822_s30 + $0x8] sm:$0xff] }
 0x7d4   : > { %v7024_v38 = vmul.f32 %v7020_v16, %v6981_v40  ;;  %v7025_v6 = vmul.f32 %v7020_v16, %v6982_v50  ;;  %v7026_v41 = vmul.f32 %v7020_v16, %v6983_v14  ;;  %v7027_v60 = vmul.f32 %v7020_v16, %v6984_v42  ;;  %v7055_v40 = vld [vmem:[%s9822_s30 + $0x10] sm:$0xff] }
 0x7d5   : > { %v7116_v5 = vadd.f32 %v7084_v28, %v7052_v53  ;;  %v7028_v46 = vmul.f32 %v7020_v16, %v6985_v24  ;;  %v7029_v54 = vmul.f32 %v7020_v16, %v6986_v4  ;;  %v7030_v12 = vmul.f32 %v7020_v16, %v6987_v18  ;;  %v7056_v24 = vld [vmem:[%s9822_s30 + $0x18] sm:$0xff]  ;;  %v7070_v53 = vld [vmem:[%s9822_s30 + $0x88] sm:$0xff] }
 0x7d6   : > { %v7031_v30 = vmul.f32 %v7020_v16, %v6988_v20  ;;  %v7032_v45 = vmul.f32 %v7020_v16, %v6989_v32  ;;  %v7033_v22 = vmul.f32 %v7020_v16, %v6990_v26  ;;  %v7034_v1 = vmul.f32 %v7020_v16, %v6991_v7  ;;  %v7057_v32 = vld [vmem:[%s9822_s30 + $0x20] sm:$0xff]  ;;  %v7068_v28 = vld [vmem:[%s9822_s30 + $0x78] sm:$0xff] }
 0x7d7   : > { %7148 = vst [vmem:[%s12623_s18 + $0xf8] sm:$0xff] %v7116_v5  ;;  %v7035_v63 = vmul.f32 %v7020_v16, %v6992_v11  ;;  %v7036_v61 = vmul.f32 %v7020_v16, %v6993_v10  ;;  %v12626_v35 = vmul.f32 %v7020_v16, %v6994_v8  ;;  %v12628_v17 = vmul.f32 %v7020_v16, %v6995_v58  ;;  %v7061_v11 = vld [vmem:[%s9822_s30 + $0x40] sm:$0xff]  ;;  %v7074_v5 = vld [vmem:[%s9822_s30 + $0xa8] sm:$0xff] }
 0x7d8   : > { %v12633_v0 = vmul.f32 %v7020_v16, %v6996_v15  ;;  %v12635_v50 = vmul.f32 %v7020_v16, %v6997_v2  ;;  %v12637_v14 = vmul.f32 %v7020_v16, %v6998_v39  ;;  %v12639_v42 = vmul.f32 %v7020_v16, %v6999_v19  ;;  %v7065_v15 = vld [vmem:[%s9822_s30 + $0x60] sm:$0xff]  ;;  %v7066_v39 = vld [vmem:[%s9822_s30 + $0x68] sm:$0xff] }
 0x7d9   : > { %v12642_v4 = vmul.f32 %v7020_v16, %v7000_v47  ;;  %v12644_v18 = vmul.f32 %v7020_v16, %v7001_v3  ;;  %v12646_v20 = vmul.f32 %v7020_v16, %v7002_v34  ;;  %v12648_v33 = vmul.f32 %v7020_v16, %v7003_v37  ;;  %v7067_v47 = vld [vmem:[%s9822_s30 + $0x70] sm:$0xff]  ;;  %v7069_v34 = vld [vmem:[%s9822_s30 + $0x80] sm:$0xff] }
 0x7da   : > { %v12654_v25 = vmul.f32 %v7020_v16, %v7004_v62  ;;  %v12659_v26 = vmul.f32 %v7020_v16, %v7005_v13  ;;  %v12664_v55 = vmul.f32 %v7020_v16, %v7006_v31  ;;  %v12669_v7 = vmul.f32 %v7020_v16, %v7007_v21  ;;  %v7059_v31 = vld [vmem:[%s9822_s30 + $0x30] sm:$0xff] }
 0x7db   : > { %v12675_v48 = vmul.f32 %v7020_v16, %v7008_v56  ;;  %v7085_v62 = vadd.f32 %v7053_v36, %v7021_v29  ;;  %v7086_v13 = vadd.f32 %v7054_v49, %v7022_v23  ;;  %v7087_v59 = vadd.f32 %v7055_v40, %v7023_v27  ;;  %v7063_v56 = vld [vmem:[%s9822_s30 + $0x50] sm:$0xff]  ;;  %v7080_v36 = vld [vmem:[%s9822_s30 + $0xd8] sm:$0xff]  ;;  %v7081_v40 = vld [vmem:[%s9822_s30 + $0xe0] sm:$0xff] }
 0x7dc   : > { %v7088_v57 = vadd.f32 %v7056_v24, %v7024_v38  ;;  %v7089_v21 = vadd.f32 %v7057_v32, %v7025_v6  ;;  %v7090_v10 = vadd.f32 %v7058_v52, %v7026_v41  ;;  %v7091_v51 = vadd.f32 %v7059_v31, %v7027_v60  ;;  %v7071_v23 = vld [vmem:[%s9822_s30 + $0x90] sm:$0xff]  ;;  %v7072_v38 = vld [vmem:[%s9822_s30 + $0x98] sm:$0xff]  ;;  %v7073_v41 = vld [vmem:[%s9822_s30 + $0xa0] sm:$0xff] }
 0x7dd   : > { %7117 = vst [vmem:[%s12623_s18] sm:$0xff] %v7085_v62  ;;  %v7092_v8 = vadd.f32 %v7060_v43, %v7028_v46  ;;  %v7093_v58 = vadd.f32 %v7061_v11, %v7029_v54  ;;  %v7094_v2 = vadd.f32 %v7062_v44, %v7030_v12  ;;  %v7095_v19 = vadd.f32 %v7063_v56, %v7031_v30  ;;  %v7075_v54 = vld [vmem:[%s9822_s30 + $0xb0] sm:$0xff]  ;;  %v7076_v30 = vld [vmem:[%s9822_s30 + $0xb8] sm:$0xff] }
 0x7de   : > { %7118 = vst [vmem:[%s12623_s18 + $0x8] sm:$0xff] %v7086_v13  ;;  %v7096_v16 = vadd.f32 %v7064_v9, %v7032_v45  ;;  %v7097_v3 = vadd.f32 %v7065_v15, %v7033_v22  ;;  %v7098_v37 = vadd.f32 %v7066_v39, %v7034_v1  ;;  %v7099_v29 = vadd.f32 %v7067_v47, %v7035_v63  ;;  %v7077_v22 = vld [vmem:[%s9822_s30 + $0xc0] sm:$0xff]  ;;  %v7078_v63 = vld [vmem:[%s9822_s30 + $0xc8] sm:$0xff] }
 0x7df   : > { %7119 = vst [vmem:[%s12623_s18 + $0x10] sm:$0xff] %v7087_v59  ;;  %v7100_v27 = vadd.f32 %v7068_v28, %v7036_v61  ;;  %v7101_v6 = vadd.f32 %v7069_v34, %v12626_v35  ;;  %v7102_v60 = vadd.f32 %v7070_v53, %v12628_v17  ;;  %v7103_v46 = vadd.f32 %v7071_v23, %v12633_v0  ;;  %v7079_v35 = vld [vmem:[%s9822_s30 + $0xd0] sm:$0xff] }
 0x7e0   : > { %7120 = vst [vmem:[%s12623_s18 + $0x18] sm:$0xff] %v7088_v57  ;;  %v7104_v12 = vadd.f32 %v7072_v38, %v12635_v50  ;;  %v7105_v45 = vadd.f32 %v7073_v41, %v12637_v14  ;;  %v7106_v1 = vadd.f32 %v7074_v5, %v12639_v42  ;;  %v7107_v61 = vadd.f32 %v7075_v54, %v12642_v4  ;;  %v7082_v50 = vld [vmem:[%s9822_s30 + $0xe8] sm:$0xff]  ;;  %v7083_v42 = vld [vmem:[%s9822_s30 + $0xf0] sm:$0xff] }
 0x7e1   : > { %7121 = vst [vmem:[%s12623_s18 + $0x20] sm:$0xff] %v7089_v21  ;;  %v7108_v17 = vadd.f32 %v7076_v30, %v12644_v18  ;;  %v7109_v49 = vadd.f32 %v7077_v22, %v12646_v20  ;;  %v7110_v0 = vadd.f32 %v7078_v63, %v12648_v33  ;;  %v7111_v14 = vadd.f32 %v7079_v35, %v12654_v25 }
 0x7e2   : > { %7122 = vst [vmem:[%s12623_s18 + $0x28] sm:$0xff] %v7090_v10  ;;  %v7112_v24 = vadd.f32 %v7080_v36, %v12659_v26  ;;  %v7113_v4 = vadd.f32 %v7081_v40, %v12664_v55  ;;  %v7114_v18 = vadd.f32 %v7082_v50, %v12669_v7  ;;  %v7115_v20 = vadd.f32 %v7083_v42, %v12675_v48 }
 0x7e3   : > { %7123 = vst [vmem:[%s12623_s18 + $0x30] sm:$0xff] %v7091_v51 }
 0x7e4   : > { %7124 = vst [vmem:[%s12623_s18 + $0x38] sm:$0xff] %v7092_v8 }
 0x7e5   : > { %7125 = vst [vmem:[%s12623_s18 + $0x40] sm:$0xff] %v7093_v58 }
 0x7e6   : > { %7126 = vst [vmem:[%s12623_s18 + $0x48] sm:$0xff] %v7094_v2 }
 0x7e7   : > { %7127 = vst [vmem:[%s12623_s18 + $0x50] sm:$0xff] %v7095_v19 }
 0x7e8   : > { %7128 = vst [vmem:[%s12623_s18 + $0x58] sm:$0xff] %v7096_v16 }
 0x7e9   : > { %7129 = vst [vmem:[%s12623_s18 + $0x60] sm:$0xff] %v7097_v3 }
 0x7ea   : > { %7130 = vst [vmem:[%s12623_s18 + $0x68] sm:$0xff] %v7098_v37 }
 0x7eb   : > { %7131 = vst [vmem:[%s12623_s18 + $0x70] sm:$0xff] %v7099_v29 }
 0x7ec   : > { %7132 = vst [vmem:[%s12623_s18 + $0x78] sm:$0xff] %v7100_v27 }
 0x7ed   : > { %7133 = vst [vmem:[%s12623_s18 + $0x80] sm:$0xff] %v7101_v6 }
 0x7ee   : > { %7134 = vst [vmem:[%s12623_s18 + $0x88] sm:$0xff] %v7102_v60 }
 0x7ef   : > { %7135 = vst [vmem:[%s12623_s18 + $0x90] sm:$0xff] %v7103_v46 }
 0x7f0   : > { %7136 = vst [vmem:[%s12623_s18 + $0x98] sm:$0xff] %v7104_v12 }
 0x7f1   : > { %7137 = vst [vmem:[%s12623_s18 + $0xa0] sm:$0xff] %v7105_v45 }
 0x7f2   : > { %7138 = vst [vmem:[%s12623_s18 + $0xa8] sm:$0xff] %v7106_v1 }
 0x7f3   : > { %7139 = vst [vmem:[%s12623_s18 + $0xb0] sm:$0xff] %v7107_v61 }
 0x7f4   : > { %7140 = vst [vmem:[%s12623_s18 + $0xb8] sm:$0xff] %v7108_v17 }
 0x7f5   : > { %7141 = vst [vmem:[%s12623_s18 + $0xc0] sm:$0xff] %v7109_v49 }
 0x7f6   : > { %7142 = vst [vmem:[%s12623_s18 + $0xc8] sm:$0xff] %v7110_v0 }
 0x7f7   : > { %7143 = vst [vmem:[%s12623_s18 + $0xd0] sm:$0xff] %v7111_v14 }
 0x7f8   : > { %7144 = vst [vmem:[%s12623_s18 + $0xd8] sm:$0xff] %v7112_v24 }
 0x7f9   : > { %7145 = vst [vmem:[%s12623_s18 + $0xe0] sm:$0xff] %v7113_v4 }
 0x7fa   : > { %7146 = vst [vmem:[%s12623_s18 + $0xe8] sm:$0xff] %v7114_v18 }
 0x7fb   : > { %7147 = vst [vmem:[%s12623_s18 + $0xf0] sm:$0xff] %v7115_v20 }
 0x7fc   : > { %9647 = shalt.err (!%p9644_p10)
}
 0x7fd   : > { %s9698_s22 = smov 128   ;;  %s9699_s24 = smov 8  }
 0x7fe   : > { %9463 = dma.vmem_to_hbm [thread:$0]  (%p9786_p3), %s7163_s28, 4096, %s7165_s29, %s7150_s4, %s9698_s22, %s9698_s22, %s9699_s24  }
 0x7ff PF: > { %s7179_s25 = sand.u32 1, %s9678_s12   ;;  %p13265_p12 = scmp.ge.s32.totalorder %s9690_s15, 2 }
 0x800   : > { %s7180_s30 = scalar_lea.sflag [#allocation5], %s7179_s25 }
 0x801   : > { %p9477_p13 = pnand %p13265_p12, %p9755_p6 }
 0x803   : > { %p9478_p0 = pneg %p9477_p13 }
 0x805   : > { %9673 = dma.done.wait (%p9478_p0), %s7180_s30, 4096  }
 0x806   : > { %9675 = vsyncadd (%p9478_p0), %s7180_s30, 4294963200  ;;  %p17_p5 = scmp.ge.s32.totalorder %s9776_s6, 4   ;;  %s13266_s12 = smov %s9682_s13 }
 0x807   : > { %s13267_s13 = smov %s9686_s14  ;;  %s13268_s14 = smov %s9792_s10 }
 0x808   : > { %s13269_s15 = smov %s9776_s6  ;;  %19 = sbr.rel (!%p17_p5) target bundleno = 6 (0x6), region = 93 }
 0x80d   :  { %7186 = vsyncpa [#allocation4], 1 }
 0x80e   :  { %7188 = vsyncpa [#allocation4 + $0x1], 1 }
 0x80f   :  { %7189 = vsyncpa [#allocation7], 1 }
 0x810   :  { %7190 = vsyncpa [#allocation5], 1 }
 0x811   :  { %7192 = vsyncpa [#allocation5 + $0x1], 1 }

</bundles_post_ra>
